<compile_context>
chip_gen: v7x
topology: tpu7x:2x2x1
jax: 0.10.0
libtpu: 0.0.40
codegen_flags: <defaults>
</compile_context>

<pallas_src>
import jax
import jax.numpy as jnp
from jax.experimental import pallas as pl
from jax.experimental.pallas import tpu as pltpu

CIN_PAD = 8      # conv1 input channels padded 3 -> 8 (MXU-K / sublane alignment)
COUT_PAD = 128   # conv3 output channels padded 3 -> 128 (lane-dense store)


def _make_fused_cnn(N, H, W, dtype):
    """Builds the fused 3-layer conv+ReLU kernel for an (N, 3, H, W) input."""
    H1, W1 = H - 2, W - 2        # conv1/conv2 valid output spatial (14, 14)
    Hc1, Wc1 = H + 2, W + 2      # conv1 padded-input canvas (18, 18)
    Wc2 = W                      # conv2/conv3 padded-input canvas width (16)
    P1 = (H1 - 1) * Wc1 + W1     # rows of conv1 "wide" output (248)
    P2 = (H1 - 1) * Wc2 + W1     # rows of conv2 "wide" output (222)

    def kernel(x_ref, w1_ref, b1_ref, w2_ref, b2_ref, w3_ref, b3_ref,
               o_ref, acc1_ref, a1p_ref, acc2_ref, a2p_ref):
        f32 = jnp.float32

        # ---- conv1: 5x5, Cin 8(padded) -> 128, as 25 shifted GEMMs ---------
        # x_ref[0] is the zero-padded image flattened to (Hc1*Wc1, 8); a
        # spatial shift (kh, kw) is the flattened row offset kh*Wc1 + kw.
        # Rows whose canvas column >= W1 are wrap-around garbage and are never
        # read back; valid output (i, j) lives at row i*Wc1 + j.
        acc1_ref[...] = jnp.zeros_like(acc1_ref)
        for kh in range(5):
            for kw in range(5):
                off = kh * Wc1 + kw
                w_k = w1_ref[(kh * 5 + kw) * CIN_PAD:
                             (kh * 5 + kw + 1) * CIN_PAD, :]          # (8, 128)
                acc1_ref[...] += jnp.dot(x_ref[0, off:off + P1, :], w_k,
                                         preferred_element_type=f32)

        # bias + ReLU, scatter the valid 14x14 rows into a zeroed 16x16
        # canvas (conv2's padded input), which stays in VMEM.
        a1p_ref[...] = jnp.zeros_like(a1p_ref)
        b1 = b1_ref[...]
        for i in range(H1):
            row = jnp.maximum(acc1_ref[i * Wc1:i * Wc1 + W1, :] + b1, 0.0)
            dst = (i + 1) * Wc2 + 1
            a1p_ref[dst:dst + W1, :] = row

        # ---- conv2: 3x3, 128 -> 64, as 9 shifted GEMMs (K=128, MXU-friendly)
        acc2_ref[...] = jnp.zeros_like(acc2_ref)
        for kh in range(3):
            for kw in range(3):
                off = kh * Wc2 + kw
                w_k = w2_ref[(kh * 3 + kw) * 128:
                             (kh * 3 + kw + 1) * 128, :]              # (128, 64)
                acc2_ref[...] += jnp.dot(a1p_ref[off:off + P2, :], w_k,
                                         preferred_element_type=f32)

        a2p_ref[...] = jnp.zeros_like(a2p_ref)
        b2 = b2_ref[...]
        for i in range(H1):
            row = jnp.maximum(acc2_ref[i * Wc2:i * Wc2 + W1, :] + b2, 0.0)
            dst = (i + 1) * Wc2 + 1
            a2p_ref[dst:dst + W1, :] = row

        # ---- conv3: 1x1 with pad=1 == plain GEMM on the padded canvas ------
        out = jnp.dot(a2p_ref[...], w3_ref[...], preferred_element_type=f32)
        out = jnp.maximum(out + b3_ref[...], 0.0)
        o_ref[0] = out.astype(o_ref.dtype)            # lane-dense (H*W, 128)

    return pl.pallas_call(
        kernel,
        out_shape=jax.ShapeDtypeStruct((N, H * W, COUT_PAD), dtype),
        grid=(N,),
        in_specs=[
            pl.BlockSpec((1, Hc1 * Wc1, CIN_PAD), lambda n: (n, 0, 0)),  # x
            pl.BlockSpec((5 * 5 * CIN_PAD, 128), lambda n: (0, 0)),      # w1
            pl.BlockSpec((1, 128), lambda n: (0, 0)),                    # b1
            pl.BlockSpec((3 * 3 * 128, 64), lambda n: (0, 0)),           # w2
            pl.BlockSpec((1, 64), lambda n: (0, 0)),                     # b2
            pl.BlockSpec((64, COUT_PAD), lambda n: (0, 0)),              # w3
            pl.BlockSpec((1, COUT_PAD), lambda n: (0, 0)),               # b3
        ],
        out_specs=pl.BlockSpec((1, H * W, COUT_PAD), lambda n: (n, 0, 0)),
        scratch_shapes=[
            pltpu.VMEM((P1, 128), jnp.float32),      # conv1 wide accumulator
            pltpu.VMEM((H * W, 128), jnp.float32),   # conv2 padded-input canvas
            pltpu.VMEM((P2, 64), jnp.float32),       # conv2 wide accumulator
            pltpu.VMEM((H * W, 64), jnp.float32),    # conv3 padded-input canvas
        ],
        compiler_params=pltpu.CompilerParams(
            dimension_semantics=("parallel",)),
    )


@jax.jit
def cnn_forward(x_nchw, w1, b1, w2, b2, w3, b3):
    N, Cin, H, W = x_nchw.shape
    dtype = x_nchw.dtype

    # One-time tiny input prep: NCHW -> NHWC, zero-pad spatial by 1 and
    # channels Cin -> 8, flatten to the (Hc1*Wc1, 8) canvas the kernel expects.
    x = jnp.transpose(x_nchw, (0, 2, 3, 1))
    x = jnp.pad(x, ((0, 0), (1, 1), (1, 1), (0, CIN_PAD - Cin)))
    x = x.reshape(N, (H + 2) * (W + 2), CIN_PAD)

    # GEMM-friendly weight layouts (K axis ordered (kh, kw, cin)).
    w1p = jnp.pad(w1, ((0, 0), (0, 0), (0, CIN_PAD - Cin), (0, 0)))
    w1p = w1p.reshape(5 * 5 * CIN_PAD, 128)
    b1p = b1.reshape(1, 128)
    w2p = w2.reshape(3 * 3 * 128, 64)
    b2p = b2.reshape(1, 64)
    w3p = jnp.pad(w3.reshape(64, 3), ((0, 0), (0, COUT_PAD - 3)))
    b3p = jnp.pad(b3, (0, COUT_PAD - 3)).reshape(1, COUT_PAD)

    fused = _make_fused_cnn(N, H, W, dtype)
    y = fused(x, w1p, b1p, w2p, b2p, w3p, b3p)         # (N, H*W, 128)

    # Slice the 3 real channels out of the lane-dense slab -> NCHW.
    y = y[:, :, :3].reshape(N, H, W, 3)
    return jnp.transpose(y, (0, 3, 1, 2))


def _init_conv_params(key, kh, kw, cin, cout):
    # deterministic synthetic init (PyTorch-like uniform(-1/sqrt(fan_in), ...))
    kw_key, kb_key = jax.random.split(key)
    fan_in = kh * kw * cin
    bound = 1.0 / (fan_in ** 0.5)
    w = jax.random.uniform(kw_key, (kh, kw, cin, cout), jnp.float32, -bound, bound)
    b = jax.random.uniform(kb_key, (cout,), jnp.float32, -bound, bound)
    return w, b


class CNNPallas:
    """Pallas port of the PyTorch CNN module (single fused kernel forward)."""

    def __init__(self, key):
        k1, k2, k3 = jax.random.split(key, 3)
        self.w1, self.b1 = _init_conv_params(k1, 5, 5, 3, 128)   # conv1
        self.w2, self.b2 = _init_conv_params(k2, 3, 3, 128, 64)  # conv2
        self.w3, self.b3 = _init_conv_params(k3, 1, 1, 64, 3)    # conv3

    def __call__(self, x_nchw):
        return cnn_forward(x_nchw, self.w1, self.b1, self.w2, self.b2,
                           self.w3, self.b3)


def _ref_conv_relu(x_nchw, w_hwio, b, pad):
    y = jax.lax.conv_general_dilated(
        x_nchw, w_hwio, window_strides=(1, 1),
        padding=[(pad, pad), (pad, pad)],
        dimension_numbers=("NCHW", "HWIO", "NCHW"),
        precision=jax.lax.Precision.HIGHEST)
    return jax.nn.relu(y + b[None, :, None, None])


if __name__ == "__main__":
    key = jax.random.PRNGKey(0)
    kx, kp = jax.random.split(key)

    x = jax.random.normal(kx, (2, 3, 16, 16), jnp.float32)   # NCHW, like PyTorch
    model = CNNPallas(kp)

    y = jax.block_until_ready(model(x))
    assert y.shape == (2, 3, 16, 16), y.shape   # 16 -> 14 -> 14 -> 16

    # correctness check vs XLA reference conv
    ref = _ref_conv_relu(x, model.w1, model.b1, 1)
    ref = _ref_conv_relu(ref, model.w2, model.b2, 1)
    ref = _ref_conv_relu(ref, model.w3, model.b3, 1)
    max_err = float(jnp.max(jnp.abs(y - ref)))
    assert max_err < 1e-2, f"max abs error too large: {max_err}"

    print("KERNEL_OK")
</pallas_src>

<mosaic_0001>
module attributes {stable_mosaic.version = 11 : i64} {
  func.func @kernel(%arg0: i32, %arg1: memref<1x324x8xf32, #tpu.memory_space<vmem>>, %arg2: memref<200x128xf32, #tpu.memory_space<vmem>>, %arg3: memref<1x128xf32, #tpu.memory_space<vmem>>, %arg4: memref<1152x64xf32, #tpu.memory_space<vmem>>, %arg5: memref<1x64xf32, #tpu.memory_space<vmem>>, %arg6: memref<64x128xf32, #tpu.memory_space<vmem>>, %arg7: memref<1x128xf32, #tpu.memory_space<vmem>>, %arg8: memref<1x256x128xf32, #tpu.memory_space<vmem>>, %arg9: memref<248x128xf32, #tpu.memory_space<vmem>>, %arg10: memref<256x128xf32, #tpu.memory_space<vmem>>, %arg11: memref<222x64xf32, #tpu.memory_space<vmem>>, %arg12: memref<256x64xf32, #tpu.memory_space<vmem>>) attributes {dimension_semantics = [#tpu.dimension_semantics<parallel>], iteration_bounds = array<i64: 2>, scalar_prefetch = 0 : i64, scratch_operands = 4 : i64, tpu.core_type = #tpu.core_type<tc>, window_params = [{transform_indices = @transform_0, window_bounds = array<i64: 1, 324, 8>}, {pipeline_mode = #tpu.pipeline_mode<synchronous>, transform_indices = @transform_1, window_bounds = array<i64: 200, 128>}, {pipeline_mode = #tpu.pipeline_mode<synchronous>, transform_indices = @transform_2, window_bounds = array<i64: 1, 128>}, {pipeline_mode = #tpu.pipeline_mode<synchronous>, transform_indices = @transform_3, window_bounds = array<i64: 1152, 64>}, {pipeline_mode = #tpu.pipeline_mode<synchronous>, transform_indices = @transform_4, window_bounds = array<i64: 1, 64>}, {pipeline_mode = #tpu.pipeline_mode<synchronous>, transform_indices = @transform_5, window_bounds = array<i64: 64, 128>}, {pipeline_mode = #tpu.pipeline_mode<synchronous>, transform_indices = @transform_6, window_bounds = array<i64: 1, 128>}, {transform_indices = @transform_7, window_bounds = array<i64: 1, 256, 128>}]} {
    %cst = arith.constant 0.000000e+00 : f32
    %0 = vector.broadcast %cst : f32 to vector<248x128xf32>
    %c0 = arith.constant 0 : index
    %c0_0 = arith.constant 0 : index
    %1 = vector.load %arg9[%c0, %c0_0] : memref<248x128xf32, #tpu.memory_space<vmem>>, vector<248x128xf32>
    tpu.vector_store %arg9[%c0, %c0_0], %0 {strides = array<i32>} : memref<248x128xf32, #tpu.memory_space<vmem>>, vector<248x128xf32>,
    %c0_1 = arith.constant 0 : index
    %c0_2 = arith.constant 0 : index
    %2 = vector.load %arg2[%c0_1, %c0_2] : memref<200x128xf32, #tpu.memory_space<vmem>>, vector<8x128xf32>
    %c0_3 = arith.constant 0 : index
    %c0_4 = arith.constant 0 : index
    %3 = vector.load %arg9[%c0_3, %c0_4] : memref<248x128xf32, #tpu.memory_space<vmem>>, vector<248x128xf32>
    %c0_5 = arith.constant 0 : index
    %c0_6 = arith.constant 0 : index
    %c0_7 = arith.constant 0 : index
    %4 = vector.load %arg1[%c0_5, %c0_6, %c0_7] : memref<1x324x8xf32, #tpu.memory_space<vmem>>, vector<1x248x8xf32>
    %5 = vector.shape_cast %4 : vector<1x248x8xf32> to vector<248x8xf32>
    %cst_8 = arith.constant dense<0.000000e+00> : vector<248x128xf32>
    %6 = tpu.matmul %5, %2, %cst_8 {dimension_numbers = #tpu.dot_dimension_numbers<[1], [0], [0], [1], [0, 0, 1, 1], [], []>} : vector<248x8xf32>, vector<8x128xf32>, vector<248x128xf32> -> vector<248x128xf32>
    %7 = arith.addf %3, %6 : vector<248x128xf32>
    %c0_9 = arith.constant 0 : index
    %c0_10 = arith.constant 0 : index
    %8 = vector.load %arg9[%c0_9, %c0_10] : memref<248x128xf32, #tpu.memory_space<vmem>>, vector<248x128xf32>
    tpu.vector_store %arg9[%c0_9, %c0_10], %7 {strides = array<i32>} : memref<248x128xf32, #tpu.memory_space<vmem>>, vector<248x128xf32>,
    %c8 = arith.constant 8 : index
    %c0_11 = arith.constant 0 : index
    %9 = vector.load %arg2[%c8, %c0_11] : memref<200x128xf32, #tpu.memory_space<vmem>>, vector<8x128xf32>
    %c0_12 = arith.constant 0 : index
    %c0_13 = arith.constant 0 : index
    %10 = vector.load %arg9[%c0_12, %c0_13] : memref<248x128xf32, #tpu.memory_space<vmem>>, vector<248x128xf32>
    %c0_14 = arith.constant 0 : index
    %c1 = arith.constant 1 : index
    %c0_15 = arith.constant 0 : index
    %11 = vector.load %arg1[%c0_14, %c1, %c0_15] : memref<1x324x8xf32, #tpu.memory_space<vmem>>, vector<1x248x8xf32>
    %12 = vector.shape_cast %11 : vector<1x248x8xf32> to vector<248x8xf32>
    %cst_16 = arith.constant dense<0.000000e+00> : vector<248x128xf32>
    %13 = tpu.matmul %12, %9, %cst_16 {dimension_numbers = #tpu.dot_dimension_numbers<[1], [0], [0], [1], [0, 0, 1, 1], [], []>} : vector<248x8xf32>, vector<8x128xf32>, vector<248x128xf32> -> vector<248x128xf32>
    %14 = arith.addf %10, %13 : vector<248x128xf32>
    %c0_17 = arith.constant 0 : index
    %c0_18 = arith.constant 0 : index
    %15 = vector.load %arg9[%c0_17, %c0_18] : memref<248x128xf32, #tpu.memory_space<vmem>>, vector<248x128xf32>
    tpu.vector_store %arg9[%c0_17, %c0_18], %14 {strides = array<i32>} : memref<248x128xf32, #tpu.memory_space<vmem>>, vector<248x128xf32>,
    %c16 = arith.constant 16 : index
    %c0_19 = arith.constant 0 : index
    %16 = vector.load %arg2[%c16, %c0_19] : memref<200x128xf32, #tpu.memory_space<vmem>>, vector<8x128xf32>
    %c0_20 = arith.constant 0 : index
    %c0_21 = arith.constant 0 : index
    %17 = vector.load %arg9[%c0_20, %c0_21] : memref<248x128xf32, #tpu.memory_space<vmem>>, vector<248x128xf32>
    %c0_22 = arith.constant 0 : index
    %c2 = arith.constant 2 : index
    %c0_23 = arith.constant 0 : index
    %18 = vector.load %arg1[%c0_22, %c2, %c0_23] : memref<1x324x8xf32, #tpu.memory_space<vmem>>, vector<1x248x8xf32>
    %19 = vector.shape_cast %18 : vector<1x248x8xf32> to vector<248x8xf32>
    %cst_24 = arith.constant dense<0.000000e+00> : vector<248x128xf32>
    %20 = tpu.matmul %19, %16, %cst_24 {dimension_numbers = #tpu.dot_dimension_numbers<[1], [0], [0], [1], [0, 0, 1, 1], [], []>} : vector<248x8xf32>, vector<8x128xf32>, vector<248x128xf32> -> vector<248x128xf32>
    %21 = arith.addf %17, %20 : vector<248x128xf32>
    %c0_25 = arith.constant 0 : index
    %c0_26 = arith.constant 0 : index
    %22 = vector.load %arg9[%c0_25, %c0_26] : memref<248x128xf32, #tpu.memory_space<vmem>>, vector<248x128xf32>
    tpu.vector_store %arg9[%c0_25, %c0_26], %21 {strides = array<i32>} : memref<248x128xf32, #tpu.memory_space<vmem>>, vector<248x128xf32>,
    %c24 = arith.constant 24 : index
    %c0_27 = arith.constant 0 : index
    %23 = vector.load %arg2[%c24, %c0_27] : memref<200x128xf32, #tpu.memory_space<vmem>>, vector<8x128xf32>
    %c0_28 = arith.constant 0 : index
    %c0_29 = arith.constant 0 : index
    %24 = vector.load %arg9[%c0_28, %c0_29] : memref<248x128xf32, #tpu.memory_space<vmem>>, vector<248x128xf32>
    %c0_30 = arith.constant 0 : index
    %c3 = arith.constant 3 : index
    %c0_31 = arith.constant 0 : index
    %25 = vector.load %arg1[%c0_30, %c3, %c0_31] : memref<1x324x8xf32, #tpu.memory_space<vmem>>, vector<1x248x8xf32>
    %26 = vector.shape_cast %25 : vector<1x248x8xf32> to vector<248x8xf32>
    %cst_32 = arith.constant dense<0.000000e+00> : vector<248x128xf32>
    %27 = tpu.matmul %26, %23, %cst_32 {dimension_numbers = #tpu.dot_dimension_numbers<[1], [0], [0], [1], [0, 0, 1, 1], [], []>} : vector<248x8xf32>, vector<8x128xf32>, vector<248x128xf32> -> vector<248x128xf32>
    %28 = arith.addf %24, %27 : vector<248x128xf32>
    %c0_33 = arith.constant 0 : index
    %c0_34 = arith.constant 0 : index
    %29 = vector.load %arg9[%c0_33, %c0_34] : memref<248x128xf32, #tpu.memory_space<vmem>>, vector<248x128xf32>
    tpu.vector_store %arg9[%c0_33, %c0_34], %28 {strides = array<i32>} : memref<248x128xf32, #tpu.memory_space<vmem>>, vector<248x128xf32>,
    %c32 = arith.constant 32 : index
    %c0_35 = arith.constant 0 : index
    %30 = vector.load %arg2[%c32, %c0_35] : memref<200x128xf32, #tpu.memory_space<vmem>>, vector<8x128xf32>
    %c0_36 = arith.constant 0 : index
    %c0_37 = arith.constant 0 : index
    %31 = vector.load %arg9[%c0_36, %c0_37] : memref<248x128xf32, #tpu.memory_space<vmem>>, vector<248x128xf32>
    %c0_38 = arith.constant 0 : index
    %c4 = arith.constant 4 : index
    %c0_39 = arith.constant 0 : index
    %32 = vector.load %arg1[%c0_38, %c4, %c0_39] : memref<1x324x8xf32, #tpu.memory_space<vmem>>, vector<1x248x8xf32>
    %33 = vector.shape_cast %32 : vector<1x248x8xf32> to vector<248x8xf32>
    %cst_40 = arith.constant dense<0.000000e+00> : vector<248x128xf32>
    %34 = tpu.matmul %33, %30, %cst_40 {dimension_numbers = #tpu.dot_dimension_numbers<[1], [0], [0], [1], [0, 0, 1, 1], [], []>} : vector<248x8xf32>, vector<8x128xf32>, vector<248x128xf32> -> vector<248x128xf32>
    %35 = arith.addf %31, %34 : vector<248x128xf32>
    %c0_41 = arith.constant 0 : index
    %c0_42 = arith.constant 0 : index
    %36 = vector.load %arg9[%c0_41, %c0_42] : memref<248x128xf32, #tpu.memory_space<vmem>>, vector<248x128xf32>
    tpu.vector_store %arg9[%c0_41, %c0_42], %35 {strides = array<i32>} : memref<248x128xf32, #tpu.memory_space<vmem>>, vector<248x128xf32>,
    %c40 = arith.constant 40 : index
    %c0_43 = arith.constant 0 : index
    %37 = vector.load %arg2[%c40, %c0_43] : memref<200x128xf32, #tpu.memory_space<vmem>>, vector<8x128xf32>
    %c0_44 = arith.constant 0 : index
    %c0_45 = arith.constant 0 : index
    %38 = vector.load %arg9[%c0_44, %c0_45] : memref<248x128xf32, #tpu.memory_space<vmem>>, vector<248x128xf32>
    %c0_46 = arith.constant 0 : index
    %c18 = arith.constant 18 : index
    %c0_47 = arith.constant 0 : index
    %39 = vector.load %arg1[%c0_46, %c18, %c0_47] : memref<1x324x8xf32, #tpu.memory_space<vmem>>, vector<1x248x8xf32>
    %40 = vector.shape_cast %39 : vector<1x248x8xf32> to vector<248x8xf32>
    %cst_48 = arith.constant dense<0.000000e+00> : vector<248x128xf32>
    %41 = tpu.matmul %40, %37, %cst_48 {dimension_numbers = #tpu.dot_dimension_numbers<[1], [0], [0], [1], [0, 0, 1, 1], [], []>} : vector<248x8xf32>, vector<8x128xf32>, vector<248x128xf32> -> vector<248x128xf32>
    %42 = arith.addf %38, %41 : vector<248x128xf32>
    %c0_49 = arith.constant 0 : index
    %c0_50 = arith.constant 0 : index
    %43 = vector.load %arg9[%c0_49, %c0_50] : memref<248x128xf32, #tpu.memory_space<vmem>>, vector<248x128xf32>
    tpu.vector_store %arg9[%c0_49, %c0_50], %42 {strides = array<i32>} : memref<248x128xf32, #tpu.memory_space<vmem>>, vector<248x128xf32>,
    %c48 = arith.constant 48 : index
    %c0_51 = arith.constant 0 : index
    %44 = vector.load %arg2[%c48, %c0_51] : memref<200x128xf32, #tpu.memory_space<vmem>>, vector<8x128xf32>
    %c0_52 = arith.constant 0 : index
    %c0_53 = arith.constant 0 : index
    %45 = vector.load %arg9[%c0_52, %c0_53] : memref<248x128xf32, #tpu.memory_space<vmem>>, vector<248x128xf32>
    %c0_54 = arith.constant 0 : index
    %c19 = arith.constant 19 : index
    %c0_55 = arith.constant 0 : index
    %46 = vector.load %arg1[%c0_54, %c19, %c0_55] : memref<1x324x8xf32, #tpu.memory_space<vmem>>, vector<1x248x8xf32>
    %47 = vector.shape_cast %46 : vector<1x248x8xf32> to vector<248x8xf32>
    %cst_56 = arith.constant dense<0.000000e+00> : vector<248x128xf32>
    %48 = tpu.matmul %47, %44, %cst_56 {dimension_numbers = #tpu.dot_dimension_numbers<[1], [0], [0], [1], [0, 0, 1, 1], [], []>} : vector<248x8xf32>, vector<8x128xf32>, vector<248x128xf32> -> vector<248x128xf32>
    %49 = arith.addf %45, %48 : vector<248x128xf32>
    %c0_57 = arith.constant 0 : index
    %c0_58 = arith.constant 0 : index
    %50 = vector.load %arg9[%c0_57, %c0_58] : memref<248x128xf32, #tpu.memory_space<vmem>>, vector<248x128xf32>
    tpu.vector_store %arg9[%c0_57, %c0_58], %49 {strides = array<i32>} : memref<248x128xf32, #tpu.memory_space<vmem>>, vector<248x128xf32>,
    %c56 = arith.constant 56 : index
    %c0_59 = arith.constant 0 : index
    %51 = vector.load %arg2[%c56, %c0_59] : memref<200x128xf32, #tpu.memory_space<vmem>>, vector<8x128xf32>
    %c0_60 = arith.constant 0 : index
    %c0_61 = arith.constant 0 : index
    %52 = vector.load %arg9[%c0_60, %c0_61] : memref<248x128xf32, #tpu.memory_space<vmem>>, vector<248x128xf32>
    %c0_62 = arith.constant 0 : index
    %c20 = arith.constant 20 : index
    %c0_63 = arith.constant 0 : index
    %53 = vector.load %arg1[%c0_62, %c20, %c0_63] : memref<1x324x8xf32, #tpu.memory_space<vmem>>, vector<1x248x8xf32>
    %54 = vector.shape_cast %53 : vector<1x248x8xf32> to vector<248x8xf32>
    %cst_64 = arith.constant dense<0.000000e+00> : vector<248x128xf32>
    %55 = tpu.matmul %54, %51, %cst_64 {dimension_numbers = #tpu.dot_dimension_numbers<[1], [0], [0], [1], [0, 0, 1, 1], [], []>} : vector<248x8xf32>, vector<8x128xf32>, vector<248x128xf32> -> vector<248x128xf32>
    %56 = arith.addf %52, %55 : vector<248x128xf32>
    %c0_65 = arith.constant 0 : index
    %c0_66 = arith.constant 0 : index
    %57 = vector.load %arg9[%c0_65, %c0_66] : memref<248x128xf32, #tpu.memory_space<vmem>>, vector<248x128xf32>
    tpu.vector_store %arg9[%c0_65, %c0_66], %56 {strides = array<i32>} : memref<248x128xf32, #tpu.memory_space<vmem>>, vector<248x128xf32>,
    %c64 = arith.constant 64 : index
    %c0_67 = arith.constant 0 : index
    %58 = vector.load %arg2[%c64, %c0_67] : memref<200x128xf32, #tpu.memory_space<vmem>>, vector<8x128xf32>
    %c0_68 = arith.constant 0 : index
    %c0_69 = arith.constant 0 : index
    %59 = vector.load %arg9[%c0_68, %c0_69] : memref<248x128xf32, #tpu.memory_space<vmem>>, vector<248x128xf32>
    %c0_70 = arith.constant 0 : index
    %c21 = arith.constant 21 : index
    %c0_71 = arith.constant 0 : index
    %60 = vector.load %arg1[%c0_70, %c21, %c0_71] : memref<1x324x8xf32, #tpu.memory_space<vmem>>, vector<1x248x8xf32>
    %61 = vector.shape_cast %60 : vector<1x248x8xf32> to vector<248x8xf32>
    %cst_72 = arith.constant dense<0.000000e+00> : vector<248x128xf32>
    %62 = tpu.matmul %61, %58, %cst_72 {dimension_numbers = #tpu.dot_dimension_numbers<[1], [0], [0], [1], [0, 0, 1, 1], [], []>} : vector<248x8xf32>, vector<8x128xf32>, vector<248x128xf32> -> vector<248x128xf32>
    %63 = arith.addf %59, %62 : vector<248x128xf32>
    %c0_73 = arith.constant 0 : index
    %c0_74 = arith.constant 0 : index
    %64 = vector.load %arg9[%c0_73, %c0_74] : memref<248x128xf32, #tpu.memory_space<vmem>>, vector<248x128xf32>
    tpu.vector_store %arg9[%c0_73, %c0_74], %63 {strides = array<i32>} : memref<248x128xf32, #tpu.memory_space<vmem>>, vector<248x128xf32>,
    %c72 = arith.constant 72 : index
    %c0_75 = arith.constant 0 : index
    %65 = vector.load %arg2[%c72, %c0_75] : memref<200x128xf32, #tpu.memory_space<vmem>>, vector<8x128xf32>
    %c0_76 = arith.constant 0 : index
    %c0_77 = arith.constant 0 : index
    %66 = vector.load %arg9[%c0_76, %c0_77] : memref<248x128xf32, #tpu.memory_space<vmem>>, vector<248x128xf32>
    %c0_78 = arith.constant 0 : index
    %c22 = arith.constant 22 : index
    %c0_79 = arith.constant 0 : index
    %67 = vector.load %arg1[%c0_78, %c22, %c0_79] : memref<1x324x8xf32, #tpu.memory_space<vmem>>, vector<1x248x8xf32>
    %68 = vector.shape_cast %67 : vector<1x248x8xf32> to vector<248x8xf32>
    %cst_80 = arith.constant dense<0.000000e+00> : vector<248x128xf32>
    %69 = tpu.matmul %68, %65, %cst_80 {dimension_numbers = #tpu.dot_dimension_numbers<[1], [0], [0], [1], [0, 0, 1, 1], [], []>} : vector<248x8xf32>, vector<8x128xf32>, vector<248x128xf32> -> vector<248x128xf32>
    %70 = arith.addf %66, %69 : vector<248x128xf32>
    %c0_81 = arith.constant 0 : index
    %c0_82 = arith.constant 0 : index
    %71 = vector.load %arg9[%c0_81, %c0_82] : memref<248x128xf32, #tpu.memory_space<vmem>>, vector<248x128xf32>
    tpu.vector_store %arg9[%c0_81, %c0_82], %70 {strides = array<i32>} : memref<248x128xf32, #tpu.memory_space<vmem>>, vector<248x128xf32>,
    %c80 = arith.constant 80 : index
    %c0_83 = arith.constant 0 : index
    %72 = vector.load %arg2[%c80, %c0_83] : memref<200x128xf32, #tpu.memory_space<vmem>>, vector<8x128xf32>
    %c0_84 = arith.constant 0 : index
    %c0_85 = arith.constant 0 : index
    %73 = vector.load %arg9[%c0_84, %c0_85] : memref<248x128xf32, #tpu.memory_space<vmem>>, vector<248x128xf32>
    %c0_86 = arith.constant 0 : index
    %c36 = arith.constant 36 : index
    %c0_87 = arith.constant 0 : index
    %74 = vector.load %arg1[%c0_86, %c36, %c0_87] : memref<1x324x8xf32, #tpu.memory_space<vmem>>, vector<1x248x8xf32>
    %75 = vector.shape_cast %74 : vector<1x248x8xf32> to vector<248x8xf32>
    %cst_88 = arith.constant dense<0.000000e+00> : vector<248x128xf32>
    %76 = tpu.matmul %75, %72, %cst_88 {dimension_numbers = #tpu.dot_dimension_numbers<[1], [0], [0], [1], [0, 0, 1, 1], [], []>} : vector<248x8xf32>, vector<8x128xf32>, vector<248x128xf32> -> vector<248x128xf32>
    %77 = arith.addf %73, %76 : vector<248x128xf32>
    %c0_89 = arith.constant 0 : index
    %c0_90 = arith.constant 0 : index
    %78 = vector.load %arg9[%c0_89, %c0_90] : memref<248x128xf32, #tpu.memory_space<vmem>>, vector<248x128xf32>
    tpu.vector_store %arg9[%c0_89, %c0_90], %77 {strides = array<i32>} : memref<248x128xf32, #tpu.memory_space<vmem>>, vector<248x128xf32>,
    %c88 = arith.constant 88 : index
    %c0_91 = arith.constant 0 : index
    %79 = vector.load %arg2[%c88, %c0_91] : memref<200x128xf32, #tpu.memory_space<vmem>>, vector<8x128xf32>
    %c0_92 = arith.constant 0 : index
    %c0_93 = arith.constant 0 : index
    %80 = vector.load %arg9[%c0_92, %c0_93] : memref<248x128xf32, #tpu.memory_space<vmem>>, vector<248x128xf32>
    %c0_94 = arith.constant 0 : index
    %c37 = arith.constant 37 : index
    %c0_95 = arith.constant 0 : index
    %81 = vector.load %arg1[%c0_94, %c37, %c0_95] : memref<1x324x8xf32, #tpu.memory_space<vmem>>, vector<1x248x8xf32>
    %82 = vector.shape_cast %81 : vector<1x248x8xf32> to vector<248x8xf32>
    %cst_96 = arith.constant dense<0.000000e+00> : vector<248x128xf32>
    %83 = tpu.matmul %82, %79, %cst_96 {dimension_numbers = #tpu.dot_dimension_numbers<[1], [0], [0], [1], [0, 0, 1, 1], [], []>} : vector<248x8xf32>, vector<8x128xf32>, vector<248x128xf32> -> vector<248x128xf32>
    %84 = arith.addf %80, %83 : vector<248x128xf32>
    %c0_97 = arith.constant 0 : index
    %c0_98 = arith.constant 0 : index
    %85 = vector.load %arg9[%c0_97, %c0_98] : memref<248x128xf32, #tpu.memory_space<vmem>>, vector<248x128xf32>
    tpu.vector_store %arg9[%c0_97, %c0_98], %84 {strides = array<i32>} : memref<248x128xf32, #tpu.memory_space<vmem>>, vector<248x128xf32>,
    %c96 = arith.constant 96 : index
    %c0_99 = arith.constant 0 : index
    %86 = vector.load %arg2[%c96, %c0_99] : memref<200x128xf32, #tpu.memory_space<vmem>>, vector<8x128xf32>
    %c0_100 = arith.constant 0 : index
    %c0_101 = arith.constant 0 : index
    %87 = vector.load %arg9[%c0_100, %c0_101] : memref<248x128xf32, #tpu.memory_space<vmem>>, vector<248x128xf32>
    %c0_102 = arith.constant 0 : index
    %c38 = arith.constant 38 : index
    %c0_103 = arith.constant 0 : index
    %88 = vector.load %arg1[%c0_102, %c38, %c0_103] : memref<1x324x8xf32, #tpu.memory_space<vmem>>, vector<1x248x8xf32>
    %89 = vector.shape_cast %88 : vector<1x248x8xf32> to vector<248x8xf32>
    %cst_104 = arith.constant dense<0.000000e+00> : vector<248x128xf32>
    %90 = tpu.matmul %89, %86, %cst_104 {dimension_numbers = #tpu.dot_dimension_numbers<[1], [0], [0], [1], [0, 0, 1, 1], [], []>} : vector<248x8xf32>, vector<8x128xf32>, vector<248x128xf32> -> vector<248x128xf32>
    %91 = arith.addf %87, %90 : vector<248x128xf32>
    %c0_105 = arith.constant 0 : index
    %c0_106 = arith.constant 0 : index
    %92 = vector.load %arg9[%c0_105, %c0_106] : memref<248x128xf32, #tpu.memory_space<vmem>>, vector<248x128xf32>
    tpu.vector_store %arg9[%c0_105, %c0_106], %91 {strides = array<i32>} : memref<248x128xf32, #tpu.memory_space<vmem>>, vector<248x128xf32>,
    %c104 = arith.constant 104 : index
    %c0_107 = arith.constant 0 : index
    %93 = vector.load %arg2[%c104, %c0_107] : memref<200x128xf32, #tpu.memory_space<vmem>>, vector<8x128xf32>
    %c0_108 = arith.constant 0 : index
    %c0_109 = arith.constant 0 : index
    %94 = vector.load %arg9[%c0_108, %c0_109] : memref<248x128xf32, #tpu.memory_space<vmem>>, vector<248x128xf32>
    %c0_110 = arith.constant 0 : index
    %c39 = arith.constant 39 : index
    %c0_111 = arith.constant 0 : index
    %95 = vector.load %arg1[%c0_110, %c39, %c0_111] : memref<1x324x8xf32, #tpu.memory_space<vmem>>, vector<1x248x8xf32>
    %96 = vector.shape_cast %95 : vector<1x248x8xf32> to vector<248x8xf32>
    %cst_112 = arith.constant dense<0.000000e+00> : vector<248x128xf32>
    %97 = tpu.matmul %96, %93, %cst_112 {dimension_numbers = #tpu.dot_dimension_numbers<[1], [0], [0], [1], [0, 0, 1, 1], [], []>} : vector<248x8xf32>, vector<8x128xf32>, vector<248x128xf32> -> vector<248x128xf32>
    %98 = arith.addf %94, %97 : vector<248x128xf32>
    %c0_113 = arith.constant 0 : index
    %c0_114 = arith.constant 0 : index
    %99 = vector.load %arg9[%c0_113, %c0_114] : memref<248x128xf32, #tpu.memory_space<vmem>>, vector<248x128xf32>
    tpu.vector_store %arg9[%c0_113, %c0_114], %98 {strides = array<i32>} : memref<248x128xf32, #tpu.memory_space<vmem>>, vector<248x128xf32>,
    %c112 = arith.constant 112 : index
    %c0_115 = arith.constant 0 : index
    %100 = vector.load %arg2[%c112, %c0_115] : memref<200x128xf32, #tpu.memory_space<vmem>>, vector<8x128xf32>
    %c0_116 = arith.constant 0 : index
    %c0_117 = arith.constant 0 : index
    %101 = vector.load %arg9[%c0_116, %c0_117] : memref<248x128xf32, #tpu.memory_space<vmem>>, vector<248x128xf32>
    %c0_118 = arith.constant 0 : index
    %c40_119 = arith.constant 40 : index
    %c0_120 = arith.constant 0 : index
    %102 = vector.load %arg1[%c0_118, %c40_119, %c0_120] : memref<1x324x8xf32, #tpu.memory_space<vmem>>, vector<1x248x8xf32>
    %103 = vector.shape_cast %102 : vector<1x248x8xf32> to vector<248x8xf32>
    %cst_121 = arith.constant dense<0.000000e+00> : vector<248x128xf32>
    %104 = tpu.matmul %103, %100, %cst_121 {dimension_numbers = #tpu.dot_dimension_numbers<[1], [0], [0], [1], [0, 0, 1, 1], [], []>} : vector<248x8xf32>, vector<8x128xf32>, vector<248x128xf32> -> vector<248x128xf32>
    %105 = arith.addf %101, %104 : vector<248x128xf32>
    %c0_122 = arith.constant 0 : index
    %c0_123 = arith.constant 0 : index
    %106 = vector.load %arg9[%c0_122, %c0_123] : memref<248x128xf32, #tpu.memory_space<vmem>>, vector<248x128xf32>
    tpu.vector_store %arg9[%c0_122, %c0_123], %105 {strides = array<i32>} : memref<248x128xf32, #tpu.memory_space<vmem>>, vector<248x128xf32>,
    %c120 = arith.constant 120 : index
    %c0_124 = arith.constant 0 : index
    %107 = vector.load %arg2[%c120, %c0_124] : memref<200x128xf32, #tpu.memory_space<vmem>>, vector<8x128xf32>
    %c0_125 = arith.constant 0 : index
    %c0_126 = arith.constant 0 : index
    %108 = vector.load %arg9[%c0_125, %c0_126] : memref<248x128xf32, #tpu.memory_space<vmem>>, vector<248x128xf32>
    %c0_127 = arith.constant 0 : index
    %c54 = arith.constant 54 : index
    %c0_128 = arith.constant 0 : index
    %109 = vector.load %arg1[%c0_127, %c54, %c0_128] : memref<1x324x8xf32, #tpu.memory_space<vmem>>, vector<1x248x8xf32>
    %110 = vector.shape_cast %109 : vector<1x248x8xf32> to vector<248x8xf32>
    %cst_129 = arith.constant dense<0.000000e+00> : vector<248x128xf32>
    %111 = tpu.matmul %110, %107, %cst_129 {dimension_numbers = #tpu.dot_dimension_numbers<[1], [0], [0], [1], [0, 0, 1, 1], [], []>} : vector<248x8xf32>, vector<8x128xf32>, vector<248x128xf32> -> vector<248x128xf32>
    %112 = arith.addf %108, %111 : vector<248x128xf32>
    %c0_130 = arith.constant 0 : index
    %c0_131 = arith.constant 0 : index
    %113 = vector.load %arg9[%c0_130, %c0_131] : memref<248x128xf32, #tpu.memory_space<vmem>>, vector<248x128xf32>
    tpu.vector_store %arg9[%c0_130, %c0_131], %112 {strides = array<i32>} : memref<248x128xf32, #tpu.memory_space<vmem>>, vector<248x128xf32>,
    %c128 = arith.constant 128 : index
    %c0_132 = arith.constant 0 : index
    %114 = vector.load %arg2[%c128, %c0_132] : memref<200x128xf32, #tpu.memory_space<vmem>>, vector<8x128xf32>
    %c0_133 = arith.constant 0 : index
    %c0_134 = arith.constant 0 : index
    %115 = vector.load %arg9[%c0_133, %c0_134] : memref<248x128xf32, #tpu.memory_space<vmem>>, vector<248x128xf32>
    %c0_135 = arith.constant 0 : index
    %c55 = arith.constant 55 : index
    %c0_136 = arith.constant 0 : index
    %116 = vector.load %arg1[%c0_135, %c55, %c0_136] : memref<1x324x8xf32, #tpu.memory_space<vmem>>, vector<1x248x8xf32>
    %117 = vector.shape_cast %116 : vector<1x248x8xf32> to vector<248x8xf32>
    %cst_137 = arith.constant dense<0.000000e+00> : vector<248x128xf32>
    %118 = tpu.matmul %117, %114, %cst_137 {dimension_numbers = #tpu.dot_dimension_numbers<[1], [0], [0], [1], [0, 0, 1, 1], [], []>} : vector<248x8xf32>, vector<8x128xf32>, vector<248x128xf32> -> vector<248x128xf32>
    %119 = arith.addf %115, %118 : vector<248x128xf32>
    %c0_138 = arith.constant 0 : index
    %c0_139 = arith.constant 0 : index
    %120 = vector.load %arg9[%c0_138, %c0_139] : memref<248x128xf32, #tpu.memory_space<vmem>>, vector<248x128xf32>
    tpu.vector_store %arg9[%c0_138, %c0_139], %119 {strides = array<i32>} : memref<248x128xf32, #tpu.memory_space<vmem>>, vector<248x128xf32>,
    %c136 = arith.constant 136 : index
    %c0_140 = arith.constant 0 : index
    %121 = vector.load %arg2[%c136, %c0_140] : memref<200x128xf32, #tpu.memory_space<vmem>>, vector<8x128xf32>
    %c0_141 = arith.constant 0 : index
    %c0_142 = arith.constant 0 : index
    %122 = vector.load %arg9[%c0_141, %c0_142] : memref<248x128xf32, #tpu.memory_space<vmem>>, vector<248x128xf32>
    %c0_143 = arith.constant 0 : index
    %c56_144 = arith.constant 56 : index
    %c0_145 = arith.constant 0 : index
    %123 = vector.load %arg1[%c0_143, %c56_144, %c0_145] : memref<1x324x8xf32, #tpu.memory_space<vmem>>, vector<1x248x8xf32>
    %124 = vector.shape_cast %123 : vector<1x248x8xf32> to vector<248x8xf32>
    %cst_146 = arith.constant dense<0.000000e+00> : vector<248x128xf32>
    %125 = tpu.matmul %124, %121, %cst_146 {dimension_numbers = #tpu.dot_dimension_numbers<[1], [0], [0], [1], [0, 0, 1, 1], [], []>} : vector<248x8xf32>, vector<8x128xf32>, vector<248x128xf32> -> vector<248x128xf32>
    %126 = arith.addf %122, %125 : vector<248x128xf32>
    %c0_147 = arith.constant 0 : index
    %c0_148 = arith.constant 0 : index
    %127 = vector.load %arg9[%c0_147, %c0_148] : memref<248x128xf32, #tpu.memory_space<vmem>>, vector<248x128xf32>
    tpu.vector_store %arg9[%c0_147, %c0_148], %126 {strides = array<i32>} : memref<248x128xf32, #tpu.memory_space<vmem>>, vector<248x128xf32>,
    %c144 = arith.constant 144 : index
    %c0_149 = arith.constant 0 : index
    %128 = vector.load %arg2[%c144, %c0_149] : memref<200x128xf32, #tpu.memory_space<vmem>>, vector<8x128xf32>
    %c0_150 = arith.constant 0 : index
    %c0_151 = arith.constant 0 : index
    %129 = vector.load %arg9[%c0_150, %c0_151] : memref<248x128xf32, #tpu.memory_space<vmem>>, vector<248x128xf32>
    %c0_152 = arith.constant 0 : index
    %c57 = arith.constant 57 : index
    %c0_153 = arith.constant 0 : index
    %130 = vector.load %arg1[%c0_152, %c57, %c0_153] : memref<1x324x8xf32, #tpu.memory_space<vmem>>, vector<1x248x8xf32>
    %131 = vector.shape_cast %130 : vector<1x248x8xf32> to vector<248x8xf32>
    %cst_154 = arith.constant dense<0.000000e+00> : vector<248x128xf32>
    %132 = tpu.matmul %131, %128, %cst_154 {dimension_numbers = #tpu.dot_dimension_numbers<[1], [0], [0], [1], [0, 0, 1, 1], [], []>} : vector<248x8xf32>, vector<8x128xf32>, vector<248x128xf32> -> vector<248x128xf32>
    %133 = arith.addf %129, %132 : vector<248x128xf32>
    %c0_155 = arith.constant 0 : index
    %c0_156 = arith.constant 0 : index
    %134 = vector.load %arg9[%c0_155, %c0_156] : memref<248x128xf32, #tpu.memory_space<vmem>>, vector<248x128xf32>
    tpu.vector_store %arg9[%c0_155, %c0_156], %133 {strides = array<i32>} : memref<248x128xf32, #tpu.memory_space<vmem>>, vector<248x128xf32>,
    %c152 = arith.constant 152 : index
    %c0_157 = arith.constant 0 : index
    %135 = vector.load %arg2[%c152, %c0_157] : memref<200x128xf32, #tpu.memory_space<vmem>>, vector<8x128xf32>
    %c0_158 = arith.constant 0 : index
    %c0_159 = arith.constant 0 : index
    %136 = vector.load %arg9[%c0_158, %c0_159] : memref<248x128xf32, #tpu.memory_space<vmem>>, vector<248x128xf32>
    %c0_160 = arith.constant 0 : index
    %c58 = arith.constant 58 : index
    %c0_161 = arith.constant 0 : index
    %137 = vector.load %arg1[%c0_160, %c58, %c0_161] : memref<1x324x8xf32, #tpu.memory_space<vmem>>, vector<1x248x8xf32>
    %138 = vector.shape_cast %137 : vector<1x248x8xf32> to vector<248x8xf32>
    %cst_162 = arith.constant dense<0.000000e+00> : vector<248x128xf32>
    %139 = tpu.matmul %138, %135, %cst_162 {dimension_numbers = #tpu.dot_dimension_numbers<[1], [0], [0], [1], [0, 0, 1, 1], [], []>} : vector<248x8xf32>, vector<8x128xf32>, vector<248x128xf32> -> vector<248x128xf32>
    %140 = arith.addf %136, %139 : vector<248x128xf32>
    %c0_163 = arith.constant 0 : index
    %c0_164 = arith.constant 0 : index
    %141 = vector.load %arg9[%c0_163, %c0_164] : memref<248x128xf32, #tpu.memory_space<vmem>>, vector<248x128xf32>
    tpu.vector_store %arg9[%c0_163, %c0_164], %140 {strides = array<i32>} : memref<248x128xf32, #tpu.memory_space<vmem>>, vector<248x128xf32>,
    %c160 = arith.constant 160 : index
    %c0_165 = arith.constant 0 : index
    %142 = vector.load %arg2[%c160, %c0_165] : memref<200x128xf32, #tpu.memory_space<vmem>>, vector<8x128xf32>
    %c0_166 = arith.constant 0 : index
    %c0_167 = arith.constant 0 : index
    %143 = vector.load %arg9[%c0_166, %c0_167] : memref<248x128xf32, #tpu.memory_space<vmem>>, vector<248x128xf32>
    %c0_168 = arith.constant 0 : index
    %c72_169 = arith.constant 72 : index
    %c0_170 = arith.constant 0 : index
    %144 = vector.load %arg1[%c0_168, %c72_169, %c0_170] : memref<1x324x8xf32, #tpu.memory_space<vmem>>, vector<1x248x8xf32>
    %145 = vector.shape_cast %144 : vector<1x248x8xf32> to vector<248x8xf32>
    %cst_171 = arith.constant dense<0.000000e+00> : vector<248x128xf32>
    %146 = tpu.matmul %145, %142, %cst_171 {dimension_numbers = #tpu.dot_dimension_numbers<[1], [0], [0], [1], [0, 0, 1, 1], [], []>} : vector<248x8xf32>, vector<8x128xf32>, vector<248x128xf32> -> vector<248x128xf32>
    %147 = arith.addf %143, %146 : vector<248x128xf32>
    %c0_172 = arith.constant 0 : index
    %c0_173 = arith.constant 0 : index
    %148 = vector.load %arg9[%c0_172, %c0_173] : memref<248x128xf32, #tpu.memory_space<vmem>>, vector<248x128xf32>
    tpu.vector_store %arg9[%c0_172, %c0_173], %147 {strides = array<i32>} : memref<248x128xf32, #tpu.memory_space<vmem>>, vector<248x128xf32>,
    %c168 = arith.constant 168 : index
    %c0_174 = arith.constant 0 : index
    %149 = vector.load %arg2[%c168, %c0_174] : memref<200x128xf32, #tpu.memory_space<vmem>>, vector<8x128xf32>
    %c0_175 = arith.constant 0 : index
    %c0_176 = arith.constant 0 : index
    %150 = vector.load %arg9[%c0_175, %c0_176] : memref<248x128xf32, #tpu.memory_space<vmem>>, vector<248x128xf32>
    %c0_177 = arith.constant 0 : index
    %c73 = arith.constant 73 : index
    %c0_178 = arith.constant 0 : index
    %151 = vector.load %arg1[%c0_177, %c73, %c0_178] : memref<1x324x8xf32, #tpu.memory_space<vmem>>, vector<1x248x8xf32>
    %152 = vector.shape_cast %151 : vector<1x248x8xf32> to vector<248x8xf32>
    %cst_179 = arith.constant dense<0.000000e+00> : vector<248x128xf32>
    %153 = tpu.matmul %152, %149, %cst_179 {dimension_numbers = #tpu.dot_dimension_numbers<[1], [0], [0], [1], [0, 0, 1, 1], [], []>} : vector<248x8xf32>, vector<8x128xf32>, vector<248x128xf32> -> vector<248x128xf32>
    %154 = arith.addf %150, %153 : vector<248x128xf32>
    %c0_180 = arith.constant 0 : index
    %c0_181 = arith.constant 0 : index
    %155 = vector.load %arg9[%c0_180, %c0_181] : memref<248x128xf32, #tpu.memory_space<vmem>>, vector<248x128xf32>
    tpu.vector_store %arg9[%c0_180, %c0_181], %154 {strides = array<i32>} : memref<248x128xf32, #tpu.memory_space<vmem>>, vector<248x128xf32>,
    %c176 = arith.constant 176 : index
    %c0_182 = arith.constant 0 : index
    %156 = vector.load %arg2[%c176, %c0_182] : memref<200x128xf32, #tpu.memory_space<vmem>>, vector<8x128xf32>
    %c0_183 = arith.constant 0 : index
    %c0_184 = arith.constant 0 : index
    %157 = vector.load %arg9[%c0_183, %c0_184] : memref<248x128xf32, #tpu.memory_space<vmem>>, vector<248x128xf32>
    %c0_185 = arith.constant 0 : index
    %c74 = arith.constant 74 : index
    %c0_186 = arith.constant 0 : index
    %158 = vector.load %arg1[%c0_185, %c74, %c0_186] : memref<1x324x8xf32, #tpu.memory_space<vmem>>, vector<1x248x8xf32>
    %159 = vector.shape_cast %158 : vector<1x248x8xf32> to vector<248x8xf32>
    %cst_187 = arith.constant dense<0.000000e+00> : vector<248x128xf32>
    %160 = tpu.matmul %159, %156, %cst_187 {dimension_numbers = #tpu.dot_dimension_numbers<[1], [0], [0], [1], [0, 0, 1, 1], [], []>} : vector<248x8xf32>, vector<8x128xf32>, vector<248x128xf32> -> vector<248x128xf32>
    %161 = arith.addf %157, %160 : vector<248x128xf32>
    %c0_188 = arith.constant 0 : index
    %c0_189 = arith.constant 0 : index
    %162 = vector.load %arg9[%c0_188, %c0_189] : memref<248x128xf32, #tpu.memory_space<vmem>>, vector<248x128xf32>
    tpu.vector_store %arg9[%c0_188, %c0_189], %161 {strides = array<i32>} : memref<248x128xf32, #tpu.memory_space<vmem>>, vector<248x128xf32>,
    %c184 = arith.constant 184 : index
    %c0_190 = arith.constant 0 : index
    %163 = vector.load %arg2[%c184, %c0_190] : memref<200x128xf32, #tpu.memory_space<vmem>>, vector<8x128xf32>
    %c0_191 = arith.constant 0 : index
    %c0_192 = arith.constant 0 : index
    %164 = vector.load %arg9[%c0_191, %c0_192] : memref<248x128xf32, #tpu.memory_space<vmem>>, vector<248x128xf32>
    %c0_193 = arith.constant 0 : index
    %c75 = arith.constant 75 : index
    %c0_194 = arith.constant 0 : index
    %165 = vector.load %arg1[%c0_193, %c75, %c0_194] : memref<1x324x8xf32, #tpu.memory_space<vmem>>, vector<1x248x8xf32>
    %166 = vector.shape_cast %165 : vector<1x248x8xf32> to vector<248x8xf32>
    %cst_195 = arith.constant dense<0.000000e+00> : vector<248x128xf32>
    %167 = tpu.matmul %166, %163, %cst_195 {dimension_numbers = #tpu.dot_dimension_numbers<[1], [0], [0], [1], [0, 0, 1, 1], [], []>} : vector<248x8xf32>, vector<8x128xf32>, vector<248x128xf32> -> vector<248x128xf32>
    %168 = arith.addf %164, %167 : vector<248x128xf32>
    %c0_196 = arith.constant 0 : index
    %c0_197 = arith.constant 0 : index
    %169 = vector.load %arg9[%c0_196, %c0_197] : memref<248x128xf32, #tpu.memory_space<vmem>>, vector<248x128xf32>
    tpu.vector_store %arg9[%c0_196, %c0_197], %168 {strides = array<i32>} : memref<248x128xf32, #tpu.memory_space<vmem>>, vector<248x128xf32>,
    %c192 = arith.constant 192 : index
    %c0_198 = arith.constant 0 : index
    %170 = vector.load %arg2[%c192, %c0_198] : memref<200x128xf32, #tpu.memory_space<vmem>>, vector<8x128xf32>
    %c0_199 = arith.constant 0 : index
    %c0_200 = arith.constant 0 : index
    %171 = vector.load %arg9[%c0_199, %c0_200] : memref<248x128xf32, #tpu.memory_space<vmem>>, vector<248x128xf32>
    %c0_201 = arith.constant 0 : index
    %c76 = arith.constant 76 : index
    %c0_202 = arith.constant 0 : index
    %172 = vector.load %arg1[%c0_201, %c76, %c0_202] : memref<1x324x8xf32, #tpu.memory_space<vmem>>, vector<1x248x8xf32>
    %173 = vector.shape_cast %172 : vector<1x248x8xf32> to vector<248x8xf32>
    %cst_203 = arith.constant dense<0.000000e+00> : vector<248x128xf32>
    %174 = tpu.matmul %173, %170, %cst_203 {dimension_numbers = #tpu.dot_dimension_numbers<[1], [0], [0], [1], [0, 0, 1, 1], [], []>} : vector<248x8xf32>, vector<8x128xf32>, vector<248x128xf32> -> vector<248x128xf32>
    %175 = arith.addf %171, %174 : vector<248x128xf32>
    %c0_204 = arith.constant 0 : index
    %c0_205 = arith.constant 0 : index
    %176 = vector.load %arg9[%c0_204, %c0_205] : memref<248x128xf32, #tpu.memory_space<vmem>>, vector<248x128xf32>
    tpu.vector_store %arg9[%c0_204, %c0_205], %175 {strides = array<i32>} : memref<248x128xf32, #tpu.memory_space<vmem>>, vector<248x128xf32>,
    %cst_206 = arith.constant 0.000000e+00 : f32
    %177 = vector.broadcast %cst_206 : f32 to vector<256x128xf32>
    %c0_207 = arith.constant 0 : index
    %c0_208 = arith.constant 0 : index
    %178 = vector.load %arg10[%c0_207, %c0_208] : memref<256x128xf32, #tpu.memory_space<vmem>>, vector<256x128xf32>
    tpu.vector_store %arg10[%c0_207, %c0_208], %177 {strides = array<i32>} : memref<256x128xf32, #tpu.memory_space<vmem>>, vector<256x128xf32>,
    %c0_209 = arith.constant 0 : index
    %c0_210 = arith.constant 0 : index
    %179 = vector.load %arg3[%c0_209, %c0_210] : memref<1x128xf32, #tpu.memory_space<vmem>>, vector<1x128xf32>
    %c0_211 = arith.constant 0 : index
    %c0_212 = arith.constant 0 : index
    %180 = vector.load %arg9[%c0_211, %c0_212] : memref<248x128xf32, #tpu.memory_space<vmem>>, vector<14x128xf32>
    %181 = vector.broadcast %179 : vector<1x128xf32> to vector<14x128xf32>
    %182 = arith.addf %180, %181 : vector<14x128xf32>
    %cst_213 = arith.constant 0.000000e+00 : f32
    %183 = vector.broadcast %cst_213 : f32 to vector<14x128xf32>
    %184 = arith.maximumf %182, %183 : vector<14x128xf32>
    %c17 = arith.constant 17 : index
    %c0_214 = arith.constant 0 : index
    %185 = vector.load %arg10[%c17, %c0_214] : memref<256x128xf32, #tpu.memory_space<vmem>>, vector<14x128xf32>
    tpu.vector_store %arg10[%c17, %c0_214], %184 {strides = array<i32>} : memref<256x128xf32, #tpu.memory_space<vmem>>, vector<14x128xf32>,
    %c18_215 = arith.constant 18 : index
    %c0_216 = arith.constant 0 : index
    %186 = vector.load %arg9[%c18_215, %c0_216] : memref<248x128xf32, #tpu.memory_space<vmem>>, vector<14x128xf32>
    %187 = vector.broadcast %179 : vector<1x128xf32> to vector<14x128xf32>
    %188 = arith.addf %186, %187 : vector<14x128xf32>
    %cst_217 = arith.constant 0.000000e+00 : f32
    %189 = vector.broadcast %cst_217 : f32 to vector<14x128xf32>
    %190 = arith.maximumf %188, %189 : vector<14x128xf32>
    %c33 = arith.constant 33 : index
    %c0_218 = arith.constant 0 : index
    %191 = vector.load %arg10[%c33, %c0_218] : memref<256x128xf32, #tpu.memory_space<vmem>>, vector<14x128xf32>
    tpu.vector_store %arg10[%c33, %c0_218], %190 {strides = array<i32>} : memref<256x128xf32, #tpu.memory_space<vmem>>, vector<14x128xf32>,
    %c36_219 = arith.constant 36 : index
    %c0_220 = arith.constant 0 : index
    %192 = vector.load %arg9[%c36_219, %c0_220] : memref<248x128xf32, #tpu.memory_space<vmem>>, vector<14x128xf32>
    %193 = vector.broadcast %179 : vector<1x128xf32> to vector<14x128xf32>
    %194 = arith.addf %192, %193 : vector<14x128xf32>
    %cst_221 = arith.constant 0.000000e+00 : f32
    %195 = vector.broadcast %cst_221 : f32 to vector<14x128xf32>
    %196 = arith.maximumf %194, %195 : vector<14x128xf32>
    %c49 = arith.constant 49 : index
    %c0_222 = arith.constant 0 : index
    %197 = vector.load %arg10[%c49, %c0_222] : memref<256x128xf32, #tpu.memory_space<vmem>>, vector<14x128xf32>
    tpu.vector_store %arg10[%c49, %c0_222], %196 {strides = array<i32>} : memref<256x128xf32, #tpu.memory_space<vmem>>, vector<14x128xf32>,
    %c54_223 = arith.constant 54 : index
    %c0_224 = arith.constant 0 : index
    %198 = vector.load %arg9[%c54_223, %c0_224] : memref<248x128xf32, #tpu.memory_space<vmem>>, vector<14x128xf32>
    %199 = vector.broadcast %179 : vector<1x128xf32> to vector<14x128xf32>
    %200 = arith.addf %198, %199 : vector<14x128xf32>
    %cst_225 = arith.constant 0.000000e+00 : f32
    %201 = vector.broadcast %cst_225 : f32 to vector<14x128xf32>
    %202 = arith.maximumf %200, %201 : vector<14x128xf32>
    %c65 = arith.constant 65 : index
    %c0_226 = arith.constant 0 : index
    %203 = vector.load %arg10[%c65, %c0_226] : memref<256x128xf32, #tpu.memory_space<vmem>>, vector<14x128xf32>
    tpu.vector_store %arg10[%c65, %c0_226], %202 {strides = array<i32>} : memref<256x128xf32, #tpu.memory_space<vmem>>, vector<14x128xf32>,
    %c72_227 = arith.constant 72 : index
    %c0_228 = arith.constant 0 : index
    %204 = vector.load %arg9[%c72_227, %c0_228] : memref<248x128xf32, #tpu.memory_space<vmem>>, vector<14x128xf32>
    %205 = vector.broadcast %179 : vector<1x128xf32> to vector<14x128xf32>
    %206 = arith.addf %204, %205 : vector<14x128xf32>
    %cst_229 = arith.constant 0.000000e+00 : f32
    %207 = vector.broadcast %cst_229 : f32 to vector<14x128xf32>
    %208 = arith.maximumf %206, %207 : vector<14x128xf32>
    %c81 = arith.constant 81 : index
    %c0_230 = arith.constant 0 : index
    %209 = vector.load %arg10[%c81, %c0_230] : memref<256x128xf32, #tpu.memory_space<vmem>>, vector<14x128xf32>
    tpu.vector_store %arg10[%c81, %c0_230], %208 {strides = array<i32>} : memref<256x128xf32, #tpu.memory_space<vmem>>, vector<14x128xf32>,
    %c90 = arith.constant 90 : index
    %c0_231 = arith.constant 0 : index
    %210 = vector.load %arg9[%c90, %c0_231] : memref<248x128xf32, #tpu.memory_space<vmem>>, vector<14x128xf32>
    %211 = vector.broadcast %179 : vector<1x128xf32> to vector<14x128xf32>
    %212 = arith.addf %210, %211 : vector<14x128xf32>
    %cst_232 = arith.constant 0.000000e+00 : f32
    %213 = vector.broadcast %cst_232 : f32 to vector<14x128xf32>
    %214 = arith.maximumf %212, %213 : vector<14x128xf32>
    %c97 = arith.constant 97 : index
    %c0_233 = arith.constant 0 : index
    %215 = vector.load %arg10[%c97, %c0_233] : memref<256x128xf32, #tpu.memory_space<vmem>>, vector<14x128xf32>
    tpu.vector_store %arg10[%c97, %c0_233], %214 {strides = array<i32>} : memref<256x128xf32, #tpu.memory_space<vmem>>, vector<14x128xf32>,
    %c108 = arith.constant 108 : index
    %c0_234 = arith.constant 0 : index
    %216 = vector.load %arg9[%c108, %c0_234] : memref<248x128xf32, #tpu.memory_space<vmem>>, vector<14x128xf32>
    %217 = vector.broadcast %179 : vector<1x128xf32> to vector<14x128xf32>
    %218 = arith.addf %216, %217 : vector<14x128xf32>
    %cst_235 = arith.constant 0.000000e+00 : f32
    %219 = vector.broadcast %cst_235 : f32 to vector<14x128xf32>
    %220 = arith.maximumf %218, %219 : vector<14x128xf32>
    %c113 = arith.constant 113 : index
    %c0_236 = arith.constant 0 : index
    %221 = vector.load %arg10[%c113, %c0_236] : memref<256x128xf32, #tpu.memory_space<vmem>>, vector<14x128xf32>
    tpu.vector_store %arg10[%c113, %c0_236], %220 {strides = array<i32>} : memref<256x128xf32, #tpu.memory_space<vmem>>, vector<14x128xf32>,
    %c126 = arith.constant 126 : index
    %c0_237 = arith.constant 0 : index
    %222 = vector.load %arg9[%c126, %c0_237] : memref<248x128xf32, #tpu.memory_space<vmem>>, vector<14x128xf32>
    %223 = vector.broadcast %179 : vector<1x128xf32> to vector<14x128xf32>
    %224 = arith.addf %222, %223 : vector<14x128xf32>
    %cst_238 = arith.constant 0.000000e+00 : f32
    %225 = vector.broadcast %cst_238 : f32 to vector<14x128xf32>
    %226 = arith.maximumf %224, %225 : vector<14x128xf32>
    %c129 = arith.constant 129 : index
    %c0_239 = arith.constant 0 : index
    %227 = vector.load %arg10[%c129, %c0_239] : memref<256x128xf32, #tpu.memory_space<vmem>>, vector<14x128xf32>
    tpu.vector_store %arg10[%c129, %c0_239], %226 {strides = array<i32>} : memref<256x128xf32, #tpu.memory_space<vmem>>, vector<14x128xf32>,
    %c144_240 = arith.constant 144 : index
    %c0_241 = arith.constant 0 : index
    %228 = vector.load %arg9[%c144_240, %c0_241] : memref<248x128xf32, #tpu.memory_space<vmem>>, vector<14x128xf32>
    %229 = vector.broadcast %179 : vector<1x128xf32> to vector<14x128xf32>
    %230 = arith.addf %228, %229 : vector<14x128xf32>
    %cst_242 = arith.constant 0.000000e+00 : f32
    %231 = vector.broadcast %cst_242 : f32 to vector<14x128xf32>
    %232 = arith.maximumf %230, %231 : vector<14x128xf32>
    %c145 = arith.constant 145 : index
    %c0_243 = arith.constant 0 : index
    %233 = vector.load %arg10[%c145, %c0_243] : memref<256x128xf32, #tpu.memory_space<vmem>>, vector<14x128xf32>
    tpu.vector_store %arg10[%c145, %c0_243], %232 {strides = array<i32>} : memref<256x128xf32, #tpu.memory_space<vmem>>, vector<14x128xf32>,
    %c162 = arith.constant 162 : index
    %c0_244 = arith.constant 0 : index
    %234 = vector.load %arg9[%c162, %c0_244] : memref<248x128xf32, #tpu.memory_space<vmem>>, vector<14x128xf32>
    %235 = vector.broadcast %179 : vector<1x128xf32> to vector<14x128xf32>
    %236 = arith.addf %234, %235 : vector<14x128xf32>
    %cst_245 = arith.constant 0.000000e+00 : f32
    %237 = vector.broadcast %cst_245 : f32 to vector<14x128xf32>
    %238 = arith.maximumf %236, %237 : vector<14x128xf32>
    %c161 = arith.constant 161 : index
    %c0_246 = arith.constant 0 : index
    %239 = vector.load %arg10[%c161, %c0_246] : memref<256x128xf32, #tpu.memory_space<vmem>>, vector<14x128xf32>
    tpu.vector_store %arg10[%c161, %c0_246], %238 {strides = array<i32>} : memref<256x128xf32, #tpu.memory_space<vmem>>, vector<14x128xf32>,
    %c180 = arith.constant 180 : index
    %c0_247 = arith.constant 0 : index
    %240 = vector.load %arg9[%c180, %c0_247] : memref<248x128xf32, #tpu.memory_space<vmem>>, vector<14x128xf32>
    %241 = vector.broadcast %179 : vector<1x128xf32> to vector<14x128xf32>
    %242 = arith.addf %240, %241 : vector<14x128xf32>
    %cst_248 = arith.constant 0.000000e+00 : f32
    %243 = vector.broadcast %cst_248 : f32 to vector<14x128xf32>
    %244 = arith.maximumf %242, %243 : vector<14x128xf32>
    %c177 = arith.constant 177 : index
    %c0_249 = arith.constant 0 : index
    %245 = vector.load %arg10[%c177, %c0_249] : memref<256x128xf32, #tpu.memory_space<vmem>>, vector<14x128xf32>
    tpu.vector_store %arg10[%c177, %c0_249], %244 {strides = array<i32>} : memref<256x128xf32, #tpu.memory_space<vmem>>, vector<14x128xf32>,
    %c198 = arith.constant 198 : index
    %c0_250 = arith.constant 0 : index
    %246 = vector.load %arg9[%c198, %c0_250] : memref<248x128xf32, #tpu.memory_space<vmem>>, vector<14x128xf32>
    %247 = vector.broadcast %179 : vector<1x128xf32> to vector<14x128xf32>
    %248 = arith.addf %246, %247 : vector<14x128xf32>
    %cst_251 = arith.constant 0.000000e+00 : f32
    %249 = vector.broadcast %cst_251 : f32 to vector<14x128xf32>
    %250 = arith.maximumf %248, %249 : vector<14x128xf32>
    %c193 = arith.constant 193 : index
    %c0_252 = arith.constant 0 : index
    %251 = vector.load %arg10[%c193, %c0_252] : memref<256x128xf32, #tpu.memory_space<vmem>>, vector<14x128xf32>
    tpu.vector_store %arg10[%c193, %c0_252], %250 {strides = array<i32>} : memref<256x128xf32, #tpu.memory_space<vmem>>, vector<14x128xf32>,
    %c216 = arith.constant 216 : index
    %c0_253 = arith.constant 0 : index
    %252 = vector.load %arg9[%c216, %c0_253] : memref<248x128xf32, #tpu.memory_space<vmem>>, vector<14x128xf32>
    %253 = vector.broadcast %179 : vector<1x128xf32> to vector<14x128xf32>
    %254 = arith.addf %252, %253 : vector<14x128xf32>
    %cst_254 = arith.constant 0.000000e+00 : f32
    %255 = vector.broadcast %cst_254 : f32 to vector<14x128xf32>
    %256 = arith.maximumf %254, %255 : vector<14x128xf32>
    %c209 = arith.constant 209 : index
    %c0_255 = arith.constant 0 : index
    %257 = vector.load %arg10[%c209, %c0_255] : memref<256x128xf32, #tpu.memory_space<vmem>>, vector<14x128xf32>
    tpu.vector_store %arg10[%c209, %c0_255], %256 {strides = array<i32>} : memref<256x128xf32, #tpu.memory_space<vmem>>, vector<14x128xf32>,
    %c234 = arith.constant 234 : index
    %c0_256 = arith.constant 0 : index
    %258 = vector.load %arg9[%c234, %c0_256] : memref<248x128xf32, #tpu.memory_space<vmem>>, vector<14x128xf32>
    %259 = vector.broadcast %179 : vector<1x128xf32> to vector<14x128xf32>
    %260 = arith.addf %258, %259 : vector<14x128xf32>
    %cst_257 = arith.constant 0.000000e+00 : f32
    %261 = vector.broadcast %cst_257 : f32 to vector<14x128xf32>
    %262 = arith.maximumf %260, %261 : vector<14x128xf32>
    %c225 = arith.constant 225 : index
    %c0_258 = arith.constant 0 : index
    %263 = vector.load %arg10[%c225, %c0_258] : memref<256x128xf32, #tpu.memory_space<vmem>>, vector<14x128xf32>
    tpu.vector_store %arg10[%c225, %c0_258], %262 {strides = array<i32>} : memref<256x128xf32, #tpu.memory_space<vmem>>, vector<14x128xf32>,
    %cst_259 = arith.constant 0.000000e+00 : f32
    %264 = vector.broadcast %cst_259 : f32 to vector<222x64xf32>
    %c0_260 = arith.constant 0 : index
    %c0_261 = arith.constant 0 : index
    %265 = vector.load %arg11[%c0_260, %c0_261] : memref<222x64xf32, #tpu.memory_space<vmem>>, vector<222x64xf32>
    tpu.vector_store %arg11[%c0_260, %c0_261], %264 {strides = array<i32>} : memref<222x64xf32, #tpu.memory_space<vmem>>, vector<222x64xf32>,
    %c0_262 = arith.constant 0 : index
    %c0_263 = arith.constant 0 : index
    %266 = vector.load %arg4[%c0_262, %c0_263] : memref<1152x64xf32, #tpu.memory_space<vmem>>, vector<128x64xf32>
    %c0_264 = arith.constant 0 : index
    %c0_265 = arith.constant 0 : index
    %267 = vector.load %arg11[%c0_264, %c0_265] : memref<222x64xf32, #tpu.memory_space<vmem>>, vector<222x64xf32>
    %c0_266 = arith.constant 0 : index
    %c0_267 = arith.constant 0 : index
    %268 = vector.load %arg10[%c0_266, %c0_267] : memref<256x128xf32, #tpu.memory_space<vmem>>, vector<222x128xf32>
    %cst_268 = arith.constant dense<0.000000e+00> : vector<222x64xf32>
    %269 = tpu.matmul %268, %266, %cst_268 {dimension_numbers = #tpu.dot_dimension_numbers<[1], [0], [0], [1], [0, 0, 1, 1], [], []>} : vector<222x128xf32>, vector<128x64xf32>, vector<222x64xf32> -> vector<222x64xf32>
    %270 = arith.addf %267, %269 : vector<222x64xf32>
    %c0_269 = arith.constant 0 : index
    %c0_270 = arith.constant 0 : index
    %271 = vector.load %arg11[%c0_269, %c0_270] : memref<222x64xf32, #tpu.memory_space<vmem>>, vector<222x64xf32>
    tpu.vector_store %arg11[%c0_269, %c0_270], %270 {strides = array<i32>} : memref<222x64xf32, #tpu.memory_space<vmem>>, vector<222x64xf32>,
    %c128_271 = arith.constant 128 : index
    %c0_272 = arith.constant 0 : index
    %272 = vector.load %arg4[%c128_271, %c0_272] : memref<1152x64xf32, #tpu.memory_space<vmem>>, vector<128x64xf32>
    %c0_273 = arith.constant 0 : index
    %c0_274 = arith.constant 0 : index
    %273 = vector.load %arg11[%c0_273, %c0_274] : memref<222x64xf32, #tpu.memory_space<vmem>>, vector<222x64xf32>
    %c1_275 = arith.constant 1 : index
    %c0_276 = arith.constant 0 : index
    %274 = vector.load %arg10[%c1_275, %c0_276] : memref<256x128xf32, #tpu.memory_space<vmem>>, vector<222x128xf32>
    %cst_277 = arith.constant dense<0.000000e+00> : vector<222x64xf32>
    %275 = tpu.matmul %274, %272, %cst_277 {dimension_numbers = #tpu.dot_dimension_numbers<[1], [0], [0], [1], [0, 0, 1, 1], [], []>} : vector<222x128xf32>, vector<128x64xf32>, vector<222x64xf32> -> vector<222x64xf32>
    %276 = arith.addf %273, %275 : vector<222x64xf32>
    %c0_278 = arith.constant 0 : index
    %c0_279 = arith.constant 0 : index
    %277 = vector.load %arg11[%c0_278, %c0_279] : memref<222x64xf32, #tpu.memory_space<vmem>>, vector<222x64xf32>
    tpu.vector_store %arg11[%c0_278, %c0_279], %276 {strides = array<i32>} : memref<222x64xf32, #tpu.memory_space<vmem>>, vector<222x64xf32>,
    %c256 = arith.constant 256 : index
    %c0_280 = arith.constant 0 : index
    %278 = vector.load %arg4[%c256, %c0_280] : memref<1152x64xf32, #tpu.memory_space<vmem>>, vector<128x64xf32>
    %c0_281 = arith.constant 0 : index
    %c0_282 = arith.constant 0 : index
    %279 = vector.load %arg11[%c0_281, %c0_282] : memref<222x64xf32, #tpu.memory_space<vmem>>, vector<222x64xf32>
    %c2_283 = arith.constant 2 : index
    %c0_284 = arith.constant 0 : index
    %280 = vector.load %arg10[%c2_283, %c0_284] : memref<256x128xf32, #tpu.memory_space<vmem>>, vector<222x128xf32>
    %cst_285 = arith.constant dense<0.000000e+00> : vector<222x64xf32>
    %281 = tpu.matmul %280, %278, %cst_285 {dimension_numbers = #tpu.dot_dimension_numbers<[1], [0], [0], [1], [0, 0, 1, 1], [], []>} : vector<222x128xf32>, vector<128x64xf32>, vector<222x64xf32> -> vector<222x64xf32>
    %282 = arith.addf %279, %281 : vector<222x64xf32>
    %c0_286 = arith.constant 0 : index
    %c0_287 = arith.constant 0 : index
    %283 = vector.load %arg11[%c0_286, %c0_287] : memref<222x64xf32, #tpu.memory_space<vmem>>, vector<222x64xf32>
    tpu.vector_store %arg11[%c0_286, %c0_287], %282 {strides = array<i32>} : memref<222x64xf32, #tpu.memory_space<vmem>>, vector<222x64xf32>,
    %c384 = arith.constant 384 : index
    %c0_288 = arith.constant 0 : index
    %284 = vector.load %arg4[%c384, %c0_288] : memref<1152x64xf32, #tpu.memory_space<vmem>>, vector<128x64xf32>
    %c0_289 = arith.constant 0 : index
    %c0_290 = arith.constant 0 : index
    %285 = vector.load %arg11[%c0_289, %c0_290] : memref<222x64xf32, #tpu.memory_space<vmem>>, vector<222x64xf32>
    %c16_291 = arith.constant 16 : index
    %c0_292 = arith.constant 0 : index
    %286 = vector.load %arg10[%c16_291, %c0_292] : memref<256x128xf32, #tpu.memory_space<vmem>>, vector<222x128xf32>
    %cst_293 = arith.constant dense<0.000000e+00> : vector<222x64xf32>
    %287 = tpu.matmul %286, %284, %cst_293 {dimension_numbers = #tpu.dot_dimension_numbers<[1], [0], [0], [1], [0, 0, 1, 1], [], []>} : vector<222x128xf32>, vector<128x64xf32>, vector<222x64xf32> -> vector<222x64xf32>
    %288 = arith.addf %285, %287 : vector<222x64xf32>
    %c0_294 = arith.constant 0 : index
    %c0_295 = arith.constant 0 : index
    %289 = vector.load %arg11[%c0_294, %c0_295] : memref<222x64xf32, #tpu.memory_space<vmem>>, vector<222x64xf32>
    tpu.vector_store %arg11[%c0_294, %c0_295], %288 {strides = array<i32>} : memref<222x64xf32, #tpu.memory_space<vmem>>, vector<222x64xf32>,
    %c512 = arith.constant 512 : index
    %c0_296 = arith.constant 0 : index
    %290 = vector.load %arg4[%c512, %c0_296] : memref<1152x64xf32, #tpu.memory_space<vmem>>, vector<128x64xf32>
    %c0_297 = arith.constant 0 : index
    %c0_298 = arith.constant 0 : index
    %291 = vector.load %arg11[%c0_297, %c0_298] : memref<222x64xf32, #tpu.memory_space<vmem>>, vector<222x64xf32>
    %c17_299 = arith.constant 17 : index
    %c0_300 = arith.constant 0 : index
    %292 = vector.load %arg10[%c17_299, %c0_300] : memref<256x128xf32, #tpu.memory_space<vmem>>, vector<222x128xf32>
    %cst_301 = arith.constant dense<0.000000e+00> : vector<222x64xf32>
    %293 = tpu.matmul %292, %290, %cst_301 {dimension_numbers = #tpu.dot_dimension_numbers<[1], [0], [0], [1], [0, 0, 1, 1], [], []>} : vector<222x128xf32>, vector<128x64xf32>, vector<222x64xf32> -> vector<222x64xf32>
    %294 = arith.addf %291, %293 : vector<222x64xf32>
    %c0_302 = arith.constant 0 : index
    %c0_303 = arith.constant 0 : index
    %295 = vector.load %arg11[%c0_302, %c0_303] : memref<222x64xf32, #tpu.memory_space<vmem>>, vector<222x64xf32>
    tpu.vector_store %arg11[%c0_302, %c0_303], %294 {strides = array<i32>} : memref<222x64xf32, #tpu.memory_space<vmem>>, vector<222x64xf32>,
    %c640 = arith.constant 640 : index
    %c0_304 = arith.constant 0 : index
    %296 = vector.load %arg4[%c640, %c0_304] : memref<1152x64xf32, #tpu.memory_space<vmem>>, vector<128x64xf32>
    %c0_305 = arith.constant 0 : index
    %c0_306 = arith.constant 0 : index
    %297 = vector.load %arg11[%c0_305, %c0_306] : memref<222x64xf32, #tpu.memory_space<vmem>>, vector<222x64xf32>
    %c18_307 = arith.constant 18 : index
    %c0_308 = arith.constant 0 : index
    %298 = vector.load %arg10[%c18_307, %c0_308] : memref<256x128xf32, #tpu.memory_space<vmem>>, vector<222x128xf32>
    %cst_309 = arith.constant dense<0.000000e+00> : vector<222x64xf32>
    %299 = tpu.matmul %298, %296, %cst_309 {dimension_numbers = #tpu.dot_dimension_numbers<[1], [0], [0], [1], [0, 0, 1, 1], [], []>} : vector<222x128xf32>, vector<128x64xf32>, vector<222x64xf32> -> vector<222x64xf32>
    %300 = arith.addf %297, %299 : vector<222x64xf32>
    %c0_310 = arith.constant 0 : index
    %c0_311 = arith.constant 0 : index
    %301 = vector.load %arg11[%c0_310, %c0_311] : memref<222x64xf32, #tpu.memory_space<vmem>>, vector<222x64xf32>
    tpu.vector_store %arg11[%c0_310, %c0_311], %300 {strides = array<i32>} : memref<222x64xf32, #tpu.memory_space<vmem>>, vector<222x64xf32>,
    %c768 = arith.constant 768 : index
    %c0_312 = arith.constant 0 : index
    %302 = vector.load %arg4[%c768, %c0_312] : memref<1152x64xf32, #tpu.memory_space<vmem>>, vector<128x64xf32>
    %c0_313 = arith.constant 0 : index
    %c0_314 = arith.constant 0 : index
    %303 = vector.load %arg11[%c0_313, %c0_314] : memref<222x64xf32, #tpu.memory_space<vmem>>, vector<222x64xf32>
    %c32_315 = arith.constant 32 : index
    %c0_316 = arith.constant 0 : index
    %304 = vector.load %arg10[%c32_315, %c0_316] : memref<256x128xf32, #tpu.memory_space<vmem>>, vector<222x128xf32>
    %cst_317 = arith.constant dense<0.000000e+00> : vector<222x64xf32>
    %305 = tpu.matmul %304, %302, %cst_317 {dimension_numbers = #tpu.dot_dimension_numbers<[1], [0], [0], [1], [0, 0, 1, 1], [], []>} : vector<222x128xf32>, vector<128x64xf32>, vector<222x64xf32> -> vector<222x64xf32>
    %306 = arith.addf %303, %305 : vector<222x64xf32>
    %c0_318 = arith.constant 0 : index
    %c0_319 = arith.constant 0 : index
    %307 = vector.load %arg11[%c0_318, %c0_319] : memref<222x64xf32, #tpu.memory_space<vmem>>, vector<222x64xf32>
    tpu.vector_store %arg11[%c0_318, %c0_319], %306 {strides = array<i32>} : memref<222x64xf32, #tpu.memory_space<vmem>>, vector<222x64xf32>,
    %c896 = arith.constant 896 : index
    %c0_320 = arith.constant 0 : index
    %308 = vector.load %arg4[%c896, %c0_320] : memref<1152x64xf32, #tpu.memory_space<vmem>>, vector<128x64xf32>
    %c0_321 = arith.constant 0 : index
    %c0_322 = arith.constant 0 : index
    %309 = vector.load %arg11[%c0_321, %c0_322] : memref<222x64xf32, #tpu.memory_space<vmem>>, vector<222x64xf32>
    %c33_323 = arith.constant 33 : index
    %c0_324 = arith.constant 0 : index
    %310 = vector.load %arg10[%c33_323, %c0_324] : memref<256x128xf32, #tpu.memory_space<vmem>>, vector<222x128xf32>
    %cst_325 = arith.constant dense<0.000000e+00> : vector<222x64xf32>
    %311 = tpu.matmul %310, %308, %cst_325 {dimension_numbers = #tpu.dot_dimension_numbers<[1], [0], [0], [1], [0, 0, 1, 1], [], []>} : vector<222x128xf32>, vector<128x64xf32>, vector<222x64xf32> -> vector<222x64xf32>
    %312 = arith.addf %309, %311 : vector<222x64xf32>
    %c0_326 = arith.constant 0 : index
    %c0_327 = arith.constant 0 : index
    %313 = vector.load %arg11[%c0_326, %c0_327] : memref<222x64xf32, #tpu.memory_space<vmem>>, vector<222x64xf32>
    tpu.vector_store %arg11[%c0_326, %c0_327], %312 {strides = array<i32>} : memref<222x64xf32, #tpu.memory_space<vmem>>, vector<222x64xf32>,
    %c1024 = arith.constant 1024 : index
    %c0_328 = arith.constant 0 : index
    %314 = vector.load %arg4[%c1024, %c0_328] : memref<1152x64xf32, #tpu.memory_space<vmem>>, vector<128x64xf32>
    %c0_329 = arith.constant 0 : index
    %c0_330 = arith.constant 0 : index
    %315 = vector.load %arg11[%c0_329, %c0_330] : memref<222x64xf32, #tpu.memory_space<vmem>>, vector<222x64xf32>
    %c34 = arith.constant 34 : index
    %c0_331 = arith.constant 0 : index
    %316 = vector.load %arg10[%c34, %c0_331] : memref<256x128xf32, #tpu.memory_space<vmem>>, vector<222x128xf32>
    %cst_332 = arith.constant dense<0.000000e+00> : vector<222x64xf32>
    %317 = tpu.matmul %316, %314, %cst_332 {dimension_numbers = #tpu.dot_dimension_numbers<[1], [0], [0], [1], [0, 0, 1, 1], [], []>} : vector<222x128xf32>, vector<128x64xf32>, vector<222x64xf32> -> vector<222x64xf32>
    %318 = arith.addf %315, %317 : vector<222x64xf32>
    %c0_333 = arith.constant 0 : index
    %c0_334 = arith.constant 0 : index
    %319 = vector.load %arg11[%c0_333, %c0_334] : memref<222x64xf32, #tpu.memory_space<vmem>>, vector<222x64xf32>
    tpu.vector_store %arg11[%c0_333, %c0_334], %318 {strides = array<i32>} : memref<222x64xf32, #tpu.memory_space<vmem>>, vector<222x64xf32>,
    %cst_335 = arith.constant 0.000000e+00 : f32
    %320 = vector.broadcast %cst_335 : f32 to vector<256x64xf32>
    %c0_336 = arith.constant 0 : index
    %c0_337 = arith.constant 0 : index
    %321 = vector.load %arg12[%c0_336, %c0_337] : memref<256x64xf32, #tpu.memory_space<vmem>>, vector<256x64xf32>
    tpu.vector_store %arg12[%c0_336, %c0_337], %320 {strides = array<i32>} : memref<256x64xf32, #tpu.memory_space<vmem>>, vector<256x64xf32>,
    %c0_338 = arith.constant 0 : index
    %c0_339 = arith.constant 0 : index
    %322 = vector.load %arg5[%c0_338, %c0_339] : memref<1x64xf32, #tpu.memory_space<vmem>>, vector<1x64xf32>
    %c0_340 = arith.constant 0 : index
    %c0_341 = arith.constant 0 : index
    %323 = vector.load %arg11[%c0_340, %c0_341] : memref<222x64xf32, #tpu.memory_space<vmem>>, vector<14x64xf32>
    %324 = vector.broadcast %322 : vector<1x64xf32> to vector<14x64xf32>
    %325 = arith.addf %323, %324 : vector<14x64xf32>
    %cst_342 = arith.constant 0.000000e+00 : f32
    %326 = vector.broadcast %cst_342 : f32 to vector<14x64xf32>
    %327 = arith.maximumf %325, %326 : vector<14x64xf32>
    %c17_343 = arith.constant 17 : index
    %c0_344 = arith.constant 0 : index
    %328 = vector.load %arg12[%c17_343, %c0_344] : memref<256x64xf32, #tpu.memory_space<vmem>>, vector<14x64xf32>
    tpu.vector_store %arg12[%c17_343, %c0_344], %327 {strides = array<i32>} : memref<256x64xf32, #tpu.memory_space<vmem>>, vector<14x64xf32>,
    %c16_345 = arith.constant 16 : index
    %c0_346 = arith.constant 0 : index
    %329 = vector.load %arg11[%c16_345, %c0_346] : memref<222x64xf32, #tpu.memory_space<vmem>>, vector<14x64xf32>
    %330 = vector.broadcast %322 : vector<1x64xf32> to vector<14x64xf32>
    %331 = arith.addf %329, %330 : vector<14x64xf32>
    %cst_347 = arith.constant 0.000000e+00 : f32
    %332 = vector.broadcast %cst_347 : f32 to vector<14x64xf32>
    %333 = arith.maximumf %331, %332 : vector<14x64xf32>
    %c33_348 = arith.constant 33 : index
    %c0_349 = arith.constant 0 : index
    %334 = vector.load %arg12[%c33_348, %c0_349] : memref<256x64xf32, #tpu.memory_space<vmem>>, vector<14x64xf32>
    tpu.vector_store %arg12[%c33_348, %c0_349], %333 {strides = array<i32>} : memref<256x64xf32, #tpu.memory_space<vmem>>, vector<14x64xf32>,
    %c32_350 = arith.constant 32 : index
    %c0_351 = arith.constant 0 : index
    %335 = vector.load %arg11[%c32_350, %c0_351] : memref<222x64xf32, #tpu.memory_space<vmem>>, vector<14x64xf32>
    %336 = vector.broadcast %322 : vector<1x64xf32> to vector<14x64xf32>
    %337 = arith.addf %335, %336 : vector<14x64xf32>
    %cst_352 = arith.constant 0.000000e+00 : f32
    %338 = vector.broadcast %cst_352 : f32 to vector<14x64xf32>
    %339 = arith.maximumf %337, %338 : vector<14x64xf32>
    %c49_353 = arith.constant 49 : index
    %c0_354 = arith.constant 0 : index
    %340 = vector.load %arg12[%c49_353, %c0_354] : memref<256x64xf32, #tpu.memory_space<vmem>>, vector<14x64xf32>
    tpu.vector_store %arg12[%c49_353, %c0_354], %339 {strides = array<i32>} : memref<256x64xf32, #tpu.memory_space<vmem>>, vector<14x64xf32>,
    %c48_355 = arith.constant 48 : index
    %c0_356 = arith.constant 0 : index
    %341 = vector.load %arg11[%c48_355, %c0_356] : memref<222x64xf32, #tpu.memory_space<vmem>>, vector<14x64xf32>
    %342 = vector.broadcast %322 : vector<1x64xf32> to vector<14x64xf32>
    %343 = arith.addf %341, %342 : vector<14x64xf32>
    %cst_357 = arith.constant 0.000000e+00 : f32
    %344 = vector.broadcast %cst_357 : f32 to vector<14x64xf32>
    %345 = arith.maximumf %343, %344 : vector<14x64xf32>
    %c65_358 = arith.constant 65 : index
    %c0_359 = arith.constant 0 : index
    %346 = vector.load %arg12[%c65_358, %c0_359] : memref<256x64xf32, #tpu.memory_space<vmem>>, vector<14x64xf32>
    tpu.vector_store %arg12[%c65_358, %c0_359], %345 {strides = array<i32>} : memref<256x64xf32, #tpu.memory_space<vmem>>, vector<14x64xf32>,
    %c64_360 = arith.constant 64 : index
    %c0_361 = arith.constant 0 : index
    %347 = vector.load %arg11[%c64_360, %c0_361] : memref<222x64xf32, #tpu.memory_space<vmem>>, vector<14x64xf32>
    %348 = vector.broadcast %322 : vector<1x64xf32> to vector<14x64xf32>
    %349 = arith.addf %347, %348 : vector<14x64xf32>
    %cst_362 = arith.constant 0.000000e+00 : f32
    %350 = vector.broadcast %cst_362 : f32 to vector<14x64xf32>
    %351 = arith.maximumf %349, %350 : vector<14x64xf32>
    %c81_363 = arith.constant 81 : index
    %c0_364 = arith.constant 0 : index
    %352 = vector.load %arg12[%c81_363, %c0_364] : memref<256x64xf32, #tpu.memory_space<vmem>>, vector<14x64xf32>
    tpu.vector_store %arg12[%c81_363, %c0_364], %351 {strides = array<i32>} : memref<256x64xf32, #tpu.memory_space<vmem>>, vector<14x64xf32>,
    %c80_365 = arith.constant 80 : index
    %c0_366 = arith.constant 0 : index
    %353 = vector.load %arg11[%c80_365, %c0_366] : memref<222x64xf32, #tpu.memory_space<vmem>>, vector<14x64xf32>
    %354 = vector.broadcast %322 : vector<1x64xf32> to vector<14x64xf32>
    %355 = arith.addf %353, %354 : vector<14x64xf32>
    %cst_367 = arith.constant 0.000000e+00 : f32
    %356 = vector.broadcast %cst_367 : f32 to vector<14x64xf32>
    %357 = arith.maximumf %355, %356 : vector<14x64xf32>
    %c97_368 = arith.constant 97 : index
    %c0_369 = arith.constant 0 : index
    %358 = vector.load %arg12[%c97_368, %c0_369] : memref<256x64xf32, #tpu.memory_space<vmem>>, vector<14x64xf32>
    tpu.vector_store %arg12[%c97_368, %c0_369], %357 {strides = array<i32>} : memref<256x64xf32, #tpu.memory_space<vmem>>, vector<14x64xf32>,
    %c96_370 = arith.constant 96 : index
    %c0_371 = arith.constant 0 : index
    %359 = vector.load %arg11[%c96_370, %c0_371] : memref<222x64xf32, #tpu.memory_space<vmem>>, vector<14x64xf32>
    %360 = vector.broadcast %322 : vector<1x64xf32> to vector<14x64xf32>
    %361 = arith.addf %359, %360 : vector<14x64xf32>
    %cst_372 = arith.constant 0.000000e+00 : f32
    %362 = vector.broadcast %cst_372 : f32 to vector<14x64xf32>
    %363 = arith.maximumf %361, %362 : vector<14x64xf32>
    %c113_373 = arith.constant 113 : index
    %c0_374 = arith.constant 0 : index
    %364 = vector.load %arg12[%c113_373, %c0_374] : memref<256x64xf32, #tpu.memory_space<vmem>>, vector<14x64xf32>
    tpu.vector_store %arg12[%c113_373, %c0_374], %363 {strides = array<i32>} : memref<256x64xf32, #tpu.memory_space<vmem>>, vector<14x64xf32>,
    %c112_375 = arith.constant 112 : index
    %c0_376 = arith.constant 0 : index
    %365 = vector.load %arg11[%c112_375, %c0_376] : memref<222x64xf32, #tpu.memory_space<vmem>>, vector<14x64xf32>
    %366 = vector.broadcast %322 : vector<1x64xf32> to vector<14x64xf32>
    %367 = arith.addf %365, %366 : vector<14x64xf32>
    %cst_377 = arith.constant 0.000000e+00 : f32
    %368 = vector.broadcast %cst_377 : f32 to vector<14x64xf32>
    %369 = arith.maximumf %367, %368 : vector<14x64xf32>
    %c129_378 = arith.constant 129 : index
    %c0_379 = arith.constant 0 : index
    %370 = vector.load %arg12[%c129_378, %c0_379] : memref<256x64xf32, #tpu.memory_space<vmem>>, vector<14x64xf32>
    tpu.vector_store %arg12[%c129_378, %c0_379], %369 {strides = array<i32>} : memref<256x64xf32, #tpu.memory_space<vmem>>, vector<14x64xf32>,
    %c128_380 = arith.constant 128 : index
    %c0_381 = arith.constant 0 : index
    %371 = vector.load %arg11[%c128_380, %c0_381] : memref<222x64xf32, #tpu.memory_space<vmem>>, vector<14x64xf32>
    %372 = vector.broadcast %322 : vector<1x64xf32> to vector<14x64xf32>
    %373 = arith.addf %371, %372 : vector<14x64xf32>
    %cst_382 = arith.constant 0.000000e+00 : f32
    %374 = vector.broadcast %cst_382 : f32 to vector<14x64xf32>
    %375 = arith.maximumf %373, %374 : vector<14x64xf32>
    %c145_383 = arith.constant 145 : index
    %c0_384 = arith.constant 0 : index
    %376 = vector.load %arg12[%c145_383, %c0_384] : memref<256x64xf32, #tpu.memory_space<vmem>>, vector<14x64xf32>
    tpu.vector_store %arg12[%c145_383, %c0_384], %375 {strides = array<i32>} : memref<256x64xf32, #tpu.memory_space<vmem>>, vector<14x64xf32>,
    %c144_385 = arith.constant 144 : index
    %c0_386 = arith.constant 0 : index
    %377 = vector.load %arg11[%c144_385, %c0_386] : memref<222x64xf32, #tpu.memory_space<vmem>>, vector<14x64xf32>
    %378 = vector.broadcast %322 : vector<1x64xf32> to vector<14x64xf32>
    %379 = arith.addf %377, %378 : vector<14x64xf32>
    %cst_387 = arith.constant 0.000000e+00 : f32
    %380 = vector.broadcast %cst_387 : f32 to vector<14x64xf32>
    %381 = arith.maximumf %379, %380 : vector<14x64xf32>
    %c161_388 = arith.constant 161 : index
    %c0_389 = arith.constant 0 : index
    %382 = vector.load %arg12[%c161_388, %c0_389] : memref<256x64xf32, #tpu.memory_space<vmem>>, vector<14x64xf32>
    tpu.vector_store %arg12[%c161_388, %c0_389], %381 {strides = array<i32>} : memref<256x64xf32, #tpu.memory_space<vmem>>, vector<14x64xf32>,
    %c160_390 = arith.constant 160 : index
    %c0_391 = arith.constant 0 : index
    %383 = vector.load %arg11[%c160_390, %c0_391] : memref<222x64xf32, #tpu.memory_space<vmem>>, vector<14x64xf32>
    %384 = vector.broadcast %322 : vector<1x64xf32> to vector<14x64xf32>
    %385 = arith.addf %383, %384 : vector<14x64xf32>
    %cst_392 = arith.constant 0.000000e+00 : f32
    %386 = vector.broadcast %cst_392 : f32 to vector<14x64xf32>
    %387 = arith.maximumf %385, %386 : vector<14x64xf32>
    %c177_393 = arith.constant 177 : index
    %c0_394 = arith.constant 0 : index
    %388 = vector.load %arg12[%c177_393, %c0_394] : memref<256x64xf32, #tpu.memory_space<vmem>>, vector<14x64xf32>
    tpu.vector_store %arg12[%c177_393, %c0_394], %387 {strides = array<i32>} : memref<256x64xf32, #tpu.memory_space<vmem>>, vector<14x64xf32>,
    %c176_395 = arith.constant 176 : index
    %c0_396 = arith.constant 0 : index
    %389 = vector.load %arg11[%c176_395, %c0_396] : memref<222x64xf32, #tpu.memory_space<vmem>>, vector<14x64xf32>
    %390 = vector.broadcast %322 : vector<1x64xf32> to vector<14x64xf32>
    %391 = arith.addf %389, %390 : vector<14x64xf32>
    %cst_397 = arith.constant 0.000000e+00 : f32
    %392 = vector.broadcast %cst_397 : f32 to vector<14x64xf32>
    %393 = arith.maximumf %391, %392 : vector<14x64xf32>
    %c193_398 = arith.constant 193 : index
    %c0_399 = arith.constant 0 : index
    %394 = vector.load %arg12[%c193_398, %c0_399] : memref<256x64xf32, #tpu.memory_space<vmem>>, vector<14x64xf32>
    tpu.vector_store %arg12[%c193_398, %c0_399], %393 {strides = array<i32>} : memref<256x64xf32, #tpu.memory_space<vmem>>, vector<14x64xf32>,
    %c192_400 = arith.constant 192 : index
    %c0_401 = arith.constant 0 : index
    %395 = vector.load %arg11[%c192_400, %c0_401] : memref<222x64xf32, #tpu.memory_space<vmem>>, vector<14x64xf32>
    %396 = vector.broadcast %322 : vector<1x64xf32> to vector<14x64xf32>
    %397 = arith.addf %395, %396 : vector<14x64xf32>
    %cst_402 = arith.constant 0.000000e+00 : f32
    %398 = vector.broadcast %cst_402 : f32 to vector<14x64xf32>
    %399 = arith.maximumf %397, %398 : vector<14x64xf32>
    %c209_403 = arith.constant 209 : index
    %c0_404 = arith.constant 0 : index
    %400 = vector.load %arg12[%c209_403, %c0_404] : memref<256x64xf32, #tpu.memory_space<vmem>>, vector<14x64xf32>
    tpu.vector_store %arg12[%c209_403, %c0_404], %399 {strides = array<i32>} : memref<256x64xf32, #tpu.memory_space<vmem>>, vector<14x64xf32>,
    %c208 = arith.constant 208 : index
    %c0_405 = arith.constant 0 : index
    %401 = vector.load %arg11[%c208, %c0_405] : memref<222x64xf32, #tpu.memory_space<vmem>>, vector<14x64xf32>
    %402 = vector.broadcast %322 : vector<1x64xf32> to vector<14x64xf32>
    %403 = arith.addf %401, %402 : vector<14x64xf32>
    %cst_406 = arith.constant 0.000000e+00 : f32
    %404 = vector.broadcast %cst_406 : f32 to vector<14x64xf32>
    %405 = arith.maximumf %403, %404 : vector<14x64xf32>
    %c225_407 = arith.constant 225 : index
    %c0_408 = arith.constant 0 : index
    %406 = vector.load %arg12[%c225_407, %c0_408] : memref<256x64xf32, #tpu.memory_space<vmem>>, vector<14x64xf32>
    tpu.vector_store %arg12[%c225_407, %c0_408], %405 {strides = array<i32>} : memref<256x64xf32, #tpu.memory_space<vmem>>, vector<14x64xf32>,
    %c0_409 = arith.constant 0 : index
    %c0_410 = arith.constant 0 : index
    %407 = vector.load %arg12[%c0_409, %c0_410] : memref<256x64xf32, #tpu.memory_space<vmem>>, vector<256x64xf32>
    %c0_411 = arith.constant 0 : index
    %c0_412 = arith.constant 0 : index
    %408 = vector.load %arg6[%c0_411, %c0_412] : memref<64x128xf32, #tpu.memory_space<vmem>>, vector<64x128xf32>
    %cst_413 = arith.constant dense<0.000000e+00> : vector<256x128xf32>
    %409 = tpu.matmul %407, %408, %cst_413 {dimension_numbers = #tpu.dot_dimension_numbers<[1], [0], [0], [1], [0, 0, 1, 1], [], []>} : vector<256x64xf32>, vector<64x128xf32>, vector<256x128xf32> -> vector<256x128xf32>
    %c0_414 = arith.constant 0 : index
    %c0_415 = arith.constant 0 : index
    %410 = vector.load %arg7[%c0_414, %c0_415] : memref<1x128xf32, #tpu.memory_space<vmem>>, vector<1x128xf32>
    %411 = vector.broadcast %410 : vector<1x128xf32> to vector<256x128xf32>
    %412 = arith.addf %409, %411 : vector<256x128xf32>
    %cst_416 = arith.constant 0.000000e+00 : f32
    %413 = vector.broadcast %cst_416 : f32 to vector<256x128xf32>
    %414 = arith.maximumf %412, %413 : vector<256x128xf32>
    %c0_417 = arith.constant 0 : index
    %c0_418 = arith.constant 0 : index
    %c0_419 = arith.constant 0 : index
    %415 = vector.load %arg8[%c0_417, %c0_418, %c0_419] : memref<1x256x128xf32, #tpu.memory_space<vmem>>, vector<1x256x128xf32>
    %416 = vector.shape_cast %415 : vector<1x256x128xf32> to vector<256x128xf32>
    %417 = vector.shape_cast %414 : vector<256x128xf32> to vector<1x256x128xf32>
    tpu.vector_store %arg8[%c0_417, %c0_418, %c0_419], %417 {strides = array<i32>} : memref<1x256x128xf32, #tpu.memory_space<vmem>>, vector<1x256x128xf32>,
    return
  }
  func.func @transform_0(%arg0: i32) -> (i32, i32, i32) {
    %c0_i32 = arith.constant 0 : i32
    %c0_i32_0 = arith.constant 0 : i32
    %c0_i32_1 = arith.constant 0 : i32
    return %arg0, %c0_i32, %c0_i32_0 : i32, i32, i32
  }
  func.func @transform_1(%arg0: i32) -> (i32, i32) {
    %c0_i32 = arith.constant 0 : i32
    %c0_i32_0 = arith.constant 0 : i32
    %c0_i32_1 = arith.constant 0 : i32
    return %c0_i32, %c0_i32_0 : i32, i32
  }
  func.func @transform_2(%arg0: i32) -> (i32, i32) {
    %c0_i32 = arith.constant 0 : i32
    %c0_i32_0 = arith.constant 0 : i32
    %c0_i32_1 = arith.constant 0 : i32
    return %c0_i32, %c0_i32_0 : i32, i32
  }
  func.func @transform_3(%arg0: i32) -> (i32, i32) {
    %c0_i32 = arith.constant 0 : i32
    %c0_i32_0 = arith.constant 0 : i32
    %c0_i32_1 = arith.constant 0 : i32
    return %c0_i32, %c0_i32_0 : i32, i32
  }
  func.func @transform_4(%arg0: i32) -> (i32, i32) {
    %c0_i32 = arith.constant 0 : i32
    %c0_i32_0 = arith.constant 0 : i32
    %c0_i32_1 = arith.constant 0 : i32
    return %c0_i32, %c0_i32_0 : i32, i32
  }
  func.func @transform_5(%arg0: i32) -> (i32, i32) {
    %c0_i32 = arith.constant 0 : i32
    %c0_i32_0 = arith.constant 0 : i32
    %c0_i32_1 = arith.constant 0 : i32
    return %c0_i32, %c0_i32_0 : i32, i32
  }
  func.func @transform_6(%arg0: i32) -> (i32, i32) {
    %c0_i32 = arith.constant 0 : i32
    %c0_i32_0 = arith.constant 0 : i32
    %c0_i32_1 = arith.constant 0 : i32
    return %c0_i32, %c0_i32_0 : i32, i32
  }
  func.func @transform_7(%arg0: i32) -> (i32, i32, i32) {
    %c0_i32 = arith.constant 0 : i32
    %c0_i32_0 = arith.constant 0 : i32
    %c0_i32_1 = arith.constant 0 : i32
    return %arg0, %c0_i32, %c0_i32_0 : i32, i32, i32
  }
}

</mosaic_0001>

<bundles_post_ra>
// kernel: cnn_forward.1
= control target key start
LH: loop header
LB: loop body
LE: loop exit
PB: predicated region body
PF: predicated region fallthrough
CT: control target
= control target key end

     0   :  { %s22015_s24 = smov 0   ;;  %s26873_s0 = inlined_call_operand.vmem [shape: f32[2,324,8], index: 0, kind: input, shape index: {}]   ;;  %s26874_s1 = inlined_call_operand.vmem [shape: f32[200,128], index: 1, kind: input, shape index: {}]   ;;  %s26875_s2 = inlined_call_operand.vmem [shape: f32[1,128], index: 2, kind: input, shape index: {}]   ;;  %s26876_s3 = inlined_call_operand.vmem [shape: f32[1152,64], index: 3, kind: input, shape index: {}]   ;;  %s26877_s4 = inlined_call_operand.vmem [shape: f32[1,64], index: 4, kind: input, shape index: {}]   ;;  %s26878_s5 = inlined_call_operand.vmem [shape: f32[64,128], index: 5, kind: input, shape index: {}]   ;;  %s26879_s6 = inlined_call_operand.vmem [shape: f32[1,128], index: 6, kind: input, shape index: {}]   ;;  %s26880_s7 = inlined_call_operand.vmem [shape: f32[2,256,128], index: 7, kind: output, shape index: {}]  }
   0x1 LB: > { %s15077_s25 = sadd.s32 4294967295, %s21971_s24   ;;  %p15081_p0 = scmp.ge.s32.totalorder %s21971_s24, 1  ;;  %s21971_s24 = sphi %s22015_s24, %s17_s24  }
   0x2   : > { %p237_p1 = scmp.lt.s32.totalorder %s21971_s24, 3 }
   0x4   : > { %p238_p2 = pnand %p15081_p0, %p237_p1 }
   0x5   : > { %v4691_v0 = vld [vmem:[%s26874_s1 + $0x50] sm:$0xff] (!%p238_p2)  ;;  %v310_v1 = vld [vmem:[%s26874_s1] sm:$0xff] (!%p238_p2)  ;;  %p22031_p3 = scmp.lt.s32.totalorder (!%p238_p2), %s15077_s25, 1  ;;  %v21973_v2 = vmov (!%p238_p2), 0.0   ;;  %vm21974_vm0 = vmmov (!%p238_p2), 0   ;;  %vm373_vm1 = vcmask (!%p238_p2), 64512  }
   0x6   : > { %241 = sbr.rel (%p238_p2) target bundleno = 3016 (0xbc8), region = 48  ;;  %18084 = vmatprep.subr.mxu0 (!%p238_p2), %v21973_v2  ;;  %11261 = vst [vmem:[#allocation3] sm:$0xff] (!%p238_p2), %v21973_v2  ;;  %11262 = vst [vmem:[#allocation3 + $0x8] sm:$0xff] (!%p238_p2), %v21973_v2  ;;  %17134 = vmatprep.subr.mxu1 (!%p238_p2), %v21973_v2  ;;  %v5129_v3 = vld [vmem:[%s26874_s1 + $0x58] sm:$0xff] (!%p238_p2)  ;;  %v749_v6 = vld [vmem:[%s26874_s1 + $0x8] sm:$0xff] (!%p238_p2)  ;;  %vm11412_vm2 = vcmask (!%p238_p2), 523264  }
   0x7   : > { %11263 = vst [vmem:[#allocation3 + $0x10] sm:$0xff] (!%p238_p2), %v21973_v2  ;;  %11264 = vst [vmem:[#allocation3 + $0x18] sm:$0xff] (!%p238_p2), %v21973_v2  ;;  %18085 = vmatpush3.msra.mxu0 (!%p238_p2), %v4691_v0  ;;  %17135 = vmatpush3.msra.mxu1 (!%p238_p2), %v310_v1  ;;  %vm11440_vm3 = vcmask (!%p238_p2), 521216  }
   0x8   : > { %11265 = vst [vmem:[#allocation3 + $0x20] sm:$0xff] (!%p238_p2), %v21973_v2  ;;  %11266 = vst [vmem:[#allocation3 + $0x28] sm:$0xff] (!%p238_p2), %v21973_v2  ;;  %17136 = vmatprep.mubr.msk.f32.mxu1 (!%p238_p2), %vm21974_vm0, %v21973_v2  ;;  %18086 = vmatprep.mubr.msk.f32.mxu0 (!%p238_p2), %vm21974_vm0, %v21973_v2 }
   0x9   : > { %11267 = vst [vmem:[#allocation3 + $0x30] sm:$0xff] (!%p238_p2), %v21973_v2  ;;  %11268 = vst [vmem:[#allocation3 + $0x38] sm:$0xff] (!%p238_p2), %v21973_v2  ;;  %18179 = vmatprep.subr.mxu0 (!%p238_p2), %v21973_v2  ;;  %17229 = vmatprep.subr.mxu1 (!%p238_p2), %v21973_v2 }
   0xa   : > { %11269 = vst [vmem:[#allocation3 + $0x40] sm:$0xff] (!%p238_p2), %v21973_v2  ;;  %11270 = vst [vmem:[#allocation3 + $0x48] sm:$0xff] (!%p238_p2), %v21973_v2 }
   0xb   : > { %11271 = vst [vmem:[#allocation3 + $0x50] sm:$0xff] (!%p238_p2), %v21973_v2  ;;  %11272 = vst [vmem:[#allocation3 + $0x58] sm:$0xff] (!%p238_p2), %v21973_v2 }
   0xc   : > { %11273 = vst [vmem:[#allocation3 + $0x60] sm:$0xff] (!%p238_p2), %v21973_v2  ;;  %11274 = vst [vmem:[#allocation3 + $0x68] sm:$0xff] (!%p238_p2), %v21973_v2 }
   0xd   : > { %11275 = vst [vmem:[#allocation3 + $0x70] sm:$0xff] %v21973_v2  ;;  %11276 = vst [vmem:[#allocation3 + $0x78] sm:$0xff] %v21973_v2  ;;  %s26883_s25 = smov (!%p22031_p3, %s15077_s25), 1 }
   0xe   : > { %11277 = vst [vmem:[#allocation3 + $0x80] sm:$0xff] %v21973_v2  ;;  %11278 = vst [vmem:[#allocation3 + $0x88] sm:$0xff] %v21973_v2  ;;  %s21947_s8 = smul.u32 328, %s26883_s25  ;;  %s15897_s14 = sshll.u32 %s26883_s25, 8 }
   0xf   : > { %11279 = vst [vmem:[#allocation3 + $0x90] sm:$0xff] %v21973_v2  ;;  %11280 = vst [vmem:[#allocation3 + $0x98] sm:$0xff] %v21973_v2  ;;  %s26805_s17 = scalar_lea.vmem %s26880_s7, %s15897_s14 }
  0x10   : > { %11281 = vst [vmem:[#allocation3 + $0xa0] sm:$0xff] %v21973_v2  ;;  %11282 = vst [vmem:[#allocation3 + $0xa8] sm:$0xff] %v21973_v2  ;;  %s22085_s11 = scalar_lea.vmem %s26873_s0, %s21947_s8 }
  0x11   : > { %11283 = vst [vmem:[#allocation3 + $0xb0] sm:$0xff] %v21973_v2  ;;  %11284 = vst [vmem:[#allocation3 + $0xb8] sm:$0xff] %v21973_v2  ;;  %v342_v4 = vld [vmem:[%s22085_s11] sm:$0xff]  ;;  %v343_v7 = vld [vmem:[%s22085_s11 + $0x8] sm:$0xff] }
  0x12   : > { %11285 = vst [vmem:[#allocation3 + $0xc0] sm:$0xff] %v21973_v2  ;;  %11286 = vst [vmem:[#allocation3 + $0xc8] sm:$0xff] %v21973_v2  ;;  %v4723_v5 = vld [vmem:[%s22085_s11 + $0x24] sm:$0xff]  ;;  %17137 = vmatmul.mubr.msk.f32.vlgmr.msra.gmra.mrb[0].mxu1 %vm373_vm1, %v342_v4  ;;  %v4724_v8 = vld [vmem:[%s22085_s11 + $0x2c] sm:$0xff] }
  0x13   : > { %11287 = vst [vmem:[#allocation3 + $0xd0] sm:$0xff] %v21973_v2  ;;  %11288 = vst [vmem:[#allocation3 + $0xd8] sm:$0xff] %v21973_v2  ;;  %18087 = vmatmul.mubr.msk.f32.vlgmr.msra.gmra.mrb[0].mxu0 %vm373_vm1, %v4723_v5  ;;  %17139 = vmatprep.mubr.msk.f32.mxu1 %vm21974_vm0, %v21973_v2  ;;  %v344_v9 = vld [vmem:[%s22085_s11 + $0x10] sm:$0xff]  ;;  %v345_v11 = vld [vmem:[%s22085_s11 + $0x18] sm:$0xff] }
  0x14   : > { %11289 = vst [vmem:[#allocation3 + $0xe0] sm:$0xff] %v21973_v2  ;;  %11290 = vst [vmem:[#allocation3 + $0xe8] sm:$0xff] %v21973_v2  ;;  %18180 = vmatpush3.msra.mxu0 %v5129_v3  ;;  %18089 = vmatprep.mubr.msk.f32.mxu0 %vm21974_vm0, %v21973_v2  ;;  %v4725_v10 = vld [vmem:[%s22085_s11 + $0x34] sm:$0xff]  ;;  %v4726_v12 = vld [vmem:[%s22085_s11 + $0x3c] sm:$0xff] }
  0x15   : > { %11291 = vst [vmem:[#allocation3 + $0xf0] sm:$0xff] %v21973_v2  ;;  %11292 = vst [vmem:[#allocation3 + $0xf8] sm:$0xff] %v21973_v2  ;;  %17230 = vmatpush3.msra.mxu1 %v749_v6  ;;  %18274 = vmatprep.subr.mxu0 %v21973_v2  ;;  %v346_v13 = vld [vmem:[%s22085_s11 + $0x20] sm:$0xff]  ;;  %v347_v15 = vld [vmem:[%s22085_s11 + $0x28] sm:$0xff] }
  0x16   : > { %17324 = vmatprep.subr.mxu1 %v21973_v2  ;;  %17140 = vmatmul.mubr.msk.f32.gmra.mrb[2].mxu1 %vm373_vm1, %v343_v7  ;;  %v4727_v14 = vld [vmem:[%s22085_s11 + $0x44] sm:$0xff]  ;;  %v4728_v16 = vld [vmem:[%s22085_s11 + $0x4c] sm:$0xff]  ;;  %v4729_v18 = vld [vmem:[%s22085_s11 + $0x54] sm:$0xff] }
  0x17   : > { %18090 = vmatmul.mubr.msk.f32.gmra.mrb[2].mxu0 %vm373_vm1, %v4724_v8  ;;  %17142 = vmatprep.mubr.msk.f32.mxu1 %vm21974_vm0, %v21973_v2  ;;  %v348_v17 = vld [vmem:[%s22085_s11 + $0x30] sm:$0xff]  ;;  %v349_v19 = vld [vmem:[%s22085_s11 + $0x38] sm:$0xff]  ;;  %v350_v21 = vld [vmem:[%s22085_s11 + $0x40] sm:$0xff] }
  0x18   : > { %18092 = vmatprep.mubr.msk.f32.mxu0 %vm21974_vm0, %v21973_v2  ;;  %v4730_v20 = vld [vmem:[%s22085_s11 + $0x5c] sm:$0xff]  ;;  %v4731_v22 = vld [vmem:[%s22085_s11 + $0x64] sm:$0xff]  ;;  %v4732_v24 = vld [vmem:[%s22085_s11 + $0x6c] sm:$0xff] }
  0x19   : > { %v351_v23 = vld [vmem:[%s22085_s11 + $0x48] sm:$0xff]  ;;  %v352_v25 = vld [vmem:[%s22085_s11 + $0x50] sm:$0xff]  ;;  %v353_v27 = vld [vmem:[%s22085_s11 + $0x58] sm:$0xff] }
  0x1a   : > { %17143 = vmatmul.mubr.msk.f32.gmra.mrb[4].mxu1 %vm373_vm1, %v344_v9  ;;  %v4733_v26 = vld [vmem:[%s22085_s11 + $0x74] sm:$0xff]  ;;  %v4734_v28 = vld [vmem:[%s22085_s11 + $0x7c] sm:$0xff]  ;;  %v4735_v30 = vld [vmem:[%s22085_s11 + $0x84] sm:$0xff] }
  0x1b   : > { %18093 = vmatmul.mubr.msk.f32.gmra.mrb[4].mxu0 %vm373_vm1, %v4725_v10  ;;  %17145 = vmatprep.mubr.msk.f32.mxu1 %vm21974_vm0, %v21973_v2  ;;  %v354_v29 = vld [vmem:[%s22085_s11 + $0x60] sm:$0xff]  ;;  %v355_v31 = vld [vmem:[%s22085_s11 + $0x68] sm:$0xff]  ;;  %v356_v33 = vld [vmem:[%s22085_s11 + $0x70] sm:$0xff] }
  0x1c   : > { %18095 = vmatprep.mubr.msk.f32.mxu0 %vm21974_vm0, %v21973_v2  ;;  %v4736_v32 = vld [vmem:[%s22085_s11 + $0x8c] sm:$0xff]  ;;  %v4737_v34 = vld [vmem:[%s22085_s11 + $0x94] sm:$0xff]  ;;  %v4738_v36 = vld [vmem:[%s22085_s11 + $0x9c] sm:$0xff] }
  0x1d   : > { %v357_v35 = vld [vmem:[%s22085_s11 + $0x78] sm:$0xff]  ;;  %v358_v37 = vld [vmem:[%s22085_s11 + $0x80] sm:$0xff]  ;;  %v359_v39 = vld [vmem:[%s22085_s11 + $0x88] sm:$0xff] }
  0x1e   : > { %17146 = vmatmul.mubr.msk.f32.gmra.mrb[6].mxu1 %vm373_vm1, %v345_v11  ;;  %v4739_v38 = vld [vmem:[%s22085_s11 + $0xa4] sm:$0xff]  ;;  %v4740_v40 = vld [vmem:[%s22085_s11 + $0xac] sm:$0xff]  ;;  %v4741_v42 = vld [vmem:[%s22085_s11 + $0xb4] sm:$0xff] }
  0x1f   : > { %18096 = vmatmul.mubr.msk.f32.gmra.mrb[6].mxu0 %vm373_vm1, %v4726_v12  ;;  %17148 = vmatprep.mubr.msk.f32.mxu1 %vm21974_vm0, %v21973_v2  ;;  %v360_v41 = vld [vmem:[%s22085_s11 + $0x90] sm:$0xff]  ;;  %v361_v43 = vld [vmem:[%s22085_s11 + $0x98] sm:$0xff]  ;;  %v362_v45 = vld [vmem:[%s22085_s11 + $0xa0] sm:$0xff] }
  0x20   : > { %18098 = vmatprep.mubr.msk.f32.mxu0 %vm21974_vm0, %v21973_v2  ;;  %v4742_v44 = vld [vmem:[%s22085_s11 + $0xbc] sm:$0xff]  ;;  %v4743_v46 = vld [vmem:[%s22085_s11 + $0xc4] sm:$0xff]  ;;  %v4744_v48 = vld [vmem:[%s22085_s11 + $0xcc] sm:$0xff] }
  0x21   : > { %v363_v47 = vld [vmem:[%s22085_s11 + $0xa8] sm:$0xff]  ;;  %v364_v49 = vld [vmem:[%s22085_s11 + $0xb0] sm:$0xff]  ;;  %v365_v51 = vld [vmem:[%s22085_s11 + $0xb8] sm:$0xff] }
  0x22   : > { %17149 = vmatmul.mubr.msk.f32.gmra.mrb[8].mxu1 %vm373_vm1, %v346_v13  ;;  %v4745_v50 = vld [vmem:[%s22085_s11 + $0xd4] sm:$0xff]  ;;  %v4746_v52 = vld [vmem:[%s22085_s11 + $0xdc] sm:$0xff]  ;;  %v4747_v54 = vld [vmem:[%s22085_s11 + $0xe4] sm:$0xff] }
  0x23   : > { %18099 = vmatmul.mubr.msk.f32.gmra.mrb[8].mxu0 %vm373_vm1, %v4727_v14  ;;  %17151 = vmatprep.mubr.msk.f32.mxu1 %vm21974_vm0, %v21973_v2  ;;  %v366_v53 = vld [vmem:[%s22085_s11 + $0xc0] sm:$0xff]  ;;  %v367_v55 = vld [vmem:[%s22085_s11 + $0xc8] sm:$0xff]  ;;  %v368_v57 = vld [vmem:[%s22085_s11 + $0xd0] sm:$0xff] }
  0x24   : > { %18101 = vmatprep.mubr.msk.f32.mxu0 %vm21974_vm0, %v21973_v2  ;;  %v4748_v56 = vld [vmem:[%s22085_s11 + $0xec] sm:$0xff]  ;;  %v4749_v58 = vld [vmem:[%s22085_s11 + $0xf4] sm:$0xff]  ;;  %v4750_v60 = vld [vmem:[%s22085_s11 + $0xfc] sm:$0xff] }
  0x25   : > { %v369_v59 = vld [vmem:[%s22085_s11 + $0xd8] sm:$0xff]  ;;  %v370_v61 = vld [vmem:[%s22085_s11 + $0xe0] sm:$0xff]  ;;  %v371_v63 = vld [vmem:[%s22085_s11 + $0xe8] sm:$0xff] }
  0x26   : > { %17152 = vmatmul.mubr.msk.f32.gmra.mrb[10].mxu1 %vm373_vm1, %v347_v15  ;;  %v4751_v62 = vld [vmem:[%s22085_s11 + $0x104] sm:$0xff]  ;;  %v4752_v0 = vld [vmem:[%s22085_s11 + $0x10c] sm:$0xff]  ;;  %v4753_v3 = vld [vmem:[%s22085_s11 + $0x114] sm:$0xff] }
  0x27   : > { %18102 = vmatmul.mubr.msk.f32.gmra.mrb[10].mxu0 %vm373_vm1, %v4728_v16  ;;  %17154 = vmatprep.mubr.msk.f32.mxu1 %vm21974_vm0, %v21973_v2  ;;  %v372_v1 = vld [vmem:[%s22085_s11 + $0xf0] sm:$0xff]  ;;  %v781_v4 = vld [vmem:[%s22085_s11 + $0x1] sm:$0xff]  ;;  %v784_v12 = vld [vmem:[%s22085_s11 + $0x19] sm:$0xff] }
  0x28   : > { %18104 = vmatprep.mubr.msk.f32.mxu0 %vm21974_vm0, %v21973_v2  ;;  %v5161_v5 = vld [vmem:[%s22085_s11 + $0x25] sm:$0xff]  ;;  %v1187_v7 = vld [vmem:[%s26874_s1 + $0x10] sm:$0xff]  ;;  %v5164_v13 = vld [vmem:[%s22085_s11 + $0x3d] sm:$0xff] }
  0x29   : > { %v5567_v6 = vld [vmem:[%s26874_s1 + $0x60] sm:$0xff]  ;;  %v782_v8 = vld [vmem:[%s22085_s11 + $0x9] sm:$0xff]  ;;  %v783_v10 = vld [vmem:[%s22085_s11 + $0x11] sm:$0xff] }
  0x2a   : > { %17155 = vmatmul.mubr.msk.f32.gmra.mrb[12].mxu1 %vm373_vm1, %v348_v17  ;;  %v5162_v9 = vld [vmem:[%s22085_s11 + $0x2d] sm:$0xff]  ;;  %v5163_v11 = vld [vmem:[%s22085_s11 + $0x35] sm:$0xff]  ;;  %v785_v14 = vld [vmem:[%s22085_s11 + $0x21] sm:$0xff] }
  0x2b   : > { %18105 = vmatmul.mubr.msk.f32.gmra.mrb[12].mxu0 %vm373_vm1, %v4729_v18  ;;  %17157 = vmatprep.mubr.msk.f32.mxu1 %vm21974_vm0, %v21973_v2  ;;  %v5165_v15 = vld [vmem:[%s22085_s11 + $0x45] sm:$0xff]  ;;  %v5166_v17 = vld [vmem:[%s22085_s11 + $0x4d] sm:$0xff] }
  0x2c   : > { %18107 = vmatprep.mubr.msk.f32.mxu0 %vm21974_vm0, %v21973_v2  ;;  %v786_v16 = vld [vmem:[%s22085_s11 + $0x29] sm:$0xff]  ;;  %v787_v18 = vld [vmem:[%s22085_s11 + $0x31] sm:$0xff] }
  0x2e   : > { %17158 = vmatmul.mubr.msk.f32.gmra.mrb[14].mxu1 %vm373_vm1, %v349_v19  ;;  %v5167_v19 = vld [vmem:[%s22085_s11 + $0x55] sm:$0xff] }
  0x2f   : > { %18108 = vmatmul.mubr.msk.f32.gmra.mrb[14].mxu0 %vm373_vm1, %v4730_v20  ;;  %17160 = vmatprep.mubr.msk.f32.mxu1 %vm21974_vm0, %v21973_v2  ;;  %v788_v20 = vld [vmem:[%s22085_s11 + $0x39] sm:$0xff] }
  0x30   : > { %18110 = vmatprep.mubr.msk.f32.mxu0 %vm21974_vm0, %v21973_v2 }
  0x32   : > { %17161 = vmatmul.mubr.msk.f32.gmra.mrb[16].mxu1 %vm373_vm1, %v350_v21  ;;  %v5168_v21 = vld [vmem:[%s22085_s11 + $0x5d] sm:$0xff] }
  0x33   : > { %18111 = vmatmul.mubr.msk.f32.gmra.mrb[16].mxu0 %vm373_vm1, %v4731_v22  ;;  %17163 = vmatprep.mubr.msk.f32.mxu1 %vm21974_vm0, %v21973_v2  ;;  %v789_v22 = vld [vmem:[%s22085_s11 + $0x41] sm:$0xff] }
  0x34   : > { %18113 = vmatprep.mubr.msk.f32.mxu0 %vm21974_vm0, %v21973_v2 }
  0x36   : > { %17164 = vmatmul.mubr.msk.f32.gmra.mrb[18].mxu1 %vm373_vm1, %v351_v23  ;;  %v5169_v23 = vld [vmem:[%s22085_s11 + $0x65] sm:$0xff] }
  0x37   : > { %18114 = vmatmul.mubr.msk.f32.gmra.mrb[18].mxu0 %vm373_vm1, %v4732_v24  ;;  %17166 = vmatprep.mubr.msk.f32.mxu1 %vm21974_vm0, %v21973_v2  ;;  %v790_v24 = vld [vmem:[%s22085_s11 + $0x49] sm:$0xff] }
  0x38   : > { %18116 = vmatprep.mubr.msk.f32.mxu0 %vm21974_vm0, %v21973_v2 }
  0x3a   : > { %17167 = vmatmul.mubr.msk.f32.gmra.mrb[20].mxu1 %vm373_vm1, %v352_v25  ;;  %v5170_v25 = vld [vmem:[%s22085_s11 + $0x6d] sm:$0xff] }
  0x3b   : > { %18117 = vmatmul.mubr.msk.f32.gmra.mrb[20].mxu0 %vm373_vm1, %v4733_v26  ;;  %17169 = vmatprep.mubr.msk.f32.mxu1 %vm21974_vm0, %v21973_v2  ;;  %v791_v26 = vld [vmem:[%s22085_s11 + $0x51] sm:$0xff] }
  0x3c   : > { %18119 = vmatprep.mubr.msk.f32.mxu0 %vm21974_vm0, %v21973_v2 }
  0x3e   : > { %17170 = vmatmul.mubr.msk.f32.gmra.mrb[22].mxu1 %vm373_vm1, %v353_v27  ;;  %v5171_v27 = vld [vmem:[%s22085_s11 + $0x75] sm:$0xff] }
  0x3f   : > { %18120 = vmatmul.mubr.msk.f32.gmra.mrb[22].mxu0 %vm373_vm1, %v4734_v28  ;;  %17172 = vmatprep.mubr.msk.f32.mxu1 %vm21974_vm0, %v21973_v2  ;;  %v792_v28 = vld [vmem:[%s22085_s11 + $0x59] sm:$0xff] }
  0x40   : > { %18122 = vmatprep.mubr.msk.f32.mxu0 %vm21974_vm0, %v21973_v2 }
  0x42   : > { %17173 = vmatmul.mubr.msk.f32.gmra.mrb[24].mxu1 %vm373_vm1, %v354_v29  ;;  %v5172_v29 = vld [vmem:[%s22085_s11 + $0x7d] sm:$0xff] }
  0x43   : > { %18123 = vmatmul.mubr.msk.f32.gmra.mrb[24].mxu0 %vm373_vm1, %v4735_v30  ;;  %17175 = vmatprep.mubr.msk.f32.mxu1 %vm21974_vm0, %v21973_v2  ;;  %v793_v30 = vld [vmem:[%s22085_s11 + $0x61] sm:$0xff] }
  0x44   : > { %18125 = vmatprep.mubr.msk.f32.mxu0 %vm21974_vm0, %v21973_v2 }
  0x46   : > { %17176 = vmatmul.mubr.msk.f32.gmra.mrb[26].mxu1 %vm373_vm1, %v355_v31  ;;  %v5173_v31 = vld [vmem:[%s22085_s11 + $0x85] sm:$0xff] }
  0x47   : > { %18126 = vmatmul.mubr.msk.f32.gmra.mrb[26].mxu0 %vm373_vm1, %v4736_v32  ;;  %17178 = vmatprep.mubr.msk.f32.mxu1 %vm21974_vm0, %v21973_v2  ;;  %v794_v32 = vld [vmem:[%s22085_s11 + $0x69] sm:$0xff] }
  0x48   : > { %18128 = vmatprep.mubr.msk.f32.mxu0 %vm21974_vm0, %v21973_v2 }
  0x4a   : > { %17179 = vmatmul.mubr.msk.f32.gmra.mrb[28].mxu1 %vm373_vm1, %v356_v33  ;;  %v5174_v33 = vld [vmem:[%s22085_s11 + $0x8d] sm:$0xff] }
  0x4b   : > { %18129 = vmatmul.mubr.msk.f32.gmra.mrb[28].mxu0 %vm373_vm1, %v4737_v34  ;;  %17181 = vmatprep.mubr.msk.f32.mxu1 %vm21974_vm0, %v21973_v2  ;;  %v795_v34 = vld [vmem:[%s22085_s11 + $0x71] sm:$0xff] }
  0x4c   : > { %18131 = vmatprep.mubr.msk.f32.mxu0 %vm21974_vm0, %v21973_v2 }
  0x4e   : > { %17182 = vmatmul.mubr.msk.f32.gmra.mrb[30].mxu1 %vm373_vm1, %v357_v35  ;;  %v5175_v35 = vld [vmem:[%s22085_s11 + $0x95] sm:$0xff] }
  0x4f   : > { %18132 = vmatmul.mubr.msk.f32.gmra.mrb[30].mxu0 %vm373_vm1, %v4738_v36  ;;  %17184 = vmatprep.mubr.msk.f32.mxu1 %vm21974_vm0, %v21973_v2  ;;  %v796_v36 = vld [vmem:[%s22085_s11 + $0x79] sm:$0xff] }
  0x50   : > { %18134 = vmatprep.mubr.msk.f32.mxu0 %vm21974_vm0, %v21973_v2 }
  0x52   : > { %17185 = vmatmul.mubr.msk.f32.gmra.mrb[32].mxu1 %vm373_vm1, %v358_v37  ;;  %v5176_v37 = vld [vmem:[%s22085_s11 + $0x9d] sm:$0xff] }
  0x53   : > { %18135 = vmatmul.mubr.msk.f32.gmra.mrb[32].mxu0 %vm373_vm1, %v4739_v38  ;;  %17187 = vmatprep.mubr.msk.f32.mxu1 %vm21974_vm0, %v21973_v2  ;;  %v797_v38 = vld [vmem:[%s22085_s11 + $0x81] sm:$0xff] }
  0x54   : > { %18137 = vmatprep.mubr.msk.f32.mxu0 %vm21974_vm0, %v21973_v2 }
  0x56   : > { %17188 = vmatmul.mubr.msk.f32.gmra.mrb[34].mxu1 %vm373_vm1, %v359_v39  ;;  %v5177_v39 = vld [vmem:[%s22085_s11 + $0xa5] sm:$0xff] }
  0x57   : > { %18138 = vmatmul.mubr.msk.f32.gmra.mrb[34].mxu0 %vm373_vm1, %v4740_v40  ;;  %17190 = vmatprep.mubr.msk.f32.mxu1 %vm21974_vm0, %v21973_v2  ;;  %v798_v40 = vld [vmem:[%s22085_s11 + $0x89] sm:$0xff] }
  0x58   : > { %18140 = vmatprep.mubr.msk.f32.mxu0 %vm21974_vm0, %v21973_v2 }
  0x5a   : > { %17191 = vmatmul.mubr.msk.f32.gmra.mrb[36].mxu1 %vm373_vm1, %v360_v41  ;;  %v5178_v41 = vld [vmem:[%s22085_s11 + $0xad] sm:$0xff] }
  0x5b   : > { %18141 = vmatmul.mubr.msk.f32.gmra.mrb[36].mxu0 %vm373_vm1, %v4741_v42  ;;  %17193 = vmatprep.mubr.msk.f32.mxu1 %vm21974_vm0, %v21973_v2  ;;  %v799_v42 = vld [vmem:[%s22085_s11 + $0x91] sm:$0xff] }
  0x5c   : > { %18143 = vmatprep.mubr.msk.f32.mxu0 %vm21974_vm0, %v21973_v2 }
  0x5e   : > { %17194 = vmatmul.mubr.msk.f32.gmra.mrb[38].mxu1 %vm373_vm1, %v361_v43  ;;  %v5179_v43 = vld [vmem:[%s22085_s11 + $0xb5] sm:$0xff] }
  0x5f   : > { %18144 = vmatmul.mubr.msk.f32.gmra.mrb[38].mxu0 %vm373_vm1, %v4742_v44  ;;  %17196 = vmatprep.mubr.msk.f32.mxu1 %vm21974_vm0, %v21973_v2  ;;  %v800_v44 = vld [vmem:[%s22085_s11 + $0x99] sm:$0xff] }
  0x60   : > { %18146 = vmatprep.mubr.msk.f32.mxu0 %vm21974_vm0, %v21973_v2 }
  0x62   : > { %17197 = vmatmul.mubr.msk.f32.gmra.mrb[40].mxu1 %vm373_vm1, %v362_v45  ;;  %v5180_v45 = vld [vmem:[%s22085_s11 + $0xbd] sm:$0xff] }
  0x63   : > { %18147 = vmatmul.mubr.msk.f32.gmra.mrb[40].mxu0 %vm373_vm1, %v4743_v46  ;;  %17199 = vmatprep.mubr.msk.f32.mxu1 %vm21974_vm0, %v21973_v2  ;;  %v801_v46 = vld [vmem:[%s22085_s11 + $0xa1] sm:$0xff] }
  0x64   : > { %18149 = vmatprep.mubr.msk.f32.mxu0 %vm21974_vm0, %v21973_v2 }
  0x66   : > { %17200 = vmatmul.mubr.msk.f32.gmra.mrb[42].mxu1 %vm373_vm1, %v363_v47  ;;  %v5181_v47 = vld [vmem:[%s22085_s11 + $0xc5] sm:$0xff] }
  0x67   : > { %18150 = vmatmul.mubr.msk.f32.gmra.mrb[42].mxu0 %vm373_vm1, %v4744_v48  ;;  %17202 = vmatprep.mubr.msk.f32.mxu1 %vm21974_vm0, %v21973_v2  ;;  %v802_v48 = vld [vmem:[%s22085_s11 + $0xa9] sm:$0xff] }
  0x68   : > { %18152 = vmatprep.mubr.msk.f32.mxu0 %vm21974_vm0, %v21973_v2 }
  0x6a   : > { %17203 = vmatmul.mubr.msk.f32.gmra.mrb[44].mxu1 %vm373_vm1, %v364_v49  ;;  %v5182_v49 = vld [vmem:[%s22085_s11 + $0xcd] sm:$0xff] }
  0x6b   : > { %18153 = vmatmul.mubr.msk.f32.gmra.mrb[44].mxu0 %vm373_vm1, %v4745_v50  ;;  %17205 = vmatprep.mubr.msk.f32.mxu1 %vm21974_vm0, %v21973_v2  ;;  %v803_v50 = vld [vmem:[%s22085_s11 + $0xb1] sm:$0xff] }
  0x6c   : > { %18155 = vmatprep.mubr.msk.f32.mxu0 %vm21974_vm0, %v21973_v2 }
  0x6e   : > { %17206 = vmatmul.mubr.msk.f32.gmra.mrb[46].mxu1 %vm373_vm1, %v365_v51  ;;  %v5183_v51 = vld [vmem:[%s22085_s11 + $0xd5] sm:$0xff] }
  0x6f   : > { %18156 = vmatmul.mubr.msk.f32.gmra.mrb[46].mxu0 %vm373_vm1, %v4746_v52  ;;  %17208 = vmatprep.mubr.msk.f32.mxu1 %vm21974_vm0, %v21973_v2 }
  0x70   : > { %18158 = vmatprep.mubr.msk.f32.mxu0 %vm21974_vm0, %v21973_v2 }
  0x72   : > { %17209 = vmatmul.mubr.msk.f32.gmra.mrb[48].mxu1 %vm373_vm1, %v366_v53 }
  0x73   : > { %18159 = vmatmul.mubr.msk.f32.gmra.mrb[48].mxu0 %vm373_vm1, %v4747_v54  ;;  %17211 = vmatprep.mubr.msk.f32.mxu1 %vm21974_vm0, %v21973_v2  ;;  %v804_v54 = vld [vmem:[%s22085_s11 + $0xb9] sm:$0xff] }
  0x74   : > { %18161 = vmatprep.mubr.msk.f32.mxu0 %vm21974_vm0, %v21973_v2 }
  0x76   : > { %17212 = vmatmul.mubr.msk.f32.gmra.mrb[50].mxu1 %vm373_vm1, %v367_v55  ;;  %v5184_v55 = vld [vmem:[%s22085_s11 + $0xdd] sm:$0xff] }
  0x77   : > { %18162 = vmatmul.mubr.msk.f32.gmra.mrb[50].mxu0 %vm373_vm1, %v4748_v56  ;;  %17214 = vmatprep.mubr.msk.f32.mxu1 %vm21974_vm0, %v21973_v2  ;;  %v805_v56 = vld [vmem:[%s22085_s11 + $0xc1] sm:$0xff] }
  0x78   : > { %18164 = vmatprep.mubr.msk.f32.mxu0 %vm21974_vm0, %v21973_v2 }
  0x7a   : > { %17215 = vmatmul.mubr.msk.f32.gmra.mrb[52].mxu1 %vm373_vm1, %v368_v57  ;;  %v5185_v57 = vld [vmem:[%s22085_s11 + $0xe5] sm:$0xff] }
  0x7b   : > { %18165 = vmatmul.mubr.msk.f32.gmra.mrb[52].mxu0 %vm373_vm1, %v4749_v58  ;;  %17217 = vmatprep.mubr.msk.f32.mxu1 %vm21974_vm0, %v21973_v2  ;;  %v806_v58 = vld [vmem:[%s22085_s11 + $0xc9] sm:$0xff] }
  0x7c   : > { %18167 = vmatprep.mubr.msk.f32.mxu0 %vm21974_vm0, %v21973_v2 }
  0x7e   : > { %17218 = vmatmul.mubr.msk.f32.gmra.mrb[54].mxu1 %vm373_vm1, %v369_v59  ;;  %v5186_v59 = vld [vmem:[%s22085_s11 + $0xed] sm:$0xff] }
  0x7f   : > { %18168 = vmatmul.mubr.msk.f32.gmra.mrb[54].mxu0 %vm373_vm1, %v4750_v60  ;;  %17220 = vmatprep.mubr.msk.f32.mxu1 %vm21974_vm0, %v21973_v2  ;;  %v807_v60 = vld [vmem:[%s22085_s11 + $0xd1] sm:$0xff] }
  0x80   : > { %18170 = vmatprep.mubr.msk.f32.mxu0 %vm21974_vm0, %v21973_v2 }
  0x82   : > { %17221 = vmatmul.mubr.msk.f32.gmra.mrb[56].mxu1 %vm373_vm1, %v370_v61  ;;  %v5187_v61 = vld [vmem:[%s22085_s11 + $0xf5] sm:$0xff] }
  0x83   : > { %18171 = vmatmul.mubr.msk.f32.gmra.mrb[56].mxu0 %vm373_vm1, %v4751_v62  ;;  %17223 = vmatprep.mubr.msk.f32.mxu1 %vm21974_vm0, %v21973_v2  ;;  %v808_v62 = vld [vmem:[%s22085_s11 + $0xd9] sm:$0xff] }
  0x84   : > { %18173 = vmatprep.mubr.msk.f32.mxu0 %vm21974_vm0, %v21973_v2 }
  0x86   : > { %17224 = vmatmul.mubr.msk.f32.gmra.mrb[58].mxu1 %vm373_vm1, %v371_v63  ;;  %v5188_v63 = vld [vmem:[%s22085_s11 + $0xfd] sm:$0xff] }
  0x87   : > { %18174 = vmatmul.mubr.msk.f32.gmra.mrb[58].mxu0 %vm373_vm1, %v4752_v0  ;;  %17226 = vmatprep.mubr.msk.f32.mxu1 %vm21974_vm0, %v21973_v2  ;;  %v809_v0 = vld [vmem:[%s22085_s11 + $0xe1] sm:$0xff] }
  0x88   : > { %18176 = vmatprep.mubr.msk.f32.mxu0 %vm21974_vm0, %v21973_v2 }
  0x8a   : > { %17227 = vmatmul.mubr.msk.f32.gmra.mrb[60].mxu1 %vm373_vm1, %v372_v1  ;;  %v5189_v1 = vld [vmem:[%s22085_s11 + $0x105] sm:$0xff] }
  0x8b   : > { %18177 = vmatmul.mubr.msk.f32.gmra.mrb[60].mxu0 %vm373_vm1, %v4753_v3  ;;  %17231 = vmatprep.mubr.msk.f32.mxu1 %vm21974_vm0, %v21973_v2  ;;  %v810_v3 = vld [vmem:[%s22085_s11 + $0xe9] sm:$0xff] }
  0x8c   : > { %18181 = vmatprep.mubr.msk.f32.mxu0 %vm21974_vm0, %v21973_v2 }
  0x8e   : > { %17232 = vmatmul.mubr.msk.f32.vlgmr.msra.gmra.mrb[62].mxu1 %vm373_vm1, %v781_v4  ;;  %v5190_v4 = vld [vmem:[%s22085_s11 + $0x10d] sm:$0xff] }
  0x8f   : > { %18182 = vmatmul.mubr.msk.f32.vlgmr.msra.gmra.mrb[62].mxu0 %vm373_vm1, %v5161_v5  ;;  %17234 = vmatprep.mubr.msk.f32.mxu1 %vm21974_vm0, %v21973_v2  ;;  %v811_v5 = vld [vmem:[%s22085_s11 + $0xf1] sm:$0xff] }
  0x90   : > { %18275 = vmatpush3.msra.mxu0 %v5567_v6  ;;  %18184 = vmatprep.mubr.msk.f32.mxu0 %vm21974_vm0, %v21973_v2  ;;  %v5191_v6 = vld [vmem:[%s22085_s11 + $0x115] sm:$0xff] }
  0x91   : > { %17325 = vmatpush3.msra.mxu1 %v1187_v7  ;;  %18369 = vmatprep.subr.mxu0 %v21973_v2  ;;  %v1219_v7 = vld [vmem:[%s22085_s11 + $0x2] sm:$0xff] }
  0x92   : > { %17419 = vmatprep.subr.mxu1 %v21973_v2  ;;  %17235 = vmatmul.mubr.msk.f32.gmra.mrb[2].mxu1 %vm373_vm1, %v782_v8  ;;  %v5599_v8 = vld [vmem:[%s22085_s11 + $0x26] sm:$0xff] }
  0x93   : > { %18185 = vmatmul.mubr.msk.f32.gmra.mrb[2].mxu0 %vm373_vm1, %v5162_v9  ;;  %17237 = vmatprep.mubr.msk.f32.mxu1 %vm21974_vm0, %v21973_v2  ;;  %v6005_v9 = vld [vmem:[%s26874_s1 + $0x68] sm:$0xff] }
  0x94   : > { %18187 = vmatprep.mubr.msk.f32.mxu0 %vm21974_vm0, %v21973_v2 }
  0x96   : > { %17238 = vmatmul.mubr.msk.f32.gmra.mrb[4].mxu1 %vm373_vm1, %v783_v10 }
  0x97   : > { %18188 = vmatmul.mubr.msk.f32.gmra.mrb[4].mxu0 %vm373_vm1, %v5163_v11  ;;  %17240 = vmatprep.mubr.msk.f32.mxu1 %vm21974_vm0, %v21973_v2  ;;  %v1625_v11 = vld [vmem:[%s26874_s1 + $0x18] sm:$0xff] }
  0x98   : > { %18190 = vmatprep.mubr.msk.f32.mxu0 %vm21974_vm0, %v21973_v2 }
  0x9a   : > { %17241 = vmatmul.mubr.msk.f32.gmra.mrb[6].mxu1 %vm373_vm1, %v784_v12 }
  0x9b   : > { %18191 = vmatmul.mubr.msk.f32.gmra.mrb[6].mxu0 %vm373_vm1, %v5164_v13  ;;  %17243 = vmatprep.mubr.msk.f32.mxu1 %vm21974_vm0, %v21973_v2  ;;  %v1220_v13 = vld [vmem:[%s22085_s11 + $0xa] sm:$0xff] }
  0x9c   : > { %18193 = vmatprep.mubr.msk.f32.mxu0 %vm21974_vm0, %v21973_v2 }
  0x9e   : > { %17244 = vmatmul.mubr.msk.f32.gmra.mrb[8].mxu1 %vm373_vm1, %v785_v14  ;;  %v5600_v14 = vld [vmem:[%s22085_s11 + $0x2e] sm:$0xff] }
  0x9f   : > { %18194 = vmatmul.mubr.msk.f32.gmra.mrb[8].mxu0 %vm373_vm1, %v5165_v15  ;;  %17246 = vmatprep.mubr.msk.f32.mxu1 %vm21974_vm0, %v21973_v2  ;;  %v1221_v15 = vld [vmem:[%s22085_s11 + $0x12] sm:$0xff] }
  0xa0   : > { %18196 = vmatprep.mubr.msk.f32.mxu0 %vm21974_vm0, %v21973_v2 }
  0xa2   : > { %17247 = vmatmul.mubr.msk.f32.gmra.mrb[10].mxu1 %vm373_vm1, %v786_v16  ;;  %v5601_v16 = vld [vmem:[%s22085_s11 + $0x36] sm:$0xff] }
  0xa3   : > { %18197 = vmatmul.mubr.msk.f32.gmra.mrb[10].mxu0 %vm373_vm1, %v5166_v17  ;;  %17249 = vmatprep.mubr.msk.f32.mxu1 %vm21974_vm0, %v21973_v2  ;;  %v1222_v17 = vld [vmem:[%s22085_s11 + $0x1a] sm:$0xff] }
  0xa4   : > { %18199 = vmatprep.mubr.msk.f32.mxu0 %vm21974_vm0, %v21973_v2 }
  0xa6   : > { %17250 = vmatmul.mubr.msk.f32.gmra.mrb[12].mxu1 %vm373_vm1, %v787_v18  ;;  %v5602_v18 = vld [vmem:[%s22085_s11 + $0x3e] sm:$0xff] }
  0xa7   : > { %18200 = vmatmul.mubr.msk.f32.gmra.mrb[12].mxu0 %vm373_vm1, %v5167_v19  ;;  %17252 = vmatprep.mubr.msk.f32.mxu1 %vm21974_vm0, %v21973_v2  ;;  %v1223_v19 = vld [vmem:[%s22085_s11 + $0x22] sm:$0xff] }
  0xa8   : > { %18202 = vmatprep.mubr.msk.f32.mxu0 %vm21974_vm0, %v21973_v2 }
  0xaa   : > { %17253 = vmatmul.mubr.msk.f32.gmra.mrb[14].mxu1 %vm373_vm1, %v788_v20  ;;  %v5603_v20 = vld [vmem:[%s22085_s11 + $0x46] sm:$0xff] }
  0xab   : > { %18203 = vmatmul.mubr.msk.f32.gmra.mrb[14].mxu0 %vm373_vm1, %v5168_v21  ;;  %17255 = vmatprep.mubr.msk.f32.mxu1 %vm21974_vm0, %v21973_v2  ;;  %v1224_v21 = vld [vmem:[%s22085_s11 + $0x2a] sm:$0xff] }
  0xac   : > { %18205 = vmatprep.mubr.msk.f32.mxu0 %vm21974_vm0, %v21973_v2 }
  0xae   : > { %17256 = vmatmul.mubr.msk.f32.gmra.mrb[16].mxu1 %vm373_vm1, %v789_v22  ;;  %v5604_v22 = vld [vmem:[%s22085_s11 + $0x4e] sm:$0xff] }
  0xaf   : > { %18206 = vmatmul.mubr.msk.f32.gmra.mrb[16].mxu0 %vm373_vm1, %v5169_v23  ;;  %17258 = vmatprep.mubr.msk.f32.mxu1 %vm21974_vm0, %v21973_v2  ;;  %v1225_v23 = vld [vmem:[%s22085_s11 + $0x32] sm:$0xff] }
  0xb0   : > { %18208 = vmatprep.mubr.msk.f32.mxu0 %vm21974_vm0, %v21973_v2 }
  0xb2   : > { %17259 = vmatmul.mubr.msk.f32.gmra.mrb[64].mxu1 %vm373_vm1, %v790_v24  ;;  %v5605_v24 = vld [vmem:[%s22085_s11 + $0x56] sm:$0xff] }
  0xb3   : > { %18209 = vmatmul.mubr.msk.f32.gmra.mrb[64].mxu0 %vm373_vm1, %v5170_v25  ;;  %17261 = vmatprep.mubr.msk.f32.mxu1 %vm21974_vm0, %v21973_v2  ;;  %v1226_v25 = vld [vmem:[%s22085_s11 + $0x3a] sm:$0xff] }
  0xb4   : > { %18211 = vmatprep.mubr.msk.f32.mxu0 %vm21974_vm0, %v21973_v2 }
  0xb6   : > { %17262 = vmatmul.mubr.msk.f32.gmra.mrb[20].mxu1 %vm373_vm1, %v791_v26  ;;  %v5606_v26 = vld [vmem:[%s22085_s11 + $0x5e] sm:$0xff] }
  0xb7   : > { %18212 = vmatmul.mubr.msk.f32.gmra.mrb[20].mxu0 %vm373_vm1, %v5171_v27  ;;  %17264 = vmatprep.mubr.msk.f32.mxu1 %vm21974_vm0, %v21973_v2  ;;  %v1227_v27 = vld [vmem:[%s22085_s11 + $0x42] sm:$0xff] }
  0xb8   : > { %18214 = vmatprep.mubr.msk.f32.mxu0 %vm21974_vm0, %v21973_v2 }
  0xba   : > { %17265 = vmatmul.mubr.msk.f32.gmra.mrb[22].mxu1 %vm373_vm1, %v792_v28  ;;  %v5607_v28 = vld [vmem:[%s22085_s11 + $0x66] sm:$0xff] }
  0xbb   : > { %18215 = vmatmul.mubr.msk.f32.gmra.mrb[22].mxu0 %vm373_vm1, %v5172_v29  ;;  %17267 = vmatprep.mubr.msk.f32.mxu1 %vm21974_vm0, %v21973_v2  ;;  %v1228_v29 = vld [vmem:[%s22085_s11 + $0x4a] sm:$0xff] }
  0xbc   : > { %18217 = vmatprep.mubr.msk.f32.mxu0 %vm21974_vm0, %v21973_v2 }
  0xbe   : > { %17268 = vmatmul.mubr.msk.f32.gmra.mrb[24].mxu1 %vm373_vm1, %v793_v30  ;;  %v5608_v30 = vld [vmem:[%s22085_s11 + $0x6e] sm:$0xff] }
  0xbf   : > { %18218 = vmatmul.mubr.msk.f32.gmra.mrb[24].mxu0 %vm373_vm1, %v5173_v31  ;;  %17270 = vmatprep.mubr.msk.f32.mxu1 %vm21974_vm0, %v21973_v2 }
  0xc0   : > { %18220 = vmatprep.mubr.msk.f32.mxu0 %vm21974_vm0, %v21973_v2 }
  0xc2   : > { %17271 = vmatmul.mubr.msk.f32.gmra.mrb[26].mxu1 %vm373_vm1, %v794_v32 }
  0xc3   : > { %18221 = vmatmul.mubr.msk.f32.gmra.mrb[26].mxu0 %vm373_vm1, %v5174_v33  ;;  %17273 = vmatprep.mubr.msk.f32.mxu1 %vm21974_vm0, %v21973_v2  ;;  %v1229_v33 = vld [vmem:[%s22085_s11 + $0x52] sm:$0xff] }
  0xc4   : > { %18223 = vmatprep.mubr.msk.f32.mxu0 %vm21974_vm0, %v21973_v2 }
  0xc6   : > { %17274 = vmatmul.mubr.msk.f32.gmra.mrb[28].mxu1 %vm373_vm1, %v795_v34  ;;  %v5609_v34 = vld [vmem:[%s22085_s11 + $0x76] sm:$0xff] }
  0xc7   : > { %18224 = vmatmul.mubr.msk.f32.gmra.mrb[28].mxu0 %vm373_vm1, %v5175_v35  ;;  %17276 = vmatprep.mubr.msk.f32.mxu1 %vm21974_vm0, %v21973_v2  ;;  %v1230_v35 = vld [vmem:[%s22085_s11 + $0x5a] sm:$0xff] }
  0xc8   : > { %18226 = vmatprep.mubr.msk.f32.mxu0 %vm21974_vm0, %v21973_v2 }
  0xca   : > { %17277 = vmatmul.mubr.msk.f32.gmra.mrb[30].mxu1 %vm373_vm1, %v796_v36  ;;  %v5610_v36 = vld [vmem:[%s22085_s11 + $0x7e] sm:$0xff] }
  0xcb   : > { %18227 = vmatmul.mubr.msk.f32.gmra.mrb[30].mxu0 %vm373_vm1, %v5176_v37  ;;  %17279 = vmatprep.mubr.msk.f32.mxu1 %vm21974_vm0, %v21973_v2  ;;  %v1231_v37 = vld [vmem:[%s22085_s11 + $0x62] sm:$0xff] }
  0xcc   : > { %18229 = vmatprep.mubr.msk.f32.mxu0 %vm21974_vm0, %v21973_v2 }
  0xce   : > { %17280 = vmatmul.mubr.msk.f32.gmra.mrb[32].mxu1 %vm373_vm1, %v797_v38  ;;  %v5611_v38 = vld [vmem:[%s22085_s11 + $0x86] sm:$0xff] }
  0xcf   : > { %18230 = vmatmul.mubr.msk.f32.gmra.mrb[32].mxu0 %vm373_vm1, %v5177_v39  ;;  %17282 = vmatprep.mubr.msk.f32.mxu1 %vm21974_vm0, %v21973_v2  ;;  %v22713_v39 = vld [vmem:[#allocation3] sm:$0xff] }
  0xd0   : > { %18232 = vmatprep.mubr.msk.f32.mxu0 %vm21974_vm0, %v21973_v2 }
  0xd2   : > { %17283 = vmatmul.mubr.msk.f32.gmra.mrb[34].mxu1 %vm373_vm1, %v798_v40  ;;  %v1232_v40 = vld [vmem:[%s22085_s11 + $0x6a] sm:$0xff] }
  0xd3   : > { %18233 = vmatmul.mubr.msk.f32.gmra.mrb[34].mxu0 %vm373_vm1, %v5178_v41  ;;  %17285 = vmatprep.mubr.msk.f32.mxu1 %vm21974_vm0, %v21973_v2  ;;  %v5612_v41 = vld [vmem:[%s22085_s11 + $0x8e] sm:$0xff] }
  0xd4   : > { %18235 = vmatprep.mubr.msk.f32.mxu0 %vm21974_vm0, %v21973_v2 }
  0xd6   : > { %17286 = vmatmul.mubr.msk.f32.gmra.mrb[66].mxu1 %vm373_vm1, %v799_v42  ;;  %v5613_v42 = vld [vmem:[%s22085_s11 + $0x96] sm:$0xff] }
  0xd7   : > { %18236 = vmatmul.mubr.msk.f32.gmra.mrb[66].mxu0 %vm373_vm1, %v5179_v43  ;;  %17288 = vmatprep.mubr.msk.f32.mxu1 %vm21974_vm0, %v21973_v2  ;;  %v1234_v43 = vld [vmem:[%s22085_s11 + $0x7a] sm:$0xff] }
  0xd8   : > { %18238 = vmatprep.mubr.msk.f32.mxu0 %vm21974_vm0, %v21973_v2 }
  0xda   : > { %17289 = vmatmul.mubr.msk.f32.gmra.mrb[38].mxu1 %vm373_vm1, %v800_v44  ;;  %v5614_v44 = vld [vmem:[%s22085_s11 + $0x9e] sm:$0xff] }
  0xdb   : > { %18239 = vmatmul.mubr.msk.f32.gmra.mrb[38].mxu0 %vm373_vm1, %v5180_v45  ;;  %17291 = vmatprep.mubr.msk.f32.mxu1 %vm21974_vm0, %v21973_v2  ;;  %v1235_v45 = vld [vmem:[%s22085_s11 + $0x82] sm:$0xff] }
  0xdc   : > { %18241 = vmatprep.mubr.msk.f32.mxu0 %vm21974_vm0, %v21973_v2 }
  0xde   : > { %17292 = vmatmul.mubr.msk.f32.gmra.mrb[40].mxu1 %vm373_vm1, %v801_v46  ;;  %v5615_v46 = vld [vmem:[%s22085_s11 + $0xa6] sm:$0xff] }
  0xdf   : > { %18242 = vmatmul.mubr.msk.f32.gmra.mrb[40].mxu0 %vm373_vm1, %v5181_v47  ;;  %17294 = vmatprep.mubr.msk.f32.mxu1 %vm21974_vm0, %v21973_v2  ;;  %v1236_v47 = vld [vmem:[%s22085_s11 + $0x8a] sm:$0xff] }
  0xe0   : > { %18244 = vmatprep.mubr.msk.f32.mxu0 %vm21974_vm0, %v21973_v2 }
  0xe2   : > { %17295 = vmatmul.mubr.msk.f32.gmra.mrb[42].mxu1 %vm373_vm1, %v802_v48  ;;  %v5616_v48 = vld [vmem:[%s22085_s11 + $0xae] sm:$0xff] }
  0xe3   : > { %18245 = vmatmul.mubr.msk.f32.gmra.mrb[42].mxu0 %vm373_vm1, %v5182_v49  ;;  %17297 = vmatprep.mubr.msk.f32.mxu1 %vm21974_vm0, %v21973_v2  ;;  %v1237_v49 = vld [vmem:[%s22085_s11 + $0x92] sm:$0xff] }
  0xe4   : > { %18247 = vmatprep.mubr.msk.f32.mxu0 %vm21974_vm0, %v21973_v2 }
  0xe6   : > { %v22529_v52 = vpop.f32.mrb[0].mxu0  ;;  %17298 = vmatmul.mubr.msk.f32.gmra.mrb[44].mxu1 %vm373_vm1, %v803_v50  ;;  %v5617_v50 = vld [vmem:[%s22085_s11 + $0xb6] sm:$0xff] }
  0xe7   : > { %v18088_v53 = vpop.f32.mrb[1].mxu0  ;;  %18248 = vmatmul.mubr.msk.f32.gmra.mrb[44].mxu0 %vm373_vm1, %v5183_v51  ;;  %17300 = vmatprep.mubr.msk.f32.mxu1 %vm21974_vm0, %v21973_v2 }
  0xe8   : > { %18250 = vmatprep.mubr.msk.f32.mxu0 %vm21974_vm0, %v21973_v2 }
  0xea   : > { %17301 = vmatmul.mubr.msk.f32.gmra.mrb[46].mxu1 %vm373_vm1, %v804_v54  ;;  %v1238_v54 = vld [vmem:[%s22085_s11 + $0x9a] sm:$0xff] }
  0xeb   : > { %18251 = vmatmul.mubr.msk.f32.gmra.mrb[46].mxu0 %vm373_vm1, %v5184_v55  ;;  %17303 = vmatprep.mubr.msk.f32.mxu1 %vm21974_vm0, %v21973_v2  ;;  %v5618_v55 = vld [vmem:[%s22085_s11 + $0xbe] sm:$0xff] }
  0xec   : > { %18253 = vmatprep.mubr.msk.f32.mxu0 %vm21974_vm0, %v21973_v2 }
  0xee   : > { %17304 = vmatmul.mubr.msk.f32.gmra.mrb[48].mxu1 %vm373_vm1, %v805_v56  ;;  %v1239_v56 = vld [vmem:[%s22085_s11 + $0xa2] sm:$0xff] }
  0xef   : > { %18254 = vmatmul.mubr.msk.f32.gmra.mrb[48].mxu0 %vm373_vm1, %v5185_v57  ;;  %17306 = vmatprep.mubr.msk.f32.mxu1 %vm21974_vm0, %v21973_v2  ;;  %v5619_v57 = vld [vmem:[%s22085_s11 + $0xc6] sm:$0xff] }
  0xf0   : > { %18256 = vmatprep.mubr.msk.f32.mxu0 %vm21974_vm0, %v21973_v2 }
  0xf2   : > { %17307 = vmatmul.mubr.msk.f32.gmra.mrb[50].mxu1 %vm373_vm1, %v806_v58  ;;  %v1240_v58 = vld [vmem:[%s22085_s11 + $0xaa] sm:$0xff] }
  0xf3   : > { %18257 = vmatmul.mubr.msk.f32.gmra.mrb[50].mxu0 %vm373_vm1, %v5186_v59  ;;  %17309 = vmatprep.mubr.msk.f32.mxu1 %vm21974_vm0, %v21973_v2  ;;  %v5620_v59 = vld [vmem:[%s22085_s11 + $0xce] sm:$0xff] }
  0xf4   : > { %18259 = vmatprep.mubr.msk.f32.mxu0 %vm21974_vm0, %v21973_v2 }
  0xf6   : > { %17310 = vmatmul.mubr.msk.f32.gmra.mrb[52].mxu1 %vm373_vm1, %v807_v60  ;;  %v1241_v60 = vld [vmem:[%s22085_s11 + $0xb2] sm:$0xff] }
  0xf7   : > { %18260 = vmatmul.mubr.msk.f32.gmra.mrb[52].mxu0 %vm373_vm1, %v5187_v61  ;;  %17312 = vmatprep.mubr.msk.f32.mxu1 %vm21974_vm0, %v21973_v2  ;;  %v5621_v61 = vld [vmem:[%s22085_s11 + $0xd6] sm:$0xff] }
  0xf8   : > { %18262 = vmatprep.mubr.msk.f32.mxu0 %vm21974_vm0, %v21973_v2 }
  0xfa   : > { %17313 = vmatmul.mubr.msk.f32.gmra.mrb[68].mxu1 %vm373_vm1, %v808_v62 }
  0xfb   : > { %18263 = vmatmul.mubr.msk.f32.gmra.mrb[68].mxu0 %vm373_vm1, %v5188_v63  ;;  %17315 = vmatprep.mubr.msk.f32.mxu1 %vm21974_vm0, %v21973_v2 }
  0xfc   : > { %18265 = vmatprep.mubr.msk.f32.mxu0 %vm21974_vm0, %v21973_v2 }
  0xfe   : > { %17316 = vmatmul.mubr.msk.f32.gmra.mrb[56].mxu1 %vm373_vm1, %v809_v0  ;;  %v1242_v0 = vld [vmem:[%s22085_s11 + $0xba] sm:$0xff] }
  0xff   : > { %18266 = vmatmul.mubr.msk.f32.gmra.mrb[56].mxu0 %vm373_vm1, %v5189_v1  ;;  %17318 = vmatprep.mubr.msk.f32.mxu1 %vm21974_vm0, %v21973_v2  ;;  %v5622_v1 = vld [vmem:[%s22085_s11 + $0xde] sm:$0xff] }
 0x100   : > { %18268 = vmatprep.mubr.msk.f32.mxu0 %vm21974_vm0, %v21973_v2 }
 0x102   : > { %17319 = vmatmul.mubr.msk.f32.gmra.mrb[58].mxu1 %vm373_vm1, %v810_v3  ;;  %v1243_v3 = vld [vmem:[%s22085_s11 + $0xc2] sm:$0xff] }
 0x103   : > { %18269 = vmatmul.mubr.msk.f32.gmra.mrb[58].mxu0 %vm373_vm1, %v5190_v4  ;;  %17321 = vmatprep.mubr.msk.f32.mxu1 %vm21974_vm0, %v21973_v2  ;;  %v5623_v4 = vld [vmem:[%s22085_s11 + $0xe6] sm:$0xff] }
 0x104   : > { %18271 = vmatprep.mubr.msk.f32.mxu0 %vm21974_vm0, %v21973_v2 }
 0x106   : > { %17322 = vmatmul.mubr.msk.f32.gmra.mrb[60].mxu1 %vm373_vm1, %v811_v5  ;;  %v1244_v5 = vld [vmem:[%s22085_s11 + $0xca] sm:$0xff] }
 0x107   : > { %18272 = vmatmul.mubr.msk.f32.gmra.mrb[60].mxu0 %vm373_vm1, %v5191_v6  ;;  %17326 = vmatprep.mubr.msk.f32.mxu1 %vm21974_vm0, %v21973_v2  ;;  %v5624_v6 = vld [vmem:[%s22085_s11 + $0xee] sm:$0xff] }
 0x108   : > { %18276 = vmatprep.mubr.msk.f32.mxu0 %vm21974_vm0, %v21973_v2 }
 0x10a   : > { %v22606_v10 = vpop.f32.mrb[18].mxu0  ;;  %17327 = vmatmul.mubr.msk.f32.vlgmr.msra.gmra.mrb[70].mxu1 %vm373_vm1, %v1219_v7  ;;  %v1245_v7 = vld [vmem:[%s22085_s11 + $0xd2] sm:$0xff] }
 0x10b   : > { %v18115_v12 = vpop.f32.mrb[19].mxu0  ;;  %18277 = vmatmul.mubr.msk.f32.vlgmr.msra.gmra.mrb[70].mxu0 %vm373_vm1, %v5599_v8  ;;  %17329 = vmatprep.mubr.msk.f32.mxu1 %vm21974_vm0, %v21973_v2  ;;  %v5625_v8 = vld [vmem:[%s22085_s11 + $0xf6] sm:$0xff] }
 0x10c   : > { %18370 = vmatpush3.msra.mxu0 %v6005_v9  ;;  %18279 = vmatprep.mubr.msk.f32.mxu0 %vm21974_vm0, %v21973_v2  ;;  %v1246_v9 = vld [vmem:[%s22085_s11 + $0xda] sm:$0xff]  ;;  %v1247_v12 = vld [vmem:[%s22085_s11 + $0xe2] sm:$0xff] }
 0x10d   : > { %17420 = vmatpush3.msra.mxu1 %v1625_v11  ;;  %18464 = vmatprep.subr.mxu0 %v21973_v2  ;;  %v5626_v11 = vld [vmem:[%s22085_s11 + $0xfe] sm:$0xff] }
 0x10e   : > { %17514 = vmatprep.subr.mxu1 %v21973_v2  ;;  %17330 = vmatmul.mubr.msk.f32.gmra.mrb[2].mxu1 %vm373_vm1, %v1220_v13  ;;  %v5627_v13 = vld [vmem:[%s22085_s11 + $0x106] sm:$0xff] }
 0x10f   : > { %18280 = vmatmul.mubr.msk.f32.gmra.mrb[2].mxu0 %vm373_vm1, %v5600_v14  ;;  %17332 = vmatprep.mubr.msk.f32.mxu1 %vm21974_vm0, %v21973_v2  ;;  %v1248_v14 = vld [vmem:[%s22085_s11 + $0xea] sm:$0xff] }
 0x110   : > { %18282 = vmatprep.mubr.msk.f32.mxu0 %vm21974_vm0, %v21973_v2 }
 0x112   : > { %17333 = vmatmul.mubr.msk.f32.gmra.mrb[4].mxu1 %vm373_vm1, %v1221_v15  ;;  %v5628_v15 = vld [vmem:[%s22085_s11 + $0x10e] sm:$0xff] }
 0x113   : > { %18283 = vmatmul.mubr.msk.f32.gmra.mrb[4].mxu0 %vm373_vm1, %v5601_v16  ;;  %17335 = vmatprep.mubr.msk.f32.mxu1 %vm21974_vm0, %v21973_v2  ;;  %v1249_v16 = vld [vmem:[%s22085_s11 + $0xf2] sm:$0xff] }
 0x114   : > { %18285 = vmatprep.mubr.msk.f32.mxu0 %vm21974_vm0, %v21973_v2 }
 0x116   : > { %17336 = vmatmul.mubr.msk.f32.gmra.mrb[6].mxu1 %vm373_vm1, %v1222_v17  ;;  %v5629_v17 = vld [vmem:[%s22085_s11 + $0x116] sm:$0xff] }
 0x117   : > { %18286 = vmatmul.mubr.msk.f32.gmra.mrb[6].mxu0 %vm373_vm1, %v5602_v18  ;;  %17338 = vmatprep.mubr.msk.f32.mxu1 %vm21974_vm0, %v21973_v2  ;;  %v1657_v18 = vld [vmem:[%s22085_s11 + $0x3] sm:$0xff] }
 0x118   : > { %18288 = vmatprep.mubr.msk.f32.mxu0 %vm21974_vm0, %v21973_v2 }
 0x11a   : > { %17339 = vmatmul.mubr.msk.f32.gmra.mrb[8].mxu1 %vm373_vm1, %v1223_v19  ;;  %v6037_v19 = vld [vmem:[%s22085_s11 + $0x27] sm:$0xff] }
 0x11b   : > { %18289 = vmatmul.mubr.msk.f32.gmra.mrb[8].mxu0 %vm373_vm1, %v5603_v20  ;;  %17341 = vmatprep.mubr.msk.f32.mxu1 %vm21974_vm0, %v21973_v2  ;;  %v6443_v20 = vld [vmem:[%s26874_s1 + $0x70] sm:$0xff] }
 0x11c   : > { %18291 = vmatprep.mubr.msk.f32.mxu0 %vm21974_vm0, %v21973_v2 }
 0x11e   : > { %17342 = vmatmul.mubr.msk.f32.gmra.mrb[10].mxu1 %vm373_vm1, %v1224_v21 }
 0x11f   : > { %18292 = vmatmul.mubr.msk.f32.gmra.mrb[10].mxu0 %vm373_vm1, %v5604_v22  ;;  %17344 = vmatprep.mubr.msk.f32.mxu1 %vm21974_vm0, %v21973_v2  ;;  %v2063_v22 = vld [vmem:[%s26874_s1 + $0x20] sm:$0xff] }
 0x120   : > { %18294 = vmatprep.mubr.msk.f32.mxu0 %vm21974_vm0, %v21973_v2 }
 0x122   : > { %17345 = vmatmul.mubr.msk.f32.gmra.mrb[12].mxu1 %vm373_vm1, %v1225_v23 }
 0x123   : > { %18295 = vmatmul.mubr.msk.f32.gmra.mrb[12].mxu0 %vm373_vm1, %v5605_v24  ;;  %17347 = vmatprep.mubr.msk.f32.mxu1 %vm21974_vm0, %v21973_v2  ;;  %v1658_v24 = vld [vmem:[%s22085_s11 + $0xb] sm:$0xff] }
 0x124   : > { %18297 = vmatprep.mubr.msk.f32.mxu0 %vm21974_vm0, %v21973_v2 }
 0x126   : > { %17348 = vmatmul.mubr.msk.f32.gmra.mrb[14].mxu1 %vm373_vm1, %v1226_v25  ;;  %v6038_v25 = vld [vmem:[%s22085_s11 + $0x2f] sm:$0xff] }
 0x127   : > { %18298 = vmatmul.mubr.msk.f32.gmra.mrb[14].mxu0 %vm373_vm1, %v5606_v26  ;;  %17350 = vmatprep.mubr.msk.f32.mxu1 %vm21974_vm0, %v21973_v2  ;;  %v1659_v26 = vld [vmem:[%s22085_s11 + $0x13] sm:$0xff] }
 0x128   : > { %18300 = vmatprep.mubr.msk.f32.mxu0 %vm21974_vm0, %v21973_v2 }
 0x12a   : > { %17351 = vmatmul.mubr.msk.f32.gmra.mrb[16].mxu1 %vm373_vm1, %v1227_v27  ;;  %v6039_v27 = vld [vmem:[%s22085_s11 + $0x37] sm:$0xff] }
 0x12b   : > { %18301 = vmatmul.mubr.msk.f32.gmra.mrb[16].mxu0 %vm373_vm1, %v5607_v28  ;;  %17353 = vmatprep.mubr.msk.f32.mxu1 %vm21974_vm0, %v21973_v2  ;;  %v1660_v28 = vld [vmem:[%s22085_s11 + $0x1b] sm:$0xff] }
 0x12c   : > { %18303 = vmatprep.mubr.msk.f32.mxu0 %vm21974_vm0, %v21973_v2 }
 0x12e   : > { %v22685_v31 = vpop.f32.mrb[36].mxu0  ;;  %17354 = vmatmul.mubr.msk.f32.gmra.mrb[72].mxu1 %vm373_vm1, %v1228_v29  ;;  %v6040_v29 = vld [vmem:[%s22085_s11 + $0x3f] sm:$0xff] }
 0x12f   : > { %v18142_v32 = vpop.f32.mrb[37].mxu0  ;;  %18304 = vmatmul.mubr.msk.f32.gmra.mrb[72].mxu0 %vm373_vm1, %v5608_v30  ;;  %17356 = vmatprep.mubr.msk.f32.mxu1 %vm21974_vm0, %v21973_v2  ;;  %v1661_v30 = vld [vmem:[%s22085_s11 + $0x23] sm:$0xff] }
 0x130   : > { %18306 = vmatprep.mubr.msk.f32.mxu0 %vm21974_vm0, %v21973_v2  ;;  %v6041_v32 = vld [vmem:[%s22085_s11 + $0x47] sm:$0xff] }
 0x132   : > { %17357 = vmatmul.mubr.msk.f32.gmra.mrb[20].mxu1 %vm373_vm1, %v1229_v33  ;;  %v1662_v33 = vld [vmem:[%s22085_s11 + $0x2b] sm:$0xff] }
 0x133   : > { %18307 = vmatmul.mubr.msk.f32.gmra.mrb[20].mxu0 %vm373_vm1, %v5609_v34  ;;  %17359 = vmatprep.mubr.msk.f32.mxu1 %vm21974_vm0, %v21973_v2  ;;  %v6042_v34 = vld [vmem:[%s22085_s11 + $0x4f] sm:$0xff] }
 0x134   : > { %18309 = vmatprep.mubr.msk.f32.mxu0 %vm21974_vm0, %v21973_v2 }
 0x136   : > { %17360 = vmatmul.mubr.msk.f32.gmra.mrb[22].mxu1 %vm373_vm1, %v1230_v35  ;;  %v1663_v35 = vld [vmem:[%s22085_s11 + $0x33] sm:$0xff] }
 0x137   : > { %18310 = vmatmul.mubr.msk.f32.gmra.mrb[22].mxu0 %vm373_vm1, %v5610_v36  ;;  %17362 = vmatprep.mubr.msk.f32.mxu1 %vm21974_vm0, %v21973_v2  ;;  %v6043_v36 = vld [vmem:[%s22085_s11 + $0x57] sm:$0xff] }
 0x138   : > { %18312 = vmatprep.mubr.msk.f32.mxu0 %vm21974_vm0, %v21973_v2  ;;  %v1233_v2 = vld [vmem:[%s22085_s11 + $0x72] sm:$0xff] }
 0x13a   : > { %17363 = vmatmul.mubr.msk.f32.gmra.mrb[24].mxu1 %vm373_vm1, %v1231_v37  ;;  %v1664_v37 = vld [vmem:[%s22085_s11 + $0x3b] sm:$0xff] }
 0x13b   : > { %18313 = vmatmul.mubr.msk.f32.gmra.mrb[24].mxu0 %vm373_vm1, %v5611_v38  ;;  %17365 = vmatprep.mubr.msk.f32.mxu1 %vm21974_vm0, %v22713_v39  ;;  %v6044_v38 = vld [vmem:[%s22085_s11 + $0x5f] sm:$0xff] }
 0x13c   : > { %18315 = vmatprep.mubr.msk.f32.mxu0 %vm21974_vm0, %v22713_v39 }
 0x13e   : > { %17366 = vmatmul.mubr.msk.f32.gmra.mrb[26].mxu1 %vm373_vm1, %v1232_v40  ;;  %v1665_v40 = vld [vmem:[%s22085_s11 + $0x43] sm:$0xff] }
 0x13f   : > { %18316 = vmatmul.mubr.msk.f32.gmra.mrb[26].mxu0 %vm373_vm1, %v5612_v41  ;;  %17368 = vmatprep.mubr.msk.f32.mxu1 %vm21974_vm0, %v22713_v39  ;;  %v6045_v41 = vld [vmem:[%s22085_s11 + $0x67] sm:$0xff] }
 0x140   : > { %18318 = vmatprep.mubr.msk.f32.mxu0 %vm21974_vm0, %v22713_v39 }
 0x142   : > { %17369 = vmatmul.mubr.msk.f32.gmra.mrb[28].mxu1 %vm373_vm1, %v1233_v2  ;;  %v1666_v2 = vld [vmem:[%s22085_s11 + $0x4b] sm:$0xff] }
 0x143   : > { %18319 = vmatmul.mubr.msk.f32.gmra.mrb[28].mxu0 %vm373_vm1, %v5613_v42  ;;  %17371 = vmatprep.mubr.msk.f32.mxu1 %vm21974_vm0, %v22713_v39  ;;  %v6046_v42 = vld [vmem:[%s22085_s11 + $0x6f] sm:$0xff] }
 0x144   : > { %18321 = vmatprep.mubr.msk.f32.mxu0 %vm21974_vm0, %v22713_v39 }
 0x146   : > { %17372 = vmatmul.mubr.msk.f32.gmra.mrb[30].mxu1 %vm373_vm1, %v1234_v43 }
 0x147   : > { %18322 = vmatmul.mubr.msk.f32.gmra.mrb[30].mxu0 %vm373_vm1, %v5614_v44  ;;  %17374 = vmatprep.mubr.msk.f32.mxu1 %vm21974_vm0, %v22713_v39 }
 0x148   : > { %18324 = vmatprep.mubr.msk.f32.mxu0 %vm21974_vm0, %v22713_v39 }
 0x14a   : > { %17375 = vmatmul.mubr.msk.f32.gmra.mrb[32].mxu1 %vm373_vm1, %v1235_v45  ;;  %v1667_v45 = vld [vmem:[%s22085_s11 + $0x53] sm:$0xff] }
 0x14b   : > { %18325 = vmatmul.mubr.msk.f32.gmra.mrb[32].mxu0 %vm373_vm1, %v5615_v46  ;;  %17377 = vmatprep.mubr.msk.f32.mxu1 %vm21974_vm0, %v22713_v39  ;;  %v6047_v46 = vld [vmem:[%s22085_s11 + $0x77] sm:$0xff] }
 0x14c   : > { %18327 = vmatprep.mubr.msk.f32.mxu0 %vm21974_vm0, %v22713_v39 }
 0x14e   : > { %17378 = vmatmul.mubr.msk.f32.gmra.mrb[34].mxu1 %vm373_vm1, %v1236_v47  ;;  %v1668_v47 = vld [vmem:[%s22085_s11 + $0x5b] sm:$0xff] }
 0x14f   : > { %18328 = vmatmul.mubr.msk.f32.gmra.mrb[34].mxu0 %vm373_vm1, %v5616_v48  ;;  %17380 = vmatprep.mubr.msk.f32.mxu1 %vm21974_vm0, %v22713_v39  ;;  %v6048_v48 = vld [vmem:[%s22085_s11 + $0x7f] sm:$0xff] }
 0x150   : > { %18330 = vmatprep.mubr.msk.f32.mxu0 %vm21974_vm0, %v22713_v39 }
 0x152   : > { %v22761_v51 = vpop.f32.mrb[54].mxu0  ;;  %17381 = vmatmul.mubr.msk.f32.gmra.mrb[74].mxu1 %vm373_vm1, %v1237_v49  ;;  %v1669_v49 = vld [vmem:[%s22085_s11 + $0x63] sm:$0xff] }
 0x153   : > { %v18169_v53 = vpop.f32.mrb[55].mxu0  ;;  %18331 = vmatmul.mubr.msk.f32.gmra.mrb[74].mxu0 %vm373_vm1, %v5617_v50  ;;  %17383 = vmatprep.mubr.msk.f32.mxu1 %vm21974_vm0, %v22713_v39  ;;  %v6049_v50 = vld [vmem:[%s22085_s11 + $0x87] sm:$0xff] }
 0x154   : > { %18333 = vmatprep.mubr.msk.f32.mxu0 %vm21974_vm0, %v22713_v39  ;;  %v1670_v53 = vld [vmem:[%s22085_s11 + $0x6b] sm:$0xff] }
 0x156   : > { %17384 = vmatmul.mubr.msk.f32.gmra.mrb[38].mxu1 %vm373_vm1, %v1238_v54  ;;  %v6050_v54 = vld [vmem:[%s22085_s11 + $0x8f] sm:$0xff] }
 0x157   : > { %18334 = vmatmul.mubr.msk.f32.gmra.mrb[38].mxu0 %vm373_vm1, %v5618_v55  ;;  %17386 = vmatprep.mubr.msk.f32.mxu1 %vm21974_vm0, %v22713_v39  ;;  %v1671_v55 = vld [vmem:[%s22085_s11 + $0x73] sm:$0xff] }
 0x158   : > { %18336 = vmatprep.mubr.msk.f32.mxu0 %vm21974_vm0, %v22713_v39 }
 0x15a   : > { %17387 = vmatmul.mubr.msk.f32.gmra.mrb[40].mxu1 %vm373_vm1, %v1239_v56  ;;  %v6051_v56 = vld [vmem:[%s22085_s11 + $0x97] sm:$0xff] }
 0x15b   : > { %18337 = vmatmul.mubr.msk.f32.gmra.mrb[40].mxu0 %vm373_vm1, %v5619_v57  ;;  %17389 = vmatprep.mubr.msk.f32.mxu1 %vm21974_vm0, %v22713_v39  ;;  %v1672_v57 = vld [vmem:[%s22085_s11 + $0x7b] sm:$0xff] }
 0x15c   : > { %18339 = vmatprep.mubr.msk.f32.mxu0 %vm21974_vm0, %v22713_v39 }
 0x15e   : > { %17390 = vmatmul.mubr.msk.f32.gmra.mrb[42].mxu1 %vm373_vm1, %v1240_v58  ;;  %v6052_v58 = vld [vmem:[%s22085_s11 + $0x9f] sm:$0xff] }
 0x15f   : > { %18340 = vmatmul.mubr.msk.f32.gmra.mrb[42].mxu0 %vm373_vm1, %v5620_v59  ;;  %17392 = vmatprep.mubr.msk.f32.mxu1 %vm21974_vm0, %v22713_v39  ;;  %v1673_v59 = vld [vmem:[%s22085_s11 + $0x83] sm:$0xff] }
 0x160   : > { %18342 = vmatprep.mubr.msk.f32.mxu0 %vm21974_vm0, %v22713_v39 }
 0x162   : > { %v22795_v62 = vpop.f32.mrb[62].mxu0  ;;  %17393 = vmatmul.mubr.msk.f32.gmra.mrb[44].mxu1 %vm373_vm1, %v1241_v60  ;;  %v6053_v60 = vld [vmem:[%s22085_s11 + $0xa7] sm:$0xff] }
 0x163   : > { %v18183_v63 = vpop.f32.mrb[63].mxu0  ;;  %18343 = vmatmul.mubr.msk.f32.gmra.mrb[44].mxu0 %vm373_vm1, %v5621_v61  ;;  %17395 = vmatprep.mubr.msk.f32.mxu1 %vm21974_vm0, %v22713_v39  ;;  %v1674_v61 = vld [vmem:[%s22085_s11 + $0x8b] sm:$0xff] }
 0x164   : > { %18345 = vmatprep.mubr.msk.f32.mxu0 %vm21974_vm0, %v22713_v39  ;;  %v6054_v63 = vld [vmem:[%s22085_s11 + $0xaf] sm:$0xff] }
 0x166   : > { %17396 = vmatmul.mubr.msk.f32.gmra.mrb[46].mxu1 %vm373_vm1, %v1242_v0  ;;  %v1675_v0 = vld [vmem:[%s22085_s11 + $0x93] sm:$0xff] }
 0x167   : > { %18346 = vmatmul.mubr.msk.f32.gmra.mrb[46].mxu0 %vm373_vm1, %v5622_v1  ;;  %17398 = vmatprep.mubr.msk.f32.mxu1 %vm21974_vm0, %v22713_v39  ;;  %v6055_v1 = vld [vmem:[%s22085_s11 + $0xb7] sm:$0xff] }
 0x168   : > { %18348 = vmatprep.mubr.msk.f32.mxu0 %vm21974_vm0, %v22713_v39 }
 0x16a   : > { %17399 = vmatmul.mubr.msk.f32.gmra.mrb[48].mxu1 %vm373_vm1, %v1243_v3 }
 0x16b   : > { %18349 = vmatmul.mubr.msk.f32.gmra.mrb[48].mxu0 %vm373_vm1, %v5623_v4  ;;  %17401 = vmatprep.mubr.msk.f32.mxu1 %vm21974_vm0, %v22713_v39 }
 0x16c   : > { %18351 = vmatprep.mubr.msk.f32.mxu0 %vm21974_vm0, %v22713_v39 }
 0x16e   : > { %17402 = vmatmul.mubr.msk.f32.gmra.mrb[50].mxu1 %vm373_vm1, %v1244_v5  ;;  %v1676_v5 = vld [vmem:[%s22085_s11 + $0x9b] sm:$0xff] }
 0x16f   : > { %18352 = vmatmul.mubr.msk.f32.gmra.mrb[50].mxu0 %vm373_vm1, %v5624_v6  ;;  %17404 = vmatprep.mubr.msk.f32.mxu1 %vm21974_vm0, %v22713_v39  ;;  %v6056_v6 = vld [vmem:[%s22085_s11 + $0xbf] sm:$0xff] }
 0x170   : > { %18354 = vmatprep.mubr.msk.f32.mxu0 %vm21974_vm0, %v22713_v39 }
 0x172   : > { %17405 = vmatmul.mubr.msk.f32.gmra.mrb[52].mxu1 %vm373_vm1, %v1245_v7  ;;  %v1677_v7 = vld [vmem:[%s22085_s11 + $0xa3] sm:$0xff] }
 0x173   : > { %18355 = vmatmul.mubr.msk.f32.gmra.mrb[52].mxu0 %vm373_vm1, %v5625_v8  ;;  %17407 = vmatprep.mubr.msk.f32.mxu1 %vm21974_vm0, %v22713_v39  ;;  %v6057_v8 = vld [vmem:[%s22085_s11 + $0xc7] sm:$0xff] }
 0x174   : > { %18357 = vmatprep.mubr.msk.f32.mxu0 %vm21974_vm0, %v22713_v39 }
 0x176   : > { %17408 = vmatmul.mubr.msk.f32.gmra.mrb[76].mxu1 %vm373_vm1, %v1246_v9  ;;  %v1678_v9 = vld [vmem:[%s22085_s11 + $0xab] sm:$0xff] }
 0x177   : > { %18358 = vmatmul.mubr.msk.f32.gmra.mrb[76].mxu0 %vm373_vm1, %v5626_v11  ;;  %17410 = vmatprep.mubr.msk.f32.mxu1 %vm21974_vm0, %v22713_v39  ;;  %v6058_v11 = vld [vmem:[%s22085_s11 + $0xcf] sm:$0xff] }
 0x178   : > { %18360 = vmatprep.mubr.msk.f32.mxu0 %vm21974_vm0, %v22713_v39 }
 0x17a   : > { %17411 = vmatmul.mubr.msk.f32.gmra.mrb[56].mxu1 %vm373_vm1, %v1247_v12  ;;  %v1679_v12 = vld [vmem:[%s22085_s11 + $0xb3] sm:$0xff] }
 0x17b   : > { %18361 = vmatmul.mubr.msk.f32.gmra.mrb[56].mxu0 %vm373_vm1, %v5627_v13  ;;  %17413 = vmatprep.mubr.msk.f32.mxu1 %vm21974_vm0, %v22713_v39  ;;  %v6059_v13 = vld [vmem:[%s22085_s11 + $0xd7] sm:$0xff] }
 0x17c   : > { %18363 = vmatprep.mubr.msk.f32.mxu0 %vm21974_vm0, %v22713_v39 }
 0x17e   : > { %17414 = vmatmul.mubr.msk.f32.gmra.mrb[58].mxu1 %vm373_vm1, %v1248_v14 }
 0x17f   : > { %18364 = vmatmul.mubr.msk.f32.gmra.mrb[58].mxu0 %vm373_vm1, %v5628_v15  ;;  %17416 = vmatprep.mubr.msk.f32.mxu1 %vm21974_vm0, %v22713_v39 }
 0x180   : > { %18366 = vmatprep.mubr.msk.f32.mxu0 %vm21974_vm0, %v22713_v39 }
 0x182   : > { %17417 = vmatmul.mubr.msk.f32.gmra.mrb[60].mxu1 %vm373_vm1, %v1249_v16  ;;  %v1680_v16 = vld [vmem:[%s22085_s11 + $0xbb] sm:$0xff] }
 0x183   : > { %18367 = vmatmul.mubr.msk.f32.gmra.mrb[60].mxu0 %vm373_vm1, %v5629_v17  ;;  %17421 = vmatprep.mubr.msk.f32.mxu1 %vm21974_vm0, %v22713_v39  ;;  %v6060_v17 = vld [vmem:[%s22085_s11 + $0xdf] sm:$0xff] }
 0x184   : > { %18371 = vmatprep.mubr.msk.f32.mxu0 %vm21974_vm0, %v22713_v39 }
 0x186   : > { %v22872_v21 = vpop.f32.mrb[64].mxu0  ;;  %17422 = vmatmul.mubr.msk.f32.vlgmr.msra.gmra.mrb[78].mxu1 %vm373_vm1, %v1657_v18  ;;  %v1681_v18 = vld [vmem:[%s22085_s11 + $0xc3] sm:$0xff] }
 0x187   : > { %v18210_v23 = vpop.f32.mrb[65].mxu0  ;;  %18372 = vmatmul.mubr.msk.f32.vlgmr.msra.gmra.mrb[78].mxu0 %vm373_vm1, %v6037_v19  ;;  %17424 = vmatprep.mubr.msk.f32.mxu1 %vm21974_vm0, %v22713_v39  ;;  %v6061_v19 = vld [vmem:[%s22085_s11 + $0xe7] sm:$0xff] }
 0x188   : > { %18465 = vmatpush3.msra.mxu0 %v6443_v20  ;;  %18374 = vmatprep.mubr.msk.f32.mxu0 %vm21974_vm0, %v22713_v39  ;;  %v1682_v20 = vld [vmem:[%s22085_s11 + $0xcb] sm:$0xff]  ;;  %v1683_v23 = vld [vmem:[%s22085_s11 + $0xd3] sm:$0xff] }
 0x189   : > { %17515 = vmatpush3.msra.mxu1 %v2063_v22  ;;  %18559 = vmatprep.subr.mxu0 %v22713_v39  ;;  %v6062_v22 = vld [vmem:[%s22085_s11 + $0xef] sm:$0xff] }
 0x18a   : > { %17609 = vmatprep.subr.mxu1 %v22713_v39  ;;  %17425 = vmatmul.mubr.msk.f32.gmra.mrb[2].mxu1 %vm373_vm1, %v1658_v24  ;;  %v6063_v24 = vld [vmem:[%s22085_s11 + $0xf7] sm:$0xff] }
 0x18b   : > { %18375 = vmatmul.mubr.msk.f32.gmra.mrb[2].mxu0 %vm373_vm1, %v6038_v25  ;;  %17427 = vmatprep.mubr.msk.f32.mxu1 %vm21974_vm0, %v22713_v39  ;;  %v1684_v25 = vld [vmem:[%s22085_s11 + $0xdb] sm:$0xff] }
 0x18c   : > { %18377 = vmatprep.mubr.msk.f32.mxu0 %vm21974_vm0, %v22713_v39 }
 0x18e   : > { %17428 = vmatmul.mubr.msk.f32.gmra.mrb[4].mxu1 %vm373_vm1, %v1659_v26  ;;  %v6064_v26 = vld [vmem:[%s22085_s11 + $0xff] sm:$0xff] }
 0x18f   : > { %18378 = vmatmul.mubr.msk.f32.gmra.mrb[4].mxu0 %vm373_vm1, %v6039_v27  ;;  %17430 = vmatprep.mubr.msk.f32.mxu1 %vm21974_vm0, %v22713_v39  ;;  %v1685_v27 = vld [vmem:[%s22085_s11 + $0xe3] sm:$0xff] }
 0x190   : > { %18380 = vmatprep.mubr.msk.f32.mxu0 %vm21974_vm0, %v22713_v39 }
 0x192   : > { %17431 = vmatmul.mubr.msk.f32.gmra.mrb[6].mxu1 %vm373_vm1, %v1660_v28  ;;  %v6065_v28 = vld [vmem:[%s22085_s11 + $0x107] sm:$0xff] }
 0x193   : > { %18381 = vmatmul.mubr.msk.f32.gmra.mrb[6].mxu0 %vm373_vm1, %v6040_v29  ;;  %17433 = vmatprep.mubr.msk.f32.mxu1 %vm21974_vm0, %v22713_v39  ;;  %v1686_v29 = vld [vmem:[%s22085_s11 + $0xeb] sm:$0xff] }
 0x194   : > { %18383 = vmatprep.mubr.msk.f32.mxu0 %vm21974_vm0, %v22713_v39 }
 0x196   : > { %17434 = vmatmul.mubr.msk.f32.gmra.mrb[8].mxu1 %vm373_vm1, %v1661_v30  ;;  %v6066_v30 = vld [vmem:[%s22085_s11 + $0x10f] sm:$0xff] }
 0x197   : > { %18384 = vmatmul.mubr.msk.f32.gmra.mrb[8].mxu0 %vm373_vm1, %v6041_v32  ;;  %17436 = vmatprep.mubr.msk.f32.mxu1 %vm21974_vm0, %v22713_v39  ;;  %v1687_v32 = vld [vmem:[%s22085_s11 + $0xf3] sm:$0xff] }
 0x198   : > { %18386 = vmatprep.mubr.msk.f32.mxu0 %vm21974_vm0, %v22713_v39 }
 0x19a   : > { %17437 = vmatmul.mubr.msk.f32.gmra.mrb[10].mxu1 %vm373_vm1, %v1662_v33  ;;  %v6067_v33 = vld [vmem:[%s22085_s11 + $0x117] sm:$0xff] }
 0x19b   : > { %18387 = vmatmul.mubr.msk.f32.gmra.mrb[10].mxu0 %vm373_vm1, %v6042_v34  ;;  %17439 = vmatprep.mubr.msk.f32.mxu1 %vm21974_vm0, %v22713_v39  ;;  %v2095_v34 = vld [vmem:[%s22085_s11 + $0x4] sm:$0xff] }
 0x19c   : > { %18389 = vmatprep.mubr.msk.f32.mxu0 %vm21974_vm0, %v22713_v39 }
 0x19e   : > { %17440 = vmatmul.mubr.msk.f32.gmra.mrb[12].mxu1 %vm373_vm1, %v1663_v35  ;;  %v6475_v35 = vld [vmem:[%s22085_s11 + $0x28] sm:$0xff] }
 0x19f   : > { %18390 = vmatmul.mubr.msk.f32.gmra.mrb[12].mxu0 %vm373_vm1, %v6043_v36  ;;  %17442 = vmatprep.mubr.msk.f32.mxu1 %vm21974_vm0, %v22713_v39  ;;  %v6881_v36 = vld [vmem:[%s26874_s1 + $0x78] sm:$0xff] }
 0x1a0   : > { %18392 = vmatprep.mubr.msk.f32.mxu0 %vm21974_vm0, %v22713_v39 }
 0x1a2   : > { %17443 = vmatmul.mubr.msk.f32.gmra.mrb[14].mxu1 %vm373_vm1, %v1664_v37 }
 0x1a3   : > { %18393 = vmatmul.mubr.msk.f32.gmra.mrb[14].mxu0 %vm373_vm1, %v6044_v38  ;;  %17445 = vmatprep.mubr.msk.f32.mxu1 %vm21974_vm0, %v22713_v39  ;;  %v2501_v38 = vld [vmem:[%s26874_s1 + $0x28] sm:$0xff] }
 0x1a4   : > { %18395 = vmatprep.mubr.msk.f32.mxu0 %vm21974_vm0, %v22713_v39 }
 0x1a6   : > { %17446 = vmatmul.mubr.msk.f32.gmra.mrb[16].mxu1 %vm373_vm1, %v1665_v40 }
 0x1a7   : > { %18396 = vmatmul.mubr.msk.f32.gmra.mrb[16].mxu0 %vm373_vm1, %v6045_v41  ;;  %17448 = vmatprep.mubr.msk.f32.mxu1 %vm21974_vm0, %v22713_v39  ;;  %v2096_v41 = vld [vmem:[%s22085_s11 + $0xc] sm:$0xff] }
 0x1a8   : > { %18398 = vmatprep.mubr.msk.f32.mxu0 %vm21974_vm0, %v22713_v39 }
 0x1aa   : > { %v22951_v43 = vpop.f32.mrb[66].mxu0  ;;  %17449 = vmatmul.mubr.msk.f32.gmra.mrb[80].mxu1 %vm373_vm1, %v1666_v2  ;;  %v6476_v2 = vld [vmem:[%s22085_s11 + $0x30] sm:$0xff] }
 0x1ab   : > { %v18237_v44 = vpop.f32.mrb[67].mxu0  ;;  %18399 = vmatmul.mubr.msk.f32.gmra.mrb[80].mxu0 %vm373_vm1, %v6046_v42  ;;  %17451 = vmatprep.mubr.msk.f32.mxu1 %vm21974_vm0, %v22713_v39  ;;  %v2097_v42 = vld [vmem:[%s22085_s11 + $0x14] sm:$0xff] }
 0x1ac   : > { %18401 = vmatprep.mubr.msk.f32.mxu0 %vm21974_vm0, %v22713_v39  ;;  %v6477_v44 = vld [vmem:[%s22085_s11 + $0x38] sm:$0xff] }
 0x1ae   : > { %17452 = vmatmul.mubr.msk.f32.gmra.mrb[20].mxu1 %vm373_vm1, %v1667_v45  ;;  %v2098_v45 = vld [vmem:[%s22085_s11 + $0x1c] sm:$0xff] }
 0x1af   : > { %18402 = vmatmul.mubr.msk.f32.gmra.mrb[20].mxu0 %vm373_vm1, %v6047_v46  ;;  %17454 = vmatprep.mubr.msk.f32.mxu1 %vm21974_vm0, %v22713_v39  ;;  %v6478_v46 = vld [vmem:[%s22085_s11 + $0x40] sm:$0xff] }
 0x1b0   : > { %18404 = vmatprep.mubr.msk.f32.mxu0 %vm21974_vm0, %v22713_v39 }
 0x1b2   : > { %17455 = vmatmul.mubr.msk.f32.gmra.mrb[22].mxu1 %vm373_vm1, %v1668_v47  ;;  %v2099_v47 = vld [vmem:[%s22085_s11 + $0x24] sm:$0xff] }
 0x1b3   : > { %18405 = vmatmul.mubr.msk.f32.gmra.mrb[22].mxu0 %vm373_vm1, %v6048_v48  ;;  %17457 = vmatprep.mubr.msk.f32.mxu1 %vm21974_vm0, %v22713_v39  ;;  %v6479_v48 = vld [vmem:[%s22085_s11 + $0x48] sm:$0xff] }
 0x1b4   : > { %18407 = vmatprep.mubr.msk.f32.mxu0 %vm21974_vm0, %v22713_v39 }
 0x1b6   : > { %17458 = vmatmul.mubr.msk.f32.gmra.mrb[24].mxu1 %vm373_vm1, %v1669_v49  ;;  %v2100_v49 = vld [vmem:[%s22085_s11 + $0x2c] sm:$0xff] }
 0x1b7   : > { %18408 = vmatmul.mubr.msk.f32.gmra.mrb[24].mxu0 %vm373_vm1, %v6049_v50  ;;  %17460 = vmatprep.mubr.msk.f32.mxu1 %vm21974_vm0, %v22713_v39  ;;  %v6480_v50 = vld [vmem:[%s22085_s11 + $0x50] sm:$0xff] }
 0x1b8   : > { %18410 = vmatprep.mubr.msk.f32.mxu0 %vm21974_vm0, %v22713_v39 }
 0x1ba   : > { %17461 = vmatmul.mubr.msk.f32.gmra.mrb[26].mxu1 %vm373_vm1, %v1670_v53  ;;  %v2101_v53 = vld [vmem:[%s22085_s11 + $0x34] sm:$0xff] }
 0x1bb   : > { %18411 = vmatmul.mubr.msk.f32.gmra.mrb[26].mxu0 %vm373_vm1, %v6050_v54  ;;  %17463 = vmatprep.mubr.msk.f32.mxu1 %vm21974_vm0, %v22713_v39  ;;  %v6481_v54 = vld [vmem:[%s22085_s11 + $0x58] sm:$0xff] }
 0x1bc   : > { %18413 = vmatprep.mubr.msk.f32.mxu0 %vm21974_vm0, %v22713_v39 }
 0x1be   : > { %17464 = vmatmul.mubr.msk.f32.gmra.mrb[28].mxu1 %vm373_vm1, %v1671_v55  ;;  %v2102_v55 = vld [vmem:[%s22085_s11 + $0x3c] sm:$0xff] }
 0x1bf   : > { %18414 = vmatmul.mubr.msk.f32.gmra.mrb[28].mxu0 %vm373_vm1, %v6051_v56  ;;  %17466 = vmatprep.mubr.msk.f32.mxu1 %vm21974_vm0, %v22713_v39  ;;  %v6482_v56 = vld [vmem:[%s22085_s11 + $0x60] sm:$0xff] }
 0x1c0   : > { %18416 = vmatprep.mubr.msk.f32.mxu0 %vm21974_vm0, %v22713_v39 }
 0x1c2   : > { %17467 = vmatmul.mubr.msk.f32.gmra.mrb[30].mxu1 %vm373_vm1, %v1672_v57  ;;  %v2103_v57 = vld [vmem:[%s22085_s11 + $0x44] sm:$0xff] }
 0x1c3   : > { %18417 = vmatmul.mubr.msk.f32.gmra.mrb[30].mxu0 %vm373_vm1, %v6052_v58  ;;  %17469 = vmatprep.mubr.msk.f32.mxu1 %vm21974_vm0, %v22713_v39  ;;  %v6483_v58 = vld [vmem:[%s22085_s11 + $0x68] sm:$0xff] }
 0x1c4   : > { %18419 = vmatprep.mubr.msk.f32.mxu0 %vm21974_vm0, %v22713_v39 }
 0x1c6   : > { %17470 = vmatmul.mubr.msk.f32.gmra.mrb[32].mxu1 %vm373_vm1, %v1673_v59  ;;  %v2104_v59 = vld [vmem:[%s22085_s11 + $0x4c] sm:$0xff] }
 0x1c7   : > { %18420 = vmatmul.mubr.msk.f32.gmra.mrb[32].mxu0 %vm373_vm1, %v6053_v60  ;;  %17472 = vmatprep.mubr.msk.f32.mxu1 %vm21974_vm0, %v22713_v39  ;;  %v6484_v60 = vld [vmem:[%s22085_s11 + $0x70] sm:$0xff] }
 0x1c8   : > { %18422 = vmatprep.mubr.msk.f32.mxu0 %vm21974_vm0, %v22713_v39 }
 0x1ca   : > { %17473 = vmatmul.mubr.msk.f32.gmra.mrb[34].mxu1 %vm373_vm1, %v1674_v61 }
 0x1cb   : > { %18423 = vmatmul.mubr.msk.f32.gmra.mrb[34].mxu0 %vm373_vm1, %v6054_v63  ;;  %17475 = vmatprep.mubr.msk.f32.mxu1 %vm21974_vm0, %v22713_v39 }
 0x1cc   : > { %18425 = vmatprep.mubr.msk.f32.mxu0 %vm21974_vm0, %v22713_v39 }
 0x1ce   : > { %v23025_v3 = vpop.f32.mrb[68].mxu0  ;;  %17476 = vmatmul.mubr.msk.f32.gmra.mrb[82].mxu1 %vm373_vm1, %v1675_v0  ;;  %v2105_v0 = vld [vmem:[%s22085_s11 + $0x54] sm:$0xff] }
 0x1cf   : > { %v18264_v4 = vpop.f32.mrb[69].mxu0  ;;  %18426 = vmatmul.mubr.msk.f32.gmra.mrb[82].mxu0 %vm373_vm1, %v6055_v1  ;;  %17478 = vmatprep.mubr.msk.f32.mxu1 %vm21974_vm0, %v22713_v39  ;;  %v6485_v1 = vld [vmem:[%s22085_s11 + $0x78] sm:$0xff] }
 0x1d0   : > { %18428 = vmatprep.mubr.msk.f32.mxu0 %vm21974_vm0, %v22713_v39  ;;  %v2106_v4 = vld [vmem:[%s22085_s11 + $0x5c] sm:$0xff] }
 0x1d2   : > { %17479 = vmatmul.mubr.msk.f32.gmra.mrb[38].mxu1 %vm373_vm1, %v1676_v5  ;;  %v6486_v5 = vld [vmem:[%s22085_s11 + $0x80] sm:$0xff] }
 0x1d3   : > { %18429 = vmatmul.mubr.msk.f32.gmra.mrb[38].mxu0 %vm373_vm1, %v6056_v6  ;;  %17481 = vmatprep.mubr.msk.f32.mxu1 %vm21974_vm0, %v22713_v39  ;;  %v2107_v6 = vld [vmem:[%s22085_s11 + $0x64] sm:$0xff] }
 0x1d4   : > { %18431 = vmatprep.mubr.msk.f32.mxu0 %vm21974_vm0, %v22713_v39 }
 0x1d6   : > { %17482 = vmatmul.mubr.msk.f32.gmra.mrb[40].mxu1 %vm373_vm1, %v1677_v7  ;;  %v6487_v7 = vld [vmem:[%s22085_s11 + $0x88] sm:$0xff] }
 0x1d7   : > { %18432 = vmatmul.mubr.msk.f32.gmra.mrb[40].mxu0 %vm373_vm1, %v6057_v8  ;;  %17484 = vmatprep.mubr.msk.f32.mxu1 %vm21974_vm0, %v22713_v39  ;;  %v2108_v8 = vld [vmem:[%s22085_s11 + $0x6c] sm:$0xff] }
 0x1d8   : > { %18434 = vmatprep.mubr.msk.f32.mxu0 %vm21974_vm0, %v22713_v39 }
 0x1da   : > { %17485 = vmatmul.mubr.msk.f32.gmra.mrb[42].mxu1 %vm373_vm1, %v1678_v9  ;;  %v6488_v9 = vld [vmem:[%s22085_s11 + $0x90] sm:$0xff] }
 0x1db   : > { %18435 = vmatmul.mubr.msk.f32.gmra.mrb[42].mxu0 %vm373_vm1, %v6058_v11  ;;  %17487 = vmatprep.mubr.msk.f32.mxu1 %vm21974_vm0, %v22713_v39  ;;  %v2109_v11 = vld [vmem:[%s22085_s11 + $0x74] sm:$0xff] }
 0x1dc   : > { %18437 = vmatprep.mubr.msk.f32.mxu0 %vm21974_vm0, %v22713_v39 }
 0x1de   : > { %v23059_v14 = vpop.f32.mrb[70].mxu0  ;;  %17488 = vmatmul.mubr.msk.f32.gmra.mrb[44].mxu1 %vm373_vm1, %v1679_v12  ;;  %v6489_v12 = vld [vmem:[%s22085_s11 + $0x98] sm:$0xff] }
 0x1df   : > { %v18278_v15 = vpop.f32.mrb[71].mxu0  ;;  %18438 = vmatmul.mubr.msk.f32.gmra.mrb[44].mxu0 %vm373_vm1, %v6059_v13  ;;  %17490 = vmatprep.mubr.msk.f32.mxu1 %vm21974_vm0, %v22713_v39  ;;  %v533_v13 = vpop.f32.mrb[0].mxu1 }
 0x1e0   : > { %18440 = vmatprep.mubr.msk.f32.mxu0 %vm21974_vm0, %v22713_v39  ;;  %v2110_v15 = vld [vmem:[%s22085_s11 + $0x7c] sm:$0xff] }
 0x1e2   : > { %17491 = vmatmul.mubr.msk.f32.gmra.mrb[46].mxu1 %vm373_vm1, %v1680_v16  ;;  %v6490_v16 = vld [vmem:[%s22085_s11 + $0xa0] sm:$0xff] }
 0x1e3   : > { %18441 = vmatmul.mubr.msk.f32.gmra.mrb[46].mxu0 %vm373_vm1, %v6060_v17  ;;  %17493 = vmatprep.mubr.msk.f32.mxu1 %vm21974_vm0, %v22713_v39  ;;  %v17138_v17 = vpop.f32.mrb[1].mxu1 }
 0x1e4   : > { %18443 = vmatprep.mubr.msk.f32.mxu0 %vm21974_vm0, %v22713_v39 }
 0x1e6   : > { %17494 = vmatmul.mubr.msk.f32.gmra.mrb[48].mxu1 %vm373_vm1, %v1681_v18  ;;  %v2111_v18 = vld [vmem:[%s22085_s11 + $0x84] sm:$0xff] }
 0x1e7   : > { %18444 = vmatmul.mubr.msk.f32.gmra.mrb[48].mxu0 %vm373_vm1, %v6061_v19  ;;  %17496 = vmatprep.mubr.msk.f32.mxu1 %vm21974_vm0, %v22713_v39  ;;  %v6491_v19 = vld [vmem:[%s22085_s11 + $0xa8] sm:$0xff] }
 0x1e8   : > { %18446 = vmatprep.mubr.msk.f32.mxu0 %vm21974_vm0, %v22713_v39 }
 0x1ea   : > { %17497 = vmatmul.mubr.msk.f32.gmra.mrb[50].mxu1 %vm373_vm1, %v1682_v20  ;;  %v578_v20 = vpop.f32.mrb[18].mxu1 }
 0x1eb   : > { %18447 = vmatmul.mubr.msk.f32.gmra.mrb[50].mxu0 %vm373_vm1, %v6062_v22  ;;  %17499 = vmatprep.mubr.msk.f32.mxu1 %vm21974_vm0, %v22713_v39  ;;  %v17165_v22 = vpop.f32.mrb[19].mxu1 }
 0x1ec   : > { %18449 = vmatprep.mubr.msk.f32.mxu0 %vm21974_vm0, %v22713_v39 }
 0x1ee   : > { %17500 = vmatmul.mubr.msk.f32.gmra.mrb[52].mxu1 %vm373_vm1, %v1683_v23  ;;  %v623_v23 = vpop.f32.mrb[36].mxu1 }
 0x1ef   : > { %18450 = vmatmul.mubr.msk.f32.gmra.mrb[52].mxu0 %vm373_vm1, %v6063_v24  ;;  %17502 = vmatprep.mubr.msk.f32.mxu1 %vm21974_vm0, %v22713_v39  ;;  %v2112_v24 = vld [vmem:[%s22085_s11 + $0x8c] sm:$0xff] }
 0x1f0   : > { %18452 = vmatprep.mubr.msk.f32.mxu0 %vm21974_vm0, %v22713_v39 }
 0x1f2   : > { %17503 = vmatmul.mubr.msk.f32.gmra.mrb[84].mxu1 %vm373_vm1, %v1684_v25  ;;  %v6492_v25 = vld [vmem:[%s22085_s11 + $0xb0] sm:$0xff] }
 0x1f3   : > { %18453 = vmatmul.mubr.msk.f32.gmra.mrb[84].mxu0 %vm373_vm1, %v6064_v26  ;;  %17505 = vmatprep.mubr.msk.f32.mxu1 %vm21974_vm0, %v22713_v39  ;;  %v17192_v26 = vpop.f32.mrb[37].mxu1 }
 0x1f4   : > { %18455 = vmatprep.mubr.msk.f32.mxu0 %vm21974_vm0, %v22713_v39  ;;  %v23355_v26 = vld [vmem:[#allocation3] sm:$0xff] }
 0x1f6   : > { %17506 = vmatmul.mubr.msk.f32.gmra.mrb[56].mxu1 %vm373_vm1, %v1685_v27  ;;  %v687_v27 = vadd.f32 %v22713_v39, %v533_v13 }
 0x1f7   : > { %18456 = vmatmul.mubr.msk.f32.gmra.mrb[56].mxu0 %vm373_vm1, %v6065_v28  ;;  %17508 = vmatprep.mubr.msk.f32.mxu1 %vm21974_vm0, %v22713_v39  ;;  %v668_v28 = vpop.f32.mrb[54].mxu1 }
 0x1f8   : > { %18458 = vmatprep.mubr.msk.f32.mxu0 %vm21974_vm0, %v22713_v39 }
 0x1fa   : > { %17509 = vmatmul.mubr.msk.f32.gmra.mrb[58].mxu1 %vm373_vm1, %v1686_v29  ;;  %v17219_v29 = vpop.f32.mrb[55].mxu1 }
 0x1fb   : > { %18459 = vmatmul.mubr.msk.f32.gmra.mrb[58].mxu0 %vm373_vm1, %v6066_v30  ;;  %17511 = vmatprep.mubr.msk.f32.mxu1 %vm21974_vm0, %v22713_v39  ;;  %v2113_v30 = vld [vmem:[%s22085_s11 + $0x94] sm:$0xff] }
 0x1fc   : > { %18461 = vmatprep.mubr.msk.f32.mxu0 %vm21974_vm0, %v22713_v39  ;;  %v6501_v29 = vld [vmem:[%s22085_s11 + $0xf8] sm:$0xff] }
 0x1fe   : > { %17512 = vmatmul.mubr.msk.f32.gmra.mrb[60].mxu1 %vm373_vm1, %v1687_v32  ;;  %v6493_v32 = vld [vmem:[%s22085_s11 + $0xb8] sm:$0xff] }
 0x1ff   : > { %18462 = vmatmul.mubr.msk.f32.gmra.mrb[60].mxu0 %vm373_vm1, %v6067_v33  ;;  %17516 = vmatprep.mubr.msk.f32.mxu1 %vm21974_vm0, %v22713_v39  ;;  %v696_v33 = vadd.f32 %v22713_v39, %v578_v20 }
 0x200   : > { %18466 = vmatprep.mubr.msk.f32.mxu0 %vm21974_vm0, %v22713_v39 }
 0x202   : > { %v23136_v37 = vpop.f32.mrb[72].mxu0  ;;  %17517 = vmatmul.mubr.msk.f32.vlgmr.msra.gmra.mrb[86].mxu1 %vm373_vm1, %v2095_v34  ;;  %v971_v34 = vpop.f32.mrb[62].mxu1 }
 0x203   : > { %v18305_v40 = vpop.f32.mrb[73].mxu0  ;;  %18467 = vmatmul.mubr.msk.f32.vlgmr.msra.gmra.mrb[86].mxu0 %vm373_vm1, %v6475_v35  ;;  %17519 = vmatprep.mubr.msk.f32.mxu1 %vm21974_vm0, %v22713_v39  ;;  %v1125_v35 = vadd.f32 %v971_v34, %v687_v27  ;;  %v2120_v27 = vld [vmem:[%s22085_s11 + $0xcc] sm:$0xff] }
 0x204   : > { %18560 = vmatpush3.msra.mxu0 %v6881_v36  ;;  %18469 = vmatprep.mubr.msk.f32.mxu0 %vm21974_vm0, %v22713_v39  ;;  %v17233_v36 = vpop.f32.mrb[63].mxu1  ;;  %v705_v40 = vadd.f32 %v22713_v39, %v623_v23  ;;  %v6503_v34 = vld [vmem:[%s22085_s11 + $0x108] sm:$0xff] }
 0x205   : > { %17610 = vmatpush3.msra.mxu1 %v2501_v38  ;;  %18654 = vmatprep.subr.mxu0 %v22713_v39  ;;  %v6504_v36 = vld [vmem:[%s22085_s11 + $0x110] sm:$0xff] }
 0x206   : > { %17704 = vmatprep.subr.mxu1 %v22713_v39  ;;  %17520 = vmatmul.mubr.msk.f32.gmra.mrb[2].mxu1 %vm373_vm1, %v2096_v41 }
 0x207   : > { %18470 = vmatmul.mubr.msk.f32.gmra.mrb[2].mxu0 %vm373_vm1, %v6476_v2  ;;  %17522 = vmatprep.mubr.msk.f32.mxu1 %vm21974_vm0, %v22713_v39  ;;  %v1016_v2 = vpop.f32.mrb[64].mxu1 }
 0x208   : > { %18472 = vmatprep.mubr.msk.f32.mxu0 %vm21974_vm0, %v22713_v39 }
 0x20a   : > { %17523 = vmatmul.mubr.msk.f32.gmra.mrb[4].mxu1 %vm373_vm1, %v2097_v42  ;;  %v2114_v42 = vld [vmem:[%s22085_s11 + $0x9c] sm:$0xff] }
 0x20b   : > { %18473 = vmatmul.mubr.msk.f32.gmra.mrb[4].mxu0 %vm373_vm1, %v6477_v44  ;;  %17525 = vmatprep.mubr.msk.f32.mxu1 %vm21974_vm0, %v22713_v39  ;;  %v6494_v44 = vld [vmem:[%s22085_s11 + $0xc0] sm:$0xff] }
 0x20c   : > { %18475 = vmatprep.mubr.msk.f32.mxu0 %vm21974_vm0, %v22713_v39 }
 0x20e   : > { %17526 = vmatmul.mubr.msk.f32.gmra.mrb[6].mxu1 %vm373_vm1, %v2098_v45  ;;  %v714_v45 = vadd.f32 %v22713_v39, %v668_v28  ;;  %v6500_v28 = vld [vmem:[%s22085_s11 + $0xf0] sm:$0xff] }
 0x20f   : > { %18476 = vmatmul.mubr.msk.f32.gmra.mrb[6].mxu0 %vm373_vm1, %v6478_v46  ;;  %17528 = vmatprep.mubr.msk.f32.mxu1 %vm21974_vm0, %v22713_v39  ;;  %v1134_v46 = vadd.f32 %v1016_v2, %v696_v33  ;;  %v2123_v33 = vld [vmem:[%s22085_s11 + $0xe4] sm:$0xff]  ;;  %v2533_v2 = vld [vmem:[%s22085_s11 + $0x12] sm:$0xff] }
 0x210   : > { %18478 = vmatprep.mubr.msk.f32.mxu0 %vm21974_vm0, %v22713_v39 }
 0x212   : > { %17529 = vmatmul.mubr.msk.f32.gmra.mrb[8].mxu1 %vm373_vm1, %v2099_v47  ;;  %v17260_v47 = vpop.f32.mrb[65].mxu1 }
 0x213   : > { %18479 = vmatmul.mubr.msk.f32.gmra.mrb[8].mxu0 %vm373_vm1, %v6479_v48  ;;  %17531 = vmatprep.mubr.msk.f32.mxu1 %vm21974_vm0, %v22713_v39  ;;  %v1061_v48 = vpop.f32.mrb[66].mxu1  ;;  %v2939_v47 = vld [vmem:[%s26874_s1 + $0x30] sm:$0xff] }
 0x214   : > { %18481 = vmatprep.mubr.msk.f32.mxu0 %vm21974_vm0, %v22713_v39 }
 0x216   : > { %17532 = vmatmul.mubr.msk.f32.gmra.mrb[10].mxu1 %vm373_vm1, %v2100_v49  ;;  %v1143_v49 = vadd.f32 %v1061_v48, %v705_v40  ;;  %v2125_v40 = vld [vmem:[%s22085_s11 + $0xf4] sm:$0xff] }
 0x217   : > { %18482 = vmatmul.mubr.msk.f32.gmra.mrb[10].mxu0 %vm373_vm1, %v6480_v50  ;;  %17534 = vmatprep.mubr.msk.f32.mxu1 %vm21974_vm0, %v22713_v39  ;;  %v17287_v50 = vpop.f32.mrb[67].mxu1 }
 0x218   : > { %18484 = vmatprep.mubr.msk.f32.mxu0 %vm21974_vm0, %v22713_v39 }
 0x21a   : > { %17535 = vmatmul.mubr.msk.f32.gmra.mrb[12].mxu1 %vm373_vm1, %v2101_v53  ;;  %v1106_v53 = vpop.f32.mrb[68].mxu1 }
 0x21b   : > { %18485 = vmatmul.mubr.msk.f32.gmra.mrb[12].mxu0 %vm373_vm1, %v6481_v54  ;;  %17537 = vmatprep.mubr.msk.f32.mxu1 %vm21974_vm0, %v22713_v39  ;;  %v2115_v54 = vld [vmem:[%s22085_s11 + $0xa4] sm:$0xff] }
 0x21c   : > { %18487 = vmatprep.mubr.msk.f32.mxu0 %vm21974_vm0, %v22713_v39 }
 0x21e   : > { %17538 = vmatmul.mubr.msk.f32.gmra.mrb[14].mxu1 %vm373_vm1, %v2102_v55  ;;  %v6495_v55 = vld [vmem:[%s22085_s11 + $0xc8] sm:$0xff] }
 0x21f   : > { %18488 = vmatmul.mubr.msk.f32.gmra.mrb[14].mxu0 %vm373_vm1, %v6482_v56  ;;  %17540 = vmatprep.mubr.msk.f32.mxu1 %vm21974_vm0, %v22713_v39  ;;  %v1152_v56 = vadd.f32 %v1106_v53, %v714_v45  ;;  %v2534_v53 = vld [vmem:[%s22085_s11 + $0x1a] sm:$0xff] }
 0x220   : > { %18490 = vmatprep.mubr.msk.f32.mxu0 %vm21974_vm0, %v22713_v39 }
 0x222   : > { %17541 = vmatmul.mubr.msk.f32.gmra.mrb[16].mxu1 %vm373_vm1, %v2103_v57  ;;  %v17314_v57 = vpop.f32.mrb[69].mxu1 }
 0x223   : > { %18491 = vmatmul.mubr.msk.f32.gmra.mrb[16].mxu0 %vm373_vm1, %v6483_v58  ;;  %17543 = vmatprep.mubr.msk.f32.mxu1 %vm21974_vm0, %v22713_v39  ;;  %v1409_v58 = vpop.f32.mrb[70].mxu1  ;;  %v2536_v57 = vld [vmem:[%s22085_s11 + $0x2a] sm:$0xff] }
 0x224   : > { %18493 = vmatprep.mubr.msk.f32.mxu0 %vm21974_vm0, %v22713_v39 }
 0x226   : > { %v23215_v61 = vpop.f32.mrb[74].mxu0  ;;  %17544 = vmatmul.mubr.msk.f32.gmra.mrb[88].mxu1 %vm373_vm1, %v2104_v59  ;;  %v1563_v59 = vadd.f32 %v1409_v58, %v1125_v35  ;;  %v2124_v35 = vld [vmem:[%s22085_s11 + $0xec] sm:$0xff] }
 0x227   : > { %v18332_v63 = vpop.f32.mrb[75].mxu0  ;;  %18494 = vmatmul.mubr.msk.f32.gmra.mrb[88].mxu0 %vm373_vm1, %v6484_v60  ;;  %17546 = vmatprep.mubr.msk.f32.mxu1 %vm21974_vm0, %v22713_v39  ;;  %v17328_v60 = vpop.f32.mrb[71].mxu1  ;;  %v6916_v58 = vld [vmem:[%s22085_s11 + $0x4e] sm:$0xff] }
 0x228   : > { %18496 = vmatprep.mubr.msk.f32.mxu0 %vm21974_vm0, %v22713_v39  ;;  %v2116_v63 = vld [vmem:[%s22085_s11 + $0xac] sm:$0xff]  ;;  %v6917_v60 = vld [vmem:[%s22085_s11 + $0x56] sm:$0xff] }
 0x22a   : > { %17547 = vmatmul.mubr.msk.f32.gmra.mrb[20].mxu1 %vm373_vm1, %v2105_v0  ;;  %v6496_v0 = vld [vmem:[%s22085_s11 + $0xd0] sm:$0xff] }
 0x22b   : > { %18497 = vmatmul.mubr.msk.f32.gmra.mrb[20].mxu0 %vm373_vm1, %v6485_v1  ;;  %17549 = vmatprep.mubr.msk.f32.mxu1 %vm21974_vm0, %v22713_v39  ;;  %v1454_v1 = vpop.f32.mrb[72].mxu1 }
 0x22c   : > { %18499 = vmatprep.mubr.msk.f32.mxu0 %vm21974_vm0, %v22713_v39 }
 0x22e   : > { %17550 = vmatmul.mubr.msk.f32.gmra.mrb[22].mxu1 %vm373_vm1, %v2106_v4  ;;  %v23321_v4 = vadd.f32 %v1454_v1, %v1134_v46  ;;  %v2539_v1 = vld [vmem:[%s22085_s11 + $0x42] sm:$0xff] }
 0x22f   : > { %18500 = vmatmul.mubr.msk.f32.gmra.mrb[22].mxu0 %vm373_vm1, %v6486_v5  ;;  %17552 = vmatprep.mubr.msk.f32.mxu1 %vm21974_vm0, %v22713_v39  ;;  %v17355_v5 = vpop.f32.mrb[73].mxu1 }
 0x230   : > { %18502 = vmatprep.mubr.msk.f32.mxu0 %vm21974_vm0, %v22713_v39  ;;  %v2540_v5 = vld [vmem:[%s22085_s11 + $0x4a] sm:$0xff] }
 0x232   : > { %17553 = vmatmul.mubr.msk.f32.gmra.mrb[24].mxu1 %vm373_vm1, %v2107_v6  ;;  %v2117_v6 = vld [vmem:[%s22085_s11 + $0xb4] sm:$0xff] }
 0x233   : > { %18503 = vmatmul.mubr.msk.f32.gmra.mrb[24].mxu0 %vm373_vm1, %v6487_v7  ;;  %17555 = vmatprep.mubr.msk.f32.mxu1 %vm21974_vm0, %v22713_v39  ;;  %v6497_v7 = vld [vmem:[%s22085_s11 + $0xd8] sm:$0xff] }
 0x234   : > { %18505 = vmatprep.mubr.msk.f32.mxu0 %vm21974_vm0, %v22713_v39 }
 0x236   : > { %17556 = vmatmul.mubr.msk.f32.gmra.mrb[26].mxu1 %vm373_vm1, %v2108_v8  ;;  %v1499_v8 = vpop.f32.mrb[74].mxu1 }
 0x237   : > { %18506 = vmatmul.mubr.msk.f32.gmra.mrb[26].mxu0 %vm373_vm1, %v6488_v9  ;;  %17558 = vmatprep.mubr.msk.f32.mxu1 %vm21974_vm0, %v22713_v39  ;;  %v23329_v9 = vadd.f32 %v1499_v8, %v1143_v49  ;;  %v6921_v8 = vld [vmem:[%s22085_s11 + $0x76] sm:$0xff] }
 0x238   : > { %18508 = vmatprep.mubr.msk.f32.mxu0 %vm21974_vm0, %v22713_v39 }
 0x23a   : > { %17559 = vmatmul.mubr.msk.f32.gmra.mrb[28].mxu1 %vm373_vm1, %v2109_v11  ;;  %v17382_v11 = vpop.f32.mrb[75].mxu1 }
 0x23b   : > { %18509 = vmatmul.mubr.msk.f32.gmra.mrb[28].mxu0 %vm373_vm1, %v6489_v12  ;;  %17561 = vmatprep.mubr.msk.f32.mxu1 %vm21974_vm0, %v22713_v39  ;;  %v2542_v11 = vld [vmem:[%s22085_s11 + $0x5a] sm:$0xff] }
 0x23c   : > { %18511 = vmatprep.mubr.msk.f32.mxu0 %vm21974_vm0, %v22713_v39 }
 0x23e   : > { %17562 = vmatmul.mubr.msk.f32.gmra.mrb[30].mxu1 %vm373_vm1, %v2110_v15 }
 0x23f   : > { %18512 = vmatmul.mubr.msk.f32.gmra.mrb[30].mxu0 %vm373_vm1, %v6490_v16  ;;  %17564 = vmatprep.mubr.msk.f32.mxu1 %vm21974_vm0, %v22713_v39 }
 0x240   : > { %18514 = vmatprep.mubr.msk.f32.mxu0 %vm21974_vm0, %v22713_v39 }
 0x242   : > { %17565 = vmatmul.mubr.msk.f32.gmra.mrb[32].mxu1 %vm373_vm1, %v2111_v18  ;;  %v2118_v18 = vld [vmem:[%s22085_s11 + $0xbc] sm:$0xff] }
 0x243   : > { %18515 = vmatmul.mubr.msk.f32.gmra.mrb[32].mxu0 %vm373_vm1, %v6491_v19  ;;  %17567 = vmatprep.mubr.msk.f32.mxu1 %vm21974_vm0, %v22713_v39  ;;  %v6498_v19 = vld [vmem:[%s22085_s11 + $0xe0] sm:$0xff] }
 0x244   : > { %18517 = vmatprep.mubr.msk.f32.mxu0 %vm21974_vm0, %v22713_v39 }
 0x246   : > { %17568 = vmatmul.mubr.msk.f32.gmra.mrb[34].mxu1 %vm373_vm1, %v2112_v24  ;;  %v2119_v24 = vld [vmem:[%s22085_s11 + $0xc4] sm:$0xff] }
 0x247   : > { %18518 = vmatmul.mubr.msk.f32.gmra.mrb[34].mxu0 %vm373_vm1, %v6492_v25  ;;  %17570 = vmatprep.mubr.msk.f32.mxu1 %vm21974_vm0, %v22713_v39  ;;  %v6499_v25 = vld [vmem:[%s22085_s11 + $0xe8] sm:$0xff] }
 0x248   : > { %18520 = vmatprep.mubr.msk.f32.mxu0 %vm21974_vm0, %v22713_v39 }
 0x249   : > { %v1544_v13 = vpop.f32.mrb[76].mxu1 }
 0x24a   : > { %v23291_v38 = vpop.f32.mrb[76].mxu0  ;;  %17571 = vmatmul.mubr.msk.f32.gmra.mrb[90].mxu1 %vm373_vm1, %v2113_v30  ;;  %v23335_v16 = vadd.f32 %v1544_v13, %v1152_v56  ;;  %v17409_v17 = vpop.f32.mrb[77].mxu1  ;;  %v2122_v30 = vld [vmem:[%s22085_s11 + $0xdc] sm:$0xff]  ;;  %v6915_v56 = vld [vmem:[%s22085_s11 + $0x46] sm:$0xff] }
 0x24b   : > { %v18359_v41 = vpop.f32.mrb[77].mxu0  ;;  %18521 = vmatmul.mubr.msk.f32.gmra.mrb[90].mxu0 %vm373_vm1, %v6493_v32  ;;  %17573 = vmatprep.mubr.msk.f32.mxu1 %vm21974_vm0, %v22713_v39  ;;  %v6502_v32 = vld [vmem:[%s22085_s11 + $0x100] sm:$0xff] }
 0x24c   : > { %18523 = vmatprep.mubr.msk.f32.mxu0 %vm21974_vm0, %v22713_v39  ;;  %v6505_v41 = vld [vmem:[%s22085_s11 + $0x118] sm:$0xff] }
 0x24d   : > { %v6922_v13 = vld [vmem:[%s22085_s11 + $0x7e] sm:$0xff] }
 0x24e   : > { %17574 = vmatmul.mubr.msk.f32.gmra.mrb[38].mxu1 %vm373_vm1, %v2114_v42  ;;  %v6913_v42 = vld [vmem:[%s22085_s11 + $0x36] sm:$0xff] }
 0x24f   : > { %18524 = vmatmul.mubr.msk.f32.gmra.mrb[38].mxu0 %vm373_vm1, %v6494_v44  ;;  %17576 = vmatprep.mubr.msk.f32.mxu1 %vm21974_vm0, %v22713_v39  ;;  %v7319_v44 = vld [vmem:[%s26874_s1 + $0x80] sm:$0xff] }
 0x250   : > { %18526 = vmatprep.mubr.msk.f32.mxu0 %vm21974_vm0, %v22713_v39 }
 0x252   : > { %17577 = vmatmul.mubr.msk.f32.gmra.mrb[40].mxu1 %vm373_vm1, %v2115_v54  ;;  %v6914_v54 = vld [vmem:[%s22085_s11 + $0x3e] sm:$0xff] }
 0x253   : > { %18527 = vmatmul.mubr.msk.f32.gmra.mrb[40].mxu0 %vm373_vm1, %v6495_v55  ;;  %17579 = vmatprep.mubr.msk.f32.mxu1 %vm21974_vm0, %v22713_v39  ;;  %v2535_v55 = vld [vmem:[%s22085_s11 + $0x22] sm:$0xff] }
 0x254   : > { %18529 = vmatprep.mubr.msk.f32.mxu0 %vm21974_vm0, %v22713_v39 }
 0x256   : > { %17580 = vmatmul.mubr.msk.f32.gmra.mrb[42].mxu1 %vm373_vm1, %v2116_v63  ;;  %v2538_v63 = vld [vmem:[%s22085_s11 + $0x3a] sm:$0xff] }
 0x257   : > { %18530 = vmatmul.mubr.msk.f32.gmra.mrb[42].mxu0 %vm373_vm1, %v6496_v0  ;;  %17582 = vmatprep.mubr.msk.f32.mxu1 %vm21974_vm0, %v22713_v39  ;;  %v6918_v0 = vld [vmem:[%s22085_s11 + $0x5e] sm:$0xff] }
 0x258   : > { %18532 = vmatprep.mubr.msk.f32.mxu0 %vm21974_vm0, %v22713_v39 }
 0x259   : > { %v1847_v20 = vpop.f32.mrb[78].mxu1 }
 0x25a   : > { %v23331_v12 = vpop.f32.mrb[78].mxu0  ;;  %17583 = vmatmul.mubr.msk.f32.gmra.mrb[44].mxu1 %vm373_vm1, %v2117_v6  ;;  %v23343_v22 = vadd.f32 %v1847_v20, %v1563_v59  ;;  %v17423_v23 = vpop.f32.mrb[79].mxu1  ;;  %v2537_v59 = vld [vmem:[%s22085_s11 + $0x32] sm:$0xff] }
 0x25b   : > { %v18373_v15 = vpop.f32.mrb[79].mxu0  ;;  %18533 = vmatmul.mubr.msk.f32.gmra.mrb[44].mxu0 %vm373_vm1, %v6497_v7  ;;  %17585 = vmatprep.mubr.msk.f32.mxu1 %vm21974_vm0, %v22713_v39  ;;  %v6920_v6 = vld [vmem:[%s22085_s11 + $0x6e] sm:$0xff]  ;;  %v2543_v23 = vld [vmem:[%s22085_s11 + $0x62] sm:$0xff] }
 0x25c   : > { %18535 = vmatprep.mubr.msk.f32.mxu0 %vm21974_vm0, %v22713_v39  ;;  %v2541_v7 = vld [vmem:[%s22085_s11 + $0x52] sm:$0xff] }
 0x25e   : > { %17586 = vmatmul.mubr.msk.f32.gmra.mrb[46].mxu1 %vm373_vm1, %v2118_v18 }
 0x25f   : > { %18536 = vmatmul.mubr.msk.f32.gmra.mrb[46].mxu0 %vm373_vm1, %v6498_v19  ;;  %17588 = vmatprep.mubr.msk.f32.mxu1 %vm21974_vm0, %v22713_v39 }
 0x260   : > { %18538 = vmatprep.mubr.msk.f32.mxu0 %vm21974_vm0, %v22713_v39  ;;  %v2121_v39 = vld [vmem:[%s22085_s11 + $0xd4] sm:$0xff] }
 0x262   : > { %17589 = vmatmul.mubr.msk.f32.gmra.mrb[48].mxu1 %vm373_vm1, %v2119_v24  ;;  %v6923_v24 = vld [vmem:[%s22085_s11 + $0x86] sm:$0xff] }
 0x263   : > { %18539 = vmatmul.mubr.msk.f32.gmra.mrb[48].mxu0 %vm373_vm1, %v6499_v25  ;;  %17591 = vmatprep.mubr.msk.f32.mxu1 %vm21974_vm0, %v23355_v26  ;;  %v6924_v25 = vld [vmem:[%s22085_s11 + $0x8e] sm:$0xff] }
 0x264   : > { %18541 = vmatprep.mubr.msk.f32.mxu0 %vm21974_vm0, %v23355_v26 }
 0x266   : > { %17592 = vmatmul.mubr.msk.f32.gmra.mrb[50].mxu1 %vm373_vm1, %v2120_v27  ;;  %v2545_v27 = vld [vmem:[%s22085_s11 + $0x72] sm:$0xff] }
 0x267   : > { %18542 = vmatmul.mubr.msk.f32.gmra.mrb[50].mxu0 %vm373_vm1, %v6500_v28  ;;  %17594 = vmatprep.mubr.msk.f32.mxu1 %vm21974_vm0, %v23355_v26  ;;  %v6925_v28 = vld [vmem:[%s22085_s11 + $0x96] sm:$0xff] }
 0x268   : > { %18544 = vmatprep.mubr.msk.f32.mxu0 %vm21974_vm0, %v23355_v26 }
 0x26a   : > { %17595 = vmatmul.mubr.msk.f32.gmra.mrb[52].mxu1 %vm373_vm1, %v2121_v39  ;;  %v2546_v39 = vld [vmem:[%s22085_s11 + $0x7a] sm:$0xff] }
 0x26b   : > { %18545 = vmatmul.mubr.msk.f32.gmra.mrb[52].mxu0 %vm373_vm1, %v6501_v29  ;;  %17597 = vmatprep.mubr.msk.f32.mxu1 %vm21974_vm0, %v23355_v26  ;;  %v6926_v29 = vld [vmem:[%s22085_s11 + $0x9e] sm:$0xff] }
 0x26c   : > { %18547 = vmatprep.mubr.msk.f32.mxu0 %vm21974_vm0, %v23355_v26 }
 0x26e   : > { %17598 = vmatmul.mubr.msk.f32.gmra.mrb[92].mxu1 %vm373_vm1, %v2122_v30  ;;  %v2547_v30 = vld [vmem:[%s22085_s11 + $0x82] sm:$0xff] }
 0x26f   : > { %18548 = vmatmul.mubr.msk.f32.gmra.mrb[92].mxu0 %vm373_vm1, %v6502_v32  ;;  %17600 = vmatprep.mubr.msk.f32.mxu1 %vm21974_vm0, %v23355_v26  ;;  %v6927_v32 = vld [vmem:[%s22085_s11 + $0xa6] sm:$0xff] }
 0x270   : > { %18550 = vmatprep.mubr.msk.f32.mxu0 %vm21974_vm0, %v23355_v26 }
 0x272   : > { %17601 = vmatmul.mubr.msk.f32.gmra.mrb[56].mxu1 %vm373_vm1, %v2123_v33  ;;  %v2548_v33 = vld [vmem:[%s22085_s11 + $0x8a] sm:$0xff] }
 0x273   : > { %18551 = vmatmul.mubr.msk.f32.gmra.mrb[56].mxu0 %vm373_vm1, %v6503_v34  ;;  %17603 = vmatprep.mubr.msk.f32.mxu1 %vm21974_vm0, %v23355_v26  ;;  %v6928_v34 = vld [vmem:[%s22085_s11 + $0xae] sm:$0xff] }
 0x274   : > { %18553 = vmatprep.mubr.msk.f32.mxu0 %vm21974_vm0, %v23355_v26 }
 0x276   : > { %17604 = vmatmul.mubr.msk.f32.gmra.mrb[58].mxu1 %vm373_vm1, %v2124_v35  ;;  %v2549_v35 = vld [vmem:[%s22085_s11 + $0x92] sm:$0xff] }
 0x277   : > { %18554 = vmatmul.mubr.msk.f32.gmra.mrb[58].mxu0 %vm373_vm1, %v6504_v36  ;;  %17606 = vmatprep.mubr.msk.f32.mxu1 %vm21974_vm0, %v23355_v26  ;;  %v6929_v36 = vld [vmem:[%s22085_s11 + $0xb6] sm:$0xff] }
 0x278   : > { %18556 = vmatprep.mubr.msk.f32.mxu0 %vm21974_vm0, %v23355_v26 }
 0x27a   : > { %17607 = vmatmul.mubr.msk.f32.gmra.mrb[60].mxu1 %vm373_vm1, %v2125_v40  ;;  %v2550_v40 = vld [vmem:[%s22085_s11 + $0x9a] sm:$0xff] }
 0x27b   : > { %18557 = vmatmul.mubr.msk.f32.gmra.mrb[60].mxu0 %vm373_vm1, %v6505_v41  ;;  %17611 = vmatprep.mubr.msk.f32.mxu1 %vm21974_vm0, %v23355_v26  ;;  %v6930_v41 = vld [vmem:[%s22085_s11 + $0xbe] sm:$0xff] }
 0x27c   : > { %18561 = vmatprep.mubr.msk.f32.mxu0 %vm21974_vm0, %v23355_v26 }
 0x27d   : > { %v1892_v46 = vpop.f32.mrb[80].mxu1 }
 0x27e   : > { %v23414_v45 = vpop.f32.mrb[80].mxu0  ;;  %17612 = vmatmul.mubr.msk.f32.vlgmr.msra.gmra.mrb[94].mxu1 %vm373_vm1, %v2533_v2  ;;  %v23422_v49 = vadd.f32 %v1892_v46, %v23321_v4  ;;  %v17450_v50 = vpop.f32.mrb[81].mxu1  ;;  %v6919_v4 = vld [vmem:[%s22085_s11 + $0x66] sm:$0xff] }
 0x27f   : > { %v18400_v48 = vpop.f32.mrb[81].mxu0  ;;  %18562 = vmatmul.mubr.msk.f32.vlgmr.msra.gmra.mrb[94].mxu0 %vm373_vm1, %v6913_v42  ;;  %17614 = vmatprep.mubr.msk.f32.mxu1 %vm21974_vm0, %v23355_v26  ;;  %v2551_v2 = vld [vmem:[%s22085_s11 + $0xa2] sm:$0xff] }
 0x280   : > { %18655 = vmatpush3.msra.mxu0 %v7319_v44  ;;  %18564 = vmatprep.mubr.msk.f32.mxu0 %vm21974_vm0, %v23355_v26  ;;  %v6931_v42 = vld [vmem:[%s22085_s11 + $0xc6] sm:$0xff] }
 0x281   : > { %17705 = vmatpush3.msra.mxu1 %v2939_v47  ;;  %18749 = vmatprep.subr.mxu0 %v23355_v26 }
 0x282   : > { %17799 = vmatprep.subr.mxu1 %v23355_v26  ;;  %17615 = vmatmul.mubr.msk.f32.gmra.mrb[2].mxu1 %vm373_vm1, %v2534_v53  ;;  %v2552_v53 = vld [vmem:[%s22085_s11 + $0xaa] sm:$0xff] }
 0x283   : > { %18565 = vmatmul.mubr.msk.f32.gmra.mrb[2].mxu0 %vm373_vm1, %v6914_v54  ;;  %17617 = vmatprep.mubr.msk.f32.mxu1 %vm21974_vm0, %v23355_v26  ;;  %v6932_v54 = vld [vmem:[%s22085_s11 + $0xce] sm:$0xff] }
 0x284   : > { %18567 = vmatprep.mubr.msk.f32.mxu0 %vm21974_vm0, %v23355_v26 }
 0x286   : > { %17618 = vmatmul.mubr.msk.f32.gmra.mrb[4].mxu1 %vm373_vm1, %v2535_v55  ;;  %v6933_v55 = vld [vmem:[%s22085_s11 + $0xd6] sm:$0xff] }
 0x287   : > { %18568 = vmatmul.mubr.msk.f32.gmra.mrb[4].mxu0 %vm373_vm1, %v6915_v56  ;;  %17620 = vmatprep.mubr.msk.f32.mxu1 %vm21974_vm0, %v23355_v26  ;;  %v2554_v56 = vld [vmem:[%s22085_s11 + $0xba] sm:$0xff] }
 0x288   : > { %18570 = vmatprep.mubr.msk.f32.mxu0 %vm21974_vm0, %v23355_v26 }
 0x28a   : > { %17621 = vmatmul.mubr.msk.f32.gmra.mrb[6].mxu1 %vm373_vm1, %v2536_v57  ;;  %v6934_v57 = vld [vmem:[%s22085_s11 + $0xde] sm:$0xff] }
 0x28b   : > { %18571 = vmatmul.mubr.msk.f32.gmra.mrb[6].mxu0 %vm373_vm1, %v6916_v58  ;;  %17623 = vmatprep.mubr.msk.f32.mxu1 %vm21974_vm0, %v23355_v26  ;;  %v2555_v58 = vld [vmem:[%s22085_s11 + $0xc2] sm:$0xff] }
 0x28c   : > { %18573 = vmatprep.mubr.msk.f32.mxu0 %vm21974_vm0, %v23355_v26 }
 0x28e   : > { %17624 = vmatmul.mubr.msk.f32.gmra.mrb[8].mxu1 %vm373_vm1, %v2537_v59  ;;  %v6935_v59 = vld [vmem:[%s22085_s11 + $0xe6] sm:$0xff] }
 0x28f   : > { %18574 = vmatmul.mubr.msk.f32.gmra.mrb[8].mxu0 %vm373_vm1, %v6917_v60  ;;  %17626 = vmatprep.mubr.msk.f32.mxu1 %vm21974_vm0, %v23355_v26 }
 0x290   : > { %18576 = vmatprep.mubr.msk.f32.mxu0 %vm21974_vm0, %v23355_v26 }
 0x292   : > { %17627 = vmatmul.mubr.msk.f32.gmra.mrb[10].mxu1 %vm373_vm1, %v2538_v63 }
 0x293   : > { %18577 = vmatmul.mubr.msk.f32.gmra.mrb[10].mxu0 %vm373_vm1, %v6918_v0  ;;  %17629 = vmatprep.mubr.msk.f32.mxu1 %vm21974_vm0, %v23355_v26 }
 0x294   : > { %18579 = vmatprep.mubr.msk.f32.mxu0 %vm21974_vm0, %v23355_v26 }
 0x296   : > { %17630 = vmatmul.mubr.msk.f32.gmra.mrb[12].mxu1 %vm373_vm1, %v2539_v1 }
 0x297   : > { %18580 = vmatmul.mubr.msk.f32.gmra.mrb[12].mxu0 %vm373_vm1, %v6919_v4  ;;  %17632 = vmatprep.mubr.msk.f32.mxu1 %vm21974_vm0, %v23355_v26 }
 0x298   : > { %18582 = vmatprep.mubr.msk.f32.mxu0 %vm21974_vm0, %v23355_v26 }
 0x29a   : > { %17633 = vmatmul.mubr.msk.f32.gmra.mrb[14].mxu1 %vm373_vm1, %v2540_v5  ;;  %v2556_v5 = vld [vmem:[%s22085_s11 + $0xca] sm:$0xff] }
 0x29b   : > { %18583 = vmatmul.mubr.msk.f32.gmra.mrb[14].mxu0 %vm373_vm1, %v6920_v6  ;;  %17635 = vmatprep.mubr.msk.f32.mxu1 %vm21974_vm0, %v23355_v26  ;;  %v6936_v6 = vld [vmem:[%s22085_s11 + $0xee] sm:$0xff] }
 0x29c   : > { %18585 = vmatprep.mubr.msk.f32.mxu0 %vm21974_vm0, %v23355_v26 }
 0x29e   : > { %17636 = vmatmul.mubr.msk.f32.gmra.mrb[16].mxu1 %vm373_vm1, %v2541_v7  ;;  %v6937_v7 = vld [vmem:[%s22085_s11 + $0xf6] sm:$0xff] }
 0x29f   : > { %18586 = vmatmul.mubr.msk.f32.gmra.mrb[16].mxu0 %vm373_vm1, %v6921_v8  ;;  %17638 = vmatprep.mubr.msk.f32.mxu1 %vm21974_vm0, %v23355_v26  ;;  %v2558_v8 = vld [vmem:[%s22085_s11 + $0xda] sm:$0xff] }
 0x2a0   : > { %18588 = vmatprep.mubr.msk.f32.mxu0 %vm21974_vm0, %v23355_v26 }
 0x2a1   : > { %v1937_v17 = vpop.f32.mrb[82].mxu1 }
 0x2a2   : > { %v23496_v15 = vpop.f32.mrb[82].mxu0  ;;  %17639 = vmatmul.mubr.msk.f32.gmra.mrb[96].mxu1 %vm373_vm1, %v2542_v11  ;;  %v23501_v19 = vadd.f32 %v1937_v17, %v23329_v9  ;;  %v17477_v20 = vpop.f32.mrb[83].mxu1  ;;  %v2544_v9 = vld [vmem:[%s22085_s11 + $0x6a] sm:$0xff]  ;;  %v6938_v11 = vld [vmem:[%s22085_s11 + $0xfe] sm:$0xff] }
 0x2a3   : > { %v18427_v18 = vpop.f32.mrb[83].mxu0  ;;  %18589 = vmatmul.mubr.msk.f32.gmra.mrb[96].mxu0 %vm373_vm1, %v6922_v13  ;;  %17641 = vmatprep.mubr.msk.f32.mxu1 %vm21974_vm0, %v23355_v26  ;;  %v2559_v13 = vld [vmem:[%s22085_s11 + $0xe2] sm:$0xff]  ;;  %v6940_v20 = vld [vmem:[%s22085_s11 + $0x10e] sm:$0xff] }
 0x2a4   : > { %18591 = vmatprep.mubr.msk.f32.mxu0 %vm21974_vm0, %v23355_v26  ;;  %v6939_v17 = vld [vmem:[%s22085_s11 + $0x106] sm:$0xff] }
 0x2a5   : > { %v2560_v18 = vld [vmem:[%s22085_s11 + $0xea] sm:$0xff] }
 0x2a6   : > { %17642 = vmatmul.mubr.msk.f32.gmra.mrb[20].mxu1 %vm373_vm1, %v2543_v23  ;;  %v2561_v23 = vld [vmem:[%s22085_s11 + $0xf2] sm:$0xff] }
 0x2a7   : > { %18592 = vmatmul.mubr.msk.f32.gmra.mrb[20].mxu0 %vm373_vm1, %v6923_v24  ;;  %17644 = vmatprep.mubr.msk.f32.mxu1 %vm21974_vm0, %v23355_v26  ;;  %v6941_v24 = vld [vmem:[%s22085_s11 + $0x116] sm:$0xff] }
 0x2a8   : > { %18594 = vmatprep.mubr.msk.f32.mxu0 %vm21974_vm0, %v23355_v26 }
 0x2aa   : > { %17645 = vmatmul.mubr.msk.f32.gmra.mrb[22].mxu1 %vm373_vm1, %v2544_v9  ;;  %v2562_v9 = vld [vmem:[%s22085_s11 + $0xfa] sm:$0xff] }
 0x2ab   : > { %18595 = vmatmul.mubr.msk.f32.gmra.mrb[22].mxu0 %vm373_vm1, %v6924_v25  ;;  %17647 = vmatprep.mubr.msk.f32.mxu1 %vm21974_vm0, %v23355_v26  ;;  %v6942_v25 = vld [vmem:[%s22085_s11 + $0x11e] sm:$0xff] }
 0x2ac   : > { %18597 = vmatprep.mubr.msk.f32.mxu0 %vm21974_vm0, %v23355_v26 }
 0x2ae   : > { %17648 = vmatmul.mubr.msk.f32.gmra.mrb[24].mxu1 %vm373_vm1, %v2545_v27  ;;  %v2563_v27 = vld [vmem:[%s22085_s11 + $0x102] sm:$0xff] }
 0x2af   : > { %18598 = vmatmul.mubr.msk.f32.gmra.mrb[24].mxu0 %vm373_vm1, %v6925_v28  ;;  %17650 = vmatprep.mubr.msk.f32.mxu1 %vm21974_vm0, %v23355_v26  ;;  %v6943_v28 = vld [vmem:[%s22085_s11 + $0x126] sm:$0xff] }
 0x2b0   : > { %18600 = vmatprep.mubr.msk.f32.mxu0 %vm21974_vm0, %v23355_v26 }
 0x2b2   : > { %17651 = vmatmul.mubr.msk.f32.gmra.mrb[26].mxu1 %vm373_vm1, %v2546_v39  ;;  %v2971_v39 = vld [vmem:[%s22085_s11 + $0x13] sm:$0xff] }
 0x2b3   : > { %18601 = vmatmul.mubr.msk.f32.gmra.mrb[26].mxu0 %vm373_vm1, %v6926_v29  ;;  %17653 = vmatprep.mubr.msk.f32.mxu1 %vm21974_vm0, %v23355_v26  ;;  %v7351_v29 = vld [vmem:[%s22085_s11 + $0x37] sm:$0xff] }
 0x2b4   : > { %18603 = vmatprep.mubr.msk.f32.mxu0 %vm21974_vm0, %v23355_v26 }
 0x2b6   : > { %17654 = vmatmul.mubr.msk.f32.gmra.mrb[28].mxu1 %vm373_vm1, %v2547_v30  ;;  %v7757_v30 = vld [vmem:[%s26874_s1 + $0x88] sm:$0xff] }
 0x2b7   : > { %18604 = vmatmul.mubr.msk.f32.gmra.mrb[28].mxu0 %vm373_vm1, %v6927_v32  ;;  %17656 = vmatprep.mubr.msk.f32.mxu1 %vm21974_vm0, %v23355_v26 }
 0x2b8   : > { %18606 = vmatprep.mubr.msk.f32.mxu0 %vm21974_vm0, %v23355_v26 }
 0x2ba   : > { %17657 = vmatmul.mubr.msk.f32.gmra.mrb[30].mxu1 %vm373_vm1, %v2548_v33 }
 0x2bb   : > { %18607 = vmatmul.mubr.msk.f32.gmra.mrb[30].mxu0 %vm373_vm1, %v6928_v34  ;;  %17659 = vmatprep.mubr.msk.f32.mxu1 %vm21974_vm0, %v23355_v26  ;;  %v3377_v34 = vld [vmem:[%s26874_s1 + $0x38] sm:$0xff] }
 0x2bc   : > { %18609 = vmatprep.mubr.msk.f32.mxu0 %vm21974_vm0, %v23355_v26 }
 0x2be   : > { %17660 = vmatmul.mubr.msk.f32.gmra.mrb[32].mxu1 %vm373_vm1, %v2549_v35 }
 0x2bf   : > { %18610 = vmatmul.mubr.msk.f32.gmra.mrb[32].mxu0 %vm373_vm1, %v6929_v36  ;;  %17662 = vmatprep.mubr.msk.f32.mxu1 %vm21974_vm0, %v23355_v26 }
 0x2c0   : > { %18612 = vmatprep.mubr.msk.f32.mxu0 %vm21974_vm0, %v23355_v26 }
 0x2c2   : > { %17663 = vmatmul.mubr.msk.f32.gmra.mrb[34].mxu1 %vm373_vm1, %v2550_v40 }
 0x2c3   : > { %18613 = vmatmul.mubr.msk.f32.gmra.mrb[34].mxu0 %vm373_vm1, %v6930_v41  ;;  %17665 = vmatprep.mubr.msk.f32.mxu1 %vm21974_vm0, %v23355_v26  ;;  %v2972_v41 = vld [vmem:[%s22085_s11 + $0x1b] sm:$0xff] }
 0x2c4   : > { %18615 = vmatprep.mubr.msk.f32.mxu0 %vm21974_vm0, %v23355_v26 }
 0x2c5   : > { %v1982_v46 = vpop.f32.mrb[84].mxu1 }
 0x2c6   : > { %v23573_v44 = vpop.f32.mrb[84].mxu0  ;;  %17666 = vmatmul.mubr.msk.f32.gmra.mrb[98].mxu1 %vm373_vm1, %v2551_v2  ;;  %v23578_v48 = vadd.f32 %v1982_v46, %v23335_v16  ;;  %v17504_v50 = vpop.f32.mrb[85].mxu1  ;;  %v2553_v16 = vld [vmem:[%s22085_s11 + $0xb2] sm:$0xff]  ;;  %v7352_v2 = vld [vmem:[%s22085_s11 + $0x3f] sm:$0xff] }
 0x2c7   : > { %v18454_v47 = vpop.f32.mrb[85].mxu0  ;;  %18616 = vmatmul.mubr.msk.f32.gmra.mrb[98].mxu0 %vm373_vm1, %v6931_v42  ;;  %17668 = vmatprep.mubr.msk.f32.mxu1 %vm21974_vm0, %v23355_v26  ;;  %v7353_v42 = vld [vmem:[%s22085_s11 + $0x47] sm:$0xff]  ;;  %v2975_v50 = vld [vmem:[%s22085_s11 + $0x33] sm:$0xff] }
 0x2c8   : > { %18618 = vmatprep.mubr.msk.f32.mxu0 %vm21974_vm0, %v23355_v26  ;;  %v2974_v46 = vld [vmem:[%s22085_s11 + $0x2b] sm:$0xff] }
 0x2c9   : > { %v7354_v47 = vld [vmem:[%s22085_s11 + $0x4f] sm:$0xff] }
 0x2ca   : > { %17669 = vmatmul.mubr.msk.f32.gmra.mrb[38].mxu1 %vm373_vm1, %v2552_v53  ;;  %v7355_v53 = vld [vmem:[%s22085_s11 + $0x57] sm:$0xff] }
 0x2cb   : > { %18619 = vmatmul.mubr.msk.f32.gmra.mrb[38].mxu0 %vm373_vm1, %v6932_v54  ;;  %17671 = vmatprep.mubr.msk.f32.mxu1 %vm21974_vm0, %v23355_v26  ;;  %v2976_v54 = vld [vmem:[%s22085_s11 + $0x3b] sm:$0xff] }
 0x2cc   : > { %18621 = vmatprep.mubr.msk.f32.mxu0 %vm21974_vm0, %v23355_v26 }
 0x2ce   : > { %17672 = vmatmul.mubr.msk.f32.gmra.mrb[40].mxu1 %vm373_vm1, %v2553_v16  ;;  %v7356_v16 = vld [vmem:[%s22085_s11 + $0x5f] sm:$0xff] }
 0x2cf   : > { %18622 = vmatmul.mubr.msk.f32.gmra.mrb[40].mxu0 %vm373_vm1, %v6933_v55  ;;  %17674 = vmatprep.mubr.msk.f32.mxu1 %vm21974_vm0, %v23355_v26  ;;  %v2977_v55 = vld [vmem:[%s22085_s11 + $0x43] sm:$0xff] }
 0x2d0   : > { %18624 = vmatprep.mubr.msk.f32.mxu0 %vm21974_vm0, %v23355_v26 }
 0x2d2   : > { %17675 = vmatmul.mubr.msk.f32.gmra.mrb[42].mxu1 %vm373_vm1, %v2554_v56  ;;  %v7357_v56 = vld [vmem:[%s22085_s11 + $0x67] sm:$0xff] }
 0x2d3   : > { %18625 = vmatmul.mubr.msk.f32.gmra.mrb[42].mxu0 %vm373_vm1, %v6934_v57  ;;  %17677 = vmatprep.mubr.msk.f32.mxu1 %vm21974_vm0, %v23355_v26  ;;  %v2978_v57 = vld [vmem:[%s22085_s11 + $0x4b] sm:$0xff] }
 0x2d4   : > { %18627 = vmatprep.mubr.msk.f32.mxu0 %vm21974_vm0, %v23355_v26 }
 0x2d5   : > { %v2285_v63 = vpop.f32.mrb[86].mxu1 }
 0x2d6   : > { %v23610_v60 = vpop.f32.mrb[86].mxu0  ;;  %17678 = vmatmul.mubr.msk.f32.gmra.mrb[44].mxu1 %vm373_vm1, %v2555_v58  ;;  %v23615_v1 = vadd.f32 %v2285_v63, %v23343_v22  ;;  %v17518_v4 = vpop.f32.mrb[87].mxu1  ;;  %v2557_v22 = vld [vmem:[%s22085_s11 + $0xd2] sm:$0xff] }
 0x2d7   : > { %v18468_v0 = vpop.f32.mrb[87].mxu0  ;;  %18628 = vmatmul.mubr.msk.f32.gmra.mrb[44].mxu0 %vm373_vm1, %v6935_v59  ;;  %17680 = vmatprep.mubr.msk.f32.mxu1 %vm21974_vm0, %v23355_v26  ;;  %v7358_v58 = vld [vmem:[%s22085_s11 + $0x6f] sm:$0xff]  ;;  %v7359_v63 = vld [vmem:[%s22085_s11 + $0x77] sm:$0xff]  ;;  %v7360_v4 = vld [vmem:[%s22085_s11 + $0x7f] sm:$0xff] }
 0x2d8   : > { %18630 = vmatprep.mubr.msk.f32.mxu0 %vm21974_vm0, %v23355_v26  ;;  %v2979_v59 = vld [vmem:[%s22085_s11 + $0x53] sm:$0xff]  ;;  %v2980_v0 = vld [vmem:[%s22085_s11 + $0x5b] sm:$0xff] }
 0x2da   : > { %17681 = vmatmul.mubr.msk.f32.gmra.mrb[46].mxu1 %vm373_vm1, %v2556_v5 }
 0x2db   : > { %18631 = vmatmul.mubr.msk.f32.gmra.mrb[46].mxu0 %vm373_vm1, %v6936_v6  ;;  %17683 = vmatprep.mubr.msk.f32.mxu1 %vm21974_vm0, %v23355_v26 }
 0x2dc   : > { %18633 = vmatprep.mubr.msk.f32.mxu0 %vm21974_vm0, %v23355_v26 }
 0x2de   : > { %17684 = vmatmul.mubr.msk.f32.gmra.mrb[48].mxu1 %vm373_vm1, %v2557_v22 }
 0x2df   : > { %18634 = vmatmul.mubr.msk.f32.gmra.mrb[48].mxu0 %vm373_vm1, %v6937_v7  ;;  %17686 = vmatprep.mubr.msk.f32.mxu1 %vm21974_vm0, %v23355_v26 }
 0x2e0   : > { %18636 = vmatprep.mubr.msk.f32.mxu0 %vm21974_vm0, %v23355_v26 }
 0x2e2   : > { %17687 = vmatmul.mubr.msk.f32.gmra.mrb[50].mxu1 %vm373_vm1, %v2558_v8 }
 0x2e3   : > { %18637 = vmatmul.mubr.msk.f32.gmra.mrb[50].mxu0 %vm373_vm1, %v6938_v11  ;;  %17689 = vmatprep.mubr.msk.f32.mxu1 %vm21974_vm0, %v23355_v26  ;;  %v2981_v11 = vld [vmem:[%s22085_s11 + $0x63] sm:$0xff] }
 0x2e4   : > { %18639 = vmatprep.mubr.msk.f32.mxu0 %vm21974_vm0, %v23355_v26 }
 0x2e6   : > { %17690 = vmatmul.mubr.msk.f32.gmra.mrb[52].mxu1 %vm373_vm1, %v2559_v13  ;;  %v7361_v13 = vld [vmem:[%s22085_s11 + $0x87] sm:$0xff] }
 0x2e7   : > { %18640 = vmatmul.mubr.msk.f32.gmra.mrb[52].mxu0 %vm373_vm1, %v6939_v17  ;;  %17692 = vmatprep.mubr.msk.f32.mxu1 %vm21974_vm0, %v23355_v26  ;;  %v7362_v17 = vld [vmem:[%s22085_s11 + $0x8f] sm:$0xff] }
 0x2e8   : > { %18642 = vmatprep.mubr.msk.f32.mxu0 %vm21974_vm0, %v23355_v26 }
 0x2ea   : > { %17693 = vmatmul.mubr.msk.f32.gmra.mrb[100].mxu1 %vm373_vm1, %v2560_v18  ;;  %v2983_v18 = vld [vmem:[%s22085_s11 + $0x73] sm:$0xff] }
 0x2eb   : > { %18643 = vmatmul.mubr.msk.f32.gmra.mrb[100].mxu0 %vm373_vm1, %v6940_v20  ;;  %17695 = vmatprep.mubr.msk.f32.mxu1 %vm21974_vm0, %v23355_v26  ;;  %v7363_v20 = vld [vmem:[%s22085_s11 + $0x97] sm:$0xff] }
 0x2ec   : > { %18645 = vmatprep.mubr.msk.f32.mxu0 %vm21974_vm0, %v23355_v26 }
 0x2ee   : > { %17696 = vmatmul.mubr.msk.f32.gmra.mrb[56].mxu1 %vm373_vm1, %v2561_v23  ;;  %v2984_v23 = vld [vmem:[%s22085_s11 + $0x7b] sm:$0xff] }
 0x2ef   : > { %18646 = vmatmul.mubr.msk.f32.gmra.mrb[56].mxu0 %vm373_vm1, %v6941_v24  ;;  %17698 = vmatprep.mubr.msk.f32.mxu1 %vm21974_vm0, %v23355_v26  ;;  %v7364_v24 = vld [vmem:[%s22085_s11 + $0x9f] sm:$0xff] }
 0x2f0   : > { %18648 = vmatprep.mubr.msk.f32.mxu0 %vm21974_vm0, %v23355_v26 }
 0x2f2   : > { %17699 = vmatmul.mubr.msk.f32.gmra.mrb[58].mxu1 %vm373_vm1, %v2562_v9  ;;  %v2985_v9 = vld [vmem:[%s22085_s11 + $0x83] sm:$0xff] }
 0x2f3   : > { %18649 = vmatmul.mubr.msk.f32.gmra.mrb[58].mxu0 %vm373_vm1, %v6942_v25  ;;  %17701 = vmatprep.mubr.msk.f32.mxu1 %vm21974_vm0, %v23355_v26  ;;  %v7365_v25 = vld [vmem:[%s22085_s11 + $0xa7] sm:$0xff] }
 0x2f4   : > { %18651 = vmatprep.mubr.msk.f32.mxu0 %vm21974_vm0, %v23355_v26 }
 0x2f6   : > { %17702 = vmatmul.mubr.msk.f32.gmra.mrb[60].mxu1 %vm373_vm1, %v2563_v27  ;;  %v2986_v27 = vld [vmem:[%s22085_s11 + $0x8b] sm:$0xff] }
 0x2f7   : > { %18652 = vmatmul.mubr.msk.f32.gmra.mrb[60].mxu0 %vm373_vm1, %v6943_v28  ;;  %17706 = vmatprep.mubr.msk.f32.mxu1 %vm21974_vm0, %v23355_v26  ;;  %v7366_v28 = vld [vmem:[%s22085_s11 + $0xaf] sm:$0xff] }
 0x2f8   : > { %18656 = vmatprep.mubr.msk.f32.mxu0 %vm21974_vm0, %v23355_v26 }
 0x2f9   : > { %v2330_v33 = vpop.f32.mrb[88].mxu1 }
 0x2fa   : > { %v23690_v32 = vpop.f32.mrb[88].mxu0  ;;  %17707 = vmatmul.mubr.msk.f32.vlgmr.msra.gmra.mrb[102].mxu1 %vm373_vm1, %v2971_v39  ;;  %v23698_v36 = vadd.f32 %v2330_v33, %v23422_v49  ;;  %v17545_v40 = vpop.f32.mrb[89].mxu1  ;;  %v2973_v49 = vld [vmem:[%s22085_s11 + $0x23] sm:$0xff]  ;;  %v2987_v39 = vld [vmem:[%s22085_s11 + $0x93] sm:$0xff] }
 0x2fb   : > { %v18495_v35 = vpop.f32.mrb[89].mxu0  ;;  %18657 = vmatmul.mubr.msk.f32.vlgmr.msra.gmra.mrb[102].mxu0 %vm373_vm1, %v7351_v29  ;;  %17709 = vmatprep.mubr.msk.f32.mxu1 %vm21974_vm0, %v23355_v26  ;;  %v7367_v29 = vld [vmem:[%s22085_s11 + $0xb7] sm:$0xff]  ;;  %v7368_v33 = vld [vmem:[%s22085_s11 + $0xbf] sm:$0xff] }
 0x2fc   : > { %18750 = vmatpush3.msra.mxu0 %v7757_v30  ;;  %18659 = vmatprep.mubr.msk.f32.mxu0 %vm21974_vm0, %v23355_v26  ;;  %v2988_v30 = vld [vmem:[%s22085_s11 + $0x9b] sm:$0xff]  ;;  %v7369_v35 = vld [vmem:[%s22085_s11 + $0xc7] sm:$0xff] }
 0x2fd   : > { %17800 = vmatpush3.msra.mxu1 %v3377_v34  ;;  %18844 = vmatprep.subr.mxu0 %v23355_v26  ;;  %v2989_v34 = vld [vmem:[%s22085_s11 + $0xa3] sm:$0xff] }
 0x2fe   : > { %17894 = vmatprep.subr.mxu1 %v23355_v26  ;;  %17710 = vmatmul.mubr.msk.f32.gmra.mrb[2].mxu1 %vm373_vm1, %v2972_v41 }
 0x2ff   : > { %18660 = vmatmul.mubr.msk.f32.gmra.mrb[2].mxu0 %vm373_vm1, %v7352_v2  ;;  %17712 = vmatprep.mubr.msk.f32.mxu1 %vm21974_vm0, %v23355_v26 }
 0x300   : > { %18662 = vmatprep.mubr.msk.f32.mxu0 %vm21974_vm0, %v23355_v26 }
 0x302   : > { %17713 = vmatmul.mubr.msk.f32.gmra.mrb[4].mxu1 %vm373_vm1, %v2973_v49 }
 0x303   : > { %18663 = vmatmul.mubr.msk.f32.gmra.mrb[4].mxu0 %vm373_vm1, %v7353_v42  ;;  %17715 = vmatprep.mubr.msk.f32.mxu1 %vm21974_vm0, %v23355_v26 }
 0x304   : > { %18665 = vmatprep.mubr.msk.f32.mxu0 %vm21974_vm0, %v23355_v26 }
 0x306   : > { %17716 = vmatmul.mubr.msk.f32.gmra.mrb[6].mxu1 %vm373_vm1, %v2974_v46  ;;  %v2990_v46 = vld [vmem:[%s22085_s11 + $0xab] sm:$0xff] }
 0x307   : > { %18666 = vmatmul.mubr.msk.f32.gmra.mrb[6].mxu0 %vm373_vm1, %v7354_v47  ;;  %17718 = vmatprep.mubr.msk.f32.mxu1 %vm21974_vm0, %v23355_v26  ;;  %v7370_v47 = vld [vmem:[%s22085_s11 + $0xcf] sm:$0xff] }
 0x308   : > { %18668 = vmatprep.mubr.msk.f32.mxu0 %vm21974_vm0, %v23355_v26 }
 0x30a   : > { %17719 = vmatmul.mubr.msk.f32.gmra.mrb[8].mxu1 %vm373_vm1, %v2975_v50  ;;  %v7371_v50 = vld [vmem:[%s22085_s11 + $0xd7] sm:$0xff] }
 0x30b   : > { %18669 = vmatmul.mubr.msk.f32.gmra.mrb[8].mxu0 %vm373_vm1, %v7355_v53  ;;  %17721 = vmatprep.mubr.msk.f32.mxu1 %vm21974_vm0, %v23355_v26  ;;  %v2992_v53 = vld [vmem:[%s22085_s11 + $0xbb] sm:$0xff] }
 0x30c   : > { %18671 = vmatprep.mubr.msk.f32.mxu0 %vm21974_vm0, %v23355_v26 }
 0x30e   : > { %17722 = vmatmul.mubr.msk.f32.gmra.mrb[10].mxu1 %vm373_vm1, %v2976_v54  ;;  %v7372_v54 = vld [vmem:[%s22085_s11 + $0xdf] sm:$0xff] }
 0x30f   : > { %18672 = vmatmul.mubr.msk.f32.gmra.mrb[10].mxu0 %vm373_vm1, %v7356_v16  ;;  %17724 = vmatprep.mubr.msk.f32.mxu1 %vm21974_vm0, %v23355_v26  ;;  %v2993_v16 = vld [vmem:[%s22085_s11 + $0xc3] sm:$0xff] }
 0x310   : > { %18674 = vmatprep.mubr.msk.f32.mxu0 %vm21974_vm0, %v23355_v26 }
 0x312   : > { %17725 = vmatmul.mubr.msk.f32.gmra.mrb[12].mxu1 %vm373_vm1, %v2977_v55  ;;  %v7373_v55 = vld [vmem:[%s22085_s11 + $0xe7] sm:$0xff] }
 0x313   : > { %18675 = vmatmul.mubr.msk.f32.gmra.mrb[12].mxu0 %vm373_vm1, %v7357_v56  ;;  %17727 = vmatprep.mubr.msk.f32.mxu1 %vm21974_vm0, %v23355_v26 }
 0x314   : > { %18677 = vmatprep.mubr.msk.f32.mxu0 %vm21974_vm0, %v23355_v26 }
 0x316   : > { %17728 = vmatmul.mubr.msk.f32.gmra.mrb[14].mxu1 %vm373_vm1, %v2978_v57 }
 0x317   : > { %18678 = vmatmul.mubr.msk.f32.gmra.mrb[14].mxu0 %vm373_vm1, %v7358_v58  ;;  %17730 = vmatprep.mubr.msk.f32.mxu1 %vm21974_vm0, %v23355_v26 }
 0x318   : > { %18680 = vmatprep.mubr.msk.f32.mxu0 %vm21974_vm0, %v23355_v26 }
 0x31a   : > { %17731 = vmatmul.mubr.msk.f32.gmra.mrb[16].mxu1 %vm373_vm1, %v2979_v59 }
 0x31b   : > { %18681 = vmatmul.mubr.msk.f32.gmra.mrb[16].mxu0 %vm373_vm1, %v7359_v63  ;;  %17733 = vmatprep.mubr.msk.f32.mxu1 %vm21974_vm0, %v23355_v26 }
 0x31c   : > { %18683 = vmatprep.mubr.msk.f32.mxu0 %vm21974_vm0, %v23355_v26 }
 0x31d   : > { %v2375_v6 = vpop.f32.mrb[90].mxu1 }
 0x31e   : > { %v23772_v5 = vpop.f32.mrb[90].mxu0  ;;  %17734 = vmatmul.mubr.msk.f32.gmra.mrb[104].mxu1 %vm373_vm1, %v2980_v0  ;;  %v23777_v7 = vadd.f32 %v2375_v6, %v23501_v19  ;;  %v17572_v8 = vpop.f32.mrb[91].mxu1  ;;  %v2982_v19 = vld [vmem:[%s22085_s11 + $0x6b] sm:$0xff]  ;;  %v7375_v6 = vld [vmem:[%s22085_s11 + $0xf7] sm:$0xff] }
 0x31f   : > { %v18522_v22 = vpop.f32.mrb[91].mxu0  ;;  %18684 = vmatmul.mubr.msk.f32.gmra.mrb[104].mxu0 %vm373_vm1, %v7360_v4  ;;  %17736 = vmatprep.mubr.msk.f32.mxu1 %vm21974_vm0, %v23355_v26  ;;  %v2994_v0 = vld [vmem:[%s22085_s11 + $0xcb] sm:$0xff]  ;;  %v7376_v8 = vld [vmem:[%s22085_s11 + $0xff] sm:$0xff] }
 0x320   : > { %18686 = vmatprep.mubr.msk.f32.mxu0 %vm21974_vm0, %v23355_v26  ;;  %v7374_v4 = vld [vmem:[%s22085_s11 + $0xef] sm:$0xff]  ;;  %v2996_v22 = vld [vmem:[%s22085_s11 + $0xdb] sm:$0xff] }
 0x322   : > { %17737 = vmatmul.mubr.msk.f32.gmra.mrb[20].mxu1 %vm373_vm1, %v2981_v11  ;;  %v2997_v11 = vld [vmem:[%s22085_s11 + $0xe3] sm:$0xff] }
 0x323   : > { %18687 = vmatmul.mubr.msk.f32.gmra.mrb[20].mxu0 %vm373_vm1, %v7361_v13  ;;  %17739 = vmatprep.mubr.msk.f32.mxu1 %vm21974_vm0, %v23355_v26  ;;  %v7377_v13 = vld [vmem:[%s22085_s11 + $0x107] sm:$0xff] }
 0x324   : > { %18689 = vmatprep.mubr.msk.f32.mxu0 %vm21974_vm0, %v23355_v26 }
 0x326   : > { %17740 = vmatmul.mubr.msk.f32.gmra.mrb[22].mxu1 %vm373_vm1, %v2982_v19  ;;  %v2998_v19 = vld [vmem:[%s22085_s11 + $0xeb] sm:$0xff] }
 0x327   : > { %18690 = vmatmul.mubr.msk.f32.gmra.mrb[22].mxu0 %vm373_vm1, %v7362_v17  ;;  %17742 = vmatprep.mubr.msk.f32.mxu1 %vm21974_vm0, %v23355_v26  ;;  %v7378_v17 = vld [vmem:[%s22085_s11 + $0x10f] sm:$0xff] }
 0x328   : > { %18692 = vmatprep.mubr.msk.f32.mxu0 %vm21974_vm0, %v23355_v26 }
 0x32a   : > { %17743 = vmatmul.mubr.msk.f32.gmra.mrb[24].mxu1 %vm373_vm1, %v2983_v18  ;;  %v2999_v18 = vld [vmem:[%s22085_s11 + $0xf3] sm:$0xff] }
 0x32b   : > { %18693 = vmatmul.mubr.msk.f32.gmra.mrb[24].mxu0 %vm373_vm1, %v7363_v20  ;;  %17745 = vmatprep.mubr.msk.f32.mxu1 %vm21974_vm0, %v23355_v26  ;;  %v7379_v20 = vld [vmem:[%s22085_s11 + $0x117] sm:$0xff] }
 0x32c   : > { %18695 = vmatprep.mubr.msk.f32.mxu0 %vm21974_vm0, %v23355_v26 }
 0x32e   : > { %17746 = vmatmul.mubr.msk.f32.gmra.mrb[26].mxu1 %vm373_vm1, %v2984_v23  ;;  %v3000_v23 = vld [vmem:[%s22085_s11 + $0xfb] sm:$0xff] }
 0x32f   : > { %18696 = vmatmul.mubr.msk.f32.gmra.mrb[26].mxu0 %vm373_vm1, %v7364_v24  ;;  %17748 = vmatprep.mubr.msk.f32.mxu1 %vm21974_vm0, %v23355_v26  ;;  %v7380_v24 = vld [vmem:[%s22085_s11 + $0x11f] sm:$0xff] }
 0x330   : > { %18698 = vmatprep.mubr.msk.f32.mxu0 %vm21974_vm0, %v23355_v26 }
 0x332   : > { %17749 = vmatmul.mubr.msk.f32.gmra.mrb[28].mxu1 %vm373_vm1, %v2985_v9  ;;  %v3001_v9 = vld [vmem:[%s22085_s11 + $0x103] sm:$0xff] }
 0x333   : > { %18699 = vmatmul.mubr.msk.f32.gmra.mrb[28].mxu0 %vm373_vm1, %v7365_v25  ;;  %17751 = vmatprep.mubr.msk.f32.mxu1 %vm21974_vm0, %v23355_v26  ;;  %v7381_v25 = vld [vmem:[%s22085_s11 + $0x127] sm:$0xff] }
 0x334   : > { %18701 = vmatprep.mubr.msk.f32.mxu0 %vm21974_vm0, %v23355_v26 }
 0x336   : > { %17752 = vmatmul.mubr.msk.f32.gmra.mrb[30].mxu1 %vm373_vm1, %v2986_v27  ;;  %v3409_v27 = vld [vmem:[%s22085_s11 + $0x14] sm:$0xff] }
 0x337   : > { %18702 = vmatmul.mubr.msk.f32.gmra.mrb[30].mxu0 %vm373_vm1, %v7366_v28  ;;  %17754 = vmatprep.mubr.msk.f32.mxu1 %vm21974_vm0, %v23355_v26  ;;  %v7789_v28 = vld [vmem:[%s22085_s11 + $0x38] sm:$0xff] }
 0x338   : > { %18704 = vmatprep.mubr.msk.f32.mxu0 %vm21974_vm0, %v23355_v26 }
 0x33a   : > { %17755 = vmatmul.mubr.msk.f32.gmra.mrb[32].mxu1 %vm373_vm1, %v2987_v39  ;;  %v8195_v39 = vld [vmem:[%s26874_s1 + $0x90] sm:$0xff] }
 0x33b   : > { %18705 = vmatmul.mubr.msk.f32.gmra.mrb[32].mxu0 %vm373_vm1, %v7367_v29  ;;  %17757 = vmatprep.mubr.msk.f32.mxu1 %vm21974_vm0, %v23355_v26 }
 0x33c   : > { %18707 = vmatprep.mubr.msk.f32.mxu0 %vm21974_vm0, %v23355_v26 }
 0x33e   : > { %17758 = vmatmul.mubr.msk.f32.gmra.mrb[34].mxu1 %vm373_vm1, %v2988_v30 }
 0x33f   : > { %18708 = vmatmul.mubr.msk.f32.gmra.mrb[34].mxu0 %vm373_vm1, %v7368_v33  ;;  %17760 = vmatprep.mubr.msk.f32.mxu1 %vm21974_vm0, %v23355_v26  ;;  %v3815_v33 = vld [vmem:[%s26874_s1 + $0x40] sm:$0xff] }
 0x340   : > { %18710 = vmatprep.mubr.msk.f32.mxu0 %vm21974_vm0, %v23355_v26 }
 0x341   : > { %v2420_v41 = vpop.f32.mrb[92].mxu1 }
 0x342   : > { %v23849_v40 = vpop.f32.mrb[92].mxu0  ;;  %17761 = vmatmul.mubr.msk.f32.gmra.mrb[106].mxu1 %vm373_vm1, %v2989_v34  ;;  %v23854_v49 = vadd.f32 %v2420_v41, %v23578_v48  ;;  %v17599_v42 = vpop.f32.mrb[93].mxu1  ;;  %v2991_v48 = vld [vmem:[%s22085_s11 + $0xb3] sm:$0xff] }
 0x343   : > { %v18549_v2 = vpop.f32.mrb[93].mxu0  ;;  %18711 = vmatmul.mubr.msk.f32.gmra.mrb[106].mxu0 %vm373_vm1, %v7369_v35  ;;  %17763 = vmatprep.mubr.msk.f32.mxu1 %vm21974_vm0, %v23355_v26  ;;  %v7790_v42 = vld [vmem:[%s22085_s11 + $0x40] sm:$0xff] }
 0x344   : > { %18713 = vmatprep.mubr.msk.f32.mxu0 %vm21974_vm0, %v23355_v26  ;;  %v3410_v2 = vld [vmem:[%s22085_s11 + $0x1c] sm:$0xff] }
 0x346   : > { %17764 = vmatmul.mubr.msk.f32.gmra.mrb[38].mxu1 %vm373_vm1, %v2990_v46  ;;  %v7791_v46 = vld [vmem:[%s22085_s11 + $0x48] sm:$0xff] }
 0x347   : > { %18714 = vmatmul.mubr.msk.f32.gmra.mrb[38].mxu0 %vm373_vm1, %v7370_v47  ;;  %17766 = vmatprep.mubr.msk.f32.mxu1 %vm21974_vm0, %v23355_v26  ;;  %v3412_v47 = vld [vmem:[%s22085_s11 + $0x2c] sm:$0xff] }
 0x348   : > { %18716 = vmatprep.mubr.msk.f32.mxu0 %vm21974_vm0, %v23355_v26 }
 0x34a   : > { %17767 = vmatmul.mubr.msk.f32.gmra.mrb[40].mxu1 %vm373_vm1, %v2991_v48  ;;  %v7792_v48 = vld [vmem:[%s22085_s11 + $0x50] sm:$0xff] }
 0x34b   : > { %18717 = vmatmul.mubr.msk.f32.gmra.mrb[40].mxu0 %vm373_vm1, %v7371_v50  ;;  %17769 = vmatprep.mubr.msk.f32.mxu1 %vm21974_vm0, %v23355_v26  ;;  %v3413_v50 = vld [vmem:[%s22085_s11 + $0x34] sm:$0xff] }
 0x34c   : > { %18719 = vmatprep.mubr.msk.f32.mxu0 %vm21974_vm0, %v23355_v26 }
 0x34e   : > { %17770 = vmatmul.mubr.msk.f32.gmra.mrb[42].mxu1 %vm373_vm1, %v2992_v53  ;;  %v7793_v53 = vld [vmem:[%s22085_s11 + $0x58] sm:$0xff] }
 0x34f   : > { %18720 = vmatmul.mubr.msk.f32.gmra.mrb[42].mxu0 %vm373_vm1, %v7372_v54  ;;  %17772 = vmatprep.mubr.msk.f32.mxu1 %vm21974_vm0, %v23355_v26  ;;  %v3414_v54 = vld [vmem:[%s22085_s11 + $0x3c] sm:$0xff] }
 0x350   : > { %18722 = vmatprep.mubr.msk.f32.mxu0 %vm21974_vm0, %v23355_v26 }
 0x351   : > { %v2723_v56 = vpop.f32.mrb[94].mxu1 }
 0x352   : > { %v23886_v57 = vpop.f32.mrb[94].mxu0  ;;  %v23889_v58 = vadd.f32 %v2723_v56, %v23615_v1  ;;  %17773 = vmatmul.mubr.msk.f32.gmra.mrb[44].mxu1 %vm373_vm1, %v2993_v16  ;;  %v17613_v63 = vpop.f32.mrb[95].mxu1  ;;  %v2995_v1 = vld [vmem:[%s22085_s11 + $0xd3] sm:$0xff]  ;;  %v7794_v16 = vld [vmem:[%s22085_s11 + $0x60] sm:$0xff]  ;;  %v7795_v56 = vld [vmem:[%s22085_s11 + $0x68] sm:$0xff] }
 0x353   : > { %v18563_v59 = vpop.f32.mrb[95].mxu0  ;;  %18723 = vmatmul.mubr.msk.f32.gmra.mrb[44].mxu0 %vm373_vm1, %v7373_v55  ;;  %17775 = vmatprep.mubr.msk.f32.mxu1 %vm21974_vm0, %v23355_v26  ;;  %v3415_v55 = vld [vmem:[%s22085_s11 + $0x44] sm:$0xff]  ;;  %v3416_v63 = vld [vmem:[%s22085_s11 + $0x4c] sm:$0xff] }
 0x354   : > { %18725 = vmatprep.mubr.msk.f32.mxu0 %vm21974_vm0, %v23355_v26  ;;  %v24026_v59 = vld [vmem:[#allocation3] sm:$0xff] }
 0x356   : > { %17776 = vmatmul.mubr.msk.f32.gmra.mrb[46].mxu1 %vm373_vm1, %v2994_v0  ;;  %v7796_v0 = vld [vmem:[%s22085_s11 + $0x70] sm:$0xff] }
 0x357   : > { %18726 = vmatmul.mubr.msk.f32.gmra.mrb[46].mxu0 %vm373_vm1, %v7374_v4  ;;  %17778 = vmatprep.mubr.msk.f32.mxu1 %vm21974_vm0, %v23355_v26  ;;  %v7797_v4 = vld [vmem:[%s22085_s11 + $0x78] sm:$0xff] }
 0x358   : > { %18728 = vmatprep.mubr.msk.f32.mxu0 %vm21974_vm0, %v23355_v26 }
 0x35a   : > { %17779 = vmatmul.mubr.msk.f32.gmra.mrb[48].mxu1 %vm373_vm1, %v2995_v1  ;;  %v3418_v1 = vld [vmem:[%s22085_s11 + $0x5c] sm:$0xff] }
 0x35b   : > { %18729 = vmatmul.mubr.msk.f32.gmra.mrb[48].mxu0 %vm373_vm1, %v7375_v6  ;;  %17781 = vmatprep.mubr.msk.f32.mxu1 %vm21974_vm0, %v23355_v26  ;;  %v7798_v6 = vld [vmem:[%s22085_s11 + $0x80] sm:$0xff] }
 0x35c   : > { %18731 = vmatprep.mubr.msk.f32.mxu0 %vm21974_vm0, %v23355_v26 }
 0x35e   : > { %17782 = vmatmul.mubr.msk.f32.gmra.mrb[50].mxu1 %vm373_vm1, %v2996_v22 }
 0x35f   : > { %18732 = vmatmul.mubr.msk.f32.gmra.mrb[50].mxu0 %vm373_vm1, %v7376_v8  ;;  %17784 = vmatprep.mubr.msk.f32.mxu1 %vm21974_vm0, %v23355_v26 }
 0x360   : > { %18734 = vmatprep.mubr.msk.f32.mxu0 %vm21974_vm0, %v23355_v26 }
 0x362   : > { %17785 = vmatmul.mubr.msk.f32.gmra.mrb[52].mxu1 %vm373_vm1, %v2997_v11 }
 0x363   : > { %18735 = vmatmul.mubr.msk.f32.gmra.mrb[52].mxu0 %vm373_vm1, %v7377_v13  ;;  %17787 = vmatprep.mubr.msk.f32.mxu1 %vm21974_vm0, %v23355_v26 }
 0x364   : > { %18737 = vmatprep.mubr.msk.f32.mxu0 %vm21974_vm0, %v23355_v26 }
 0x366   : > { %17788 = vmatmul.mubr.msk.f32.gmra.mrb[108].mxu1 %vm373_vm1, %v2998_v19 }
 0x367   : > { %18738 = vmatmul.mubr.msk.f32.gmra.mrb[108].mxu0 %vm373_vm1, %v7378_v17  ;;  %17790 = vmatprep.mubr.msk.f32.mxu1 %vm21974_vm0, %v23355_v26  ;;  %v3419_v17 = vld [vmem:[%s22085_s11 + $0x64] sm:$0xff] }
 0x368   : > { %18740 = vmatprep.mubr.msk.f32.mxu0 %vm21974_vm0, %v23355_v26 }
 0x36a   : > { %17791 = vmatmul.mubr.msk.f32.gmra.mrb[56].mxu1 %vm373_vm1, %v2999_v18  ;;  %v7799_v18 = vld [vmem:[%s22085_s11 + $0x88] sm:$0xff] }
 0x36b   : > { %18741 = vmatmul.mubr.msk.f32.gmra.mrb[56].mxu0 %vm373_vm1, %v7379_v20  ;;  %17793 = vmatprep.mubr.msk.f32.mxu1 %vm21974_vm0, %v23355_v26  ;;  %v7800_v20 = vld [vmem:[%s22085_s11 + $0x90] sm:$0xff] }
 0x36c   : > { %18743 = vmatprep.mubr.msk.f32.mxu0 %vm21974_vm0, %v23355_v26 }
 0x36e   : > { %17794 = vmatmul.mubr.msk.f32.gmra.mrb[58].mxu1 %vm373_vm1, %v3000_v23  ;;  %v3421_v23 = vld [vmem:[%s22085_s11 + $0x74] sm:$0xff] }
 0x36f   : > { %18744 = vmatmul.mubr.msk.f32.gmra.mrb[58].mxu0 %vm373_vm1, %v7380_v24  ;;  %17796 = vmatprep.mubr.msk.f32.mxu1 %vm21974_vm0, %v23355_v26  ;;  %v7801_v24 = vld [vmem:[%s22085_s11 + $0x98] sm:$0xff] }
 0x370   : > { %18746 = vmatprep.mubr.msk.f32.mxu0 %vm21974_vm0, %v23355_v26 }
 0x372   : > { %17797 = vmatmul.mubr.msk.f32.gmra.mrb[60].mxu1 %vm373_vm1, %v3001_v9  ;;  %v3422_v9 = vld [vmem:[%s22085_s11 + $0x7c] sm:$0xff] }
 0x373   : > { %18747 = vmatmul.mubr.msk.f32.gmra.mrb[60].mxu0 %vm373_vm1, %v7381_v25  ;;  %17801 = vmatprep.mubr.msk.f32.mxu1 %vm21974_vm0, %v23355_v26  ;;  %v7802_v25 = vld [vmem:[%s22085_s11 + $0xa0] sm:$0xff] }
 0x374   : > { %18751 = vmatprep.mubr.msk.f32.mxu0 %vm21974_vm0, %v23355_v26 }
 0x375   : > { %v2768_v29 = vpop.f32.mrb[96].mxu1 }
 0x376   : > { %v23966_v30 = vpop.f32.mrb[96].mxu0  ;;  %v23972_v34 = vadd.f32 %v2768_v29, %v23698_v36  ;;  %17802 = vmatmul.mubr.msk.f32.vlgmr.msra.gmra.mrb[110].mxu1 %vm373_vm1, %v3409_v27  ;;  %v17640_v41 = vpop.f32.mrb[97].mxu1  ;;  %v3411_v36 = vld [vmem:[%s22085_s11 + $0x24] sm:$0xff]  ;;  %v7804_v29 = vld [vmem:[%s22085_s11 + $0xb0] sm:$0xff] }
 0x377   : > { %v18590_v35 = vpop.f32.mrb[97].mxu0  ;;  %18752 = vmatmul.mubr.msk.f32.vlgmr.msra.gmra.mrb[110].mxu0 %vm373_vm1, %v7789_v28  ;;  %17804 = vmatprep.mubr.msk.f32.mxu1 %vm21974_vm0, %v23355_v26  ;;  %v3423_v27 = vld [vmem:[%s22085_s11 + $0x84] sm:$0xff]  ;;  %v3426_v41 = vld [vmem:[%s22085_s11 + $0x9c] sm:$0xff] }
 0x378   : > { %18845 = vmatpush3.msra.mxu0 %v8195_v39  ;;  %18754 = vmatprep.mubr.msk.f32.mxu0 %vm21974_vm0, %v23355_v26  ;;  %v7803_v28 = vld [vmem:[%s22085_s11 + $0xa8] sm:$0xff]  ;;  %v7805_v35 = vld [vmem:[%s22085_s11 + $0xb8] sm:$0xff] }
 0x379   : > { %17895 = vmatpush3.msra.mxu1 %v3815_v33  ;;  %18939 = vmatprep.subr.mxu0 %v23355_v26  ;;  %v3424_v39 = vld [vmem:[%s22085_s11 + $0x8c] sm:$0xff]  ;;  %v3425_v33 = vld [vmem:[%s22085_s11 + $0x94] sm:$0xff] }
 0x37a   : > { %17989 = vmatprep.subr.mxu1 %v23355_v26  ;;  %17805 = vmatmul.mubr.msk.f32.gmra.mrb[2].mxu1 %vm373_vm1, %v3410_v2  ;;  %v7806_v2 = vld [vmem:[%s22085_s11 + $0xc0] sm:$0xff] }
 0x37b   : > { %18755 = vmatmul.mubr.msk.f32.gmra.mrb[2].mxu0 %vm373_vm1, %v7790_v42  ;;  %17807 = vmatprep.mubr.msk.f32.mxu1 %vm21974_vm0, %v23355_v26  ;;  %v3427_v42 = vld [vmem:[%s22085_s11 + $0xa4] sm:$0xff] }
 0x37c   : > { %18757 = vmatprep.mubr.msk.f32.mxu0 %vm21974_vm0, %v23355_v26 }
 0x37e   : > { %17808 = vmatmul.mubr.msk.f32.gmra.mrb[4].mxu1 %vm373_vm1, %v3411_v36  ;;  %v7807_v36 = vld [vmem:[%s22085_s11 + $0xc8] sm:$0xff] }
 0x37f   : > { %18758 = vmatmul.mubr.msk.f32.gmra.mrb[4].mxu0 %vm373_vm1, %v7791_v46  ;;  %17810 = vmatprep.mubr.msk.f32.mxu1 %vm21974_vm0, %v23355_v26 }
 0x380   : > { %18760 = vmatprep.mubr.msk.f32.mxu0 %vm21974_vm0, %v23355_v26 }
 0x382   : > { %17811 = vmatmul.mubr.msk.f32.gmra.mrb[6].mxu1 %vm373_vm1, %v3412_v47 }
 0x383   : > { %18761 = vmatmul.mubr.msk.f32.gmra.mrb[6].mxu0 %vm373_vm1, %v7792_v48  ;;  %17813 = vmatprep.mubr.msk.f32.mxu1 %vm21974_vm0, %v23355_v26 }
 0x384   : > { %18763 = vmatprep.mubr.msk.f32.mxu0 %vm21974_vm0, %v23355_v26 }
 0x386   : > { %17814 = vmatmul.mubr.msk.f32.gmra.mrb[8].mxu1 %vm373_vm1, %v3413_v50 }
 0x387   : > { %18764 = vmatmul.mubr.msk.f32.gmra.mrb[8].mxu0 %vm373_vm1, %v7793_v53  ;;  %17816 = vmatprep.mubr.msk.f32.mxu1 %vm21974_vm0, %v23355_v26 }
 0x388   : > { %18766 = vmatprep.mubr.msk.f32.mxu0 %vm21974_vm0, %v23355_v26 }
 0x38a   : > { %17817 = vmatmul.mubr.msk.f32.gmra.mrb[10].mxu1 %vm373_vm1, %v3414_v54  ;;  %v3428_v54 = vld [vmem:[%s22085_s11 + $0xac] sm:$0xff] }
 0x38b   : > { %18767 = vmatmul.mubr.msk.f32.gmra.mrb[10].mxu0 %vm373_vm1, %v7794_v16  ;;  %17819 = vmatprep.mubr.msk.f32.mxu1 %vm21974_vm0, %v23355_v26  ;;  %v7808_v16 = vld [vmem:[%s22085_s11 + $0xd0] sm:$0xff] }
 0x38c   : > { %18769 = vmatprep.mubr.msk.f32.mxu0 %vm21974_vm0, %v23355_v26  ;;  %v3417_v26 = vld [vmem:[%s22085_s11 + $0x54] sm:$0xff] }
 0x38e   : > { %17820 = vmatmul.mubr.msk.f32.gmra.mrb[12].mxu1 %vm373_vm1, %v3415_v55  ;;  %v7809_v55 = vld [vmem:[%s22085_s11 + $0xd8] sm:$0xff] }
 0x38f   : > { %18770 = vmatmul.mubr.msk.f32.gmra.mrb[12].mxu0 %vm373_vm1, %v7795_v56  ;;  %17822 = vmatprep.mubr.msk.f32.mxu1 %vm21974_vm0, %v24026_v59  ;;  %v3430_v56 = vld [vmem:[%s22085_s11 + $0xbc] sm:$0xff] }
 0x390   : > { %18772 = vmatprep.mubr.msk.f32.mxu0 %vm21974_vm0, %v24026_v59 }
 0x392   : > { %17823 = vmatmul.mubr.msk.f32.gmra.mrb[14].mxu1 %vm373_vm1, %v3416_v63  ;;  %v7810_v63 = vld [vmem:[%s22085_s11 + $0xe0] sm:$0xff] }
 0x393   : > { %18773 = vmatmul.mubr.msk.f32.gmra.mrb[14].mxu0 %vm373_vm1, %v7796_v0  ;;  %17825 = vmatprep.mubr.msk.f32.mxu1 %vm21974_vm0, %v24026_v59  ;;  %v3431_v0 = vld [vmem:[%s22085_s11 + $0xc4] sm:$0xff] }
 0x394   : > { %18775 = vmatprep.mubr.msk.f32.mxu0 %vm21974_vm0, %v24026_v59 }
 0x396   : > { %17826 = vmatmul.mubr.msk.f32.gmra.mrb[16].mxu1 %vm373_vm1, %v3417_v26  ;;  %v7811_v26 = vld [vmem:[%s22085_s11 + $0xe8] sm:$0xff] }
 0x397   : > { %18776 = vmatmul.mubr.msk.f32.gmra.mrb[16].mxu0 %vm373_vm1, %v7797_v4  ;;  %17828 = vmatprep.mubr.msk.f32.mxu1 %vm21974_vm0, %v24026_v59 }
 0x398   : > { %18778 = vmatprep.mubr.msk.f32.mxu0 %vm21974_vm0, %v24026_v59 }
 0x399   : > { %v2813_v22 = vpop.f32.mrb[98].mxu1 }
 0x39a   : > { %v24050_v8 = vpop.f32.mrb[98].mxu0  ;;  %v24053_v11 = vadd.f32 %v2813_v22, %v23777_v7  ;;  %17829 = vmatmul.mubr.msk.f32.gmra.mrb[112].mxu1 %vm373_vm1, %v3418_v1  ;;  %v17667_v19 = vpop.f32.mrb[99].mxu1  ;;  %v3420_v7 = vld [vmem:[%s22085_s11 + $0x6c] sm:$0xff] }
 0x39b   : > { %v18617_v13 = vpop.f32.mrb[99].mxu0  ;;  %18779 = vmatmul.mubr.msk.f32.gmra.mrb[112].mxu0 %vm373_vm1, %v7798_v6  ;;  %17831 = vmatprep.mubr.msk.f32.mxu1 %vm21974_vm0, %v24026_v59  ;;  %v3432_v19 = vld [vmem:[%s22085_s11 + $0xcc] sm:$0xff] }
 0x39c   : > { %18781 = vmatprep.mubr.msk.f32.mxu0 %vm21974_vm0, %v24026_v59 }
 0x39e   : > { %17832 = vmatmul.mubr.msk.f32.gmra.mrb[20].mxu1 %vm373_vm1, %v3419_v17  ;;  %v7812_v17 = vld [vmem:[%s22085_s11 + $0xf0] sm:$0xff] }
 0x39f   : > { %18782 = vmatmul.mubr.msk.f32.gmra.mrb[20].mxu0 %vm373_vm1, %v7799_v18  ;;  %17834 = vmatprep.mubr.msk.f32.mxu1 %vm21974_vm0, %v24026_v59  ;;  %v7813_v18 = vld [vmem:[%s22085_s11 + $0xf8] sm:$0xff] }
 0x3a0   : > { %18784 = vmatprep.mubr.msk.f32.mxu0 %vm21974_vm0, %v24026_v59 }
 0x3a2   : > { %17835 = vmatmul.mubr.msk.f32.gmra.mrb[22].mxu1 %vm373_vm1, %v3420_v7  ;;  %v3434_v7 = vld [vmem:[%s22085_s11 + $0xdc] sm:$0xff] }
 0x3a3   : > { %18785 = vmatmul.mubr.msk.f32.gmra.mrb[22].mxu0 %vm373_vm1, %v7800_v20  ;;  %17837 = vmatprep.mubr.msk.f32.mxu1 %vm21974_vm0, %v24026_v59  ;;  %v7814_v20 = vld [vmem:[%s22085_s11 + $0x100] sm:$0xff] }
 0x3a4   : > { %18787 = vmatprep.mubr.msk.f32.mxu0 %vm21974_vm0, %v24026_v59 }
 0x3a6   : > { %17838 = vmatmul.mubr.msk.f32.gmra.mrb[24].mxu1 %vm373_vm1, %v3421_v23  ;;  %v3435_v23 = vld [vmem:[%s22085_s11 + $0xe4] sm:$0xff] }
 0x3a7   : > { %18788 = vmatmul.mubr.msk.f32.gmra.mrb[24].mxu0 %vm373_vm1, %v7801_v24  ;;  %17840 = vmatprep.mubr.msk.f32.mxu1 %vm21974_vm0, %v24026_v59  ;;  %v7815_v24 = vld [vmem:[%s22085_s11 + $0x108] sm:$0xff] }
 0x3a8   : > { %18790 = vmatprep.mubr.msk.f32.mxu0 %vm21974_vm0, %v24026_v59 }
 0x3aa   : > { %17841 = vmatmul.mubr.msk.f32.gmra.mrb[26].mxu1 %vm373_vm1, %v3422_v9  ;;  %v3436_v9 = vld [vmem:[%s22085_s11 + $0xec] sm:$0xff] }
 0x3ab   : > { %18791 = vmatmul.mubr.msk.f32.gmra.mrb[26].mxu0 %vm373_vm1, %v7802_v25  ;;  %17843 = vmatprep.mubr.msk.f32.mxu1 %vm21974_vm0, %v24026_v59  ;;  %v7816_v25 = vld [vmem:[%s22085_s11 + $0x110] sm:$0xff] }
 0x3ac   : > { %18793 = vmatprep.mubr.msk.f32.mxu0 %vm21974_vm0, %v24026_v59 }
 0x3ae   : > { %17844 = vmatmul.mubr.msk.f32.gmra.mrb[28].mxu1 %vm373_vm1, %v3423_v27  ;;  %v3437_v27 = vld [vmem:[%s22085_s11 + $0xf4] sm:$0xff] }
 0x3af   : > { %18794 = vmatmul.mubr.msk.f32.gmra.mrb[28].mxu0 %vm373_vm1, %v7803_v28  ;;  %17846 = vmatprep.mubr.msk.f32.mxu1 %vm21974_vm0, %v24026_v59  ;;  %v7817_v28 = vld [vmem:[%s22085_s11 + $0x118] sm:$0xff] }
 0x3b0   : > { %18796 = vmatprep.mubr.msk.f32.mxu0 %vm21974_vm0, %v24026_v59 }
 0x3b2   : > { %17847 = vmatmul.mubr.msk.f32.gmra.mrb[30].mxu1 %vm373_vm1, %v3424_v39  ;;  %v3438_v39 = vld [vmem:[%s22085_s11 + $0xfc] sm:$0xff] }
 0x3b3   : > { %18797 = vmatmul.mubr.msk.f32.gmra.mrb[30].mxu0 %vm373_vm1, %v7804_v29  ;;  %17849 = vmatprep.mubr.msk.f32.mxu1 %vm21974_vm0, %v24026_v59  ;;  %v7818_v29 = vld [vmem:[%s22085_s11 + $0x120] sm:$0xff] }
 0x3b4   : > { %18799 = vmatprep.mubr.msk.f32.mxu0 %vm21974_vm0, %v24026_v59 }
 0x3b6   : > { %17850 = vmatmul.mubr.msk.f32.gmra.mrb[32].mxu1 %vm373_vm1, %v3425_v33  ;;  %v3439_v33 = vld [vmem:[%s22085_s11 + $0x104] sm:$0xff] }
 0x3b7   : > { %18800 = vmatmul.mubr.msk.f32.gmra.mrb[32].mxu0 %vm373_vm1, %v7805_v35  ;;  %17852 = vmatprep.mubr.msk.f32.mxu1 %vm21974_vm0, %v24026_v59  ;;  %v7819_v35 = vld [vmem:[%s22085_s11 + $0x128] sm:$0xff] }
 0x3b8   : > { %18802 = vmatprep.mubr.msk.f32.mxu0 %vm21974_vm0, %v24026_v59 }
 0x3ba   : > { %17853 = vmatmul.mubr.msk.f32.gmra.mrb[34].mxu1 %vm373_vm1, %v3426_v41  ;;  %v3847_v41 = vld [vmem:[%s22085_s11 + $0x15] sm:$0xff] }
 0x3bb   : > { %18803 = vmatmul.mubr.msk.f32.gmra.mrb[34].mxu0 %vm373_vm1, %v7806_v2  ;;  %17855 = vmatprep.mubr.msk.f32.mxu1 %vm21974_vm0, %v24026_v59  ;;  %v8227_v2 = vld [vmem:[%s22085_s11 + $0x39] sm:$0xff] }
 0x3bc   : > { %18805 = vmatprep.mubr.msk.f32.mxu0 %vm21974_vm0, %v24026_v59 }
 0x3bd   : > { %v2858_v46 = vpop.f32.mrb[100].mxu1 }
 0x3be   : > { %v24127_v47 = vpop.f32.mrb[100].mxu0  ;;  %v24130_v48 = vadd.f32 %v2858_v46, %v23854_v49  ;;  %17856 = vmatmul.mubr.msk.f32.gmra.mrb[114].mxu1 %vm373_vm1, %v3427_v42  ;;  %v17694_v53 = vpop.f32.mrb[101].mxu1  ;;  %v3429_v49 = vld [vmem:[%s22085_s11 + $0xb4] sm:$0xff] }
 0x3bf   : > { %v18644_v50 = vpop.f32.mrb[101].mxu0  ;;  %18806 = vmatmul.mubr.msk.f32.gmra.mrb[114].mxu0 %vm373_vm1, %v7807_v36  ;;  %17858 = vmatprep.mubr.msk.f32.mxu1 %vm21974_vm0, %v24026_v59  ;;  %v8633_v42 = vld [vmem:[%s26874_s1 + $0x98] sm:$0xff] }
 0x3c0   : > { %18808 = vmatprep.mubr.msk.f32.mxu0 %vm21974_vm0, %v24026_v59  ;;  %v4253_v50 = vld [vmem:[%s26874_s1 + $0x48] sm:$0xff] }
 0x3c2   : > { %17859 = vmatmul.mubr.msk.f32.gmra.mrb[38].mxu1 %vm373_vm1, %v3428_v54 }
 0x3c3   : > { %18809 = vmatmul.mubr.msk.f32.gmra.mrb[38].mxu0 %vm373_vm1, %v7808_v16  ;;  %17861 = vmatprep.mubr.msk.f32.mxu1 %vm21974_vm0, %v24026_v59 }
 0x3c4   : > { %18811 = vmatprep.mubr.msk.f32.mxu0 %vm21974_vm0, %v24026_v59 }
 0x3c6   : > { %17862 = vmatmul.mubr.msk.f32.gmra.mrb[40].mxu1 %vm373_vm1, %v3429_v49  ;;  %v3848_v49 = vld [vmem:[%s22085_s11 + $0x1d] sm:$0xff] }
 0x3c7   : > { %18812 = vmatmul.mubr.msk.f32.gmra.mrb[40].mxu0 %vm373_vm1, %v7809_v55  ;;  %17864 = vmatprep.mubr.msk.f32.mxu1 %vm21974_vm0, %v24026_v59  ;;  %v8228_v55 = vld [vmem:[%s22085_s11 + $0x41] sm:$0xff] }
 0x3c8   : > { %18814 = vmatprep.mubr.msk.f32.mxu0 %vm21974_vm0, %v24026_v59 }
 0x3ca   : > { %17865 = vmatmul.mubr.msk.f32.gmra.mrb[42].mxu1 %vm373_vm1, %v3430_v56  ;;  %v8229_v56 = vld [vmem:[%s22085_s11 + $0x49] sm:$0xff] }
 0x3cb   : > { %18815 = vmatmul.mubr.msk.f32.gmra.mrb[42].mxu0 %vm373_vm1, %v7810_v63  ;;  %17867 = vmatprep.mubr.msk.f32.mxu1 %vm21974_vm0, %v24026_v59  ;;  %v3850_v63 = vld [vmem:[%s22085_s11 + $0x2d] sm:$0xff] }
 0x3cc   : > { %18817 = vmatprep.mubr.msk.f32.mxu0 %vm21974_vm0, %v24026_v59 }
 0x3cd   : > { %v3161_v4 = vpop.f32.mrb[102].mxu1 }
 0x3ce   : > { %v24164_v1 = vpop.f32.mrb[102].mxu0  ;;  %v24167_v6 = vadd.f32 %v3161_v4, %v23889_v58  ;;  %17868 = vmatmul.mubr.msk.f32.gmra.mrb[44].mxu1 %vm373_vm1, %v3431_v0  ;;  %v17708_v13 = vpop.f32.mrb[103].mxu1  ;;  %v3433_v58 = vld [vmem:[%s22085_s11 + $0xd4] sm:$0xff] }
 0x3cf   : > { %v18658_v22 = vpop.f32.mrb[103].mxu0  ;;  %18818 = vmatmul.mubr.msk.f32.gmra.mrb[44].mxu0 %vm373_vm1, %v7811_v26  ;;  %17870 = vmatprep.mubr.msk.f32.mxu1 %vm21974_vm0, %v24026_v59  ;;  %v8230_v0 = vld [vmem:[%s22085_s11 + $0x51] sm:$0xff]  ;;  %v8231_v4 = vld [vmem:[%s22085_s11 + $0x59] sm:$0xff]  ;;  %v8232_v13 = vld [vmem:[%s22085_s11 + $0x61] sm:$0xff] }
 0x3d0   : > { %18820 = vmatprep.mubr.msk.f32.mxu0 %vm21974_vm0, %v24026_v59  ;;  %v3851_v26 = vld [vmem:[%s22085_s11 + $0x35] sm:$0xff]  ;;  %v3852_v22 = vld [vmem:[%s22085_s11 + $0x3d] sm:$0xff] }
 0x3d2   : > { %17871 = vmatmul.mubr.msk.f32.gmra.mrb[46].mxu1 %vm373_vm1, %v3432_v19  ;;  %v3853_v19 = vld [vmem:[%s22085_s11 + $0x45] sm:$0xff] }
 0x3d3   : > { %18821 = vmatmul.mubr.msk.f32.gmra.mrb[46].mxu0 %vm373_vm1, %v7812_v17  ;;  %17873 = vmatprep.mubr.msk.f32.mxu1 %vm21974_vm0, %v24026_v59  ;;  %v8233_v17 = vld [vmem:[%s22085_s11 + $0x69] sm:$0xff] }
 0x3d4   : > { %18823 = vmatprep.mubr.msk.f32.mxu0 %vm21974_vm0, %v24026_v59 }
 0x3d6   : > { %17874 = vmatmul.mubr.msk.f32.gmra.mrb[48].mxu1 %vm373_vm1, %v3433_v58  ;;  %v3854_v58 = vld [vmem:[%s22085_s11 + $0x4d] sm:$0xff] }
 0x3d7   : > { %18824 = vmatmul.mubr.msk.f32.gmra.mrb[48].mxu0 %vm373_vm1, %v7813_v18  ;;  %17876 = vmatprep.mubr.msk.f32.mxu1 %vm21974_vm0, %v24026_v59  ;;  %v8234_v18 = vld [vmem:[%s22085_s11 + $0x71] sm:$0xff] }
 0x3d8   : > { %18826 = vmatprep.mubr.msk.f32.mxu0 %vm21974_vm0, %v24026_v59 }
 0x3da   : > { %17877 = vmatmul.mubr.msk.f32.gmra.mrb[50].mxu1 %vm373_vm1, %v3434_v7  ;;  %v3855_v7 = vld [vmem:[%s22085_s11 + $0x55] sm:$0xff] }
 0x3db   : > { %18827 = vmatmul.mubr.msk.f32.gmra.mrb[50].mxu0 %vm373_vm1, %v7814_v20  ;;  %17879 = vmatprep.mubr.msk.f32.mxu1 %vm21974_vm0, %v24026_v59  ;;  %v8235_v20 = vld [vmem:[%s22085_s11 + $0x79] sm:$0xff] }
 0x3dc   : > { %18829 = vmatprep.mubr.msk.f32.mxu0 %vm21974_vm0, %v24026_v59 }
 0x3de   : > { %17880 = vmatmul.mubr.msk.f32.gmra.mrb[52].mxu1 %vm373_vm1, %v3435_v23  ;;  %v3856_v23 = vld [vmem:[%s22085_s11 + $0x5d] sm:$0xff] }
 0x3df   : > { %18830 = vmatmul.mubr.msk.f32.gmra.mrb[52].mxu0 %vm373_vm1, %v7815_v24  ;;  %17882 = vmatprep.mubr.msk.f32.mxu1 %vm21974_vm0, %v24026_v59  ;;  %v8236_v24 = vld [vmem:[%s22085_s11 + $0x81] sm:$0xff] }
 0x3e0   : > { %18832 = vmatprep.mubr.msk.f32.mxu0 %vm21974_vm0, %v24026_v59 }
 0x3e2   : > { %17883 = vmatmul.mubr.msk.f32.gmra.mrb[116].mxu1 %vm373_vm1, %v3436_v9 }
 0x3e3   : > { %18833 = vmatmul.mubr.msk.f32.gmra.mrb[116].mxu0 %vm373_vm1, %v7816_v25  ;;  %17885 = vmatprep.mubr.msk.f32.mxu1 %vm21974_vm0, %v24026_v59 }
 0x3e4   : > { %18835 = vmatprep.mubr.msk.f32.mxu0 %vm21974_vm0, %v24026_v59 }
 0x3e6   : > { %17886 = vmatmul.mubr.msk.f32.gmra.mrb[56].mxu1 %vm373_vm1, %v3437_v27 }
 0x3e7   : > { %18836 = vmatmul.mubr.msk.f32.gmra.mrb[56].mxu0 %vm373_vm1, %v7817_v28  ;;  %17888 = vmatprep.mubr.msk.f32.mxu1 %vm21974_vm0, %v24026_v59 }
 0x3e8   : > { %18838 = vmatprep.mubr.msk.f32.mxu0 %vm21974_vm0, %v24026_v59 }
 0x3ea   : > { %17889 = vmatmul.mubr.msk.f32.gmra.mrb[58].mxu1 %vm373_vm1, %v3438_v39 }
 0x3eb   : > { %18839 = vmatmul.mubr.msk.f32.gmra.mrb[58].mxu0 %vm373_vm1, %v7818_v29  ;;  %17891 = vmatprep.mubr.msk.f32.mxu1 %vm21974_vm0, %v24026_v59  ;;  %v3857_v29 = vld [vmem:[%s22085_s11 + $0x65] sm:$0xff] }
 0x3ec   : > { %18841 = vmatprep.mubr.msk.f32.mxu0 %vm21974_vm0, %v24026_v59 }
 0x3ee   : > { %17892 = vmatmul.mubr.msk.f32.gmra.mrb[60].mxu1 %vm373_vm1, %v3439_v33  ;;  %v8237_v33 = vld [vmem:[%s22085_s11 + $0x89] sm:$0xff] }
 0x3ef   : > { %18842 = vmatmul.mubr.msk.f32.gmra.mrb[60].mxu0 %vm373_vm1, %v7819_v35  ;;  %17896 = vmatprep.mubr.msk.f32.mxu1 %vm21974_vm0, %v24026_v59  ;;  %v8238_v35 = vld [vmem:[%s22085_s11 + $0x91] sm:$0xff] }
 0x3f0   : > { %18846 = vmatprep.mubr.msk.f32.mxu0 %vm21974_vm0, %v24026_v59 }
 0x3f1   : > { %v3206_v36 = vpop.f32.mrb[104].mxu1 }
 0x3f2   : > { %v24244_v46 = vpop.f32.mrb[104].mxu0  ;;  %v24250_v53 = vadd.f32 %v3206_v36, %v23972_v34  ;;  %17897 = vmatmul.mubr.msk.f32.vlgmr.msra.gmra.mrb[118].mxu1 %vm373_vm1, %v3847_v41  ;;  %v17735_v16 = vpop.f32.mrb[105].mxu1  ;;  %v3849_v34 = vld [vmem:[%s22085_s11 + $0x25] sm:$0xff]  ;;  %v3859_v41 = vld [vmem:[%s22085_s11 + $0x75] sm:$0xff] }
 0x3f3   : > { %v18685_v54 = vpop.f32.mrb[105].mxu0  ;;  %18847 = vmatmul.mubr.msk.f32.vlgmr.msra.gmra.mrb[118].mxu0 %vm373_vm1, %v8227_v2  ;;  %17899 = vmatprep.mubr.msk.f32.mxu1 %vm21974_vm0, %v24026_v59  ;;  %v8239_v2 = vld [vmem:[%s22085_s11 + $0x99] sm:$0xff]  ;;  %v8240_v36 = vld [vmem:[%s22085_s11 + $0xa1] sm:$0xff]  ;;  %v3862_v16 = vld [vmem:[%s22085_s11 + $0x8d] sm:$0xff] }
 0x3f4   : > { %18940 = vmatpush3.msra.mxu0 %v8633_v42  ;;  %18849 = vmatprep.mubr.msk.f32.mxu0 %vm21974_vm0, %v24026_v59  ;;  %v3860_v42 = vld [vmem:[%s22085_s11 + $0x7d] sm:$0xff]  ;;  %v8241_v54 = vld [vmem:[%s22085_s11 + $0xa9] sm:$0xff] }
 0x3f5   : > { %17990 = vmatpush3.msra.mxu1 %v4253_v50  ;;  %19034 = vmatprep.subr.mxu0 %v24026_v59  ;;  %v3861_v50 = vld [vmem:[%s22085_s11 + $0x85] sm:$0xff] }
 0x3f6   : > { %17900 = vmatmul.mubr.msk.f32.gmra.mrb[2].mxu1 %vm373_vm1, %v3848_v49  ;;  %v8242_v49 = vld [vmem:[%s22085_s11 + $0xb1] sm:$0xff] }
 0x3f7   : > { %18850 = vmatmul.mubr.msk.f32.gmra.mrb[2].mxu0 %vm373_vm1, %v8228_v55  ;;  %17902 = vmatprep.mubr.msk.f32.mxu1 %vm21974_vm0, %v24026_v59  ;;  %v3863_v55 = vld [vmem:[%s22085_s11 + $0x95] sm:$0xff] }
 0x3f8   : > { %18852 = vmatprep.mubr.msk.f32.mxu0 %vm21974_vm0, %v24026_v59 }
 0x3fa   : > { %17903 = vmatmul.mubr.msk.f32.gmra.mrb[4].mxu1 %vm373_vm1, %v3849_v34  ;;  %v8243_v34 = vld [vmem:[%s22085_s11 + $0xb9] sm:$0xff] }
 0x3fb   : > { %18853 = vmatmul.mubr.msk.f32.gmra.mrb[4].mxu0 %vm373_vm1, %v8229_v56  ;;  %17905 = vmatprep.mubr.msk.f32.mxu1 %vm21974_vm0, %v24026_v59  ;;  %v3864_v56 = vld [vmem:[%s22085_s11 + $0x9d] sm:$0xff] }
 0x3fc   : > { %18855 = vmatprep.mubr.msk.f32.mxu0 %vm21974_vm0, %v24026_v59 }
 0x3fe   : > { %17906 = vmatmul.mubr.msk.f32.gmra.mrb[6].mxu1 %vm373_vm1, %v3850_v63  ;;  %v8244_v63 = vld [vmem:[%s22085_s11 + $0xc1] sm:$0xff] }
 0x3ff   : > { %18856 = vmatmul.mubr.msk.f32.gmra.mrb[6].mxu0 %vm373_vm1, %v8230_v0  ;;  %17908 = vmatprep.mubr.msk.f32.mxu1 %vm21974_vm0, %v24026_v59  ;;  %v3865_v0 = vld [vmem:[%s22085_s11 + $0xa5] sm:$0xff] }
 0x400   : > { %18858 = vmatprep.mubr.msk.f32.mxu0 %vm21974_vm0, %v24026_v59 }
 0x402   : > { %17909 = vmatmul.mubr.msk.f32.gmra.mrb[8].mxu1 %vm373_vm1, %v3851_v26  ;;  %v8245_v26 = vld [vmem:[%s22085_s11 + $0xc9] sm:$0xff] }
 0x403   : > { %18859 = vmatmul.mubr.msk.f32.gmra.mrb[8].mxu0 %vm373_vm1, %v8231_v4  ;;  %17911 = vmatprep.mubr.msk.f32.mxu1 %vm21974_vm0, %v24026_v59 }
 0x404   : > { %18861 = vmatprep.mubr.msk.f32.mxu0 %vm21974_vm0, %v24026_v59 }
 0x406   : > { %17912 = vmatmul.mubr.msk.f32.gmra.mrb[10].mxu1 %vm373_vm1, %v3852_v22 }
 0x407   : > { %18862 = vmatmul.mubr.msk.f32.gmra.mrb[10].mxu0 %vm373_vm1, %v8232_v13  ;;  %17914 = vmatprep.mubr.msk.f32.mxu1 %vm21974_vm0, %v24026_v59 }
 0x408   : > { %18864 = vmatprep.mubr.msk.f32.mxu0 %vm21974_vm0, %v24026_v59 }
 0x40a   : > { %17915 = vmatmul.mubr.msk.f32.gmra.mrb[12].mxu1 %vm373_vm1, %v3853_v19 }
 0x40b   : > { %18865 = vmatmul.mubr.msk.f32.gmra.mrb[12].mxu0 %vm373_vm1, %v8233_v17  ;;  %17917 = vmatprep.mubr.msk.f32.mxu1 %vm21974_vm0, %v24026_v59 }
 0x40c   : > { %18867 = vmatprep.mubr.msk.f32.mxu0 %vm21974_vm0, %v24026_v59 }
 0x40e   : > { %17918 = vmatmul.mubr.msk.f32.gmra.mrb[14].mxu1 %vm373_vm1, %v3854_v58  ;;  %v3866_v58 = vld [vmem:[%s22085_s11 + $0xad] sm:$0xff] }
 0x40f   : > { %18868 = vmatmul.mubr.msk.f32.gmra.mrb[14].mxu0 %vm373_vm1, %v8234_v18  ;;  %17920 = vmatprep.mubr.msk.f32.mxu1 %vm21974_vm0, %v24026_v59  ;;  %v8246_v18 = vld [vmem:[%s22085_s11 + $0xd1] sm:$0xff] }
 0x410   : > { %18870 = vmatprep.mubr.msk.f32.mxu0 %vm21974_vm0, %v24026_v59 }
 0x412   : > { %17921 = vmatmul.mubr.msk.f32.gmra.mrb[16].mxu1 %vm373_vm1, %v3855_v7  ;;  %v8247_v7 = vld [vmem:[%s22085_s11 + $0xd9] sm:$0xff] }
 0x413   : > { %18871 = vmatmul.mubr.msk.f32.gmra.mrb[16].mxu0 %vm373_vm1, %v8235_v20  ;;  %17923 = vmatprep.mubr.msk.f32.mxu1 %vm21974_vm0, %v24026_v59  ;;  %v3868_v20 = vld [vmem:[%s22085_s11 + $0xbd] sm:$0xff] }
 0x414   : > { %18873 = vmatprep.mubr.msk.f32.mxu0 %vm21974_vm0, %v24026_v59 }
 0x415   : > { %v3251_v9 = vpop.f32.mrb[106].mxu1 }
 0x416   : > { %v24325_v25 = vpop.f32.mrb[106].mxu0  ;;  %v24328_v27 = vadd.f32 %v3251_v9, %v24053_v11  ;;  %17924 = vmatmul.mubr.msk.f32.gmra.mrb[120].mxu1 %vm373_vm1, %v3856_v23  ;;  %v17762_v39 = vpop.f32.mrb[107].mxu1  ;;  %v3858_v11 = vld [vmem:[%s22085_s11 + $0x6d] sm:$0xff]  ;;  %v8248_v23 = vld [vmem:[%s22085_s11 + $0xe1] sm:$0xff] }
 0x417   : > { %v18712_v28 = vpop.f32.mrb[107].mxu0  ;;  %18874 = vmatmul.mubr.msk.f32.gmra.mrb[120].mxu0 %vm373_vm1, %v8236_v24  ;;  %17926 = vmatprep.mubr.msk.f32.mxu1 %vm21974_vm0, %v24026_v59  ;;  %v3869_v24 = vld [vmem:[%s22085_s11 + $0xc5] sm:$0xff] }
 0x418   : > { %18876 = vmatprep.mubr.msk.f32.mxu0 %vm21974_vm0, %v24026_v59  ;;  %v8249_v9 = vld [vmem:[%s22085_s11 + $0xe9] sm:$0xff] }
 0x41a   : > { %17927 = vmatmul.mubr.msk.f32.gmra.mrb[20].mxu1 %vm373_vm1, %v3857_v29 }
 0x41b   : > { %18877 = vmatmul.mubr.msk.f32.gmra.mrb[20].mxu0 %vm373_vm1, %v8237_v33  ;;  %17929 = vmatprep.mubr.msk.f32.mxu1 %vm21974_vm0, %v24026_v59 }
 0x41c   : > { %18879 = vmatprep.mubr.msk.f32.mxu0 %vm21974_vm0, %v24026_v59 }
 0x41e   : > { %17930 = vmatmul.mubr.msk.f32.gmra.mrb[22].mxu1 %vm373_vm1, %v3858_v11 }
 0x41f   : > { %18880 = vmatmul.mubr.msk.f32.gmra.mrb[22].mxu0 %vm373_vm1, %v8238_v35  ;;  %17932 = vmatprep.mubr.msk.f32.mxu1 %vm21974_vm0, %v24026_v59  ;;  %v3870_v35 = vld [vmem:[%s22085_s11 + $0xcd] sm:$0xff] }
 0x420   : > { %18882 = vmatprep.mubr.msk.f32.mxu0 %vm21974_vm0, %v24026_v59 }
 0x422   : > { %17933 = vmatmul.mubr.msk.f32.gmra.mrb[24].mxu1 %vm373_vm1, %v3859_v41  ;;  %v8250_v41 = vld [vmem:[%s22085_s11 + $0xf1] sm:$0xff] }
 0x423   : > { %18883 = vmatmul.mubr.msk.f32.gmra.mrb[24].mxu0 %vm373_vm1, %v8239_v2  ;;  %17935 = vmatprep.mubr.msk.f32.mxu1 %vm21974_vm0, %v24026_v59  ;;  %v8251_v2 = vld [vmem:[%s22085_s11 + $0xf9] sm:$0xff] }
 0x424   : > { %18885 = vmatprep.mubr.msk.f32.mxu0 %vm21974_vm0, %v24026_v59 }
 0x426   : > { %17936 = vmatmul.mubr.msk.f32.gmra.mrb[26].mxu1 %vm373_vm1, %v3860_v42  ;;  %v3872_v42 = vld [vmem:[%s22085_s11 + $0xdd] sm:$0xff] }
 0x427   : > { %18886 = vmatmul.mubr.msk.f32.gmra.mrb[26].mxu0 %vm373_vm1, %v8240_v36  ;;  %17938 = vmatprep.mubr.msk.f32.mxu1 %vm21974_vm0, %v24026_v59  ;;  %v8252_v36 = vld [vmem:[%s22085_s11 + $0x101] sm:$0xff] }
 0x428   : > { %18888 = vmatprep.mubr.msk.f32.mxu0 %vm21974_vm0, %v24026_v59 }
 0x42a   : > { %17939 = vmatmul.mubr.msk.f32.gmra.mrb[28].mxu1 %vm373_vm1, %v3861_v50  ;;  %v3873_v50 = vld [vmem:[%s22085_s11 + $0xe5] sm:$0xff] }
 0x42b   : > { %18889 = vmatmul.mubr.msk.f32.gmra.mrb[28].mxu0 %vm373_vm1, %v8241_v54  ;;  %17941 = vmatprep.mubr.msk.f32.mxu1 %vm21974_vm0, %v24026_v59  ;;  %v8253_v54 = vld [vmem:[%s22085_s11 + $0x109] sm:$0xff] }
 0x42c   : > { %18891 = vmatprep.mubr.msk.f32.mxu0 %vm21974_vm0, %v24026_v59 }
 0x42e   : > { %17942 = vmatmul.mubr.msk.f32.gmra.mrb[30].mxu1 %vm373_vm1, %v3862_v16  ;;  %v3874_v16 = vld [vmem:[%s22085_s11 + $0xed] sm:$0xff] }
 0x42f   : > { %18892 = vmatmul.mubr.msk.f32.gmra.mrb[30].mxu0 %vm373_vm1, %v8242_v49  ;;  %17944 = vmatprep.mubr.msk.f32.mxu1 %vm21974_vm0, %v24026_v59  ;;  %v8254_v49 = vld [vmem:[%s22085_s11 + $0x111] sm:$0xff] }
 0x430   : > { %18894 = vmatprep.mubr.msk.f32.mxu0 %vm21974_vm0, %v24026_v59 }
 0x432   : > { %17945 = vmatmul.mubr.msk.f32.gmra.mrb[32].mxu1 %vm373_vm1, %v3863_v55  ;;  %v3875_v55 = vld [vmem:[%s22085_s11 + $0xf5] sm:$0xff] }
 0x433   : > { %18895 = vmatmul.mubr.msk.f32.gmra.mrb[32].mxu0 %vm373_vm1, %v8243_v34  ;;  %17947 = vmatprep.mubr.msk.f32.mxu1 %vm21974_vm0, %v24026_v59  ;;  %v8255_v34 = vld [vmem:[%s22085_s11 + $0x119] sm:$0xff] }
 0x434   : > { %18897 = vmatprep.mubr.msk.f32.mxu0 %vm21974_vm0, %v24026_v59 }
 0x436   : > { %17948 = vmatmul.mubr.msk.f32.gmra.mrb[34].mxu1 %vm373_vm1, %v3864_v56  ;;  %v3876_v56 = vld [vmem:[%s22085_s11 + $0xfd] sm:$0xff] }
 0x437   : > { %18898 = vmatmul.mubr.msk.f32.gmra.mrb[34].mxu0 %vm373_vm1, %v8244_v63  ;;  %17950 = vmatprep.mubr.msk.f32.mxu1 %vm21974_vm0, %v24026_v59  ;;  %v8256_v63 = vld [vmem:[%s22085_s11 + $0x121] sm:$0xff] }
 0x438   : > { %18900 = vmatprep.mubr.msk.f32.mxu0 %vm21974_vm0, %v24026_v59 }
 0x439   : > { %v3296_v4 = vpop.f32.mrb[108].mxu1 }
 0x43a   : > { %v24402_v22 = vpop.f32.mrb[108].mxu0  ;;  %v24405_v13 = vadd.f32 %v3296_v4, %v24130_v48  ;;  %17951 = vmatmul.mubr.msk.f32.gmra.mrb[122].mxu1 %vm373_vm1, %v3865_v0  ;;  %v17789_v17 = vpop.f32.mrb[109].mxu1  ;;  %v3867_v48 = vld [vmem:[%s22085_s11 + $0xb5] sm:$0xff]  ;;  %v3877_v0 = vld [vmem:[%s22085_s11 + $0x105] sm:$0xff] }
 0x43b   : > { %v18739_v19 = vpop.f32.mrb[109].mxu0  ;;  %18901 = vmatmul.mubr.msk.f32.gmra.mrb[122].mxu0 %vm373_vm1, %v8245_v26  ;;  %17953 = vmatprep.mubr.msk.f32.mxu1 %vm21974_vm0, %v24026_v59  ;;  %v8257_v26 = vld [vmem:[%s22085_s11 + $0x129] sm:$0xff]  ;;  %v4285_v4 = vld [vmem:[%s22085_s11 + $0x16] sm:$0xff]  ;;  %v9071_v17 = vld [vmem:[%s26874_s1 + $0xa0] sm:$0xff] }
 0x43c   : > { %18903 = vmatprep.mubr.msk.f32.mxu0 %vm21974_vm0, %v24026_v59  ;;  %v8665_v19 = vld [vmem:[%s22085_s11 + $0x3a] sm:$0xff] }
 0x43e   : > { %17954 = vmatmul.mubr.msk.f32.gmra.mrb[38].mxu1 %vm373_vm1, %v3866_v58 }
 0x43f   : > { %18904 = vmatmul.mubr.msk.f32.gmra.mrb[38].mxu0 %vm373_vm1, %v8246_v18  ;;  %17956 = vmatprep.mubr.msk.f32.mxu1 %vm21974_vm0, %v24026_v59 }
 0x440   : > { %18906 = vmatprep.mubr.msk.f32.mxu0 %vm21974_vm0, %v24026_v59 }
 0x442   : > { %17957 = vmatmul.mubr.msk.f32.gmra.mrb[40].mxu1 %vm373_vm1, %v3867_v48 }
 0x443   : > { %18907 = vmatmul.mubr.msk.f32.gmra.mrb[40].mxu0 %vm373_vm1, %v8247_v7  ;;  %17959 = vmatprep.mubr.msk.f32.mxu1 %vm21974_vm0, %v24026_v59 }
 0x444   : > { %18909 = vmatprep.mubr.msk.f32.mxu0 %vm21974_vm0, %v24026_v59 }
 0x446   : > { %17960 = vmatmul.mubr.msk.f32.gmra.mrb[42].mxu1 %vm373_vm1, %v3868_v20 }
 0x447   : > { %18910 = vmatmul.mubr.msk.f32.gmra.mrb[42].mxu0 %vm373_vm1, %v8248_v23  ;;  %17962 = vmatprep.mubr.msk.f32.mxu1 %vm21974_vm0, %v24026_v59  ;;  %v4286_v23 = vld [vmem:[%s22085_s11 + $0x1e] sm:$0xff] }
 0x448   : > { %18912 = vmatprep.mubr.msk.f32.mxu0 %vm21974_vm0, %v24026_v59 }
 0x449   : > { %v3599_v28 = vpop.f32.mrb[110].mxu1 }
 0x44a   : > { %v24439_v39 = vpop.f32.mrb[110].mxu0  ;;  %v24442_v29 = vadd.f32 %v3599_v28, %v24167_v6  ;;  %17963 = vmatmul.mubr.msk.f32.gmra.mrb[44].mxu1 %vm373_vm1, %v3869_v24  ;;  %v17803_v11 = vpop.f32.mrb[111].mxu1  ;;  %v3871_v6 = vld [vmem:[%s22085_s11 + $0xd5] sm:$0xff]  ;;  %v8666_v24 = vld [vmem:[%s22085_s11 + $0x42] sm:$0xff] }
 0x44b   : > { %v18753_v33 = vpop.f32.mrb[111].mxu0  ;;  %18913 = vmatmul.mubr.msk.f32.gmra.mrb[44].mxu0 %vm373_vm1, %v8249_v9  ;;  %17965 = vmatprep.mubr.msk.f32.mxu1 %vm21974_vm0, %v24026_v59  ;;  %v8667_v9 = vld [vmem:[%s22085_s11 + $0x4a] sm:$0xff]  ;;  %v4289_v11 = vld [vmem:[%s22085_s11 + $0x36] sm:$0xff] }
 0x44c   : > { %18915 = vmatprep.mubr.msk.f32.mxu0 %vm21974_vm0, %v24026_v59  ;;  %v4288_v28 = vld [vmem:[%s22085_s11 + $0x2e] sm:$0xff] }
 0x44d   : > { %v8668_v33 = vld [vmem:[%s22085_s11 + $0x52] sm:$0xff] }
 0x44e   : > { %17966 = vmatmul.mubr.msk.f32.gmra.mrb[46].mxu1 %vm373_vm1, %v3870_v35  ;;  %v8669_v35 = vld [vmem:[%s22085_s11 + $0x5a] sm:$0xff] }
 0x44f   : > { %18916 = vmatmul.mubr.msk.f32.gmra.mrb[46].mxu0 %vm373_vm1, %v8250_v41  ;;  %17968 = vmatprep.mubr.msk.f32.mxu1 %vm21974_vm0, %v24026_v59  ;;  %v4290_v41 = vld [vmem:[%s22085_s11 + $0x3e] sm:$0xff] }
 0x450   : > { %18918 = vmatprep.mubr.msk.f32.mxu0 %vm21974_vm0, %v24026_v59 }
 0x452   : > { %17969 = vmatmul.mubr.msk.f32.gmra.mrb[48].mxu1 %vm373_vm1, %v3871_v6  ;;  %v8670_v6 = vld [vmem:[%s22085_s11 + $0x62] sm:$0xff] }
 0x453   : > { %18919 = vmatmul.mubr.msk.f32.gmra.mrb[48].mxu0 %vm373_vm1, %v8251_v2  ;;  %17971 = vmatprep.mubr.msk.f32.mxu1 %vm21974_vm0, %v24026_v59  ;;  %v4291_v2 = vld [vmem:[%s22085_s11 + $0x46] sm:$0xff] }
 0x454   : > { %18921 = vmatprep.mubr.msk.f32.mxu0 %vm21974_vm0, %v24026_v59 }
 0x456   : > { %17972 = vmatmul.mubr.msk.f32.gmra.mrb[50].mxu1 %vm373_vm1, %v3872_v42  ;;  %v8671_v42 = vld [vmem:[%s22085_s11 + $0x6a] sm:$0xff] }
 0x457   : > { %18922 = vmatmul.mubr.msk.f32.gmra.mrb[50].mxu0 %vm373_vm1, %v8252_v36  ;;  %17974 = vmatprep.mubr.msk.f32.mxu1 %vm21974_vm0, %v24026_v59  ;;  %v4292_v36 = vld [vmem:[%s22085_s11 + $0x4e] sm:$0xff] }
 0x458   : > { %18924 = vmatprep.mubr.msk.f32.mxu0 %vm21974_vm0, %v24026_v59 }
 0x45a   : > { %17975 = vmatmul.mubr.msk.f32.gmra.mrb[52].mxu1 %vm373_vm1, %v3873_v50  ;;  %v8672_v50 = vld [vmem:[%s22085_s11 + $0x72] sm:$0xff] }
 0x45b   : > { %18925 = vmatmul.mubr.msk.f32.gmra.mrb[52].mxu0 %vm373_vm1, %v8253_v54  ;;  %17977 = vmatprep.mubr.msk.f32.mxu1 %vm21974_vm0, %v24026_v59  ;;  %v4293_v54 = vld [vmem:[%s22085_s11 + $0x56] sm:$0xff] }
 0x45c   : > { %18927 = vmatprep.mubr.msk.f32.mxu0 %vm21974_vm0, %v24026_v59 }
 0x45e   : > { %17978 = vmatmul.mubr.msk.f32.gmra.mrb[124].mxu1 %vm373_vm1, %v3874_v16  ;;  %v8673_v16 = vld [vmem:[%s22085_s11 + $0x7a] sm:$0xff] }
 0x45f   : > { %18928 = vmatmul.mubr.msk.f32.gmra.mrb[124].mxu0 %vm373_vm1, %v8254_v49  ;;  %17980 = vmatprep.mubr.msk.f32.mxu1 %vm21974_vm0, %v24026_v59  ;;  %v4294_v49 = vld [vmem:[%s22085_s11 + $0x5e] sm:$0xff] }
 0x460   : > { %18930 = vmatprep.mubr.msk.f32.mxu0 %vm21974_vm0, %v24026_v59 }
 0x462   : > { %17981 = vmatmul.mubr.msk.f32.gmra.mrb[56].mxu1 %vm373_vm1, %v3875_v55  ;;  %v8674_v55 = vld [vmem:[%s22085_s11 + $0x82] sm:$0xff] }
 0x463   : > { %18931 = vmatmul.mubr.msk.f32.gmra.mrb[56].mxu0 %vm373_vm1, %v8255_v34  ;;  %17983 = vmatprep.mubr.msk.f32.mxu1 %vm21974_vm0, %v24026_v59 }
 0x464   : > { %18933 = vmatprep.mubr.msk.f32.mxu0 %vm21974_vm0, %v24026_v59 }
 0x466   : > { %17984 = vmatmul.mubr.msk.f32.gmra.mrb[58].mxu1 %vm373_vm1, %v3876_v56 }
 0x467   : > { %18934 = vmatmul.mubr.msk.f32.gmra.mrb[58].mxu0 %vm373_vm1, %v8256_v63  ;;  %17986 = vmatprep.mubr.msk.f32.mxu1 %vm21974_vm0, %v24026_v59 }
 0x468   : > { %18936 = vmatprep.mubr.msk.f32.mxu0 %vm21974_vm0, %v24026_v59 }
 0x46a   : > { %17987 = vmatmul.mubr.msk.f32.gmra.mrb[60].mxu1 %vm373_vm1, %v3877_v0 }
 0x46b   : > { %18937 = vmatmul.mubr.msk.f32.gmra.mrb[60].mxu0 %vm373_vm1, %v8257_v26  ;;  %17991 = vmatprep.mubr.msk.f32.mxu1 %vm21974_vm0, %v24026_v59 }
 0x46c   : > { %18941 = vmatprep.mubr.msk.f32.mxu0 %vm21974_vm0, %v24026_v59 }
 0x46d   : > { %v3644_v58 = vpop.f32.mrb[112].mxu1 }
 0x46e   : > { %v24519_v18 = vpop.f32.mrb[112].mxu0  ;;  %v24522_v48 = vadd.f32 %v3644_v58, %v24250_v53  ;;  %17992 = vmatmul.mubr.msk.f32.vlgmr.msra.gmra.mrb[126].mxu1 %vm373_vm1, %v4285_v4  ;;  %v17830_v20 = vpop.f32.mrb[113].mxu1  ;;  %v4287_v53 = vld [vmem:[%s22085_s11 + $0x26] sm:$0xff]  ;;  %v4297_v58 = vld [vmem:[%s22085_s11 + $0x76] sm:$0xff] }
 0x46f   : > { %v18780_v7 = vpop.f32.mrb[113].mxu0  ;;  %18942 = vmatmul.mubr.msk.f32.vlgmr.msra.gmra.mrb[126].mxu0 %vm373_vm1, %v8665_v19  ;;  %17994 = vmatprep.mubr.msk.f32.mxu1 %vm21974_vm0, %v24026_v59  ;;  %v4295_v4 = vld [vmem:[%s22085_s11 + $0x66] sm:$0xff]  ;;  %v4298_v20 = vld [vmem:[%s22085_s11 + $0x7e] sm:$0xff] }
 0x470   : > { %19035 = vmatpush3.msra.mxu0 %v9071_v17  ;;  %18944 = vmatprep.mubr.msk.f32.mxu0 %vm21974_vm0, %v24026_v59  ;;  %v8675_v19 = vld [vmem:[%s22085_s11 + $0x8a] sm:$0xff]  ;;  %v8676_v17 = vld [vmem:[%s22085_s11 + $0x92] sm:$0xff]  ;;  %v8677_v7 = vld [vmem:[%s22085_s11 + $0x9a] sm:$0xff] }
 0x471   : > { %19129 = vmatprep.subr.mxu0 %v24026_v59 }
 0x472   : > { %17995 = vmatmul.mubr.msk.f32.gmra.mrb[2].mxu1 %vm373_vm1, %v4286_v23  ;;  %v8678_v23 = vld [vmem:[%s22085_s11 + $0xa2] sm:$0xff] }
 0x473   : > { %18945 = vmatmul.mubr.msk.f32.gmra.mrb[2].mxu0 %vm373_vm1, %v8666_v24  ;;  %17997 = vmatprep.mubr.msk.f32.mxu1 %vm21974_vm0, %v24026_v59  ;;  %v4299_v24 = vld [vmem:[%s22085_s11 + $0x86] sm:$0xff] }
 0x474   : > { %18947 = vmatprep.mubr.msk.f32.mxu0 %vm21974_vm0, %v24026_v59 }
 0x476   : > { %17998 = vmatmul.mubr.msk.f32.gmra.mrb[4].mxu1 %vm373_vm1, %v4287_v53  ;;  %v8679_v53 = vld [vmem:[%s22085_s11 + $0xaa] sm:$0xff] }
 0x477   : > { %18948 = vmatmul.mubr.msk.f32.gmra.mrb[4].mxu0 %vm373_vm1, %v8667_v9  ;;  %18000 = vmatprep.mubr.msk.f32.mxu1 %vm21974_vm0, %v24026_v59  ;;  %v4300_v9 = vld [vmem:[%s22085_s11 + $0x8e] sm:$0xff] }
 0x478   : > { %18950 = vmatprep.mubr.msk.f32.mxu0 %vm21974_vm0, %v24026_v59 }
 0x47a   : > { %18001 = vmatmul.mubr.msk.f32.gmra.mrb[6].mxu1 %vm373_vm1, %v4288_v28  ;;  %v8680_v28 = vld [vmem:[%s22085_s11 + $0xb2] sm:$0xff] }
 0x47b   : > { %18951 = vmatmul.mubr.msk.f32.gmra.mrb[6].mxu0 %vm373_vm1, %v8668_v33  ;;  %18003 = vmatprep.mubr.msk.f32.mxu1 %vm21974_vm0, %v24026_v59  ;;  %v4301_v33 = vld [vmem:[%s22085_s11 + $0x96] sm:$0xff] }
 0x47c   : > { %18953 = vmatprep.mubr.msk.f32.mxu0 %vm21974_vm0, %v24026_v59 }
 0x47e   : > { %18004 = vmatmul.mubr.msk.f32.gmra.mrb[8].mxu1 %vm373_vm1, %v4289_v11  ;;  %v8681_v11 = vld [vmem:[%s22085_s11 + $0xba] sm:$0xff] }
 0x47f   : > { %18954 = vmatmul.mubr.msk.f32.gmra.mrb[8].mxu0 %vm373_vm1, %v8669_v35  ;;  %18006 = vmatprep.mubr.msk.f32.mxu1 %vm21974_vm0, %v24026_v59  ;;  %v4302_v35 = vld [vmem:[%s22085_s11 + $0x9e] sm:$0xff] }
 0x480   : > { %18956 = vmatprep.mubr.msk.f32.mxu0 %vm21974_vm0, %v24026_v59 }
 0x482   : > { %18007 = vmatmul.mubr.msk.f32.gmra.mrb[10].mxu1 %vm373_vm1, %v4290_v41  ;;  %v8682_v41 = vld [vmem:[%s22085_s11 + $0xc2] sm:$0xff] }
 0x483   : > { %18957 = vmatmul.mubr.msk.f32.gmra.mrb[10].mxu0 %vm373_vm1, %v8670_v6  ;;  %18009 = vmatprep.mubr.msk.f32.mxu1 %vm21974_vm0, %v24026_v59  ;;  %v4303_v6 = vld [vmem:[%s22085_s11 + $0xa6] sm:$0xff] }
 0x484   : > { %18959 = vmatprep.mubr.msk.f32.mxu0 %vm21974_vm0, %v24026_v59 }
 0x486   : > { %18010 = vmatmul.mubr.msk.f32.gmra.mrb[12].mxu1 %vm373_vm1, %v4291_v2  ;;  %v8683_v2 = vld [vmem:[%s22085_s11 + $0xca] sm:$0xff] }
 0x487   : > { %18960 = vmatmul.mubr.msk.f32.gmra.mrb[12].mxu0 %vm373_vm1, %v8671_v42  ;;  %18012 = vmatprep.mubr.msk.f32.mxu1 %vm21974_vm0, %v24026_v59 }
 0x488   : > { %18962 = vmatprep.mubr.msk.f32.mxu0 %vm21974_vm0, %v24026_v59 }
 0x48a   : > { %18013 = vmatmul.mubr.msk.f32.gmra.mrb[14].mxu1 %vm373_vm1, %v4292_v36 }
 0x48b   : > { %18963 = vmatmul.mubr.msk.f32.gmra.mrb[14].mxu0 %vm373_vm1, %v8672_v50  ;;  %18015 = vmatprep.mubr.msk.f32.mxu1 %vm21974_vm0, %v24026_v59 }
 0x48c   : > { %18965 = vmatprep.mubr.msk.f32.mxu0 %vm21974_vm0, %v24026_v59 }
 0x48e   : > { %18016 = vmatmul.mubr.msk.f32.gmra.mrb[16].mxu1 %vm373_vm1, %v4293_v54 }
 0x48f   : > { %18966 = vmatmul.mubr.msk.f32.gmra.mrb[16].mxu0 %vm373_vm1, %v8673_v16  ;;  %18018 = vmatprep.mubr.msk.f32.mxu1 %vm21974_vm0, %v24026_v59 }
 0x490   : > { %18968 = vmatprep.mubr.msk.f32.mxu0 %vm21974_vm0, %v24026_v59 }
 0x491   : > { %v3689_v34 = vpop.f32.mrb[114].mxu1 }
 0x492   : > { %v24597_v56 = vpop.f32.mrb[114].mxu0  ;;  %v24600_v63 = vadd.f32 %v3689_v34, %v24328_v27  ;;  %18019 = vmatmul.mubr.msk.f32.gmra.mrb[128].mxu1 %vm373_vm1, %v4294_v49  ;;  %v17857_v26 = vpop.f32.mrb[115].mxu1  ;;  %v4296_v27 = vld [vmem:[%s22085_s11 + $0x6e] sm:$0xff]  ;;  %v8685_v34 = vld [vmem:[%s22085_s11 + $0xda] sm:$0xff] }
 0x493   : > { %v18807_v0 = vpop.f32.mrb[115].mxu0  ;;  %18969 = vmatmul.mubr.msk.f32.gmra.mrb[128].mxu0 %vm373_vm1, %v8674_v55  ;;  %18021 = vmatprep.mubr.msk.f32.mxu1 %vm21974_vm0, %v24026_v59  ;;  %v4304_v49 = vld [vmem:[%s22085_s11 + $0xae] sm:$0xff]  ;;  %v4306_v26 = vld [vmem:[%s22085_s11 + $0xbe] sm:$0xff] }
 0x494   : > { %18971 = vmatprep.mubr.msk.f32.mxu0 %vm21974_vm0, %v24026_v59  ;;  %v8684_v55 = vld [vmem:[%s22085_s11 + $0xd2] sm:$0xff] }
 0x495   : > { %v24697_v0 = vld [vmem:[#allocation3] sm:$0xff] }
 0x496   : > { %18022 = vmatmul.mubr.msk.f32.gmra.mrb[20].mxu1 %vm373_vm1, %v4295_v4  ;;  %v8686_v4 = vld [vmem:[%s22085_s11 + $0xe2] sm:$0xff] }
 0x497   : > { %18972 = vmatmul.mubr.msk.f32.gmra.mrb[20].mxu0 %vm373_vm1, %v8675_v19  ;;  %18024 = vmatprep.mubr.msk.f32.mxu1 %vm21974_vm0, %v24026_v59  ;;  %v8687_v19 = vld [vmem:[%s22085_s11 + $0xea] sm:$0xff] }
 0x498   : > { %18974 = vmatprep.mubr.msk.f32.mxu0 %vm21974_vm0, %v24026_v59 }
 0x49a   : > { %18025 = vmatmul.mubr.msk.f32.gmra.mrb[22].mxu1 %vm373_vm1, %v4296_v27 }
 0x49b   : > { %18975 = vmatmul.mubr.msk.f32.gmra.mrb[22].mxu0 %vm373_vm1, %v8676_v17  ;;  %18027 = vmatprep.mubr.msk.f32.mxu1 %vm21974_vm0, %v24026_v59 }
 0x49c   : > { %18977 = vmatprep.mubr.msk.f32.mxu0 %vm21974_vm0, %v24026_v59 }
 0x49e   : > { %18028 = vmatmul.mubr.msk.f32.gmra.mrb[24].mxu1 %vm373_vm1, %v4297_v58 }
 0x49f   : > { %18978 = vmatmul.mubr.msk.f32.gmra.mrb[24].mxu0 %vm373_vm1, %v8677_v7  ;;  %18030 = vmatprep.mubr.msk.f32.mxu1 %vm21974_vm0, %v24026_v59 }
 0x4a0   : > { %18980 = vmatprep.mubr.msk.f32.mxu0 %vm21974_vm0, %v24026_v59 }
 0x4a2   : > { %18031 = vmatmul.mubr.msk.f32.gmra.mrb[26].mxu1 %vm373_vm1, %v4298_v20 }
 0x4a3   : > { %18981 = vmatmul.mubr.msk.f32.gmra.mrb[26].mxu0 %vm373_vm1, %v8678_v23  ;;  %18033 = vmatprep.mubr.msk.f32.mxu1 %vm21974_vm0, %v24026_v59  ;;  %v4308_v23 = vld [vmem:[%s22085_s11 + $0xce] sm:$0xff] }
 0x4a4   : > { %18983 = vmatprep.mubr.msk.f32.mxu0 %vm21974_vm0, %v24026_v59 }
 0x4a6   : > { %18034 = vmatmul.mubr.msk.f32.gmra.mrb[28].mxu1 %vm373_vm1, %v4299_v24  ;;  %v8688_v24 = vld [vmem:[%s22085_s11 + $0xf2] sm:$0xff] }
 0x4a7   : > { %18984 = vmatmul.mubr.msk.f32.gmra.mrb[28].mxu0 %vm373_vm1, %v8679_v53  ;;  %18036 = vmatprep.mubr.msk.f32.mxu1 %vm21974_vm0, %v24026_v59  ;;  %v8689_v53 = vld [vmem:[%s22085_s11 + $0xfa] sm:$0xff] }
 0x4a8   : > { %18986 = vmatprep.mubr.msk.f32.mxu0 %vm21974_vm0, %v24026_v59 }
 0x4aa   : > { %18037 = vmatmul.mubr.msk.f32.gmra.mrb[30].mxu1 %vm373_vm1, %v4300_v9  ;;  %v4310_v9 = vld [vmem:[%s22085_s11 + $0xde] sm:$0xff] }
 0x4ab   : > { %18987 = vmatmul.mubr.msk.f32.gmra.mrb[30].mxu0 %vm373_vm1, %v8680_v28  ;;  %18039 = vmatprep.mubr.msk.f32.mxu1 %vm21974_vm0, %v24026_v59  ;;  %v8690_v28 = vld [vmem:[%s22085_s11 + $0x102] sm:$0xff] }
 0x4ac   : > { %18989 = vmatprep.mubr.msk.f32.mxu0 %vm21974_vm0, %v24026_v59 }
 0x4ae   : > { %18040 = vmatmul.mubr.msk.f32.gmra.mrb[32].mxu1 %vm373_vm1, %v4301_v33  ;;  %v4311_v33 = vld [vmem:[%s22085_s11 + $0xe6] sm:$0xff] }
 0x4af   : > { %18990 = vmatmul.mubr.msk.f32.gmra.mrb[32].mxu0 %vm373_vm1, %v8681_v11  ;;  %18042 = vmatprep.mubr.msk.f32.mxu1 %vm21974_vm0, %v24026_v59  ;;  %v8691_v11 = vld [vmem:[%s22085_s11 + $0x10a] sm:$0xff] }
 0x4b0   : > { %18992 = vmatprep.mubr.msk.f32.mxu0 %vm21974_vm0, %v24026_v59 }
 0x4b2   : > { %18043 = vmatmul.mubr.msk.f32.gmra.mrb[34].mxu1 %vm373_vm1, %v4302_v35  ;;  %v4312_v35 = vld [vmem:[%s22085_s11 + $0xee] sm:$0xff] }
 0x4b3   : > { %18993 = vmatmul.mubr.msk.f32.gmra.mrb[34].mxu0 %vm373_vm1, %v8682_v41  ;;  %18045 = vmatprep.mubr.msk.f32.mxu1 %vm21974_vm0, %v24026_v59  ;;  %v8692_v41 = vld [vmem:[%s22085_s11 + $0x112] sm:$0xff] }
 0x4b4   : > { %18995 = vmatprep.mubr.msk.f32.mxu0 %vm21974_vm0, %v24026_v59 }
 0x4b5   : > { %v3734_v42 = vpop.f32.mrb[116].mxu1 }
 0x4b6   : > { %v24674_v36 = vpop.f32.mrb[116].mxu0  ;;  %v24677_v50 = vadd.f32 %v3734_v42, %v24405_v13  ;;  %18046 = vmatmul.mubr.msk.f32.gmra.mrb[130].mxu1 %vm373_vm1, %v4303_v6  ;;  %v17884_v16 = vpop.f32.mrb[117].mxu1  ;;  %v4305_v13 = vld [vmem:[%s22085_s11 + $0xb6] sm:$0xff]  ;;  %v4314_v42 = vld [vmem:[%s22085_s11 + $0xfe] sm:$0xff] }
 0x4b7   : > { %v18834_v54 = vpop.f32.mrb[117].mxu0  ;;  %18996 = vmatmul.mubr.msk.f32.gmra.mrb[130].mxu0 %vm373_vm1, %v8683_v2  ;;  %18048 = vmatprep.mubr.msk.f32.mxu1 %vm21974_vm0, %v24026_v59  ;;  %v4313_v6 = vld [vmem:[%s22085_s11 + $0xf6] sm:$0xff]  ;;  %v4315_v16 = vld [vmem:[%s22085_s11 + $0x106] sm:$0xff] }
 0x4b8   : > { %18998 = vmatprep.mubr.msk.f32.mxu0 %vm21974_vm0, %v24026_v59  ;;  %v8693_v2 = vld [vmem:[%s22085_s11 + $0x11a] sm:$0xff]  ;;  %v8694_v54 = vld [vmem:[%s22085_s11 + $0x122] sm:$0xff] }
 0x4ba   : > { %18049 = vmatmul.mubr.msk.f32.gmra.mrb[38].mxu1 %vm373_vm1, %v4304_v49  ;;  %v8695_v49 = vld [vmem:[%s22085_s11 + $0x12a] sm:$0xff] }
 0x4bb   : > { %18999 = vmatmul.mubr.msk.f32.gmra.mrb[38].mxu0 %vm373_vm1, %v8684_v55  ;;  %18051 = vmatprep.mubr.msk.f32.mxu1 %vm21974_vm0, %v24026_v59  ;;  %v9103_v55 = vld [vmem:[%s22085_s11 + $0x48] sm:$0xff] }
 0x4bc   : > { %19001 = vmatprep.mubr.msk.f32.mxu0 %vm21974_vm0, %v24026_v59  ;;  %v4307_v59 = vld [vmem:[%s22085_s11 + $0xc6] sm:$0xff] }
 0x4be   : > { %18052 = vmatmul.mubr.msk.f32.gmra.mrb[40].mxu1 %vm373_vm1, %v4305_v13  ;;  %v9509_v13 = vld [vmem:[%s26874_s1 + $0xa8] sm:$0xff] }
 0x4bf   : > { %19002 = vmatmul.mubr.msk.f32.gmra.mrb[40].mxu0 %vm373_vm1, %v8685_v34  ;;  %18054 = vmatprep.mubr.msk.f32.mxu1 %vm21974_vm0, %v24697_v0 }
 0x4c0   : > { %19004 = vmatprep.mubr.msk.f32.mxu0 %vm21974_vm0, %v24697_v0 }
 0x4c2   : > { %18055 = vmatmul.mubr.msk.f32.gmra.mrb[42].mxu1 %vm373_vm1, %v4306_v26 }
 0x4c3   : > { %19005 = vmatmul.mubr.msk.f32.gmra.mrb[42].mxu0 %vm373_vm1, %v8686_v4  ;;  %18057 = vmatprep.mubr.msk.f32.mxu1 %vm21974_vm0, %v24697_v0 }
 0x4c4   : > { %19007 = vmatprep.mubr.msk.f32.mxu0 %vm21974_vm0, %v24697_v0 }
 0x4c5   : > { %v4037_v27 = vpop.f32.mrb[118].mxu1 }
 0x4c6   : > { %v24713_v17 = vpop.f32.mrb[118].mxu0  ;;  %v24716_v58 = vadd.f32 %v4037_v27, %v24442_v29  ;;  %18058 = vmatmul.mubr.msk.f32.gmra.mrb[44].mxu1 %vm373_vm1, %v4307_v59  ;;  %v17898_v20 = vpop.f32.mrb[119].mxu1  ;;  %v4309_v29 = vld [vmem:[%s22085_s11 + $0xd6] sm:$0xff] }
 0x4c7   : > { %v18848_v7 = vpop.f32.mrb[119].mxu0  ;;  %19008 = vmatmul.mubr.msk.f32.gmra.mrb[44].mxu0 %vm373_vm1, %v8687_v19  ;;  %18060 = vmatprep.mubr.msk.f32.mxu1 %vm21974_vm0, %v24697_v0  ;;  %v9104_v27 = vld [vmem:[%s22085_s11 + $0x50] sm:$0xff]  ;;  %v9107_v20 = vld [vmem:[%s22085_s11 + $0x68] sm:$0xff] }
 0x4c8   : > { %19010 = vmatprep.mubr.msk.f32.mxu0 %vm21974_vm0, %v24697_v0  ;;  %v9106_v7 = vld [vmem:[%s22085_s11 + $0x60] sm:$0xff] }
 0x4ca   : > { %18061 = vmatmul.mubr.msk.f32.gmra.mrb[46].mxu1 %vm373_vm1, %v4308_v23  ;;  %v9108_v23 = vld [vmem:[%s22085_s11 + $0x70] sm:$0xff] }
 0x4cb   : > { %19011 = vmatmul.mubr.msk.f32.gmra.mrb[46].mxu0 %vm373_vm1, %v8688_v24  ;;  %18063 = vmatprep.mubr.msk.f32.mxu1 %vm21974_vm0, %v24697_v0  ;;  %v9109_v24 = vld [vmem:[%s22085_s11 + $0x78] sm:$0xff] }
 0x4cc   : > { %19013 = vmatprep.mubr.msk.f32.mxu0 %vm21974_vm0, %v24697_v0 }
 0x4ce   : > { %18064 = vmatmul.mubr.msk.f32.gmra.mrb[48].mxu1 %vm373_vm1, %v4309_v29  ;;  %v9110_v29 = vld [vmem:[%s22085_s11 + $0x80] sm:$0xff] }
 0x4cf   : > { %19014 = vmatmul.mubr.msk.f32.gmra.mrb[48].mxu0 %vm373_vm1, %v8689_v53  ;;  %18066 = vmatprep.mubr.msk.f32.mxu1 %vm21974_vm0, %v24697_v0  ;;  %v9111_v53 = vld [vmem:[%s22085_s11 + $0x88] sm:$0xff] }
 0x4d0   : > { %19016 = vmatprep.mubr.msk.f32.mxu0 %vm21974_vm0, %v24697_v0 }
 0x4d2   : > { %18067 = vmatmul.mubr.msk.f32.gmra.mrb[50].mxu1 %vm373_vm1, %v4310_v9  ;;  %v9112_v9 = vld [vmem:[%s22085_s11 + $0x90] sm:$0xff] }
 0x4d3   : > { %19017 = vmatmul.mubr.msk.f32.gmra.mrb[50].mxu0 %vm373_vm1, %v8690_v28  ;;  %18069 = vmatprep.mubr.msk.f32.mxu1 %vm21974_vm0, %v24697_v0 }
 0x4d4   : > { %19019 = vmatprep.mubr.msk.f32.mxu0 %vm21974_vm0, %v24697_v0 }
 0x4d6   : > { %18070 = vmatmul.mubr.msk.f32.gmra.mrb[52].mxu1 %vm373_vm1, %v4311_v33 }
 0x4d7   : > { %19020 = vmatmul.mubr.msk.f32.gmra.mrb[52].mxu0 %vm373_vm1, %v8691_v11  ;;  %18072 = vmatprep.mubr.msk.f32.mxu1 %vm21974_vm0, %v24697_v0 }
 0x4d8   : > { %19022 = vmatprep.mubr.msk.f32.mxu0 %vm21974_vm0, %v24697_v0 }
 0x4da   : > { %18073 = vmatmul.mubr.msk.f32.gmra.mrb[132].mxu1 %vm373_vm1, %v4312_v35 }
 0x4db   : > { %19023 = vmatmul.mubr.msk.f32.gmra.mrb[132].mxu0 %vm373_vm1, %v8692_v41  ;;  %18075 = vmatprep.mubr.msk.f32.mxu1 %vm21974_vm0, %v24697_v0 }
 0x4dc   : > { %19025 = vmatprep.mubr.msk.f32.mxu0 %vm21974_vm0, %v24697_v0 }
 0x4de   : > { %18076 = vmatmul.mubr.msk.f32.gmra.mrb[56].mxu1 %vm373_vm1, %v4313_v6  ;;  %v9113_v6 = vld [vmem:[%s22085_s11 + $0x98] sm:$0xff] }
 0x4df   : > { %19026 = vmatmul.mubr.msk.f32.gmra.mrb[56].mxu0 %vm373_vm1, %v8693_v2  ;;  %18078 = vmatprep.mubr.msk.f32.mxu1 %vm21974_vm0, %v24697_v0  ;;  %v9114_v2 = vld [vmem:[%s22085_s11 + $0xa0] sm:$0xff] }
 0x4e0   : > { %19028 = vmatprep.mubr.msk.f32.mxu0 %vm21974_vm0, %v24697_v0 }
 0x4e2   : > { %18079 = vmatmul.mubr.msk.f32.gmra.mrb[58].mxu1 %vm373_vm1, %v4314_v42  ;;  %v9116_v42 = vld [vmem:[%s22085_s11 + $0xb0] sm:$0xff] }
 0x4e3   : > { %19029 = vmatmul.mubr.msk.f32.gmra.mrb[58].mxu0 %vm373_vm1, %v8694_v54  ;;  %18081 = vmatprep.mubr.msk.f32.mxu1 %vm21974_vm0, %v24697_v0  ;;  %v9117_v54 = vld [vmem:[%s22085_s11 + $0xb8] sm:$0xff] }
 0x4e4   : > { %19031 = vmatprep.mubr.msk.f32.mxu0 %vm21974_vm0, %v24697_v0 }
 0x4e6   : > { %18082 = vmatmul.mubr.msk.f32.gmra.mrb[60].mxu1 %vm373_vm1, %v4315_v16  ;;  %v9118_v16 = vld [vmem:[%s22085_s11 + $0xc0] sm:$0xff] }
 0x4e7   : > { %19032 = vmatmul.mubr.msk.f32.gmra.mrb[60].mxu0 %vm373_vm1, %v8695_v49  ;;  %19541 = vmatprep.mubr.f32.mxu1 %v24697_v0  ;;  %v9119_v49 = vld [vmem:[%s22085_s11 + $0xc8] sm:$0xff] }
 0x4e8   : > { %19036 = vmatprep.mubr.msk.f32.mxu0 %vm21974_vm0, %v24697_v0 }
 0x4e9   : > { %v4082_v34 = vpop.f32.mrb[120].mxu1 }
 0x4ea   : > { %v24791_v26 = vpop.f32.mrb[120].mxu0  ;;  %v24794_v4 = vadd.f32 %v4082_v34, %v24522_v48  ;;  %v17925_v19 = vpop.f32.mrb[121].mxu1  ;;  %v9105_v48 = vld [vmem:[%s22085_s11 + $0x58] sm:$0xff] }
 0x4eb   : > { %v18875_v59 = vpop.f32.mrb[121].mxu0  ;;  %19037 = vmatmul.mubr.msk.f32.vlgmr.msra.gmra.mrb[134].mxu0 %vm373_vm1, %v9103_v55  ;;  %v9120_v55 = vld [vmem:[%s22085_s11 + $0xd0] sm:$0xff] }
 0x4ec   : > { %19130 = vmatpush3.msra.mxu0 %v9509_v13  ;;  %19039 = vmatprep.mubr.msk.f32.mxu0 %vm21974_vm0, %v24697_v0  ;;  %v9121_v13 = vld [vmem:[%s22085_s11 + $0xd8] sm:$0xff] }
 0x4ed   : > { %19224 = vmatprep.subr.mxu0 %v24697_v0 }
 0x4ef   : > { %19040 = vmatmul.mubr.msk.f32.gmra.mrb[2].mxu0 %vm373_vm1, %v9104_v27 }
 0x4f0   : > { %19042 = vmatprep.mubr.msk.f32.mxu0 %vm21974_vm0, %v24697_v0 }
 0x4f3   : > { %19043 = vmatmul.mubr.msk.f32.gmra.mrb[4].mxu0 %vm373_vm1, %v9105_v48 }
 0x4f4   : > { %19045 = vmatprep.mubr.msk.f32.mxu0 %vm21974_vm0, %v24697_v0 }
 0x4f7   : > { %19046 = vmatmul.mubr.msk.f32.gmra.mrb[6].mxu0 %vm373_vm1, %v9106_v7  ;;  %v9122_v7 = vld [vmem:[%s22085_s11 + $0xe0] sm:$0xff] }
 0x4f8   : > { %19048 = vmatprep.mubr.msk.f32.mxu0 %vm21974_vm0, %v24697_v0 }
 0x4fb   : > { %19049 = vmatmul.mubr.msk.f32.gmra.mrb[8].mxu0 %vm373_vm1, %v9107_v20  ;;  %v9123_v20 = vld [vmem:[%s22085_s11 + $0xe8] sm:$0xff] }
 0x4fc   : > { %19051 = vmatprep.mubr.msk.f32.mxu0 %vm21974_vm0, %v24697_v0 }
 0x4ff   : > { %19052 = vmatmul.mubr.msk.f32.gmra.mrb[10].mxu0 %vm373_vm1, %v9108_v23  ;;  %v9125_v23 = vld [vmem:[%s22085_s11 + $0xf8] sm:$0xff] }
 0x500   : > { %19054 = vmatprep.mubr.msk.f32.mxu0 %vm21974_vm0, %v24697_v0 }
 0x503   : > { %19055 = vmatmul.mubr.msk.f32.gmra.mrb[12].mxu0 %vm373_vm1, %v9109_v24 }
 0x504   : > { %19057 = vmatprep.mubr.msk.f32.mxu0 %vm21974_vm0, %v24697_v0 }
 0x507   : > { %19058 = vmatmul.mubr.msk.f32.gmra.mrb[14].mxu0 %vm373_vm1, %v9110_v29 }
 0x508   : > { %19060 = vmatprep.mubr.msk.f32.mxu0 %vm21974_vm0, %v24697_v0 }
 0x50b   : > { %19061 = vmatmul.mubr.msk.f32.gmra.mrb[16].mxu0 %vm373_vm1, %v9111_v53 }
 0x50c   : > { %19063 = vmatprep.mubr.msk.f32.mxu0 %vm21974_vm0, %v24697_v0 }
 0x50d   : > { %v4127_v28 = vpop.f32.mrb[122].mxu1 }
 0x50e   : > { %v24833_v33 = vpop.f32.mrb[122].mxu0  ;;  %v24836_v11 = vadd.f32 %v4127_v28, %v24600_v63  ;;  %v17952_v41 = vpop.f32.mrb[123].mxu1  ;;  %v9115_v63 = vld [vmem:[%s22085_s11 + $0xa8] sm:$0xff] }
 0x50f   : > { %v18902_v35 = vpop.f32.mrb[123].mxu0  ;;  %19064 = vmatmul.mubr.msk.f32.gmra.mrb[136].mxu0 %vm373_vm1, %v9112_v9 }
 0x510   : > { %19066 = vmatprep.mubr.msk.f32.mxu0 %vm21974_vm0, %v24697_v0  ;;  %v9126_v35 = vld [vmem:[%s22085_s11 + $0x100] sm:$0xff] }
 0x513   : > { %19067 = vmatmul.mubr.msk.f32.gmra.mrb[20].mxu0 %vm373_vm1, %v9113_v6 }
 0x514   : > { %19069 = vmatprep.mubr.msk.f32.mxu0 %vm21974_vm0, %v24697_v0 }
 0x517   : > { %19070 = vmatmul.mubr.msk.f32.gmra.mrb[22].mxu0 %vm373_vm1, %v9114_v2 }
 0x518   : > { %19072 = vmatprep.mubr.msk.f32.mxu0 %vm21974_vm0, %v24697_v0 }
 0x51b   : > { %19073 = vmatmul.mubr.msk.f32.gmra.mrb[24].mxu0 %vm373_vm1, %v9115_v63 }
 0x51c   : > { %19075 = vmatprep.mubr.msk.f32.mxu0 %vm21974_vm0, %v24697_v0 }
 0x51f   : > { %19076 = vmatmul.mubr.msk.f32.gmra.mrb[26].mxu0 %vm373_vm1, %v9116_v42 }
 0x520   : > { %19078 = vmatprep.mubr.msk.f32.mxu0 %vm21974_vm0, %v24697_v0 }
 0x523   : > { %19079 = vmatmul.mubr.msk.f32.gmra.mrb[28].mxu0 %vm373_vm1, %v9117_v54 }
 0x524   : > { %19081 = vmatprep.mubr.msk.f32.mxu0 %vm21974_vm0, %v24697_v0 }
 0x527   : > { %19082 = vmatmul.mubr.msk.f32.gmra.mrb[30].mxu0 %vm373_vm1, %v9118_v16 }
 0x528   : > { %19084 = vmatprep.mubr.msk.f32.mxu0 %vm21974_vm0, %v24697_v0 }
 0x52b   : > { %19085 = vmatmul.mubr.msk.f32.gmra.mrb[32].mxu0 %vm373_vm1, %v9119_v49 }
 0x52c   : > { %19087 = vmatprep.mubr.msk.f32.mxu0 %vm21974_vm0, %v24697_v0 }
 0x52f   : > { %19088 = vmatmul.mubr.msk.f32.gmra.mrb[34].mxu0 %vm373_vm1, %v9120_v55 }
 0x530   : > { %19090 = vmatprep.mubr.msk.f32.mxu0 %vm21974_vm0, %v24697_v0 }
 0x531   : > { %v4172_v34 = vpop.f32.mrb[124].mxu1 }
 0x532   : > { %v24874_v59 = vpop.f32.mrb[124].mxu0  ;;  %v24877_v19 = vadd.f32 %v4172_v34, %v24677_v50  ;;  %v17979_v48 = vpop.f32.mrb[125].mxu1  ;;  %v9124_v50 = vld [vmem:[%s22085_s11 + $0xf0] sm:$0xff] }
 0x533   : > { %v18929_v27 = vpop.f32.mrb[125].mxu0  ;;  %19091 = vmatmul.mubr.msk.f32.gmra.mrb[138].mxu0 %vm373_vm1, %v9121_v13 }
 0x534   : > { %19093 = vmatprep.mubr.msk.f32.mxu0 %vm21974_vm0, %v24697_v0 }
 0x537   : > { %19094 = vmatmul.mubr.msk.f32.gmra.mrb[38].mxu0 %vm373_vm1, %v9122_v7 }
 0x538   : > { %19096 = vmatprep.mubr.msk.f32.mxu0 %vm21974_vm0, %v24697_v0 }
 0x53b   : > { %19097 = vmatmul.mubr.msk.f32.gmra.mrb[40].mxu0 %vm373_vm1, %v9123_v20 }
 0x53c   : > { %19099 = vmatprep.mubr.msk.f32.mxu0 %vm21974_vm0, %v24697_v0 }
 0x53f   : > { %19100 = vmatmul.mubr.msk.f32.gmra.mrb[42].mxu0 %vm373_vm1, %v9124_v50 }
 0x540   : > { %19102 = vmatprep.mubr.msk.f32.mxu0 %vm21974_vm0, %v24697_v0 }
 0x541   : > { %v4475_v24 = vpop.f32.mrb[126].mxu1 }
 0x542   : > { %v8855_v29 = vpop.f32.mrb[126].mxu0  ;;  %v4629_v53 = vadd.f32 %v4475_v24, %v24716_v58  ;;  %v17993_v28 = vpop.f32.mrb[127].mxu1  ;;  %v9127_v58 = vld [vmem:[%s22085_s11 + $0x108] sm:$0xff] }
 0x543   : > { %v18943_v9 = vpop.f32.mrb[127].mxu0  ;;  %19103 = vmatmul.mubr.msk.f32.gmra.mrb[44].mxu0 %vm373_vm1, %v9125_v23 }
 0x544   : > { %19105 = vmatprep.mubr.msk.f32.mxu0 %vm21974_vm0, %v24697_v0  ;;  %v5067_v41 = vadd.f32 %v22529_v52, %v4629_v53 }
 0x545   : > { %v4480_v6 = vpop.f32.mrb[2].mxu1 }
 0x546   : > { %v5505_v2 = vadd.f32 %v22795_v62, %v5067_v41  ;;  %v20545_v63 = vadd.f32 %v24697_v0, %v4480_v6  ;;  %v17996_v42 = vpop.f32.mrb[3].mxu1  ;;  %v9128_v62 = vld [vmem:[%s22085_s11 + $0x110] sm:$0xff] }
 0x547   : > { %19106 = vmatmul.mubr.msk.f32.gmra.mrb[46].mxu0 %vm373_vm1, %v9126_v35  ;;  %v9133_v42 = vld [vmem:[%s22085_s11 + $0x138] sm:$0xff] }
 0x548   : > { %19108 = vmatprep.mubr.msk.f32.mxu0 %vm21974_vm0, %v24697_v0  ;;  %v5943_v54 = vadd.f32 %v23059_v14, %v5505_v2  ;;  %20546 = vst [vmem:[#allocation2 + $0x8] sm:$0xff] %v20545_v63 }
 0x549   : > { %v4485_v16 = vpop.f32.mrb[4].mxu1 }
 0x54a   : > { %v6381_v52 = vadd.f32 %v23331_v12, %v5943_v54  ;;  %v20551_v49 = vadd.f32 %v24697_v0, %v4485_v16  ;;  %v17999_v55 = vpop.f32.mrb[5].mxu1  ;;  %v9129_v12 = vld [vmem:[%s22085_s11 + $0x118] sm:$0xff] }
 0x54b   : > { %19109 = vmatmul.mubr.msk.f32.gmra.mrb[48].mxu0 %vm373_vm1, %v9127_v58 }
 0x54c   : > { %19111 = vmatprep.mubr.msk.f32.mxu0 %vm21974_vm0, %v24697_v0  ;;  %v6819_v13 = vadd.f32 %v23610_v60, %v6381_v52  ;;  %20552 = vst [vmem:[#allocation2 + $0x10] sm:$0xff] %v20551_v49  ;;  %v9541_v52 = vld [vmem:[%s22085_s11 + $0x49] sm:$0xff] }
 0x54d   : > { %v4490_v34 = vpop.f32.mrb[6].mxu1  ;;  %v9947_v49 = vld [vmem:[%s26874_s1 + $0xb0] sm:$0xff] }
 0x54e   : > { %v7257_v14 = vadd.f32 %v23886_v57, %v6819_v13  ;;  %v20557_v27 = vadd.f32 %v24697_v0, %v4490_v34  ;;  %v18002_v48 = vpop.f32.mrb[7].mxu1  ;;  %v9130_v57 = vld [vmem:[%s22085_s11 + $0x120] sm:$0xff] }
 0x54f   : > { %19112 = vmatmul.mubr.msk.f32.gmra.mrb[50].mxu0 %vm373_vm1, %v9128_v62 }
 0x550   : > { %19114 = vmatprep.mubr.msk.f32.mxu0 %vm21974_vm0, %v24697_v0  ;;  %v7695_v7 = vadd.f32 %v24164_v1, %v7257_v14  ;;  %20558 = vst [vmem:[#allocation2 + $0x18] sm:$0xff] %v20557_v27  ;;  %v9542_v27 = vld [vmem:[%s22085_s11 + $0x51] sm:$0xff] }
 0x551   : > { %v4495_v20 = vpop.f32.mrb[8].mxu1 }
 0x552   : > { %v8133_v60 = vadd.f32 %v24439_v39, %v7695_v7  ;;  %v20563_v50 = vadd.f32 %v24697_v0, %v4495_v20  ;;  %v18005_v23 = vpop.f32.mrb[9].mxu1  ;;  %v9131_v39 = vld [vmem:[%s22085_s11 + $0x128] sm:$0xff] }
 0x553   : > { %19115 = vmatmul.mubr.msk.f32.gmra.mrb[52].mxu0 %vm373_vm1, %v9129_v12 }
 0x554   : > { %19117 = vmatprep.mubr.msk.f32.mxu0 %vm21974_vm0, %v24697_v0  ;;  %v8571_v24 = vadd.f32 %v24713_v17, %v8133_v60  ;;  %20564 = vst [vmem:[#allocation2 + $0x20] sm:$0xff] %v20563_v50  ;;  %v9132_v17 = vld [vmem:[%s22085_s11 + $0x130] sm:$0xff]  ;;  %v9543_v60 = vld [vmem:[%s22085_s11 + $0x59] sm:$0xff] }
 0x555   : > { %v4500_v53 = vpop.f32.mrb[10].mxu1 }
 0x556   : > { %v24929_v1 = vadd.f32 %v8855_v29, %v8571_v24  ;;  %v20569_v9 = vadd.f32 %v24697_v0, %v4500_v53  ;;  %v18008_v28 = vpop.f32.mrb[11].mxu1 }
 0x557   : > { %19118 = vmatmul.mubr.msk.f32.gmra.mrb[140].mxu0 %vm373_vm1, %v9130_v57 }
 0x558   : > { %19120 = vmatprep.mubr.msk.f32.mxu0 %vm21974_vm0, %v24697_v0  ;;  %20570 = vst [vmem:[#allocation2 + $0x28] sm:$0xff] %v20569_v9 }
 0x559   : > { %v4505_v35 = vpop.f32.mrb[12].mxu1 }
 0x55a   : > { %v20575_v41 = vadd.f32 %v24697_v0, %v4505_v35  ;;  %v18011_v6 = vpop.f32.mrb[13].mxu1 }
 0x55b   : > { %19121 = vmatmul.mubr.msk.f32.gmra.mrb[56].mxu0 %vm373_vm1, %v9131_v39 }
 0x55c   : > { %19123 = vmatprep.mubr.msk.f32.mxu0 %vm21974_vm0, %v24697_v0  ;;  %20576 = vst [vmem:[#allocation2 + $0x30] sm:$0xff] %v20575_v41 }
 0x55d   : > { %v4510_v29 = vpop.f32.mrb[14].mxu1 }
 0x55e   : > { %v20581_v2 = vadd.f32 %v24697_v0, %v4510_v29  ;;  %v18014_v63 = vpop.f32.mrb[15].mxu1 }
 0x55f   : > { %19124 = vmatmul.mubr.msk.f32.gmra.mrb[58].mxu0 %vm373_vm1, %v9132_v17 }
 0x560   : > { %19126 = vmatprep.mubr.msk.f32.mxu0 %vm21974_vm0, %v24697_v0  ;;  %20582 = vst [vmem:[#allocation2 + $0x38] sm:$0xff] %v20581_v2 }
 0x561   : > { %v4515_v58 = vpop.f32.mrb[16].mxu1 }
 0x562   : > { %v20587_v54 = vadd.f32 %v24697_v0, %v4515_v58  ;;  %v18017_v16 = vpop.f32.mrb[17].mxu1 }
 0x563   : > { %19127 = vmatmul.mubr.msk.f32.gmra.mrb[60].mxu0 %vm373_vm1, %v9133_v42 }
 0x564   : > { %19131 = vmatprep.mubr.msk.f32.mxu0 %vm21974_vm0, %v24697_v0  ;;  %20588 = vst [vmem:[#allocation2 + $0x40] sm:$0xff] %v20587_v54 }
 0x565   : > { %v4520_v55 = vpop.f32.mrb[128].mxu1 }
 0x566   : > { %v8900_v62 = vpop.f32.mrb[128].mxu0  ;;  %v4638_v13 = vadd.f32 %v4520_v55, %v24794_v4  ;;  %v18020_v14 = vpop.f32.mrb[129].mxu1 }
 0x567   : > { %v18970_v34 = vpop.f32.mrb[129].mxu0  ;;  %19132 = vmatmul.mubr.msk.f32.vlgmr.msra.gmra.mrb[142].mxu0 %vm373_vm1, %v9541_v52 }
 0x568   : > { %19225 = vmatpush3.msra.mxu0 %v9947_v49  ;;  %19134 = vmatprep.mubr.msk.f32.mxu0 %vm21974_vm0, %v24697_v0  ;;  %v5076_v48 = vadd.f32 %v22606_v10, %v4638_v13 }
 0x569   : > { %19319 = vmatprep.subr.mxu0 %v24697_v0  ;;  %v4525_v12 = vpop.f32.mrb[20].mxu1 }
 0x56a   : > { %v5514_v7 = vadd.f32 %v22872_v21, %v5076_v48  ;;  %v20593_v20 = vadd.f32 %v24697_v0, %v4525_v12  ;;  %v18023_v4 = vpop.f32.mrb[21].mxu1  ;;  %v9544_v21 = vld [vmem:[%s22085_s11 + $0x61] sm:$0xff] }
 0x56b   : > { %19135 = vmatmul.mubr.msk.f32.gmra.mrb[2].mxu0 %vm373_vm1, %v9542_v27  ;;  %v9550_v27 = vld [vmem:[%s22085_s11 + $0x91] sm:$0xff] }
 0x56c   : > { %19137 = vmatprep.mubr.msk.f32.mxu0 %vm21974_vm0, %v24697_v0  ;;  %v5952_v50 = vadd.f32 %v23136_v37, %v5514_v7  ;;  %20594 = vst [vmem:[#allocation2 + $0x50] sm:$0xff] %v20593_v20 }
 0x56d   : > { %v4530_v10 = vpop.f32.mrb[22].mxu1 }
 0x56e   : > { %v6390_v23 = vadd.f32 %v23414_v45, %v5952_v50  ;;  %v20599_v57 = vadd.f32 %v24697_v0, %v4530_v10  ;;  %v18026_v24 = vpop.f32.mrb[23].mxu1  ;;  %v9545_v45 = vld [vmem:[%s22085_s11 + $0x69] sm:$0xff] }
 0x56f   : > { %19138 = vmatmul.mubr.msk.f32.gmra.mrb[4].mxu0 %vm373_vm1, %v9543_v60  ;;  %v9551_v60 = vld [vmem:[%s22085_s11 + $0x99] sm:$0xff] }
 0x570   : > { %19140 = vmatprep.mubr.msk.f32.mxu0 %vm21974_vm0, %v24697_v0  ;;  %v6828_v53 = vadd.f32 %v23690_v32, %v6390_v23  ;;  %20600 = vst [vmem:[#allocation2 + $0x58] sm:$0xff] %v20599_v57 }
 0x571   : > { %v4535_v9 = vpop.f32.mrb[24].mxu1 }
 0x572   : > { %v7266_v37 = vadd.f32 %v23966_v30, %v6828_v53  ;;  %v20605_v28 = vadd.f32 %v24697_v0, %v4535_v9  ;;  %v18029_v39 = vpop.f32.mrb[25].mxu1  ;;  %v9546_v30 = vld [vmem:[%s22085_s11 + $0x71] sm:$0xff] }
 0x573   : > { %19141 = vmatmul.mubr.msk.f32.gmra.mrb[6].mxu0 %vm373_vm1, %v9544_v21 }
 0x574   : > { %19143 = vmatprep.mubr.msk.f32.mxu0 %vm21974_vm0, %v24697_v0  ;;  %v7704_v35 = vadd.f32 %v24244_v46, %v7266_v37  ;;  %20606 = vst [vmem:[#allocation2 + $0x60] sm:$0xff] %v20605_v28 }
 0x575   : > { %v4540_v41 = vpop.f32.mrb[26].mxu1 }
 0x576   : > { %v8142_v32 = vadd.f32 %v24519_v18, %v7704_v35  ;;  %v20611_v6 = vadd.f32 %v24697_v0, %v4540_v41  ;;  %v18032_v17 = vpop.f32.mrb[27].mxu1  ;;  %v9547_v18 = vld [vmem:[%s22085_s11 + $0x79] sm:$0xff] }
 0x577   : > { %19144 = vmatmul.mubr.msk.f32.gmra.mrb[8].mxu0 %vm373_vm1, %v9545_v45 }
 0x578   : > { %19146 = vmatprep.mubr.msk.f32.mxu0 %vm21974_vm0, %v24697_v0  ;;  %v8580_v29 = vadd.f32 %v24791_v26, %v8142_v32  ;;  %20612 = vst [vmem:[#allocation2 + $0x68] sm:$0xff] %v20611_v6  ;;  %v9548_v26 = vld [vmem:[%s22085_s11 + $0x81] sm:$0xff] }
 0x579   : > { %v4545_v2 = vpop.f32.mrb[28].mxu1 }
 0x57a   : > { %v24989_v46 = vadd.f32 %v8900_v62, %v8580_v29  ;;  %v20617_v63 = vadd.f32 %v24697_v0, %v4545_v2  ;;  %v18035_v42 = vpop.f32.mrb[29].mxu1  ;;  %v9549_v62 = vld [vmem:[%s22085_s11 + $0x89] sm:$0xff] }
 0x57b   : > { %19147 = vmatmul.mubr.msk.f32.gmra.mrb[10].mxu0 %vm373_vm1, %v9546_v30 }
 0x57c   : > { %19149 = vmatprep.mubr.msk.f32.mxu0 %vm21974_vm0, %v24697_v0  ;;  %20618 = vst [vmem:[#allocation2 + $0x70] sm:$0xff] %v20617_v63 }
 0x57d   : > { %v4550_v58 = vpop.f32.mrb[30].mxu1 }
 0x57e   : > { %v20623_v54 = vadd.f32 %v24697_v0, %v4550_v58  ;;  %v18038_v16 = vpop.f32.mrb[31].mxu1 }
 0x57f   : > { %19150 = vmatmul.mubr.msk.f32.gmra.mrb[12].mxu0 %vm373_vm1, %v9547_v18 }
 0x580   : > { %19152 = vmatprep.mubr.msk.f32.mxu0 %vm21974_vm0, %v24697_v0  ;;  %20624 = vst [vmem:[#allocation2 + $0x78] sm:$0xff] %v20623_v54 }
 0x581   : > { %v4555_v52 = vpop.f32.mrb[32].mxu1 }
 0x582   : > { %v20629_v49 = vadd.f32 %v24697_v0, %v4555_v52  ;;  %v18041_v55 = vpop.f32.mrb[33].mxu1  ;;  %v9558_v52 = vld [vmem:[%s22085_s11 + $0xd1] sm:$0xff] }
 0x583   : > { %19153 = vmatmul.mubr.msk.f32.gmra.mrb[14].mxu0 %vm373_vm1, %v9548_v26 }
 0x584   : > { %19155 = vmatprep.mubr.msk.f32.mxu0 %vm21974_vm0, %v24697_v0  ;;  %20630 = vst [vmem:[#allocation2 + $0x80] sm:$0xff] %v20629_v49 }
 0x585   : > { %v4560_v13 = vpop.f32.mrb[34].mxu1 }
 0x586   : > { %v20635_v34 = vadd.f32 %v24697_v0, %v4560_v13  ;;  %v18044_v14 = vpop.f32.mrb[35].mxu1  ;;  %v9559_v13 = vld [vmem:[%s22085_s11 + $0xd9] sm:$0xff] }
 0x587   : > { %19156 = vmatmul.mubr.msk.f32.gmra.mrb[16].mxu0 %vm373_vm1, %v9549_v62 }
 0x588   : > { %19158 = vmatprep.mubr.msk.f32.mxu0 %vm21974_vm0, %v24697_v0  ;;  %20636 = vst [vmem:[#allocation2 + $0x88] sm:$0xff] %v20635_v34 }
 0x589   : > { %v4565_v48 = vpop.f32.mrb[130].mxu1 }
 0x58a   : > { %v8945_v12 = vpop.f32.mrb[130].mxu0  ;;  %v4647_v7 = vadd.f32 %v4565_v48, %v24836_v11  ;;  %v18047_v4 = vpop.f32.mrb[131].mxu1  ;;  %v9552_v11 = vld [vmem:[%s22085_s11 + $0xa1] sm:$0xff] }
 0x58b   : > { %v18997_v20 = vpop.f32.mrb[131].mxu0  ;;  %19159 = vmatmul.mubr.msk.f32.gmra.mrb[144].mxu0 %vm373_vm1, %v9550_v27 }
 0x58c   : > { %19161 = vmatprep.mubr.msk.f32.mxu0 %vm21974_vm0, %v24697_v0  ;;  %v5085_v50 = vadd.f32 %v22685_v31, %v4647_v7  ;;  %v9560_v7 = vld [vmem:[%s22085_s11 + $0xe1] sm:$0xff] }
 0x58d   : > { %v4570_v10 = vpop.f32.mrb[38].mxu1 }
 0x58e   : > { %v5523_v23 = vadd.f32 %v22951_v43, %v5085_v50  ;;  %v20641_v57 = vadd.f32 %v24697_v0, %v4570_v10  ;;  %v18050_v24 = vpop.f32.mrb[39].mxu1  ;;  %v9553_v43 = vld [vmem:[%s22085_s11 + $0xa9] sm:$0xff] }
 0x58f   : > { %19162 = vmatmul.mubr.msk.f32.gmra.mrb[20].mxu0 %vm373_vm1, %v9551_v60 }
 0x590   : > { %19164 = vmatprep.mubr.msk.f32.mxu0 %vm21974_vm0, %v24697_v0  ;;  %v5961_v21 = vadd.f32 %v23215_v61, %v5523_v23  ;;  %20642 = vst [vmem:[#allocation2 + $0x98] sm:$0xff] %v20641_v57 }
 0x591   : > { %v4575_v53 = vpop.f32.mrb[40].mxu1 }
 0x592   : > { %v6399_v31 = vadd.f32 %v23496_v15, %v5961_v21  ;;  %v20647_v9 = vadd.f32 %v24697_v0, %v4575_v53  ;;  %v18053_v37 = vpop.f32.mrb[41].mxu1  ;;  %v9554_v15 = vld [vmem:[%s22085_s11 + $0xb1] sm:$0xff] }
 0x593   : > { %19165 = vmatmul.mubr.msk.f32.gmra.mrb[22].mxu0 %vm373_vm1, %v9552_v11 }
 0x594   : > { %19167 = vmatprep.mubr.msk.f32.mxu0 %vm21974_vm0, %v24697_v0  ;;  %v6837_v28 = vadd.f32 %v23772_v5, %v6399_v31  ;;  %20648 = vst [vmem:[#allocation2 + $0xa0] sm:$0xff] %v20647_v9 }
 0x595   : > { %v4580_v39 = vpop.f32.mrb[42].mxu1 }
 0x596   : > { %v7275_v61 = vadd.f32 %v24050_v8, %v6837_v28  ;;  %v20653_v45 = vadd.f32 %v24697_v0, %v4580_v39  ;;  %v18056_v35 = vpop.f32.mrb[43].mxu1  ;;  %v9555_v8 = vld [vmem:[%s22085_s11 + $0xb9] sm:$0xff]  ;;  %v9564_v39 = vld [vmem:[%s22085_s11 + $0x101] sm:$0xff] }
 0x597   : > { %19168 = vmatmul.mubr.msk.f32.gmra.mrb[24].mxu0 %vm373_vm1, %v9553_v43  ;;  %v9569_v35 = vld [vmem:[%s22085_s11 + $0x129] sm:$0xff] }
 0x598   : > { %19170 = vmatprep.mubr.msk.f32.mxu0 %vm21974_vm0, %v24697_v0  ;;  %v7713_v41 = vadd.f32 %v24325_v25, %v7275_v61  ;;  %20654 = vst [vmem:[#allocation2 + $0xa8] sm:$0xff] %v20653_v45  ;;  %v9568_v45 = vld [vmem:[%s22085_s11 + $0x121] sm:$0xff] }
 0x599   : > { %v4585_v32 = vpop.f32.mrb[44].mxu1 }
 0x59a   : > { %v8151_v5 = vadd.f32 %v24597_v56, %v7713_v41  ;;  %v20659_v6 = vadd.f32 %v24697_v0, %v4585_v32  ;;  %v18059_v17 = vpop.f32.mrb[45].mxu1  ;;  %v9556_v56 = vld [vmem:[%s22085_s11 + $0xc1] sm:$0xff]  ;;  %v9571_v41 = vld [vmem:[%s22085_s11 + $0x139] sm:$0xff]  ;;  %v9979_v32 = vld [vmem:[%s22085_s11 + $0x4a] sm:$0xff] }
 0x59b   : > { %19171 = vmatmul.mubr.msk.f32.gmra.mrb[26].mxu0 %vm373_vm1, %v9554_v15  ;;  %v9570_v15 = vld [vmem:[%s22085_s11 + $0x131] sm:$0xff] }
 0x59c   : > { %19173 = vmatprep.mubr.msk.f32.mxu0 %vm21974_vm0, %v24697_v0  ;;  %v8589_v30 = vadd.f32 %v24833_v33, %v8151_v5  ;;  %20660 = vst [vmem:[#allocation2 + $0xb0] sm:$0xff] %v20659_v6  ;;  %v9557_v33 = vld [vmem:[%s22085_s11 + $0xc9] sm:$0xff]  ;;  %v10385_v5 = vld [vmem:[%s26874_s1 + $0xb8] sm:$0xff] }
 0x59d   : > { %v4590_v29 = vpop.f32.mrb[46].mxu1 }
 0x59e   : > { %v25045_v25 = vadd.f32 %v8945_v12, %v8589_v30  ;;  %v20665_v2 = vadd.f32 %v24697_v0, %v4590_v29  ;;  %v18062_v63 = vpop.f32.mrb[47].mxu1  ;;  %v9980_v30 = vld [vmem:[%s22085_s11 + $0x52] sm:$0xff]  ;;  %v9982_v29 = vld [vmem:[%s22085_s11 + $0x62] sm:$0xff] }
 0x59f   : > { %19174 = vmatmul.mubr.msk.f32.gmra.mrb[28].mxu0 %vm373_vm1, %v9555_v8  ;;  %v9984_v63 = vld [vmem:[%s22085_s11 + $0x72] sm:$0xff] }
 0x5a0   : > { %19176 = vmatprep.mubr.msk.f32.mxu0 %vm21974_vm0, %v24697_v0  ;;  %20666 = vst [vmem:[#allocation2 + $0xb8] sm:$0xff] %v20665_v2  ;;  %v9983_v2 = vld [vmem:[%s22085_s11 + $0x6a] sm:$0xff] }
 0x5a1   : > { %v4595_v42 = vpop.f32.mrb[48].mxu1 }
 0x5a2   : > { %v20671_v18 = vadd.f32 %v24697_v0, %v4595_v42  ;;  %v18065_v58 = vpop.f32.mrb[49].mxu1  ;;  %v9986_v42 = vld [vmem:[%s22085_s11 + $0x82] sm:$0xff] }
 0x5a3   : > { %19177 = vmatmul.mubr.msk.f32.gmra.mrb[30].mxu0 %vm373_vm1, %v9556_v56  ;;  %v9985_v56 = vld [vmem:[%s22085_s11 + $0x7a] sm:$0xff]  ;;  %v9988_v58 = vld [vmem:[%s22085_s11 + $0x92] sm:$0xff] }
 0x5a4   : > { %19179 = vmatprep.mubr.msk.f32.mxu0 %vm21974_vm0, %v24697_v0  ;;  %20672 = vst [vmem:[#allocation2 + $0xc0] sm:$0xff] %v20671_v18  ;;  %v9987_v18 = vld [vmem:[%s22085_s11 + $0x8a] sm:$0xff] }
 0x5a5   : > { %v4600_v54 = vpop.f32.mrb[50].mxu1 }
 0x5a6   : > { %v20677_v16 = vadd.f32 %v24697_v0, %v4600_v54  ;;  %v18068_v26 = vpop.f32.mrb[51].mxu1 }
 0x5a7   : > { %19180 = vmatmul.mubr.msk.f32.gmra.mrb[32].mxu0 %vm373_vm1, %v9557_v33  ;;  %v9989_v26 = vld [vmem:[%s22085_s11 + $0x9a] sm:$0xff] }
 0x5a8   : > { %19182 = vmatprep.mubr.msk.f32.mxu0 %vm21974_vm0, %v24697_v0  ;;  %20678 = vst [vmem:[#allocation2 + $0xc8] sm:$0xff] %v20677_v16 }
 0x5a9   : > { %v4605_v49 = vpop.f32.mrb[52].mxu1 }
 0x5aa   : > { %v20683_v55 = vadd.f32 %v24697_v0, %v4605_v49  ;;  %v18071_v62 = vpop.f32.mrb[53].mxu1  ;;  %v9992_v49 = vld [vmem:[%s22085_s11 + $0xb2] sm:$0xff] }
 0x5ab   : > { %19183 = vmatmul.mubr.msk.f32.gmra.mrb[34].mxu0 %vm373_vm1, %v9558_v52  ;;  %v9990_v52 = vld [vmem:[%s22085_s11 + $0xa2] sm:$0xff] }
 0x5ac   : > { %19185 = vmatprep.mubr.msk.f32.mxu0 %vm21974_vm0, %v24697_v0  ;;  %20684 = vst [vmem:[#allocation2 + $0xd0] sm:$0xff] %v20683_v55  ;;  %v9993_v55 = vld [vmem:[%s22085_s11 + $0xba] sm:$0xff]  ;;  %v9994_v62 = vld [vmem:[%s22085_s11 + $0xc2] sm:$0xff] }
 0x5ad   : > { %v4610_v34 = vpop.f32.mrb[132].mxu1 }
 0x5ae   : > { %v8990_v14 = vpop.f32.mrb[132].mxu0  ;;  %v4656_v27 = vadd.f32 %v4610_v34, %v24877_v19  ;;  %v18074_v12 = vpop.f32.mrb[133].mxu1  ;;  %v9561_v19 = vld [vmem:[%s22085_s11 + $0xe9] sm:$0xff]  ;;  %v9996_v34 = vld [vmem:[%s22085_s11 + $0xd2] sm:$0xff] }
 0x5af   : > { %v19024_v48 = vpop.f32.mrb[133].mxu0  ;;  %19186 = vmatmul.mubr.msk.f32.gmra.mrb[146].mxu0 %vm373_vm1, %v9559_v13  ;;  %v9995_v13 = vld [vmem:[%s22085_s11 + $0xca] sm:$0xff] }
 0x5b0   : > { %19188 = vmatprep.mubr.msk.f32.mxu0 %vm21974_vm0, %v24697_v0  ;;  %v5094_v20 = vadd.f32 %v22761_v51, %v4656_v27 }
 0x5b1   : > { %v4615_v4 = vpop.f32.mrb[56].mxu1 }
 0x5b2   : > { %v5532_v60 = vadd.f32 %v23025_v3, %v5094_v20  ;;  %v20689_v50 = vadd.f32 %v24697_v0, %v4615_v4  ;;  %v18077_v10 = vpop.f32.mrb[57].mxu1  ;;  %v9562_v3 = vld [vmem:[%s22085_s11 + $0xf1] sm:$0xff]  ;;  %v9998_v20 = vld [vmem:[%s22085_s11 + $0xe2] sm:$0xff] }
 0x5b3   : > { %19189 = vmatmul.mubr.msk.f32.gmra.mrb[38].mxu0 %vm373_vm1, %v9560_v7  ;;  %v25223_v7 = vld [vmem:[#allocation3] sm:$0xff] }
 0x5b4   : > { %19191 = vmatprep.mubr.msk.f32.mxu0 %vm21974_vm0, %v24697_v0  ;;  %v5970_v23 = vadd.f32 %v23291_v38, %v5532_v60  ;;  %20690 = vst [vmem:[#allocation2 + $0xe0] sm:$0xff] %v20689_v50  ;;  %v10000_v4 = vld [vmem:[%s22085_s11 + $0xf2] sm:$0xff]  ;;  %v10001_v60 = vld [vmem:[%s22085_s11 + $0xfa] sm:$0xff] }
 0x5b5   : > { %v4620_v57 = vpop.f32.mrb[58].mxu1 }
 0x5b6   : > { %v6408_v51 = vadd.f32 %v23573_v44, %v5970_v23  ;;  %v20695_v24 = vadd.f32 %v24697_v0, %v4620_v57  ;;  %v18080_v11 = vpop.f32.mrb[59].mxu1  ;;  %v9563_v44 = vld [vmem:[%s22085_s11 + $0xf9] sm:$0xff]  ;;  %v10002_v23 = vld [vmem:[%s22085_s11 + $0x102] sm:$0xff]  ;;  %v10003_v57 = vld [vmem:[%s22085_s11 + $0x10a] sm:$0xff] }
 0x5b7   : > { %19192 = vmatmul.mubr.msk.f32.gmra.mrb[40].mxu0 %vm373_vm1, %v9561_v19  ;;  %v10006_v11 = vld [vmem:[%s22085_s11 + $0x122] sm:$0xff] }
 0x5b8   : > { %19194 = vmatprep.mubr.msk.f32.mxu0 %vm21974_vm0, %v24697_v0  ;;  %v6846_v21 = vadd.f32 %v23849_v40, %v6408_v51  ;;  %20696 = vst [vmem:[#allocation2 + $0xe8] sm:$0xff] %v20695_v24  ;;  %v10004_v51 = vld [vmem:[%s22085_s11 + $0x112] sm:$0xff]  ;;  %v10005_v24 = vld [vmem:[%s22085_s11 + $0x11a] sm:$0xff] }
 0x5b9   : > { %v4625_v53 = vpop.f32.mrb[60].mxu1 }
 0x5ba   : > { %v7284_v38 = vadd.f32 %v24127_v47, %v6846_v21  ;;  %v20701_v31 = vadd.f32 %v24697_v0, %v4625_v53  ;;  %v18083_v9 = vpop.f32.mrb[61].mxu1  ;;  %v10008_v21 = vld [vmem:[%s22085_s11 + $0x132] sm:$0xff]  ;;  %v10009_v53 = vld [vmem:[%s22085_s11 + $0x13a] sm:$0xff] }
 0x5bb   : > { %19195 = vmatmul.mubr.msk.f32.gmra.mrb[42].mxu0 %vm373_vm1, %v9562_v3  ;;  %v10007_v3 = vld [vmem:[%s22085_s11 + $0x12a] sm:$0xff] }
 0x5bc   : > { %19197 = vmatprep.mubr.msk.f32.mxu0 %vm21974_vm0, %v24697_v0  ;;  %v7722_v37 = vadd.f32 %v24402_v22, %v7284_v38  ;;  %20702 = vst [vmem:[#allocation2 + $0xf0] sm:$0xff] %v20701_v31  ;;  %v10417_v38 = vld [vmem:[%s22085_s11 + $0x4b] sm:$0xff]  ;;  %v10823_v31 = vld [vmem:[%s26874_s1 + $0xc0] sm:$0xff] }
 0x5be   : > { %v9293_v40 = vpop.f32.mrb[134].mxu0  ;;  %v8160_v43 = vadd.f32 %v24674_v36, %v7722_v37  ;;  %v9565_v36 = vld [vmem:[%s22085_s11 + $0x109] sm:$0xff] }
 0x5bf   : > { %v25096_v47 = vadd.f32 %v9293_v40, %v24929_v1  ;;  %v19038_v28 = vpop.f32.mrb[135].mxu0  ;;  %19198 = vmatmul.mubr.msk.f32.gmra.mrb[44].mxu0 %vm373_vm1, %v9563_v44  ;;  %v9566_v1 = vld [vmem:[%s22085_s11 + $0x111] sm:$0xff] }
 0x5c0   : > { %19200 = vmatprep.mubr.msk.f32.mxu0 %vm21974_vm0, %v24697_v0  ;;  %v8598_v61 = vadd.f32 %v24874_v59, %v8160_v43  ;;  %v9567_v59 = vld [vmem:[%s22085_s11 + $0x119] sm:$0xff]  ;;  %v10421_v28 = vld [vmem:[%s22085_s11 + $0x6b] sm:$0xff] }
 0x5c1   : > { %v10418_v40 = vld [vmem:[%s22085_s11 + $0x53] sm:$0xff]  ;;  %v10419_v43 = vld [vmem:[%s22085_s11 + $0x5b] sm:$0xff] }
 0x5c2   : > { %v25103_v22 = vadd.f32 %v8990_v14, %v8598_v61  ;;  %v9997_v14 = vld [vmem:[%s22085_s11 + $0xda] sm:$0xff] }
 0x5c3   : > { %19201 = vmatmul.mubr.msk.f32.gmra.mrb[46].mxu0 %vm373_vm1, %v9564_v39  ;;  %v10422_v39 = vld [vmem:[%s22085_s11 + $0x73] sm:$0xff]  ;;  %v10423_v61 = vld [vmem:[%s22085_s11 + $0x7b] sm:$0xff] }
 0x5c4   : > { %19203 = vmatprep.mubr.msk.f32.mxu0 %vm21974_vm0, %v24697_v0 }
 0x5c7   : > { %19204 = vmatmul.mubr.msk.f32.gmra.mrb[48].mxu0 %vm373_vm1, %v9565_v36  ;;  %v10425_v36 = vld [vmem:[%s22085_s11 + $0x8b] sm:$0xff] }
 0x5c8   : > { %19206 = vmatprep.mubr.msk.f32.mxu0 %vm21974_vm0, %v24697_v0 }
 0x5cb   : > { %19207 = vmatmul.mubr.msk.f32.gmra.mrb[50].mxu0 %vm373_vm1, %v9566_v1  ;;  %v10426_v1 = vld [vmem:[%s22085_s11 + $0x93] sm:$0xff] }
 0x5cc   : > { %19209 = vmatprep.mubr.msk.f32.mxu0 %vm21974_vm0, %v24697_v0 }
 0x5cf   : > { %19210 = vmatmul.mubr.msk.f32.gmra.mrb[52].mxu0 %vm373_vm1, %v9567_v59 }
 0x5d0   : > { %19212 = vmatprep.mubr.msk.f32.mxu0 %vm21974_vm0, %v24697_v0 }
 0x5d3   : > { %19213 = vmatmul.mubr.msk.f32.gmra.mrb[148].mxu0 %vm373_vm1, %v9568_v45 }
 0x5d4   : > { %19215 = vmatprep.mubr.msk.f32.mxu0 %vm21974_vm0, %v24697_v0 }
 0x5d7   : > { %19216 = vmatmul.mubr.msk.f32.gmra.mrb[56].mxu0 %vm373_vm1, %v9569_v35 }
 0x5d8   : > { %19218 = vmatprep.mubr.msk.f32.mxu0 %vm21974_vm0, %v24697_v0 }
 0x5db   : > { %19219 = vmatmul.mubr.msk.f32.gmra.mrb[58].mxu0 %vm373_vm1, %v9570_v15  ;;  %v10427_v15 = vld [vmem:[%s22085_s11 + $0x9b] sm:$0xff] }
 0x5dc   : > { %19221 = vmatprep.mubr.msk.f32.mxu0 %vm21974_vm0, %v24697_v0 }
 0x5df   : > { %19222 = vmatmul.mubr.msk.f32.gmra.mrb[60].mxu0 %vm373_vm1, %v9571_v41  ;;  %v10428_v41 = vld [vmem:[%s22085_s11 + $0xa3] sm:$0xff] }
 0x5e0   : > { %19226 = vmatprep.mubr.msk.f32.mxu0 %vm21974_vm0, %v24697_v0 }
 0x5e2   : > { %v9338_v6 = vpop.f32.mrb[136].mxu0 }
 0x5e3   : > { %v25141_v17 = vadd.f32 %v9338_v6, %v24989_v46  ;;  %v19065_v8 = vpop.f32.mrb[137].mxu0  ;;  %19227 = vmatmul.mubr.msk.f32.vlgmr.msra.gmra.mrb[150].mxu0 %vm373_vm1, %v9979_v32  ;;  %v9981_v46 = vld [vmem:[%s22085_s11 + $0x5a] sm:$0xff]  ;;  %v10429_v32 = vld [vmem:[%s22085_s11 + $0xab] sm:$0xff] }
 0x5e4   : > { %19320 = vmatpush3.msra.mxu0 %v10385_v5  ;;  %19229 = vmatprep.mubr.msk.f32.mxu0 %vm21974_vm0, %v24697_v0  ;;  %v10430_v5 = vld [vmem:[%s22085_s11 + $0xb3] sm:$0xff]  ;;  %v10431_v6 = vld [vmem:[%s22085_s11 + $0xbb] sm:$0xff]  ;;  %v10433_v8 = vld [vmem:[%s22085_s11 + $0xcb] sm:$0xff] }
 0x5e5   : > { %19414 = vmatprep.subr.mxu0 %v24697_v0 }
 0x5e7   : > { %19230 = vmatmul.mubr.msk.f32.gmra.mrb[2].mxu0 %vm373_vm1, %v9980_v30  ;;  %v10434_v30 = vld [vmem:[%s22085_s11 + $0xd3] sm:$0xff] }
 0x5e8   : > { %19232 = vmatprep.mubr.msk.f32.mxu0 %vm21974_vm0, %v24697_v0 }
 0x5eb   : > { %19233 = vmatmul.mubr.msk.f32.gmra.mrb[4].mxu0 %vm373_vm1, %v9981_v46  ;;  %v10435_v46 = vld [vmem:[%s22085_s11 + $0xdb] sm:$0xff] }
 0x5ec   : > { %19235 = vmatprep.mubr.msk.f32.mxu0 %vm21974_vm0, %v24697_v0 }
 0x5ef   : > { %19236 = vmatmul.mubr.msk.f32.gmra.mrb[6].mxu0 %vm373_vm1, %v9982_v29 }
 0x5f0   : > { %19238 = vmatprep.mubr.msk.f32.mxu0 %vm21974_vm0, %v24697_v0 }
 0x5f3   : > { %19239 = vmatmul.mubr.msk.f32.gmra.mrb[8].mxu0 %vm373_vm1, %v9983_v2 }
 0x5f4   : > { %19241 = vmatprep.mubr.msk.f32.mxu0 %vm21974_vm0, %v24697_v0 }
 0x5f7   : > { %19242 = vmatmul.mubr.msk.f32.gmra.mrb[10].mxu0 %vm373_vm1, %v9984_v63 }
 0x5f8   : > { %19244 = vmatprep.mubr.msk.f32.mxu0 %vm21974_vm0, %v24697_v0 }
 0x5fb   : > { %19245 = vmatmul.mubr.msk.f32.gmra.mrb[12].mxu0 %vm373_vm1, %v9985_v56  ;;  %v10436_v56 = vld [vmem:[%s22085_s11 + $0xe3] sm:$0xff] }
 0x5fc   : > { %19247 = vmatprep.mubr.msk.f32.mxu0 %vm21974_vm0, %v24697_v0 }
 0x5ff   : > { %19248 = vmatmul.mubr.msk.f32.gmra.mrb[14].mxu0 %vm373_vm1, %v9986_v42  ;;  %v10437_v42 = vld [vmem:[%s22085_s11 + $0xeb] sm:$0xff] }
 0x600   : > { %19250 = vmatprep.mubr.msk.f32.mxu0 %vm21974_vm0, %v24697_v0 }
 0x603   : > { %19251 = vmatmul.mubr.msk.f32.gmra.mrb[16].mxu0 %vm373_vm1, %v9987_v18  ;;  %v10438_v18 = vld [vmem:[%s22085_s11 + $0xf3] sm:$0xff] }
 0x604   : > { %19253 = vmatprep.mubr.msk.f32.mxu0 %vm21974_vm0, %v24697_v0 }
 0x606   : > { %v9383_v33 = vpop.f32.mrb[138].mxu0 }
 0x607   : > { %v25181_v54 = vadd.f32 %v9383_v33, %v25045_v25  ;;  %v19092_v16 = vpop.f32.mrb[139].mxu0  ;;  %19254 = vmatmul.mubr.msk.f32.gmra.mrb[152].mxu0 %vm373_vm1, %v9988_v58  ;;  %v9991_v25 = vld [vmem:[%s22085_s11 + $0xaa] sm:$0xff]  ;;  %v10439_v58 = vld [vmem:[%s22085_s11 + $0xfb] sm:$0xff] }
 0x608   : > { %19256 = vmatprep.mubr.msk.f32.mxu0 %vm21974_vm0, %v24697_v0 }
 0x60b   : > { %19257 = vmatmul.mubr.msk.f32.gmra.mrb[20].mxu0 %vm373_vm1, %v9989_v26  ;;  %v10440_v26 = vld [vmem:[%s22085_s11 + $0x103] sm:$0xff] }
 0x60c   : > { %19259 = vmatprep.mubr.msk.f32.mxu0 %vm21974_vm0, %v24697_v0 }
 0x60f   : > { %19260 = vmatmul.mubr.msk.f32.gmra.mrb[22].mxu0 %vm373_vm1, %v9990_v52  ;;  %v10441_v52 = vld [vmem:[%s22085_s11 + $0x10b] sm:$0xff] }
 0x610   : > { %19262 = vmatprep.mubr.msk.f32.mxu0 %vm21974_vm0, %v24697_v0 }
 0x613   : > { %19263 = vmatmul.mubr.msk.f32.gmra.mrb[24].mxu0 %vm373_vm1, %v9991_v25  ;;  %v10442_v25 = vld [vmem:[%s22085_s11 + $0x113] sm:$0xff] }
 0x614   : > { %19265 = vmatprep.mubr.msk.f32.mxu0 %vm21974_vm0, %v24697_v0 }
 0x617   : > { %19266 = vmatmul.mubr.msk.f32.gmra.mrb[26].mxu0 %vm373_vm1, %v9992_v49  ;;  %v10443_v49 = vld [vmem:[%s22085_s11 + $0x11b] sm:$0xff] }
 0x618   : > { %19268 = vmatprep.mubr.msk.f32.mxu0 %vm21974_vm0, %v24697_v0 }
 0x61b   : > { %19269 = vmatmul.mubr.msk.f32.gmra.mrb[28].mxu0 %vm373_vm1, %v9993_v55  ;;  %v10444_v55 = vld [vmem:[%s22085_s11 + $0x123] sm:$0xff] }
 0x61c   : > { %19271 = vmatprep.mubr.msk.f32.mxu0 %vm21974_vm0, %v24697_v0 }
 0x61f   : > { %19272 = vmatmul.mubr.msk.f32.gmra.mrb[30].mxu0 %vm373_vm1, %v9994_v62  ;;  %v10445_v62 = vld [vmem:[%s22085_s11 + $0x12b] sm:$0xff] }
 0x620   : > { %19274 = vmatprep.mubr.msk.f32.mxu0 %vm21974_vm0, %v24697_v0 }
 0x623   : > { %19275 = vmatmul.mubr.msk.f32.gmra.mrb[32].mxu0 %vm373_vm1, %v9995_v13  ;;  %v10446_v13 = vld [vmem:[%s22085_s11 + $0x133] sm:$0xff] }
 0x624   : > { %19277 = vmatprep.mubr.msk.f32.mxu0 %vm21974_vm0, %v24697_v0 }
 0x627   : > { %19278 = vmatmul.mubr.msk.f32.gmra.mrb[34].mxu0 %vm373_vm1, %v9996_v34  ;;  %v10447_v34 = vld [vmem:[%s22085_s11 + $0x13b] sm:$0xff] }
 0x628   : > { %19280 = vmatprep.mubr.msk.f32.mxu0 %vm21974_vm0, %v24697_v0  ;;  %v9999_v0 = vld [vmem:[%s22085_s11 + $0xea] sm:$0xff] }
 0x62a   : > { %v9428_v27 = vpop.f32.mrb[140].mxu0 }
 0x62b   : > { %v25220_v48 = vadd.f32 %v9428_v27, %v25103_v22  ;;  %v19119_v12 = vpop.f32.mrb[141].mxu0  ;;  %19281 = vmatmul.mubr.msk.f32.gmra.mrb[154].mxu0 %vm373_vm1, %v9997_v14  ;;  %v10424_v22 = vld [vmem:[%s22085_s11 + $0x83] sm:$0xff]  ;;  %v10855_v14 = vld [vmem:[%s22085_s11 + $0x4c] sm:$0xff] }
 0x62c   : > { %19283 = vmatprep.mubr.msk.f32.mxu0 %vm21974_vm0, %v25223_v7 }
 0x62f   : > { %19284 = vmatmul.mubr.msk.f32.gmra.mrb[38].mxu0 %vm373_vm1, %v9998_v20  ;;  %v10856_v20 = vld [vmem:[%s22085_s11 + $0x54] sm:$0xff] }
 0x630   : > { %19286 = vmatprep.mubr.msk.f32.mxu0 %vm21974_vm0, %v25223_v7 }
 0x633   : > { %19287 = vmatmul.mubr.msk.f32.gmra.mrb[40].mxu0 %vm373_vm1, %v9999_v0  ;;  %v10857_v0 = vld [vmem:[%s22085_s11 + $0x5c] sm:$0xff] }
 0x634   : > { %19289 = vmatprep.mubr.msk.f32.mxu0 %vm21974_vm0, %v25223_v7 }
 0x637   : > { %19290 = vmatmul.mubr.msk.f32.gmra.mrb[42].mxu0 %vm373_vm1, %v10000_v4  ;;  %v10858_v4 = vld [vmem:[%s22085_s11 + $0x64] sm:$0xff] }
 0x638   : > { %19292 = vmatprep.mubr.msk.f32.mxu0 %vm21974_vm0, %v25223_v7 }
 0x63a   : > { %v9731_v50 = vpop.f32.mrb[142].mxu0 }
 0x63b   : > { %v25241_v10 = vadd.f32 %v9731_v50, %v25096_v47  ;;  %v19133_v19 = vpop.f32.mrb[143].mxu0  ;;  %19293 = vmatmul.mubr.msk.f32.gmra.mrb[44].mxu0 %vm373_vm1, %v10001_v60  ;;  %v10420_v47 = vld [vmem:[%s22085_s11 + $0x63] sm:$0xff]  ;;  %v10859_v60 = vld [vmem:[%s22085_s11 + $0x6c] sm:$0xff]  ;;  %v10860_v50 = vld [vmem:[%s22085_s11 + $0x74] sm:$0xff] }
 0x63c   : > { %19295 = vmatprep.mubr.msk.f32.mxu0 %vm21974_vm0, %v25223_v7  ;;  %v10862_v19 = vld [vmem:[%s22085_s11 + $0x84] sm:$0xff] }
 0x63f   : > { %19296 = vmatmul.mubr.msk.f32.gmra.mrb[46].mxu0 %vm373_vm1, %v10002_v23  ;;  %v10863_v23 = vld [vmem:[%s22085_s11 + $0x8c] sm:$0xff] }
 0x640   : > { %19298 = vmatprep.mubr.msk.f32.mxu0 %vm21974_vm0, %v25223_v7 }
 0x643   : > { %19299 = vmatmul.mubr.msk.f32.gmra.mrb[48].mxu0 %vm373_vm1, %v10003_v57  ;;  %v11442_v57 = vld [vmem:[%s26876_s3] sm:$0xff] }
 0x644   : > { %19301 = vmatprep.mubr.msk.f32.mxu0 %vm21974_vm0, %v25223_v7 }
 0x647   : > { %19302 = vmatmul.mubr.msk.f32.gmra.mrb[50].mxu0 %vm373_vm1, %v10004_v51  ;;  %v11443_v51 = vld [vmem:[%s26876_s3 + $0x8] sm:$0xff] }
 0x648   : > { %19304 = vmatprep.mubr.msk.f32.mxu0 %vm21974_vm0, %v25223_v7 }
 0x64b   : > { %19305 = vmatmul.mubr.msk.f32.gmra.mrb[52].mxu0 %vm373_vm1, %v10005_v24  ;;  %v11444_v24 = vld [vmem:[%s26876_s3 + $0x10] sm:$0xff] }
 0x64c   : > { %19307 = vmatprep.mubr.msk.f32.mxu0 %vm21974_vm0, %v25223_v7 }
 0x64f   : > { %19308 = vmatmul.mubr.msk.f32.gmra.mrb[156].mxu0 %vm373_vm1, %v10006_v11  ;;  %v10864_v11 = vld [vmem:[%s22085_s11 + $0x94] sm:$0xff] }
 0x650   : > { %19310 = vmatprep.mubr.msk.f32.mxu0 %vm21974_vm0, %v25223_v7 }
 0x653   : > { %19311 = vmatmul.mubr.msk.f32.gmra.mrb[56].mxu0 %vm373_vm1, %v10007_v3  ;;  %v20239_v3 = vpack.c.bf16 %v11443_v51, %v11442_v57  ;;  %v11778_v51 = vld [vmem:[%s26876_s3 + $0x98] sm:$0xff] }
 0x654   : > { %19313 = vmatprep.mubr.msk.f32.mxu0 %vm21974_vm0, %v25223_v7 }
 0x655   : > { %20240 = vmatprep.subr.bf16.mxu1 %v20239_v3 }
 0x656   : > { %20242 = vmatpush3.bf16.msra.mxu1 %v20239_v3  ;;  %v11780_v3 = vld [vmem:[%s26876_s3 + $0xa8] sm:$0xff] }
 0x657   : > { %19314 = vmatmul.mubr.msk.f32.gmra.mrb[58].mxu0 %vm373_vm1, %v10008_v21  ;;  %v11445_v21 = vld [vmem:[%s26876_s3 + $0x18] sm:$0xff] }
 0x658   : > { %19316 = vmatprep.mubr.msk.f32.mxu0 %vm21974_vm0, %v25223_v7 }
 0x65b   : > { %19317 = vmatmul.mubr.msk.f32.gmra.mrb[60].mxu0 %vm373_vm1, %v10009_v53  ;;  %v20243_v53 = vpack.c.bf16 %v11445_v21, %v11444_v24 }
 0x65c   : > { %19321 = vmatprep.mubr.msk.f32.mxu0 %vm21974_vm0, %v25223_v7 }
 0x65d   : > { %20244 = vmatprep.subr.bf16.mxu1 %v20243_v53 }
 0x65e   : > { %v9776_v9 = vpop.f32.mrb[144].mxu0  ;;  %20246 = vmatpush3.bf16.msra.mxu1 %v20243_v53 }
 0x65f   : > { %v25283_v44 = vadd.f32 %v9776_v9, %v25141_v17  ;;  %v19160_v37 = vpop.f32.mrb[145].mxu0  ;;  %19322 = vmatmul.mubr.msk.f32.vlgmr.msra.gmra.mrb[158].mxu0 %vm373_vm1, %v10417_v38  ;;  %v10432_v17 = vld [vmem:[%s22085_s11 + $0xc3] sm:$0xff] }
 0x660   : > { %19415 = vmatpush3.msra.mxu0 %v10823_v31  ;;  %19324 = vmatprep.mubr.msk.f32.mxu0 %vm21974_vm0, %v25223_v7  ;;  %v10866_v37 = vld [vmem:[%s22085_s11 + $0xa4] sm:$0xff] }
 0x663   : > { %19325 = vmatmul.mubr.msk.f32.gmra.mrb[2].mxu0 %vm373_vm1, %v10418_v40  ;;  %v10867_v40 = vld [vmem:[%s22085_s11 + $0xac] sm:$0xff] }
 0x664   : > { %19327 = vmatprep.mubr.msk.f32.mxu0 %vm21974_vm0, %v25223_v7 }
 0x667   : > { %19328 = vmatmul.mubr.msk.f32.gmra.mrb[4].mxu0 %vm373_vm1, %v10419_v43  ;;  %v10868_v43 = vld [vmem:[%s22085_s11 + $0xb4] sm:$0xff] }
 0x668   : > { %19330 = vmatprep.mubr.msk.f32.mxu0 %vm21974_vm0, %v25223_v7 }
 0x66b   : > { %19331 = vmatmul.mubr.msk.f32.gmra.mrb[6].mxu0 %vm373_vm1, %v10420_v47  ;;  %v10869_v47 = vld [vmem:[%s22085_s11 + $0xbc] sm:$0xff] }
 0x66c   : > { %19333 = vmatprep.mubr.msk.f32.mxu0 %vm21974_vm0, %v25223_v7 }
 0x66f   : > { %19334 = vmatmul.mubr.msk.f32.gmra.mrb[8].mxu0 %vm373_vm1, %v10421_v28  ;;  %v10870_v28 = vld [vmem:[%s22085_s11 + $0xc4] sm:$0xff] }
 0x670   : > { %19336 = vmatprep.mubr.msk.f32.mxu0 %vm21974_vm0, %v25223_v7 }
 0x673   : > { %19337 = vmatmul.mubr.msk.f32.gmra.mrb[10].mxu0 %vm373_vm1, %v10422_v39  ;;  %v10871_v39 = vld [vmem:[%s22085_s11 + $0xcc] sm:$0xff] }
 0x674   : > { %19339 = vmatprep.mubr.msk.f32.mxu0 %vm21974_vm0, %v25223_v7 }
 0x677   : > { %19340 = vmatmul.mubr.msk.f32.gmra.mrb[12].mxu0 %vm373_vm1, %v10423_v61  ;;  %v10872_v61 = vld [vmem:[%s22085_s11 + $0xd4] sm:$0xff] }
 0x678   : > { %19342 = vmatprep.mubr.msk.f32.mxu0 %vm21974_vm0, %v25223_v7 }
 0x67b   : > { %19343 = vmatmul.mubr.msk.f32.gmra.mrb[14].mxu0 %vm373_vm1, %v10424_v22  ;;  %v11446_v22 = vld [vmem:[%s26876_s3 + $0x20] sm:$0xff] }
 0x67c   : > { %19345 = vmatprep.mubr.msk.f32.mxu0 %vm21974_vm0, %v25223_v7 }
 0x67f   : > { %19346 = vmatmul.mubr.msk.f32.gmra.mrb[16].mxu0 %vm373_vm1, %v10425_v36  ;;  %v11447_v36 = vld [vmem:[%s26876_s3 + $0x28] sm:$0xff] }
 0x680   : > { %19348 = vmatprep.mubr.msk.f32.mxu0 %vm21974_vm0, %v25223_v7 }
 0x682   : > { %v9821_v59 = vpop.f32.mrb[146].mxu0 }
 0x683   : > { %v25322_v45 = vadd.f32 %v9821_v59, %v25181_v54  ;;  %v19187_v35 = vpop.f32.mrb[147].mxu0  ;;  %19349 = vmatmul.mubr.msk.f32.gmra.mrb[160].mxu0 %vm373_vm1, %v10426_v1  ;;  %v10873_v1 = vld [vmem:[%s22085_s11 + $0xdc] sm:$0xff]  ;;  %v20247_v59 = vpack.c.bf16 %v11447_v36, %v11446_v22 }
 0x684   : > { %19351 = vmatprep.mubr.msk.f32.mxu0 %vm21974_vm0, %v25223_v7  ;;  %v25648_v36 = vld [vmem:[%s26875_s2] ss:$0 sm:$0xff] }
 0x685   : > { %20248 = vmatprep.subr.bf16.mxu1 %v20247_v59 }
 0x686   : > { %20250 = vmatpush3.bf16.msra.mxu1 %v20247_v59  ;;  %v11788_v59 = vld [vmem:[%s26876_s3 + $0xe8] sm:$0xff] }
 0x687   : > { %19352 = vmatmul.mubr.msk.f32.gmra.mrb[20].mxu0 %vm373_vm1, %v10427_v15 }
 0x688   : > { %19354 = vmatprep.mubr.msk.f32.mxu0 %vm21974_vm0, %v25223_v7 }
 0x68b   : > { %19355 = vmatmul.mubr.msk.f32.gmra.mrb[22].mxu0 %vm373_vm1, %v10428_v41  ;;  %v10874_v41 = vld [vmem:[%s22085_s11 + $0xe4] sm:$0xff] }
 0x68c   : > { %19357 = vmatprep.mubr.msk.f32.mxu0 %vm21974_vm0, %v25223_v7 }
 0x68f   : > { %19358 = vmatmul.mubr.msk.f32.gmra.mrb[24].mxu0 %vm373_vm1, %v10429_v32  ;;  %v11448_v32 = vld [vmem:[%s26876_s3 + $0x30] sm:$0xff] }
 0x690   : > { %19360 = vmatprep.mubr.msk.f32.mxu0 %vm21974_vm0, %v25223_v7 }
 0x693   : > { %19361 = vmatmul.mubr.msk.f32.gmra.mrb[26].mxu0 %vm373_vm1, %v10430_v5  ;;  %v11449_v5 = vld [vmem:[%s26876_s3 + $0x38] sm:$0xff] }
 0x694   : > { %19363 = vmatprep.mubr.msk.f32.mxu0 %vm21974_vm0, %v25223_v7 }
 0x697   : > { %19364 = vmatmul.mubr.msk.f32.gmra.mrb[28].mxu0 %vm373_vm1, %v10431_v6  ;;  %v20251_v6 = vpack.c.bf16 %v11449_v5, %v11448_v32  ;;  %v20547_v5 = vld [vmem:[#allocation2 + $0x8] sm:$0xff] }
 0x698   : > { %19366 = vmatprep.mubr.msk.f32.mxu0 %vm21974_vm0, %v25223_v7 }
 0x699   : > { %20252 = vmatprep.subr.bf16.mxu1 %v20251_v6 }
 0x69a   : > { %20254 = vmatpush3.bf16.msra.mxu1 %v20251_v6  ;;  %v11789_v6 = vld [vmem:[%s26876_s3 + $0xf0] sm:$0xff] }
 0x69b   : > { %19367 = vmatmul.mubr.msk.f32.gmra.mrb[30].mxu0 %vm373_vm1, %v10432_v17  ;;  %v10875_v17 = vld [vmem:[%s22085_s11 + $0xec] sm:$0xff] }
 0x69c   : > { %19369 = vmatprep.mubr.msk.f32.mxu0 %vm21974_vm0, %v25223_v7 }
 0x69f   : > { %19370 = vmatmul.mubr.msk.f32.gmra.mrb[32].mxu0 %vm373_vm1, %v10433_v8  ;;  %v11450_v8 = vld [vmem:[%s26876_s3 + $0x40] sm:$0xff] }
 0x6a0   : > { %19372 = vmatprep.mubr.msk.f32.mxu0 %vm21974_vm0, %v25223_v7 }
 0x6a3   : > { %19373 = vmatmul.mubr.msk.f32.gmra.mrb[34].mxu0 %vm373_vm1, %v10434_v30  ;;  %v11451_v30 = vld [vmem:[%s26876_s3 + $0x48] sm:$0xff] }
 0x6a4   : > { %19375 = vmatprep.mubr.msk.f32.mxu0 %vm21974_vm0, %v25223_v7 }
 0x6a6   : > { %v9866_v29 = vpop.f32.mrb[148].mxu0 }
 0x6a7   : > { %v25361_v2 = vadd.f32 %v9866_v29, %v25220_v48  ;;  %v19214_v63 = vpop.f32.mrb[149].mxu0  ;;  %19376 = vmatmul.mubr.msk.f32.gmra.mrb[162].mxu0 %vm373_vm1, %v10435_v46  ;;  %v20255_v46 = vpack.c.bf16 %v11451_v30, %v11450_v8  ;;  %v10876_v29 = vld [vmem:[%s22085_s11 + $0xf4] sm:$0xff] }
 0x6a8   : > { %19378 = vmatprep.mubr.msk.f32.mxu0 %vm21974_vm0, %v25223_v7  ;;  %v11453_v63 = vld [vmem:[%s26876_s3 + $0x58] sm:$0xff] }
 0x6a9   : > { %20256 = vmatprep.subr.bf16.mxu1 %v20255_v46 }
 0x6aa   : > { %20258 = vmatpush3.bf16.msra.mxu1 %v20255_v46 }
 0x6ab   : > { %19379 = vmatmul.mubr.msk.f32.gmra.mrb[38].mxu0 %vm373_vm1, %v10436_v56 }
 0x6ac   : > { %19381 = vmatprep.mubr.msk.f32.mxu0 %vm21974_vm0, %v25223_v7 }
 0x6af   : > { %19382 = vmatmul.mubr.msk.f32.gmra.mrb[40].mxu0 %vm373_vm1, %v10437_v42  ;;  %v10877_v42 = vld [vmem:[%s22085_s11 + $0xfc] sm:$0xff] }
 0x6b0   : > { %19384 = vmatprep.mubr.msk.f32.mxu0 %vm21974_vm0, %v25223_v7 }
 0x6b3   : > { %19385 = vmatmul.mubr.msk.f32.gmra.mrb[42].mxu0 %vm373_vm1, %v10438_v18  ;;  %v11454_v18 = vld [vmem:[%s26876_s3 + $0x60] sm:$0xff] }
 0x6b4   : > { %19387 = vmatprep.mubr.msk.f32.mxu0 %vm21974_vm0, %v25223_v7 }
 0x6b6   : > { %v10169_v33 = vpop.f32.mrb[150].mxu0 }
 0x6b7   : > { %v25380_v54 = vadd.f32 %v10169_v33, %v25241_v10  ;;  %v19228_v16 = vpop.f32.mrb[151].mxu0  ;;  %19388 = vmatmul.mubr.msk.f32.gmra.mrb[44].mxu0 %vm373_vm1, %v10439_v58  ;;  %v10861_v10 = vld [vmem:[%s22085_s11 + $0x7c] sm:$0xff]  ;;  %v11455_v58 = vld [vmem:[%s26876_s3 + $0x68] sm:$0xff] }
 0x6b8   : > { %19390 = vmatprep.mubr.msk.f32.mxu0 %vm21974_vm0, %v25223_v7  ;;  %v20263_v16 = vpack.c.bf16 %v11455_v58, %v11454_v18 }
 0x6bb   : > { %19391 = vmatmul.mubr.msk.f32.gmra.mrb[46].mxu0 %vm373_vm1, %v10440_v26 }
 0x6bc   : > { %19393 = vmatprep.mubr.msk.f32.mxu0 %vm21974_vm0, %v25223_v7 }
 0x6bf   : > { %19394 = vmatmul.mubr.msk.f32.gmra.mrb[48].mxu0 %vm373_vm1, %v10441_v52 }
 0x6c0   : > { %19396 = vmatprep.mubr.msk.f32.mxu0 %vm21974_vm0, %v25223_v7 }
 0x6c3   : > { %19397 = vmatmul.mubr.msk.f32.gmra.mrb[50].mxu0 %vm373_vm1, %v10442_v25  ;;  %v10878_v25 = vld [vmem:[%s22085_s11 + $0x104] sm:$0xff] }
 0x6c4   : > { %19399 = vmatprep.mubr.msk.f32.mxu0 %vm21974_vm0, %v25223_v7 }
 0x6c7   : > { %19400 = vmatmul.mubr.msk.f32.gmra.mrb[52].mxu0 %vm373_vm1, %v10443_v49  ;;  %v11456_v49 = vld [vmem:[%s26876_s3 + $0x70] sm:$0xff] }
 0x6c8   : > { %19402 = vmatprep.mubr.msk.f32.mxu0 %vm21974_vm0, %v25223_v7 }
 0x6cb   : > { %19403 = vmatmul.mubr.msk.f32.gmra.mrb[164].mxu0 %vm373_vm1, %v10444_v55 }
 0x6cc   : > { %19405 = vmatprep.mubr.msk.f32.mxu0 %vm21974_vm0, %v25223_v7 }
 0x6cf   : > { %19406 = vmatmul.mubr.msk.f32.gmra.mrb[56].mxu0 %vm373_vm1, %v10445_v62  ;;  %v10879_v62 = vld [vmem:[%s22085_s11 + $0x10c] sm:$0xff] }
 0x6d0   : > { %19408 = vmatprep.mubr.msk.f32.mxu0 %vm21974_vm0, %v25223_v7 }
 0x6d3   : > { %19409 = vmatmul.mubr.msk.f32.gmra.mrb[58].mxu0 %vm373_vm1, %v10446_v13  ;;  %v10880_v13 = vld [vmem:[%s22085_s11 + $0x114] sm:$0xff] }
 0x6d4   : > { %19411 = vmatprep.mubr.msk.f32.mxu0 %vm21974_vm0, %v25223_v7 }
 0x6d7   : > { %19412 = vmatmul.mubr.msk.f32.gmra.mrb[60].mxu0 %vm373_vm1, %v10447_v34  ;;  %v10881_v34 = vld [vmem:[%s22085_s11 + $0x11c] sm:$0xff] }
 0x6d8   : > { %19416 = vmatprep.mubr.msk.f32.mxu0 %vm21974_vm0, %v25223_v7 }
 0x6da   : > { %v10214_v27 = vpop.f32.mrb[152].mxu0 }
 0x6db   : > { %v25419_v48 = vadd.f32 %v10214_v27, %v25283_v44  ;;  %v19255_v12 = vpop.f32.mrb[153].mxu0  ;;  %19417 = vmatmul.mubr.msk.f32.vlgmr.msra.gmra.mrb[166].mxu0 %vm373_vm1, %v10855_v14  ;;  %v10865_v44 = vld [vmem:[%s22085_s11 + $0x9c] sm:$0xff]  ;;  %v10882_v14 = vld [vmem:[%s22085_s11 + $0x124] sm:$0xff]  ;;  %v10883_v27 = vld [vmem:[%s22085_s11 + $0x12c] sm:$0xff] }
 0x6dc   : > { %19419 = vmatprep.mubr.msk.f32.mxu0 %vm21974_vm0, %v25223_v7  ;;  %v10884_v12 = vld [vmem:[%s22085_s11 + $0x134] sm:$0xff] }
 0x6df   : > { %19420 = vmatmul.mubr.msk.f32.gmra.mrb[2].mxu0 %vm373_vm1, %v10856_v20  ;;  %v10885_v20 = vld [vmem:[%s22085_s11 + $0x13c] sm:$0xff] }
 0x6e0   : > { %19422 = vmatprep.mubr.msk.f32.mxu0 %vm21974_vm0, %v25223_v7 }
 0x6e3   : > { %19423 = vmatmul.mubr.msk.f32.gmra.mrb[4].mxu0 %vm373_vm1, %v10857_v0 }
 0x6e4   : > { %19425 = vmatprep.mubr.msk.f32.mxu0 %vm21974_vm0, %v25223_v7 }
 0x6e7   : > { %19426 = vmatmul.mubr.msk.f32.gmra.mrb[6].mxu0 %vm373_vm1, %v10858_v4 }
 0x6e8   : > { %19428 = vmatprep.mubr.msk.f32.mxu0 %vm21974_vm0, %v25223_v7 }
 0x6eb   : > { %19429 = vmatmul.mubr.msk.f32.gmra.mrb[8].mxu0 %vm373_vm1, %v10859_v60 }
 0x6ec   : > { %19431 = vmatprep.mubr.msk.f32.mxu0 %vm21974_vm0, %v25223_v7 }
 0x6ef   : > { %19432 = vmatmul.mubr.msk.f32.gmra.mrb[10].mxu0 %vm373_vm1, %v10860_v50 }
 0x6f0   : > { %19434 = vmatprep.mubr.msk.f32.mxu0 %vm21974_vm0, %v25223_v7 }
 0x6f3   : > { %19435 = vmatmul.mubr.msk.f32.gmra.mrb[12].mxu0 %vm373_vm1, %v10861_v10 }
 0x6f4   : > { %19437 = vmatprep.mubr.msk.f32.mxu0 %vm21974_vm0, %v25223_v7 }
 0x6f7   : > { %19438 = vmatmul.mubr.msk.f32.gmra.mrb[14].mxu0 %vm373_vm1, %v10862_v19 }
 0x6f8   : > { %19440 = vmatprep.mubr.msk.f32.mxu0 %vm21974_vm0, %v25223_v7 }
 0x6fb   : > { %19441 = vmatmul.mubr.msk.f32.gmra.mrb[16].mxu0 %vm373_vm1, %v10863_v23  ;;  %v11775_v23 = vld [vmem:[%s26876_s3 + $0x80] sm:$0xff] }
 0x6fc   : > { %19443 = vmatprep.mubr.msk.f32.mxu0 %vm21974_vm0, %v25223_v7 }
 0x6fe   : > { %v10259_v38 = vpop.f32.mrb[154].mxu0 }
 0x6ff   : > { %v25470_v31 = vadd.f32 %v10259_v38, %v25322_v45  ;;  %v19282_v9 = vpop.f32.mrb[155].mxu0  ;;  %19444 = vmatmul.mubr.msk.f32.gmra.mrb[168].mxu0 %vm373_vm1, %v10864_v11  ;;  %v11779_v11 = vld [vmem:[%s26876_s3 + $0xa0] sm:$0xff] }
 0x700   : > { %19446 = vmatprep.mubr.msk.f32.mxu0 %vm21974_vm0, %v25223_v7  ;;  %v20279_v21 = vpack.c.bf16 %v11780_v3, %v11779_v11  ;;  %v11781_v9 = vld [vmem:[%s26876_s3 + $0xb0] sm:$0xff] }
 0x703   : > { %19447 = vmatmul.mubr.msk.f32.gmra.mrb[20].mxu0 %vm373_vm1, %v10865_v44  ;;  %v11782_v44 = vld [vmem:[%s26876_s3 + $0xb8] sm:$0xff] }
 0x704   : > { %19449 = vmatprep.mubr.msk.f32.mxu0 %vm21974_vm0, %v25223_v7 }
 0x707   : > { %19450 = vmatmul.mubr.msk.f32.gmra.mrb[22].mxu0 %vm373_vm1, %v10866_v37  ;;  %v11783_v37 = vld [vmem:[%s26876_s3 + $0xc0] sm:$0xff] }
 0x708   : > { %19452 = vmatprep.mubr.msk.f32.mxu0 %vm21974_vm0, %v25223_v7 }
 0x70b   : > { %19453 = vmatmul.mubr.msk.f32.gmra.mrb[24].mxu0 %vm373_vm1, %v10867_v40  ;;  %v20283_v40 = vpack.c.bf16 %v11782_v44, %v11781_v9 }
 0x70c   : > { %19455 = vmatprep.mubr.msk.f32.mxu0 %vm21974_vm0, %v25223_v7 }
 0x70f   : > { %19456 = vmatmul.mubr.msk.f32.gmra.mrb[26].mxu0 %vm373_vm1, %v10868_v43  ;;  %v11784_v43 = vld [vmem:[%s26876_s3 + $0xc8] sm:$0xff] }
 0x710   : > { %19458 = vmatprep.mubr.msk.f32.mxu0 %vm21974_vm0, %v25223_v7 }
 0x713   : > { %19459 = vmatmul.mubr.msk.f32.gmra.mrb[28].mxu0 %vm373_vm1, %v10869_v47  ;;  %v20287_v47 = vpack.c.bf16 %v11784_v43, %v11783_v37 }
 0x714   : > { %19461 = vmatprep.mubr.msk.f32.mxu0 %vm21974_vm0, %v25223_v7 }
 0x717   : > { %19462 = vmatmul.mubr.msk.f32.gmra.mrb[30].mxu0 %vm373_vm1, %v10870_v28  ;;  %v11785_v28 = vld [vmem:[%s26876_s3 + $0xd0] sm:$0xff] }
 0x718   : > { %19464 = vmatprep.mubr.msk.f32.mxu0 %vm21974_vm0, %v25223_v7 }
 0x71b   : > { %19465 = vmatmul.mubr.msk.f32.gmra.mrb[32].mxu0 %vm373_vm1, %v10871_v39  ;;  %v11786_v39 = vld [vmem:[%s26876_s3 + $0xd8] sm:$0xff] }
 0x71c   : > { %19467 = vmatprep.mubr.msk.f32.mxu0 %vm21974_vm0, %v25223_v7 }
 0x71f   : > { %19468 = vmatmul.mubr.msk.f32.gmra.mrb[34].mxu0 %vm373_vm1, %v10872_v61  ;;  %v20291_v61 = vpack.c.bf16 %v11786_v39, %v11785_v28 }
 0x720   : > { %19470 = vmatprep.mubr.msk.f32.mxu0 %vm21974_vm0, %v25223_v7 }
 0x722   : > { %v10304_v45 = vpop.f32.mrb[156].mxu0 }
 0x723   : > { %v25515_v35 = vadd.f32 %v10304_v45, %v25361_v2  ;;  %v19309_v15 = vpop.f32.mrb[157].mxu0  ;;  %19471 = vmatmul.mubr.msk.f32.gmra.mrb[170].mxu0 %vm373_vm1, %v10873_v1  ;;  %v11452_v2 = vld [vmem:[%s26876_s3 + $0x50] sm:$0xff]  ;;  %v11787_v1 = vld [vmem:[%s26876_s3 + $0xe0] sm:$0xff] }
 0x724   : > { %19473 = vmatprep.mubr.msk.f32.mxu0 %vm21974_vm0, %v25223_v7  ;;  %v20259_v56 = vpack.c.bf16 %v11453_v63, %v11452_v2  ;;  %v20295_v15 = vpack.c.bf16 %v11788_v59, %v11787_v1  ;;  %v20553_v63 = vld [vmem:[#allocation2 + $0x10] sm:$0xff] }
 0x726   : > { %20260 = vmatprep.subr.bf16.mxu1 %v20259_v56 }
 0x727   : > { %19474 = vmatmul.mubr.msk.f32.gmra.mrb[38].mxu0 %vm373_vm1, %v10874_v41  ;;  %20262 = vmatpush3.bf16.msra.mxu1 %v20259_v56  ;;  %v12108_v56 = vld [vmem:[%s26876_s3 + $0x100] sm:$0xff] }
 0x728   : > { %19476 = vmatprep.mubr.msk.f32.mxu0 %vm21974_vm0, %v25223_v7  ;;  %20264 = vmatprep.subr.bf16.mxu1 %v20263_v16 }
 0x72b   : > { %19477 = vmatmul.mubr.msk.f32.gmra.mrb[40].mxu0 %vm373_vm1, %v10875_v17  ;;  %20266 = vmatpush3.bf16.msra.mxu1 %v20263_v16  ;;  %v11790_v17 = vld [vmem:[%s26876_s3 + $0xf8] sm:$0xff] }
 0x72c   : > { %19479 = vmatprep.mubr.msk.f32.mxu0 %vm21974_vm0, %v25223_v7 }
 0x72f   : > { %19480 = vmatmul.mubr.msk.f32.gmra.mrb[42].mxu0 %vm373_vm1, %v10876_v29  ;;  %v20299_v29 = vpack.c.bf16 %v11790_v17, %v11789_v6 }
 0x730   : > { %19482 = vmatprep.mubr.msk.f32.mxu0 %vm21974_vm0, %v25223_v7 }
 0x732   : > { %v10607_v33 = vpop.f32.mrb[158].mxu0 }
 0x733   : > { %v25558_v26 = vadd.f32 %v10607_v33, %v25380_v54  ;;  %v19323_v52 = vpop.f32.mrb[159].mxu0  ;;  %19483 = vmatmul.mubr.msk.f32.gmra.mrb[44].mxu0 %vm373_vm1, %v10877_v42  ;;  %v11457_v54 = vld [vmem:[%s26876_s3 + $0x78] sm:$0xff]  ;;  %v12109_v42 = vld [vmem:[%s26876_s3 + $0x108] sm:$0xff] }
 0x734   : > { %19485 = vmatprep.mubr.msk.f32.mxu0 %vm21974_vm0, %v25223_v7  ;;  %v20267_v55 = vpack.c.bf16 %v11457_v54, %v11456_v49  ;;  %v25675_v33 = vpack.c.bf16 %v12109_v42, %v12108_v56 }
 0x736   : > { %20268 = vmatprep.subr.bf16.mxu1 %v20267_v55 }
 0x737   : > { %19486 = vmatmul.mubr.msk.f32.gmra.mrb[46].mxu0 %vm373_vm1, %v10878_v25  ;;  %20270 = vmatpush3.bf16.msra.mxu1 %v20267_v55 }
 0x738   : > { %19488 = vmatprep.mubr.msk.f32.mxu0 %vm21974_vm0, %v25223_v7 }
 0x73a   : > { %19542 = vmatmul.mubr.f32.vlgmr.msra.gmra.mrb[134].mxu1 %v25223_v7 }
 0x73b   : > { %19489 = vmatmul.mubr.msk.f32.gmra.mrb[48].mxu0 %vm373_vm1, %v10879_v62 }
 0x73c   : > { %19491 = vmatprep.mubr.msk.f32.mxu0 %vm21974_vm0, %v25223_v7 }
 0x73f   : > { %19492 = vmatmul.mubr.msk.f32.gmra.mrb[50].mxu0 %vm373_vm1, %v10880_v13  ;;  %v20565_v13 = vld [vmem:[#allocation2 + $0x20] sm:$0xff] }
 0x740   : > { %19494 = vmatprep.mubr.msk.f32.mxu0 %vm21974_vm0, %v25223_v7 }
 0x743   : > { %19495 = vmatmul.mubr.msk.f32.gmra.mrb[52].mxu0 %vm373_vm1, %v10881_v34 }
 0x744   : > { %19497 = vmatprep.mubr.msk.f32.mxu0 %vm21974_vm0, %v25223_v7 }
 0x747   : > { %19498 = vmatmul.mubr.msk.f32.gmra.mrb[172].mxu0 %vm373_vm1, %v10882_v14 }
 0x748   : > { %19500 = vmatprep.mubr.msk.f32.mxu0 %vm21974_vm0, %v25223_v7 }
 0x74b   : > { %19501 = vmatmul.mubr.msk.f32.gmra.mrb[56].mxu0 %vm373_vm1, %v10883_v27 }
 0x74c   : > { %19503 = vmatprep.mubr.msk.f32.mxu0 %vm21974_vm0, %v25223_v7 }
 0x74f   : > { %19504 = vmatmul.mubr.msk.f32.gmra.mrb[58].mxu0 %vm373_vm1, %v10884_v12 }
 0x750   : > { %19506 = vmatprep.mubr.msk.f32.mxu0 %vm21974_vm0, %v25223_v7  ;;  %v11776_v7 = vld [vmem:[%s26876_s3 + $0x88] sm:$0xff] }
 0x751   : > { %v20271_v57 = vpack.c.bf16 %v11776_v7, %v11775_v23 }
 0x753   : > { %19507 = vmatmul.mubr.msk.f32.gmra.mrb[60].mxu0 %vm373_vm1, %v10885_v20  ;;  %20272 = vmatprep.subr.bf16.mxu1 %v20271_v57  ;;  %v20571_v20 = vld [vmem:[#allocation2 + $0x28] sm:$0xff] }
 0x754   : > { %20274 = vmatpush3.bf16.msra.mxu1 %v20271_v57 }
 0x756   : > { %v10652_v0 = vpop.f32.mrb[160].mxu0 }
 0x757   : > { %v25601_v4 = vadd.f32 %v10652_v0, %v25419_v48  ;;  %v19350_v60 = vpop.f32.mrb[161].mxu0  ;;  %v11777_v48 = vld [vmem:[%s26876_s3 + $0x90] sm:$0xff] }
 0x758   : > { %v20275_v24 = vpack.c.bf16 %v11778_v51, %v11777_v48  ;;  %v20577_v48 = vld [vmem:[#allocation2 + $0x30] sm:$0xff] }
 0x75a   : > { %20276 = vmatprep.subr.bf16.mxu1 %v20275_v24 }
 0x75b   : > { %20278 = vmatpush3.bf16.msra.mxu1 %v20275_v24 }
 0x75c   : > { %20280 = vmatprep.subr.bf16.mxu1 %v20279_v21 }
 0x75f   : > { %20282 = vmatpush3.bf16.msra.mxu1 %v20279_v21 }
 0x760   : > { %20284 = vmatprep.subr.bf16.mxu1 %v20283_v40 }
 0x763   : > { %20286 = vmatpush3.bf16.msra.mxu1 %v20283_v40 }
 0x764   : > { %20288 = vmatprep.subr.bf16.mxu1 %v20287_v47 }
 0x767   : > { %20290 = vmatpush3.bf16.msra.mxu1 %v20287_v47  ;;  %v20589_v47 = vld [vmem:[#allocation2 + $0x40] sm:$0xff] }
 0x768   : > { %20292 = vmatprep.subr.bf16.mxu1 %v20291_v61 }
 0x76b   : > { %20294 = vmatpush3.bf16.msra.mxu1 %v20291_v61 }
 0x76c   : > { %20296 = vmatprep.subr.bf16.mxu1 %v20295_v15 }
 0x76f   : > { %20298 = vmatpush3.bf16.msra.mxu1 %v20295_v15 }
 0x770   : > { %20300 = vmatprep.subr.bf16.mxu1 %v20299_v29 }
 0x773   : > { %20302 = vmatpush3.bf16.msra.mxu1 %v20299_v29  ;;  %v20595_v29 = vld [vmem:[#allocation2 + $0x50] sm:$0xff] }
 0x774   : > { %20304 = vmatprep.subr.bf16.mxu1 %v25675_v33 }
 0x77a   : > { %v10697_v50 = vpop.f32.mrb[162].mxu0 }
 0x77b   : > { %v25604_v10 = vadd.f32 %v10697_v50, %v25470_v31  ;;  %v19377_v19 = vpop.f32.mrb[163].mxu0 }
 0x79e   : > { %v10742_v53 = vpop.f32.mrb[164].mxu0 }
 0x79f   : > { %v25625_v38 = vadd.f32 %v10742_v53, %v25515_v35  ;;  %v19404_v31 = vpop.f32.mrb[165].mxu0 }
 0x7a0   : > { %v20583_v31 = vld [vmem:[#allocation2 + $0x38] sm:$0xff] }
 0x7ae   : > { %v11045_v22 = vpop.f32.mrb[166].mxu0 }
 0x7af   : > { %v11199_v45 = vadd.f32 %v11045_v22, %v25558_v26  ;;  %v19418_v35 = vpop.f32.mrb[167].mxu0  ;;  %v20559_v26 = vld [vmem:[#allocation2 + $0x18] sm:$0xff] }
 0x7b1   : > { %v25658_v41 = vadd.f32 %v25648_v36, %v11199_v45 }
 0x7b2   : > { %v11050_v32 = vpop.f32.mrb[2].mxu0 }
 0x7b3   : > { %v11304_v8 = vmax.f32 %v25658_v41, 0.0  ;;  %v20548_v30 = vadd.f32 %v20547_v5, %v11050_v32  ;;  %v19421_v46 = vpop.f32.mrb[3].mxu0 }
 0x7b5   : > { %11306 = vst [vmem:[#allocation3 + $0x11] sm:$0xff] %v11304_v8  ;;  %11231 = vst [vmem:[#allocation2 + $0x8] sm:$0xff] %v20548_v30 }
 0x7b6   : > { %v11055_v2 = vpop.f32.mrb[4].mxu0 }
 0x7b7   : > { %v20554_v18 = vadd.f32 %v20553_v63, %v11055_v2  ;;  %v19424_v58 = vpop.f32.mrb[5].mxu0 }
 0x7b9   : > { %11232 = vst [vmem:[#allocation2 + $0x10] sm:$0xff] %v20554_v18 }
 0x7ba   : > { %v11060_v16 = vpop.f32.mrb[6].mxu0 }
 0x7bb   : > { %v20560_v52 = vadd.f32 %v20559_v26, %v11060_v16  ;;  %v19427_v25 = vpop.f32.mrb[7].mxu0  ;;  %v20601_v26 = vld [vmem:[#allocation2 + $0x58] sm:$0xff] }
 0x7bc   : > { %v11295_v49 = vld [vmem:[#allocation2 + $0x8] sm:$0x3f] }
 0x7bd   : > { %v11488_v54 = vld [vmem:[#allocation3 + $0x10] sm:$0xff]  ;;  %11233 = vst [vmem:[#allocation2 + $0x18] sm:$0xff] %v20560_v52  ;;  %v11303_v55 = vadd.f32 %v25648_v36, %v11295_v49 }
 0x7be   : > { %19544 = vmatprep.mubr.f32.mxu1 %v11488_v54  ;;  %v11065_v62 = vpop.f32.mrb[8].mxu0 }
 0x7bf   : > { %v20566_v34 = vadd.f32 %v20565_v13, %v11065_v62  ;;  %v19430_v14 = vpop.f32.mrb[9].mxu0  ;;  %v11305_v27 = vmax.f32 %v11303_v55, 0.0  ;;  %v20607_v62 = vld [vmem:[#allocation2 + $0x60] sm:$0xff] }
 0x7c1   : > { %11234 = vst [vmem:[#allocation2 + $0x20] sm:$0xff] %v20566_v34  ;;  %11307 = vst [vmem:[#allocation3 + $0x19] sm:$0x3f] %v11305_v27 }
 0x7c2   : > { %v11070_v12 = vpop.f32.mrb[10].mxu0 }
 0x7c3   : > { %v20572_v0 = vadd.f32 %v20571_v20, %v11070_v12  ;;  %v19433_v60 = vpop.f32.mrb[11].mxu0 }
 0x7c4   : > { %v11308_v50 = vld [vmem:[#allocation2 + $0x12] sm:$0xff]  ;;  %v11309_v19 = vld [vmem:[#allocation2 + $0x1a] sm:$0x3f] }
 0x7c5   : > { %v25680_v23 = vadd.f32 %v25648_v36, %v11308_v50  ;;  %11235 = vst [vmem:[#allocation2 + $0x28] sm:$0xff] %v20572_v0  ;;  %v11311_v7 = vadd.f32 %v25648_v36, %v11309_v19  ;;  %v20613_v0 = vld [vmem:[#allocation2 + $0x68] sm:$0xff] }
 0x7c6   : > { %v11075_v57 = vpop.f32.mrb[12].mxu0 }
 0x7c7   : > { %v11312_v51 = vmax.f32 %v25680_v23, 0.0  ;;  %v20578_v24 = vadd.f32 %v20577_v48, %v11075_v57  ;;  %v19436_v11 = vpop.f32.mrb[13].mxu0  ;;  %v11313_v3 = vmax.f32 %v11311_v7, 0.0 }
 0x7c8   : > { %v11489_v21 = vld [vmem:[#allocation3 + $0x18] sm:$0xff] }
 0x7c9   : > { %11314 = vst [vmem:[#allocation3 + $0x21] sm:$0xff] %v11312_v51  ;;  %11236 = vst [vmem:[#allocation2 + $0x30] sm:$0xff] %v20578_v24  ;;  %19545 = vmatmul.mubr.f32.gmra.mrb[136].mxu1 %v11489_v21  ;;  %v20619_v24 = vld [vmem:[#allocation2 + $0x70] sm:$0xff] }
 0x7ca   : > { %11315 = vst [vmem:[#allocation3 + $0x29] sm:$0x3f] %v11313_v3  ;;  %v11080_v53 = vpop.f32.mrb[14].mxu0 }
 0x7cb   : > { %v20584_v9 = vadd.f32 %v20583_v31, %v11080_v53  ;;  %v19439_v44 = vpop.f32.mrb[15].mxu0 }
 0x7cc   : > { %v11316_v37 = vld [vmem:[#allocation2 + $0x24] sm:$0xff] }
 0x7cd   : > { %v25687_v40 = vadd.f32 %v25648_v36, %v11316_v37  ;;  %11237 = vst [vmem:[#allocation2 + $0x38] sm:$0xff] %v20584_v9  ;;  %v20625_v37 = vld [vmem:[#allocation2 + $0x78] sm:$0xff] }
 0x7ce   : > { %v11085_v43 = vpop.f32.mrb[16].mxu0 }
 0x7cf   : > { %v11320_v28 = vmax.f32 %v25687_v40, 0.0  ;;  %v20590_v39 = vadd.f32 %v20589_v47, %v11085_v43  ;;  %v19442_v61 = vpop.f32.mrb[17].mxu0 }
 0x7d0   : > { %v11317_v22 = vld [vmem:[#allocation2 + $0x2c] sm:$0x3f]  ;;  %v11490_v1 = vld [vmem:[#allocation3 + $0x20] sm:$0xff] }
 0x7d1   : > { %v11491_v59 = vld [vmem:[#allocation3 + $0x28] sm:$0xff]  ;;  %11322 = vst [vmem:[#allocation3 + $0x31] sm:$0xff] %v11320_v28  ;;  %11238 = vst [vmem:[#allocation2 + $0x40] sm:$0xff] %v20590_v39  ;;  %19547 = vmatprep.mubr.f32.mxu1 %v11490_v1  ;;  %v11319_v45 = vadd.f32 %v25648_v36, %v11317_v22 }
 0x7d2   : > { %v11090_v35 = vpop.f32.mrb[168].mxu0  ;;  %19548 = vmatmul.mubr.f32.gmra.mrb[138].mxu1 %v11491_v59  ;;  %v20631_v59 = vld [vmem:[#allocation2 + $0x80] sm:$0xff] }
 0x7d3   : > { %v11208_v15 = vadd.f32 %v11090_v35, %v25601_v4  ;;  %v19445_v32 = vpop.f32.mrb[169].mxu0  ;;  %v11321_v5 = vmax.f32 %v11319_v45, 0.0 }
 0x7d4   : > { %v11324_v6 = vld [vmem:[#allocation2 + $0x36] sm:$0xff] }
 0x7d5   : > { %v25695_v17 = vadd.f32 %v25648_v36, %v11324_v6  ;;  %v25698_v30 = vadd.f32 %v25648_v36, %v11208_v15  ;;  %11323 = vst [vmem:[#allocation3 + $0x39] sm:$0x3f] %v11321_v5  ;;  %v20637_v6 = vld [vmem:[#allocation2 + $0x88] sm:$0xff] }
 0x7d6   : > { %v11095_v46 = vpop.f32.mrb[20].mxu0 }
 0x7d7   : > { %v11328_v2 = vmax.f32 %v25695_v17, 0.0  ;;  %v11336_v63 = vmax.f32 %v25698_v30, 0.0  ;;  %v20596_v56 = vadd.f32 %v20595_v29, %v11095_v46  ;;  %v19448_v42 = vpop.f32.mrb[21].mxu0 }
 0x7d8   : > { %v11325_v18 = vld [vmem:[#allocation2 + $0x3e] sm:$0x3f]  ;;  %v11492_v4 = vld [vmem:[#allocation3 + $0x30] sm:$0xff] }
 0x7d9   : > { %11330 = vst [vmem:[#allocation3 + $0x41] sm:$0xff] %v11328_v2  ;;  %11338 = vst [vmem:[#allocation3 + $0x51] sm:$0xff] %v11336_v63  ;;  %19550 = vmatprep.mubr.f32.mxu1 %v11492_v4  ;;  %v11327_v58 = vadd.f32 %v25648_v36, %v11325_v18 }
 0x7da   : > { %11240 = vst [vmem:[#allocation2 + $0x50] sm:$0xff] %v20596_v56  ;;  %v11100_v16 = vpop.f32.mrb[22].mxu0 }
 0x7db   : > { %v20602_v52 = vadd.f32 %v20601_v26, %v11100_v16  ;;  %v19451_v25 = vpop.f32.mrb[23].mxu0  ;;  %v11329_v49 = vmax.f32 %v11327_v58, 0.0 }
 0x7dc   : > { %v11493_v54 = vld [vmem:[#allocation3 + $0x38] sm:$0xff] }
 0x7dd   : > { %11241 = vst [vmem:[#allocation2 + $0x58] sm:$0xff] %v20602_v52  ;;  %19551 = vmatmul.mubr.f32.gmra.mrb[140].mxu1 %v11493_v54  ;;  %11331 = vst [vmem:[#allocation3 + $0x49] sm:$0x3f] %v11329_v49 }
 0x7de   : > { %v11105_v55 = vpop.f32.mrb[24].mxu0 }
 0x7df   : > { %v20608_v13 = vadd.f32 %v20607_v62, %v11105_v55  ;;  %v19454_v34 = vpop.f32.mrb[25].mxu0 }
 0x7e0   : > { %v11494_v27 = vld [vmem:[#allocation3 + $0x40] sm:$0xff]  ;;  %v11496_v57 = vld [vmem:[#allocation3 + $0x50] sm:$0xff] }
 0x7e1   : > { %v11333_v14 = vld [vmem:[#allocation2 + $0x50] sm:$0x3f]  ;;  %11242 = vst [vmem:[#allocation2 + $0x60] sm:$0xff] %v20608_v13  ;;  %19553 = vmatprep.mubr.f32.mxu1 %v11494_v27  ;;  %v20643_v13 = vld [vmem:[#allocation2 + $0x98] sm:$0xff] }
 0x7e2   : > { %v11335_v12 = vadd.f32 %v25648_v36, %v11333_v14  ;;  %v11110_v20 = vpop.f32.mrb[26].mxu0 }
 0x7e3   : > { %v20614_v60 = vadd.f32 %v20613_v0, %v11110_v20  ;;  %v19457_v50 = vpop.f32.mrb[27].mxu0 }
 0x7e4   : > { %v11337_v19 = vmax.f32 %v11335_v12, 0.0  ;;  %v11495_v7 = vld [vmem:[#allocation3 + $0x48] sm:$0xff] }
 0x7e5   : > { %11243 = vst [vmem:[#allocation2 + $0x68] sm:$0xff] %v20614_v60  ;;  %19554 = vmatmul.mubr.f32.gmra.mrb[142].mxu1 %v11495_v7  ;;  %v20649_v50 = vld [vmem:[#allocation2 + $0xa0] sm:$0xff] }
 0x7e6   : > { %11339 = vst [vmem:[#allocation3 + $0x59] sm:$0x3f] %v11337_v19  ;;  %v11115_v48 = vpop.f32.mrb[28].mxu0  ;;  %19556 = vmatprep.mubr.f32.mxu1 %v11496_v57 }
 0x7e7   : > { %v20620_v11 = vadd.f32 %v20619_v24, %v11115_v48  ;;  %v19460_v3 = vpop.f32.mrb[29].mxu0 }
 0x7e8   : > { %v11340_v21 = vld [vmem:[#allocation2 + $0x5a] sm:$0xff]  ;;  %v11341_v53 = vld [vmem:[#allocation2 + $0x62] sm:$0x3f] }
 0x7e9   : > { %v25709_v31 = vadd.f32 %v25648_v36, %v11340_v21  ;;  %11244 = vst [vmem:[#allocation2 + $0x70] sm:$0xff] %v20620_v11  ;;  %v11343_v9 = vadd.f32 %v25648_v36, %v11341_v53  ;;  %v20655_v11 = vld [vmem:[#allocation2 + $0xa8] sm:$0xff] }
 0x7ea   : > { %v11120_v44 = vpop.f32.mrb[30].mxu0 }
 0x7eb   : > { %v11344_v43 = vmax.f32 %v25709_v31, 0.0  ;;  %v20626_v47 = vadd.f32 %v20625_v37, %v11120_v44  ;;  %v19463_v39 = vpop.f32.mrb[31].mxu0  ;;  %v11345_v61 = vmax.f32 %v11343_v9, 0.0 }
 0x7ed   : > { %v11497_v22 = vld [vmem:[#allocation3 + $0x58] sm:$0xff]  ;;  %11346 = vst [vmem:[#allocation3 + $0x61] sm:$0xff] %v11344_v43  ;;  %11245 = vst [vmem:[#allocation2 + $0x78] sm:$0xff] %v20626_v47 }
 0x7ee   : > { %19557 = vmatmul.mubr.f32.gmra.mrb[144].mxu1 %v11497_v22  ;;  %11347 = vst [vmem:[#allocation3 + $0x69] sm:$0x3f] %v11345_v61  ;;  %v11125_v1 = vpop.f32.mrb[32].mxu0  ;;  %v20661_v47 = vld [vmem:[#allocation2 + $0xb0] sm:$0xff] }
 0x7ef   : > { %v20632_v45 = vadd.f32 %v20631_v59, %v11125_v1  ;;  %v19466_v35 = vpop.f32.mrb[33].mxu0 }
 0x7f0   : > { %v11348_v15 = vld [vmem:[#allocation2 + $0x6c] sm:$0xff]  ;;  %v20667_v35 = vld [vmem:[#allocation2 + $0xb8] sm:$0xff] }
 0x7f1   : > { %v25716_v32 = vadd.f32 %v25648_v36, %v11348_v15  ;;  %11246 = vst [vmem:[#allocation2 + $0x80] sm:$0xff] %v20632_v45 }
 0x7f2   : > { %v11130_v5 = vpop.f32.mrb[34].mxu0 }
 0x7f3   : > { %v11352_v46 = vmax.f32 %v25716_v32, 0.0  ;;  %v20638_v29 = vadd.f32 %v20637_v6, %v11130_v5  ;;  %v19469_v56 = vpop.f32.mrb[35].mxu0 }
 0x7f4   : > { %v11349_v42 = vld [vmem:[#allocation2 + $0x74] sm:$0x3f] }
 0x7f5   : > { %v11498_v18 = vld [vmem:[#allocation3 + $0x60] sm:$0xff]  ;;  %v25719_v4 = vld [vmem:[#allocation3 + $0x68] sm:$0xff]  ;;  %11354 = vst [vmem:[#allocation3 + $0x71] sm:$0xff] %v11352_v46  ;;  %11247 = vst [vmem:[#allocation2 + $0x88] sm:$0xff] %v20638_v29  ;;  %v11351_v58 = vadd.f32 %v25648_v36, %v11349_v42 }
 0x7f6   : > { %19559 = vmatprep.mubr.f32.mxu1 %v11498_v18  ;;  %v11135_v16 = vpop.f32.mrb[170].mxu0 }
 0x7f7   : > { %19560 = vmatmul.mubr.f32.gmra.mrb[146].mxu1 %v25719_v4  ;;  %v11217_v26 = vadd.f32 %v11135_v16, %v25604_v10  ;;  %v19472_v52 = vpop.f32.mrb[171].mxu0  ;;  %v11353_v25 = vmax.f32 %v11351_v58, 0.0  ;;  %v20673_v58 = vld [vmem:[#allocation2 + $0xc0] sm:$0xff] }
 0x7f8   : > { %v11356_v49 = vld [vmem:[#allocation2 + $0x7e] sm:$0xff] }
 0x7f9   : > { %v25727_v54 = vadd.f32 %v25648_v36, %v11356_v49  ;;  %v25730_v55 = vadd.f32 %v25648_v36, %v11217_v26  ;;  %11355 = vst [vmem:[#allocation3 + $0x79] sm:$0x3f] %v11353_v25 }
 0x7fa   : > { %v11140_v62 = vpop.f32.mrb[38].mxu0 }
 0x7fb   : > { %v11360_v34 = vmax.f32 %v25727_v54, 0.0  ;;  %v11368_v14 = vmax.f32 %v25730_v55, 0.0  ;;  %v20644_v27 = vadd.f32 %v20643_v13, %v11140_v62  ;;  %v19475_v12 = vpop.f32.mrb[39].mxu0  ;;  %v20679_v13 = vld [vmem:[#allocation2 + $0xc8] sm:$0xff] }
 0x7fc   : > { %v11357_v20 = vld [vmem:[#allocation2 + $0x86] sm:$0x3f] }
 0x7fd   : > { %v25734_v10 = vld [vmem:[#allocation3 + $0x70] sm:$0xff]  ;;  %11362 = vst [vmem:[#allocation3 + $0x81] sm:$0xff] %v11360_v34  ;;  %11370 = vst [vmem:[#allocation3 + $0x91] sm:$0xff] %v11368_v14  ;;  %v11359_v0 = vadd.f32 %v25648_v36, %v11357_v20 }
 0x7fe   : > { %11249 = vst [vmem:[#allocation2 + $0x98] sm:$0xff] %v20644_v27  ;;  %19562 = vmatprep.mubr.f32.mxu1 %v25734_v10  ;;  %v11145_v60 = vpop.f32.mrb[40].mxu0 }
 0x7ff   : > { %v20650_v19 = vadd.f32 %v20649_v50, %v11145_v60  ;;  %v19478_v7 = vpop.f32.mrb[41].mxu0  ;;  %v11361_v57 = vmax.f32 %v11359_v0, 0.0  ;;  %v20685_v50 = vld [vmem:[#allocation2 + $0xd0] sm:$0xff] }
 0x800   : > { %v25742_v48 = vld [vmem:[#allocation3 + $0x78] sm:$0xff] }
 0x801   : > { %11250 = vst [vmem:[#allocation2 + $0xa0] sm:$0xff] %v20650_v19  ;;  %19563 = vmatmul.mubr.f32.gmra.mrb[148].mxu1 %v25742_v48  ;;  %11363 = vst [vmem:[#allocation3 + $0x89] sm:$0x3f] %v11361_v57  ;;  %v25770_v19 = vld [vmem:[#allocation3] sm:$0xff] }
 0x802   : > { %v11150_v24 = vpop.f32.mrb[42].mxu0  ;;  %11414 = vst.msk [vmem:[#allocation4 + $0x8] sm:$0xff] %vm11412_vm2, %v25770_v19  ;;  %11413 = vst.msk [vmem:[#allocation4] sm:$0xff] %vm11412_vm2, %v25770_v19 }
 0x803   : > { %v20656_v3 = vadd.f32 %v20655_v11, %v11150_v24  ;;  %v19481_v21 = vpop.f32.mrb[43].mxu0  ;;  %11415 = vst.msk [vmem:[#allocation4 + $0x10] sm:$0xff] %vm11412_vm2, %v25770_v19  ;;  %11416 = vst.msk [vmem:[#allocation4 + $0x18] sm:$0xff] %vm11412_vm2, %v25770_v19 }
 0x804   : > { %v25745_v9 = vld [vmem:[#allocation3 + $0x80] sm:$0xff]  ;;  %v25752_v59 = vld [vmem:[#allocation3 + $0x90] sm:$0xff]  ;;  %11417 = vst.msk [vmem:[#allocation4 + $0x20] sm:$0xff] %vm11412_vm2, %v25770_v19  ;;  %11418 = vst.msk [vmem:[#allocation4 + $0x28] sm:$0xff] %vm11412_vm2, %v25770_v19 }
 0x805   : > { %v11365_v53 = vld [vmem:[#allocation2 + $0x98] sm:$0x3f]  ;;  %11251 = vst [vmem:[#allocation2 + $0xa8] sm:$0xff] %v20656_v3  ;;  %19565 = vmatprep.mubr.f32.mxu1 %v25745_v9  ;;  %11419 = vst.msk [vmem:[#allocation4 + $0x30] sm:$0xff] %vm11412_vm2, %v25770_v19 }
 0x806   : > { %v11367_v44 = vadd.f32 %v25648_v36, %v11365_v53  ;;  %v11155_v37 = vpop.f32.mrb[44].mxu0  ;;  %11420 = vst.msk [vmem:[#allocation4 + $0x38] sm:$0xff] %vm11412_vm2, %v25770_v19  ;;  %11421 = vst.msk [vmem:[#allocation4 + $0x40] sm:$0xff] %vm11412_vm2, %v25770_v19 }
 0x807   : > { %v20662_v39 = vadd.f32 %v20661_v47, %v11155_v37  ;;  %v19484_v61 = vpop.f32.mrb[45].mxu0  ;;  %11422 = vst.msk [vmem:[#allocation4 + $0x48] sm:$0xff] %vm11412_vm2, %v25770_v19  ;;  %11423 = vst.msk [vmem:[#allocation4 + $0x50] sm:$0xff] %vm11412_vm2, %v25770_v19 }
 0x808   : > { %v11369_v22 = vmax.f32 %v11367_v44, 0.0  ;;  %v25749_v1 = vld [vmem:[#allocation3 + $0x88] sm:$0xff]  ;;  %11424 = vst.msk [vmem:[#allocation4 + $0x58] sm:$0xff] %vm11412_vm2, %v25770_v19  ;;  %11425 = vst.msk [vmem:[#allocation4 + $0x60] sm:$0xff] %vm11412_vm2, %v25770_v19 }
 0x809   : > { %11252 = vst [vmem:[#allocation2 + $0xb0] sm:$0xff] %v20662_v39  ;;  %19566 = vmatmul.mubr.f32.gmra.mrb[150].mxu1 %v25749_v1  ;;  %11426 = vst.msk [vmem:[#allocation4 + $0x68] sm:$0xff] %vm11412_vm2, %v25770_v19 }
 0x80a   : > { %11371 = vst [vmem:[#allocation3 + $0x99] sm:$0x3f] %v11369_v22  ;;  %v11160_v45 = vpop.f32.mrb[46].mxu0  ;;  %19568 = vmatprep.mubr.f32.mxu1 %v25752_v59  ;;  %11427 = vst.msk [vmem:[#allocation4 + $0x70] sm:$0xff] %vm11412_vm2, %v25770_v19 }
 0x80b   : > { %v20668_v15 = vadd.f32 %v20667_v35, %v11160_v45  ;;  %v19487_v5 = vpop.f32.mrb[47].mxu0  ;;  %11428 = vst.msk [vmem:[#allocation4 + $0x78] sm:$0xff] %vm11412_vm2, %v25770_v19  ;;  %11429 = vst.msk [vmem:[#allocation4 + $0x80] sm:$0xff] %vm11412_vm2, %v25770_v19 }
 0x80c   : > { %v11372_v6 = vld [vmem:[#allocation2 + $0xa2] sm:$0xff]  ;;  %v11373_v29 = vld [vmem:[#allocation2 + $0xaa] sm:$0x3f]  ;;  %11430 = vst.msk [vmem:[#allocation4 + $0x88] sm:$0xff] %vm11412_vm2, %v25770_v19  ;;  %11431 = vst.msk [vmem:[#allocation4 + $0x90] sm:$0xff] %vm11412_vm2, %v25770_v19 }
 0x80d   : > { %v25756_v56 = vadd.f32 %v25648_v36, %v11372_v6  ;;  %11253 = vst [vmem:[#allocation2 + $0xb8] sm:$0xff] %v20668_v15  ;;  %v11375_v42 = vadd.f32 %v25648_v36, %v11373_v29  ;;  %11432 = vst.msk [vmem:[#allocation4 + $0x98] sm:$0xff] %vm11412_vm2, %v25770_v19  ;;  %v19543_v44 = vpop.f32.mrb[134].mxu1  ;;  %v11459_v5 = vld [vmem:[#allocation4 + $0x8] sm:$0xff]  ;;  %v11458_v6 = vld [vmem:[#allocation4] sm:$0xff] }
 0x80e   : > { %v11165_v18 = vpop.f32.mrb[48].mxu0  ;;  %11433 = vst.msk [vmem:[#allocation4 + $0xa0] sm:$0xff] %vm11412_vm2, %v25770_v19  ;;  %11434 = vst.msk [vmem:[#allocation4 + $0xa8] sm:$0xff] %vm11412_vm2, %v25770_v19  ;;  %v11580_v47 = vpop.f32.mrb[135].mxu1 }
 0x80f   : > { %v11376_v16 = vmax.f32 %v25756_v56, 0.0  ;;  %v20674_v26 = vadd.f32 %v20673_v58, %v11165_v18  ;;  %v19490_v52 = vpop.f32.mrb[49].mxu0  ;;  %v11377_v25 = vmax.f32 %v11375_v42, 0.0  ;;  %11435 = vst.msk [vmem:[#allocation4 + $0xb0] sm:$0xff] %vm11412_vm2, %v25770_v19  ;;  %11436 = vst.msk [vmem:[#allocation4 + $0xb8] sm:$0xff] %vm11412_vm2, %v25770_v19  ;;  %v20691_v42 = vld [vmem:[#allocation2 + $0xe0] sm:$0xff]  ;;  %v11720_v18 = vadd.f32 %v19543_v44, %v11459_v5 }
 0x810   : > { %11437 = vst.msk [vmem:[#allocation4 + $0xc0] sm:$0xff] %vm11412_vm2, %v25770_v19  ;;  %11438 = vst.msk [vmem:[#allocation4 + $0xc8] sm:$0xff] %vm11412_vm2, %v25770_v19  ;;  %v11719_v58 = vadd.f32 %v11580_v47, %v11458_v6  ;;  %v12443_v56 = vld [vmem:[%s26876_s3 + $0x190] sm:$0xff] }
 0x811   : > { %v25760_v49 = vld [vmem:[#allocation3 + $0x98] sm:$0xff]  ;;  %11378 = vst [vmem:[#allocation3 + $0xa1] sm:$0xff] %v11376_v16  ;;  %11254 = vst [vmem:[#allocation2 + $0xc0] sm:$0xff] %v20674_v26 }
 0x812   : > { %19569 = vmatmul.mubr.f32.gmra.mrb[152].mxu1 %v25760_v49  ;;  %11379 = vst [vmem:[#allocation3 + $0xa9] sm:$0x3f] %v11377_v25  ;;  %v11170_v62 = vpop.f32.mrb[50].mxu0  ;;  %11439 = vst.msk [vmem:[#allocation4 + $0xd0] sm:$0xff] %vm11412_vm2, %v25770_v19  ;;  %v26026_v32 = vld [vmem:[#allocation3 + $0x99] sm:$0xff] }
 0x813   : > { %v20680_v27 = vadd.f32 %v20679_v13, %v11170_v62  ;;  %v19493_v12 = vpop.f32.mrb[51].mxu0  ;;  %14439 = vst.msk [vmem:[#allocation5] sm:$0xff] %vm11412_vm2, %v25770_v19  ;;  %14440 = vst.msk [vmem:[#allocation5 + $0x8] sm:$0xff] %vm11412_vm2, %v25770_v19 }
 0x814   : > { %v11380_v20 = vld [vmem:[#allocation2 + $0xb4] sm:$0xff]  ;;  %14441 = vst.msk [vmem:[#allocation5 + $0x10] sm:$0xff] %vm11412_vm2, %v25770_v19  ;;  %14442 = vst.msk [vmem:[#allocation5 + $0x18] sm:$0xff] %vm11412_vm2, %v25770_v19 }
 0x815   : > { %v25766_v0 = vadd.f32 %v25648_v36, %v11380_v20  ;;  %11255 = vst [vmem:[#allocation2 + $0xc8] sm:$0xff] %v20680_v27  ;;  %14443 = vst.msk [vmem:[#allocation5 + $0x20] sm:$0xff] %vm11412_vm2, %v25770_v19  ;;  %v20697_v20 = vld [vmem:[#allocation2 + $0xe8] sm:$0xff] }
 0x816   : > { %v25768_v60 = vpop.f32.mrb[52].mxu0  ;;  %14444 = vst.msk [vmem:[#allocation5 + $0x28] sm:$0xff] %vm11412_vm2, %v25770_v19  ;;  %14445 = vst.msk [vmem:[#allocation5 + $0x30] sm:$0xff] %vm11412_vm2, %v25770_v19 }
 0x817   : > { %14446 = vst.msk [vmem:[#allocation5 + $0x38] sm:$0xff] %vm11412_vm2, %v25770_v19  ;;  %14447 = vst.msk [vmem:[#allocation5 + $0x40] sm:$0xff] %vm11412_vm2, %v25770_v19  ;;  %v11384_v7 = vmax.f32 %v25766_v0, 0.0  ;;  %v20686_v57 = vadd.f32 %v20685_v50, %v25768_v60  ;;  %v19496_v24 = vpop.f32.mrb[53].mxu0 }
 0x818   : > { %14448 = vst.msk [vmem:[#allocation5 + $0x48] sm:$0xff] %vm11412_vm2, %v25770_v19  ;;  %14449 = vst.msk [vmem:[#allocation5 + $0x50] sm:$0xff] %vm11412_vm2, %v25770_v19  ;;  %v11381_v11 = vld [vmem:[#allocation2 + $0xbc] sm:$0x3f] }
 0x819   : > { %14450 = vst.msk [vmem:[#allocation5 + $0x58] sm:$0xff] %vm11412_vm2, %v25770_v19  ;;  %14451 = vst.msk [vmem:[#allocation5 + $0x60] sm:$0xff] %vm11412_vm2, %v25770_v19  ;;  %v25892_v3 = vld [vmem:[#allocation3 + $0xa0] sm:$0xff]  ;;  %v25894_v21 = vld [vmem:[#allocation3 + $0xa8] sm:$0xff]  ;;  %v11383_v53 = vadd.f32 %v25648_v36, %v11381_v11 }
 0x81a   : > { %14452 = vst.msk [vmem:[#allocation5 + $0x68] sm:$0xff] %vm11412_vm2, %v25770_v19  ;;  %14453 = vst.msk [vmem:[#allocation5 + $0x70] sm:$0xff] %vm11412_vm2, %v25770_v19  ;;  %19571 = vmatprep.mubr.f32.mxu1 %v25892_v3  ;;  %v11180_v37 = vpop.f32.mrb[172].mxu0 }
 0x81b   : > { %14454 = vst.msk [vmem:[#allocation5 + $0x78] sm:$0xff] %vm11412_vm2, %v25770_v19  ;;  %14455 = vst.msk [vmem:[#allocation5 + $0x80] sm:$0xff] %vm11412_vm2, %v25770_v19  ;;  %19572 = vmatmul.mubr.f32.gmra.mrb[154].mxu1 %v25894_v21  ;;  %v11226_v39 = vadd.f32 %v11180_v37, %v25625_v38  ;;  %v19499_v61 = vpop.f32.mrb[173].mxu0  ;;  %v11385_v22 = vmax.f32 %v11383_v53, 0.0  ;;  %v20703_v53 = vld [vmem:[#allocation2 + $0xf0] sm:$0xff] }
 0x81c   : > { %14456 = vst.msk [vmem:[#allocation5 + $0x88] sm:$0xff] %vm11412_vm2, %v25770_v19  ;;  %14457 = vst.msk [vmem:[#allocation5 + $0x90] sm:$0xff] %vm11412_vm2, %v25770_v19  ;;  %v11388_v45 = vld [vmem:[#allocation2 + $0xc6] sm:$0xff] }
 0x81d   : > { %14458 = vst.msk [vmem:[#allocation5 + $0x98] sm:$0xff] %vm11412_vm2, %v25770_v19  ;;  %14459 = vst.msk [vmem:[#allocation5 + $0xa0] sm:$0xff] %vm11412_vm2, %v25770_v19  ;;  %v25903_v35 = vadd.f32 %v25648_v36, %v11388_v45  ;;  %v25906_v15 = vadd.f32 %v25648_v36, %v11226_v39 }
 0x81e   : > { %14460 = vst.msk [vmem:[#allocation5 + $0xa8] sm:$0xff] %vm11412_vm2, %v25770_v19  ;;  %14461 = vst.msk [vmem:[#allocation5 + $0xb0] sm:$0xff] %vm11412_vm2, %v25770_v19  ;;  %v11185_v29 = vpop.f32.mrb[56].mxu0 }
 0x81f   : > { %14462 = vst.msk [vmem:[#allocation5 + $0xb8] sm:$0xff] %vm11412_vm2, %v25770_v19  ;;  %14463 = vst.msk [vmem:[#allocation5 + $0xc0] sm:$0xff] %vm11412_vm2, %v25770_v19  ;;  %v11392_v26 = vmax.f32 %v25903_v35, 0.0  ;;  %v11400_v38 = vmax.f32 %v25906_v15, 0.0  ;;  %v20692_v52 = vadd.f32 %v20691_v42, %v11185_v29  ;;  %v19502_v25 = vpop.f32.mrb[57].mxu0  ;;  %v12445_v35 = vld [vmem:[%s26876_s3 + $0x1a0] sm:$0xff] }
 0x820   : > { %14464 = vst.msk [vmem:[#allocation5 + $0xc8] sm:$0xff] %vm11412_vm2, %v25770_v19  ;;  %14465 = vst.msk [vmem:[#allocation5 + $0xd0] sm:$0xff] %vm11412_vm2, %v25770_v19  ;;  %v12446_v15 = vld [vmem:[%s26876_s3 + $0x1a8] sm:$0xff] }
 0x821   : > { %14466 = vst.msk [vmem:[#allocation5 + $0xd8] sm:$0xff] %vm11412_vm2, %v25770_v19  ;;  %14467 = vst.msk [vmem:[#allocation5 + $0xe0] sm:$0xff] %vm11412_vm2, %v25770_v19 }
 0x822   : > { %14468 = vst.msk [vmem:[#allocation5 + $0xe8] sm:$0xff] %vm11412_vm2, %v25770_v19  ;;  %14469 = vst.msk [vmem:[#allocation5 + $0xf0] sm:$0xff] %vm11412_vm2, %v25770_v19  ;;  %v11190_v12 = vpop.f32.mrb[58].mxu0 }
 0x823   : > { %14470 = vst.msk [vmem:[#allocation5 + $0xf8] sm:$0xff] %vm11412_vm2, %v25770_v19  ;;  %11386 = vst [vmem:[#allocation3 + $0xb1] sm:$0xff] %v11384_v7  ;;  %v20698_v60 = vadd.f32 %v20697_v20, %v11190_v12  ;;  %v19505_v50 = vpop.f32.mrb[59].mxu0  ;;  %v12111_v12 = vld [vmem:[%s26876_s3 + $0x118] sm:$0xff]  ;;  %v11820_v20 = vld [vmem:[#allocation3 + $0x9] sm:$0xff] }
 0x824   : > { %11256 = vst [vmem:[#allocation2 + $0xd0] sm:$0xff] %v20686_v57  ;;  %11387 = vst [vmem:[#allocation3 + $0xb9] sm:$0x3f] %v11385_v22  ;;  %v12113_v50 = vld [vmem:[%s26876_s3 + $0x128] sm:$0xff] }
 0x825   : > { %11748 = vst.msk [vmem:[#allocation4 + $0x8] sm:$0xff] %vm11412_vm2, %v11720_v18  ;;  %11747 = vst.msk [vmem:[#allocation4] sm:$0xff] %vm11412_vm2, %v11719_v58 }
 0x826   : > { %11394 = vst [vmem:[#allocation3 + $0xc1] sm:$0xff] %v11392_v26  ;;  %11402 = vst [vmem:[#allocation3 + $0xd1] sm:$0xff] %v11400_v38  ;;  %v11195_v11 = vpop.f32.mrb[60].mxu0 }
 0x827   : > { %11258 = vst [vmem:[#allocation2 + $0xe0] sm:$0xff] %v20692_v52  ;;  %11259 = vst [vmem:[#allocation2 + $0xe8] sm:$0xff] %v20698_v60  ;;  %v20704_v44 = vadd.f32 %v20703_v53, %v11195_v11  ;;  %v19508_v37 = vpop.f32.mrb[61].mxu0  ;;  %v11819_v52 = vld [vmem:[#allocation3 + $0x1] sm:$0xff]  ;;  %v25950_v11 = vld [vmem:[#allocation3 + $0x19] sm:$0xff] }
 0x828   : > { %v12114_v53 = vld [vmem:[%s26876_s3 + $0x130] sm:$0xff]  ;;  %v12117_v37 = vld [vmem:[%s26876_s3 + $0x148] sm:$0xff]  ;;  %11441 = vst.msk [vmem:[#allocation4 + $0xd8] sm:$0x3f] %vm11440_vm3, %v25770_v19 }
 0x829   : > { %11260 = vst [vmem:[#allocation2 + $0xf0] sm:$0xff] %v20704_v44  ;;  %v12115_v44 = vld [vmem:[%s26876_s3 + $0x138] sm:$0xff] }
 0x82a   : > { %v25910_v13 = vld [vmem:[#allocation3 + $0xb0] sm:$0xff]  ;;  %v20315_v41 = vpack.c.bf16 %v12115_v44, %v12114_v53  ;;  %v26085_v44 = vld [vmem:[#allocation3 + $0x3a] sm:$0xff] }
 0x82b   : > { %v11389_v62 = vld [vmem:[#allocation2 + $0xce] sm:$0x3f]  ;;  %19574 = vmatprep.mubr.f32.mxu1 %v25910_v13 }
 0x82c   : > { %v11391_v27 = vadd.f32 %v25648_v36, %v11389_v62  ;;  %v25920_v24 = vld [vmem:[#allocation3 + $0xb8] sm:$0xff] }
 0x82d   : > { %19575 = vmatmul.mubr.f32.gmra.mrb[156].mxu1 %v25920_v24  ;;  %v25923_v39 = vld [vmem:[#allocation3 + $0xc0] sm:$0xff]  ;;  %v25930_v5 = vld [vmem:[#allocation3 + $0xd0] sm:$0xff] }
 0x82e   : > { %v11393_v57 = vmax.f32 %v11391_v27, 0.0  ;;  %v11397_v47 = vld [vmem:[#allocation2 + $0xe0] sm:$0x3f]  ;;  %19577 = vmatprep.mubr.f32.mxu1 %v25923_v39  ;;  %v12110_v27 = vld [vmem:[%s26876_s3 + $0x110] sm:$0xff] }
 0x82f   : > { %v11399_v61 = vadd.f32 %v25648_v36, %v11397_v47  ;;  %v20307_v60 = vpack.c.bf16 %v12111_v12, %v12110_v27  ;;  %v12118_v47 = vld [vmem:[%s26876_s3 + $0x150] sm:$0xff]  ;;  %v12448_v27 = vld [vmem:[%s26876_s3 + $0x1b8] sm:$0xff] }
 0x830   : > { %11395 = vst [vmem:[#allocation3 + $0xc9] sm:$0x3f] %v11393_v57  ;;  %v11404_v6 = vld [vmem:[#allocation2 + $0xea] sm:$0xff]  ;;  %v11405_v29 = vld [vmem:[#allocation2 + $0xf2] sm:$0x3f]  ;;  %v26070_v12 = vld [vmem:[#allocation3 + $0x22] sm:$0xff] }
 0x831   : > { %v11401_v22 = vmax.f32 %v11399_v61, 0.0  ;;  %v11406_v42 = vadd.f32 %v25648_v36, %v11404_v6  ;;  %v11407_v18 = vadd.f32 %v25648_v36, %v11405_v29  ;;  %v12112_v36 = vld [vmem:[%s26876_s3 + $0x120] sm:$0xff]  ;;  %v12119_v61 = vld [vmem:[%s26876_s3 + $0x158] sm:$0xff]  ;;  %v12121_v6 = vld [vmem:[%s26876_s3 + $0x168] sm:$0xff] }
 0x832   : > { %v20311_v57 = vpack.c.bf16 %v12113_v50, %v12112_v36  ;;  %v20323_v40 = vpack.c.bf16 %v12119_v61, %v12118_v47  ;;  %v12122_v29 = vld [vmem:[%s26876_s3 + $0x170] sm:$0xff]  ;;  %v12449_v36 = vld [vmem:[%s26876_s3 + $0x1c0] sm:$0xff]  ;;  %v12450_v50 = vld [vmem:[%s26876_s3 + $0x1c8] sm:$0xff] }
 0x833   : > { %11403 = vst [vmem:[#allocation3 + $0xd9] sm:$0x3f] %v11401_v22  ;;  %v11408_v58 = vmax.f32 %v11406_v42, 0.0  ;;  %v11409_v25 = vmax.f32 %v11407_v18, 0.0  ;;  %v12120_v22 = vld [vmem:[%s26876_s3 + $0x160] sm:$0xff]  ;;  %v12123_v42 = vld [vmem:[%s26876_s3 + $0x178] sm:$0xff]  ;;  %v20351_v53 = vpack.c.bf16 %v12450_v50, %v12449_v36 }
 0x834   : > { %v20327_v17 = vpack.c.bf16 %v12121_v6, %v12120_v22  ;;  %v20331_v30 = vpack.c.bf16 %v12123_v42, %v12122_v29  ;;  %v12441_v18 = vld [vmem:[%s26876_s3 + $0x180] sm:$0xff]  ;;  %v26036_v54 = vld [vmem:[#allocation3 + $0xb9] sm:$0xff] }
 0x835   : > { %11410 = vst [vmem:[#allocation3 + $0xe1] sm:$0xff] %v11408_v58  ;;  %11411 = vst [vmem:[#allocation3 + $0xe9] sm:$0x3f] %v11409_v25  ;;  %v12442_v58 = vld [vmem:[%s26876_s3 + $0x188] sm:$0xff]  ;;  %v26061_v25 = vld [vmem:[#allocation3 + $0x1a] sm:$0xff] }
 0x836   : > { %v20335_v31 = vpack.c.bf16 %v12442_v58, %v12441_v18  ;;  %v26097_v47 = vld [vmem:[#allocation3 + $0x4a] sm:$0xff]  ;;  %v26106_v22 = vld [vmem:[#allocation3 + $0x52] sm:$0xff]  ;;  %v12456_v42 = vld [vmem:[%s26876_s3 + $0x1f8] sm:$0xff] }
 0x837   : > { %v25927_v45 = vld [vmem:[#allocation3 + $0xc8] sm:$0xff]  ;;  %v12455_v29 = vld [vmem:[%s26876_s3 + $0x1f0] sm:$0xff] }
 0x838   : > { %19578 = vmatmul.mubr.f32.gmra.mrb[158].mxu1 %v25927_v45  ;;  %v26041_v55 = vld [vmem:[#allocation3 + $0xc9] sm:$0xff]  ;;  %v20363_v18 = vpack.c.bf16 %v12456_v42, %v12455_v29  ;;  %v26126_v50 = vld [vmem:[#allocation3 + $0xba] sm:$0xff] }
 0x839   : > { %19580 = vmatprep.mubr.f32.mxu1 %v25930_v5  ;;  %v12453_v61 = vld [vmem:[%s26876_s3 + $0x1e0] sm:$0xff]  ;;  %v12776_v42 = vld [vmem:[%s26876_s3 + $0x210] sm:$0xff] }
 0x83a   : > { %v11513_v62 = vld [vmem:[#allocation3 + $0xd8] sm:$0x3f]  ;;  %v12165_v58 = vld [vmem:[#allocation3 + $0x6a] sm:$0xff] }
 0x83b   : > { %v12179_v29 = vld [vmem:[#allocation3 + $0xda] sm:$0x3f] }
 0x83c   : > { %19581 = vmatmul.mubr.f32.gmra.mrb[160].mxu1 %v11513_v62  ;;  %v12447_v62 = vld [vmem:[%s26876_s3 + $0x1b0] sm:$0xff] }
 0x83d   : > { %19615 = vmatprep.mubr.f32.mxu1 %v11819_v52  ;;  %v26021_v52 = vld [vmem:[#allocation3 + $0x89] sm:$0xff] }
 0x840   : > { %19616 = vmatmul.mubr.f32.vlgmr.msra.gmra.mrb[162].mxu1 %v11820_v20  ;;  %v20347_v20 = vpack.c.bf16 %v12448_v27, %v12447_v62  ;;  %v26123_v62 = vld [vmem:[#allocation3 + $0xb2] sm:$0xff] }
 0x841   : > { %20306 = vmatpush3.bf16.msra.mxu1 %v25675_v33  ;;  %19618 = vmatprep.mubr.f32.mxu1 %v11304_v8  ;;  %v25961_v8 = vld [vmem:[#allocation3 + $0x29] sm:$0xff]  ;;  %v11461_v27 = vld [vmem:[#allocation4 + $0x18] sm:$0xff] }
 0x842   : > { %20308 = vmatprep.subr.bf16.mxu1 %v20307_v60  ;;  %v12116_v33 = vld [vmem:[%s26876_s3 + $0x140] sm:$0xff] }
 0x843   : > { %v20319_v23 = vpack.c.bf16 %v12117_v37, %v12116_v33  ;;  %v12452_v33 = vld [vmem:[%s26876_s3 + $0x1d8] sm:$0xff] }
 0x844   : > { %19619 = vmatmul.mubr.f32.gmra.mrb[164].mxu1 %v25950_v11  ;;  %v26094_v37 = vld [vmem:[#allocation3 + $0x42] sm:$0xff] }
 0x845   : > { %19621 = vmatprep.mubr.f32.mxu1 %v11312_v51  ;;  %20310 = vmatpush3.bf16.msra.mxu1 %v20307_v60  ;;  %v25972_v51 = vld [vmem:[#allocation3 + $0x39] sm:$0xff]  ;;  %v26073_v60 = vld [vmem:[#allocation3 + $0x2a] sm:$0xff] }
 0x846   : > { %20312 = vmatprep.subr.bf16.mxu1 %v20311_v57 }
 0x848   : > { %19622 = vmatmul.mubr.f32.gmra.mrb[166].mxu1 %v25961_v8 }
 0x849   : > { %19624 = vmatprep.mubr.f32.mxu1 %v11320_v28  ;;  %20314 = vmatpush3.bf16.msra.mxu1 %v20311_v57  ;;  %v25983_v28 = vld [vmem:[#allocation3 + $0x49] sm:$0xff]  ;;  %v26082_v57 = vld [vmem:[#allocation3 + $0x32] sm:$0xff] }
 0x84a   : > { %20316 = vmatprep.subr.bf16.mxu1 %v20315_v41 }
 0x84c   : > { %19625 = vmatmul.mubr.f32.gmra.mrb[168].mxu1 %v25972_v51 }
 0x84d   : > { %19627 = vmatprep.mubr.f32.mxu1 %v11328_v2  ;;  %20318 = vmatpush3.bf16.msra.mxu1 %v20315_v41  ;;  %v25994_v2 = vld [vmem:[#allocation3 + $0x59] sm:$0xff] }
 0x84e   : > { %20320 = vmatprep.subr.bf16.mxu1 %v20319_v23  ;;  %v12451_v41 = vld [vmem:[%s26876_s3 + $0x1d0] sm:$0xff] }
 0x850   : > { %19628 = vmatmul.mubr.f32.gmra.mrb[170].mxu1 %v25983_v28 }
 0x851   : > { %19630 = vmatprep.mubr.f32.mxu1 %v11336_v63  ;;  %20322 = vmatpush3.bf16.msra.mxu1 %v20319_v23  ;;  %v26005_v63 = vld [vmem:[#allocation3 + $0x69] sm:$0xff]  ;;  %v20355_v23 = vpack.c.bf16 %v12452_v33, %v12451_v41 }
 0x852   : > { %20324 = vmatprep.subr.bf16.mxu1 %v20323_v40  ;;  %v26129_v33 = vld [vmem:[#allocation3 + $0xc2] sm:$0xff] }
 0x854   : > { %19631 = vmatmul.mubr.f32.gmra.mrb[172].mxu1 %v25994_v2 }
 0x855   : > { %19633 = vmatprep.mubr.f32.mxu1 %v11344_v43  ;;  %20326 = vmatpush3.bf16.msra.mxu1 %v20323_v40  ;;  %v26016_v43 = vld [vmem:[#allocation3 + $0x79] sm:$0xff]  ;;  %v12454_v40 = vld [vmem:[%s26876_s3 + $0x1e8] sm:$0xff] }
 0x856   : > { %20328 = vmatprep.subr.bf16.mxu1 %v20327_v17  ;;  %v20359_v6 = vpack.c.bf16 %v12454_v40, %v12453_v61  ;;  %v26134_v61 = vld [vmem:[#allocation3 + $0xca] sm:$0xff]  ;;  %v26137_v40 = vld [vmem:[#allocation3 + $0xd2] sm:$0xff] }
 0x858   : > { %19634 = vmatmul.mubr.f32.gmra.mrb[174].mxu1 %v26005_v63 }
 0x859   : > { %19636 = vmatprep.mubr.f32.mxu1 %v11352_v46  ;;  %20330 = vmatpush3.bf16.msra.mxu1 %v20327_v17  ;;  %v26031_v46 = vld [vmem:[#allocation3 + $0xa9] sm:$0xff]  ;;  %v12163_v17 = vld [vmem:[#allocation3 + $0x5a] sm:$0xff] }
 0x85a   : > { %20332 = vmatprep.subr.bf16.mxu1 %v20331_v30 }
 0x85c   : > { %19637 = vmatmul.mubr.f32.gmra.mrb[176].mxu1 %v26016_v43 }
 0x85d   : > { %19639 = vmatprep.mubr.f32.mxu1 %v11360_v34  ;;  %20334 = vmatpush3.bf16.msra.mxu1 %v20331_v30  ;;  %v12152_v34 = vld [vmem:[#allocation3 + $0x2] sm:$0xff] }
 0x85e   : > { %20336 = vmatprep.subr.bf16.mxu1 %v20335_v31  ;;  %v12164_v30 = vld [vmem:[#allocation3 + $0x62] sm:$0xff] }
 0x860   : > { %19640 = vmatmul.mubr.f32.gmra.mrb[178].mxu1 %v26021_v52 }
 0x861   : > { %19642 = vmatprep.mubr.f32.mxu1 %v11368_v14  ;;  %v11846_v14 = vld [vmem:[#allocation3 + $0xd9] sm:$0x3f] }
 0x864   : > { %19643 = vmatmul.mubr.f32.gmra.mrb[180].mxu1 %v26026_v32 }
 0x865   : > { %19645 = vmatprep.mubr.f32.mxu1 %v11376_v16  ;;  %v12444_v16 = vld [vmem:[%s26876_s3 + $0x198] sm:$0xff] }
 0x866   : > { %v20339_v0 = vpack.c.bf16 %v12444_v16, %v12443_v56  ;;  %v12167_v56 = vld [vmem:[#allocation3 + $0x7a] sm:$0xff]  ;;  %v12168_v16 = vld [vmem:[#allocation3 + $0x82] sm:$0xff] }
 0x868   : > { %19646 = vmatmul.mubr.f32.gmra.mrb[182].mxu1 %v26031_v46 }
 0x869   : > { %19648 = vmatprep.mubr.f32.mxu1 %v11384_v7  ;;  %v12153_v7 = vld [vmem:[#allocation3 + $0xa] sm:$0xff] }
 0x86c   : > { %19649 = vmatmul.mubr.f32.gmra.mrb[184].mxu1 %v26036_v54 }
 0x86d   : > { %19651 = vmatprep.mubr.f32.mxu1 %v11392_v26  ;;  %v26058_v26 = vld [vmem:[#allocation3 + $0x12] sm:$0xff] }
 0x870   : > { %19652 = vmatmul.mubr.f32.gmra.mrb[186].mxu1 %v26041_v55 }
 0x871   : > { %19654 = vmatprep.mubr.f32.mxu1 %v11400_v38  ;;  %v20343_v38 = vpack.c.bf16 %v12446_v15, %v12445_v35  ;;  %v12171_v35 = vld [vmem:[#allocation3 + $0x9a] sm:$0xff]  ;;  %v12172_v15 = vld [vmem:[#allocation3 + $0xa2] sm:$0xff] }
 0x874   : > { %19655 = vmatmul.mubr.f32.gmra.mrb[188].mxu1 %v11846_v14  ;;  %v12166_v14 = vld [vmem:[#allocation3 + $0x72] sm:$0xff] }
 0x875   : > { %19689 = vmatprep.mubr.f32.mxu1 %v12152_v34  ;;  %v12775_v34 = vld [vmem:[%s26876_s3 + $0x208] sm:$0xff] }
 0x878   : > { %19690 = vmatmul.mubr.f32.vlgmr.msra.gmra.mrb[190].mxu1 %v12153_v7  ;;  %v12170_v7 = vld [vmem:[#allocation3 + $0x92] sm:$0xff] }
 0x879   : > { %20338 = vmatpush3.bf16.msra.mxu1 %v20335_v31  ;;  %19692 = vmatprep.mubr.f32.mxu1 %v26058_v26  ;;  %v12774_v31 = vld [vmem:[%s26876_s3 + $0x200] sm:$0xff] }
 0x87a   : > { %20340 = vmatprep.subr.bf16.mxu1 %v20339_v0  ;;  %v20367_v19 = vpack.c.bf16 %v12775_v34, %v12774_v31 }
 0x87c   : > { %19693 = vmatmul.mubr.f32.gmra.mrb[192].mxu1 %v26061_v25 }
 0x87d   : > { %19695 = vmatprep.mubr.f32.mxu1 %v26070_v12  ;;  %20342 = vmatpush3.bf16.msra.mxu1 %v20339_v0  ;;  %v12169_v0 = vld [vmem:[#allocation3 + $0x8a] sm:$0xff] }
 0x87e   : > { %20344 = vmatprep.subr.bf16.mxu1 %v20343_v38 }
 0x880   : > { %19696 = vmatmul.mubr.f32.gmra.mrb[194].mxu1 %v26073_v60 }
 0x881   : > { %19698 = vmatprep.mubr.f32.mxu1 %v26082_v57  ;;  %20346 = vmatpush3.bf16.msra.mxu1 %v20343_v38  ;;  %v12173_v38 = vld [vmem:[#allocation3 + $0xaa] sm:$0xff] }
 0x882   : > { %20348 = vmatprep.subr.bf16.mxu1 %v20347_v20 }
 0x884   : > { %19699 = vmatmul.mubr.f32.gmra.mrb[196].mxu1 %v26085_v44 }
 0x885   : > { %19701 = vmatprep.mubr.f32.mxu1 %v26094_v37  ;;  %20350 = vmatpush3.bf16.msra.mxu1 %v20347_v20  ;;  %v11460_v20 = vld [vmem:[#allocation4 + $0x10] sm:$0xff] }
 0x886   : > { %20352 = vmatprep.subr.bf16.mxu1 %v20351_v53 }
 0x888   : > { %19702 = vmatmul.mubr.f32.gmra.mrb[198].mxu1 %v26097_v47 }
 0x889   : > { %19704 = vmatprep.mubr.f32.mxu1 %v26106_v22  ;;  %20354 = vmatpush3.bf16.msra.mxu1 %v20351_v53 }
 0x88a   : > { %20356 = vmatprep.subr.bf16.mxu1 %v20355_v23 }
 0x88c   : > { %19705 = vmatmul.mubr.f32.gmra.mrb[200].mxu1 %v12163_v17  ;;  %v11462_v17 = vld [vmem:[#allocation4 + $0x20] sm:$0xff] }
 0x88d   : > { %19707 = vmatprep.mubr.f32.mxu1 %v12164_v30  ;;  %20358 = vmatpush3.bf16.msra.mxu1 %v20355_v23  ;;  %v12777_v30 = vld [vmem:[%s26876_s3 + $0x218] sm:$0xff] }
 0x88e   : > { %20360 = vmatprep.subr.bf16.mxu1 %v20359_v6 }
 0x890   : > { %19708 = vmatmul.mubr.f32.gmra.mrb[202].mxu1 %v12165_v58  ;;  %v12485_v58 = vld [vmem:[#allocation3 + $0x10] sm:$0xff] }
 0x891   : > { %19710 = vmatprep.mubr.f32.mxu1 %v12166_v14  ;;  %20362 = vmatpush3.bf16.msra.mxu1 %v20359_v6  ;;  %v11463_v6 = vld [vmem:[#allocation4 + $0x28] sm:$0xff] }
 0x892   : > { %20364 = vmatprep.subr.bf16.mxu1 %v20363_v18 }
 0x894   : > { %19711 = vmatmul.mubr.f32.gmra.mrb[204].mxu1 %v12167_v56  ;;  %v20371_v56 = vpack.c.bf16 %v12777_v30, %v12776_v42 }
 0x895   : > { %19713 = vmatprep.mubr.f32.mxu1 %v12168_v16  ;;  %20366 = vmatpush3.bf16.msra.mxu1 %v20363_v18  ;;  %v12486_v16 = vld [vmem:[#allocation3 + $0x18] sm:$0xff] }
 0x896   : > { %20368 = vmatprep.subr.bf16.mxu1 %v20367_v19 }
 0x898   : > { %19714 = vmatmul.mubr.f32.gmra.mrb[206].mxu1 %v12169_v0  ;;  %v12778_v0 = vld [vmem:[%s26876_s3 + $0x220] sm:$0xff] }
 0x899   : > { %19716 = vmatprep.mubr.f32.mxu1 %v12170_v7  ;;  %v12779_v7 = vld [vmem:[%s26876_s3 + $0x228] sm:$0xff] }
 0x89c   : > { %19717 = vmatmul.mubr.f32.gmra.mrb[208].mxu1 %v12171_v35  ;;  %v19546_v36 = vpop.f32.mrb[136].mxu1  ;;  %v26154_v35 = vld [vmem:[#allocation3 + $0x20] sm:$0xff] }
 0x89d   : > { %19719 = vmatprep.mubr.f32.mxu1 %v12172_v15  ;;  %v11722_v53 = vadd.f32 %v19546_v36, %v11461_v27  ;;  %v11590_v41 = vpop.f32.mrb[137].mxu1  ;;  %v20375_v15 = vpack.c.bf16 %v12779_v7, %v12778_v0  ;;  %v12780_v27 = vld [vmem:[%s26876_s3 + $0x230] sm:$0xff]  ;;  %v12489_v36 = vld [vmem:[#allocation3 + $0x30] sm:$0xff]  ;;  %v11467_v0 = vld [vmem:[#allocation4 + $0x48] sm:$0xff] }
 0x89e   : > { %v11721_v23 = vadd.f32 %v11590_v41, %v11460_v20  ;;  %v12781_v20 = vld [vmem:[%s26876_s3 + $0x238] sm:$0xff]  ;;  %v11464_v41 = vld [vmem:[#allocation4 + $0x30] sm:$0xff] }
 0x89f   : > { %11750 = vst.msk [vmem:[#allocation4 + $0x18] sm:$0xff] %vm11412_vm2, %v11722_v53  ;;  %v11465_v53 = vld [vmem:[#allocation4 + $0x38] sm:$0xff]  ;;  %v11466_v7 = vld [vmem:[#allocation4 + $0x40] sm:$0xff] }
 0x8a0   : > { %19720 = vmatmul.mubr.f32.gmra.mrb[210].mxu1 %v12173_v38  ;;  %11749 = vst.msk [vmem:[#allocation4 + $0x10] sm:$0xff] %vm11412_vm2, %v11721_v23  ;;  %v12488_v38 = vld [vmem:[#allocation3 + $0x28] sm:$0xff] }
 0x8a1   : > { %19722 = vmatprep.mubr.f32.mxu1 %v26123_v62 }
 0x8a4   : > { %19723 = vmatmul.mubr.f32.gmra.mrb[212].mxu1 %v26126_v50 }
 0x8a5   : > { %19725 = vmatprep.mubr.f32.mxu1 %v26129_v33  ;;  %v19549_v18 = vpop.f32.mrb[138].mxu1 }
 0x8a6   : > { %v11724_v31 = vadd.f32 %v19549_v18, %v11463_v6  ;;  %v11600_v34 = vpop.f32.mrb[139].mxu1  ;;  %v12490_v6 = vld [vmem:[#allocation3 + $0x38] sm:$0xff]  ;;  %v12491_v18 = vld [vmem:[#allocation3 + $0x40] sm:$0xff] }
 0x8a7   : > { %v11723_v14 = vadd.f32 %v11600_v34, %v11462_v17  ;;  %v12782_v17 = vld [vmem:[%s26876_s3 + $0x240] sm:$0xff] }
 0x8a8   : > { %19726 = vmatmul.mubr.f32.gmra.mrb[214].mxu1 %v26134_v61  ;;  %11752 = vst.msk [vmem:[#allocation4 + $0x28] sm:$0xff] %vm11412_vm2, %v11724_v31  ;;  %v12492_v34 = vld [vmem:[#allocation3 + $0x48] sm:$0xff] }
 0x8a9   : > { %19728 = vmatprep.mubr.f32.mxu1 %v26137_v40  ;;  %11751 = vst.msk [vmem:[#allocation4 + $0x20] sm:$0xff] %vm11412_vm2, %v11723_v14  ;;  %v12784_v14 = vld [vmem:[%s26876_s3 + $0x250] sm:$0xff] }
 0x8ac   : > { %19729 = vmatmul.mubr.f32.gmra.mrb[216].mxu1 %v12179_v29  ;;  %v12783_v29 = vld [vmem:[%s26876_s3 + $0x248] sm:$0xff] }
 0x8ad   : > { %19763 = vmatprep.mubr.f32.mxu1 %v12485_v58  ;;  %v20383_v31 = vpack.c.bf16 %v12783_v29, %v12782_v17  ;;  %v12788_v17 = vld [vmem:[%s26876_s3 + $0x270] sm:$0xff]  ;;  %v12789_v29 = vld [vmem:[%s26876_s3 + $0x278] sm:$0xff] }
 0x8b0   : > { %19764 = vmatmul.mubr.f32.vlgmr.msra.gmra.mrb[218].mxu1 %v12486_v16  ;;  %v19552_v23 = vpop.f32.mrb[140].mxu1  ;;  %v12493_v16 = vld [vmem:[#allocation3 + $0x50] sm:$0xff] }
 0x8b1   : > { %20370 = vmatpush3.bf16.msra.mxu1 %v20367_v19  ;;  %19766 = vmatprep.mubr.f32.mxu1 %v26154_v35  ;;  %v20379_v19 = vpack.c.bf16 %v12781_v20, %v12780_v27  ;;  %v11726_v42 = vadd.f32 %v19552_v23, %v11465_v53  ;;  %v11610_v30 = vpop.f32.mrb[141].mxu1  ;;  %v12494_v27 = vld [vmem:[#allocation3 + $0x58] sm:$0xff]  ;;  %v12786_v20 = vld [vmem:[%s26876_s3 + $0x260] sm:$0xff]  ;;  %v12495_v23 = vld [vmem:[#allocation3 + $0x60] sm:$0xff] }
 0x8b2   : > { %20372 = vmatprep.subr.bf16.mxu1 %v20371_v56  ;;  %v11725_v58 = vadd.f32 %v11610_v30, %v11464_v41  ;;  %v11468_v30 = vld [vmem:[#allocation4 + $0x50] sm:$0xff] }
 0x8b3   : > { %11754 = vst.msk [vmem:[#allocation4 + $0x38] sm:$0xff] %vm11412_vm2, %v11726_v42  ;;  %v11469_v42 = vld [vmem:[#allocation4 + $0x58] sm:$0xff] }
 0x8b4   : > { %19767 = vmatmul.mubr.f32.gmra.mrb[220].mxu1 %v12488_v38  ;;  %11753 = vst.msk [vmem:[#allocation4 + $0x30] sm:$0xff] %vm11412_vm2, %v11725_v58 }
 0x8b5   : > { %19769 = vmatprep.mubr.f32.mxu1 %v12489_v36  ;;  %20374 = vmatpush3.bf16.msra.mxu1 %v20371_v56  ;;  %v12785_v56 = vld [vmem:[%s26876_s3 + $0x258] sm:$0xff]  ;;  %v12787_v36 = vld [vmem:[%s26876_s3 + $0x268] sm:$0xff] }
 0x8b6   : > { %20376 = vmatprep.subr.bf16.mxu1 %v20375_v15 }
 0x8b8   : > { %19770 = vmatmul.mubr.f32.gmra.mrb[222].mxu1 %v12490_v6  ;;  %v19555_v38 = vpop.f32.mrb[142].mxu1 }
 0x8b9   : > { %19772 = vmatprep.mubr.f32.mxu1 %v12491_v18  ;;  %20378 = vmatpush3.bf16.msra.mxu1 %v20375_v15  ;;  %v20387_v15 = vpack.c.bf16 %v12785_v56, %v12784_v14  ;;  %v11728_v53 = vadd.f32 %v19555_v38, %v11467_v0  ;;  %v11620_v41 = vpop.f32.mrb[143].mxu1  ;;  %v20395_v18 = vpack.c.bf16 %v12789_v29, %v12788_v17  ;;  %v11470_v0 = vld [vmem:[#allocation4 + $0x60] sm:$0xff]  ;;  %v13111_v17 = vld [vmem:[%s26876_s3 + $0x2a0] sm:$0xff]  ;;  %v13112_v29 = vld [vmem:[%s26876_s3 + $0x2a8] sm:$0xff] }
 0x8ba   : > { %20380 = vmatprep.subr.bf16.mxu1 %v20379_v19  ;;  %v11727_v6 = vadd.f32 %v11620_v41, %v11466_v7 }
 0x8bb   : > { %11756 = vst.msk [vmem:[#allocation4 + $0x48] sm:$0xff] %vm11412_vm2, %v11728_v53  ;;  %v13109_v53 = vld [vmem:[%s26876_s3 + $0x290] sm:$0xff] }
 0x8bc   : > { %19773 = vmatmul.mubr.f32.gmra.mrb[224].mxu1 %v12492_v34  ;;  %11755 = vst.msk [vmem:[#allocation4 + $0x40] sm:$0xff] %vm11412_vm2, %v11727_v6  ;;  %v13108_v34 = vld [vmem:[%s26876_s3 + $0x288] sm:$0xff] }
 0x8bd   : > { %19775 = vmatprep.mubr.f32.mxu1 %v12493_v16  ;;  %20382 = vmatpush3.bf16.msra.mxu1 %v20379_v19  ;;  %v20391_v19 = vpack.c.bf16 %v12787_v36, %v12786_v20  ;;  %v11471_v16 = vld [vmem:[#allocation4 + $0x68] sm:$0xff] }
 0x8be   : > { %20384 = vmatprep.subr.bf16.mxu1 %v20383_v31  ;;  %v12512_v36 = vld [vmem:[#allocation3 + $0xe8] sm:$0x3f] }
 0x8c0   : > { %19776 = vmatmul.mubr.f32.gmra.mrb[226].mxu1 %v12494_v27 }
 0x8c1   : > { %19778 = vmatprep.mubr.f32.mxu1 %v12495_v23  ;;  %20386 = vmatpush3.bf16.msra.mxu1 %v20383_v31  ;;  %v19558_v58 = vpop.f32.mrb[144].mxu1  ;;  %v13107_v31 = vld [vmem:[%s26876_s3 + $0x280] sm:$0xff]  ;;  %v12818_v23 = vld [vmem:[#allocation3 + $0x11] sm:$0xff] }
 0x8c2   : > { %20388 = vmatprep.subr.bf16.mxu1 %v20387_v15  ;;  %v11730_v14 = vadd.f32 %v19558_v58, %v11469_v42  ;;  %v11630_v56 = vpop.f32.mrb[145].mxu1  ;;  %v12820_v42 = vld [vmem:[#allocation3 + $0x21] sm:$0xff]  ;;  %v20407_v58 = vpack.c.bf16 %v13112_v29, %v13111_v17 }
 0x8c4   : > { %19779 = vmatmul.mubr.f32.gmra.mrb[228].mxu1 %v25719_v4  ;;  %v11729_v4 = vadd.f32 %v11630_v56, %v11468_v30  ;;  %11758 = vst.msk [vmem:[#allocation4 + $0x58] sm:$0xff] %vm11412_vm2, %v11730_v14  ;;  %v11477_v30 = vld [vmem:[#allocation4 + $0x98] sm:$0xff]  ;;  %v13114_v14 = vld [vmem:[%s26876_s3 + $0x2b8] sm:$0xff] }
 0x8c5   : > { %19781 = vmatprep.mubr.f32.mxu1 %v25734_v10  ;;  %20390 = vmatpush3.bf16.msra.mxu1 %v20387_v15  ;;  %v20399_v10 = vpack.c.bf16 %v13108_v34, %v13107_v31  ;;  %v13113_v34 = vld [vmem:[%s26876_s3 + $0x2b0] sm:$0xff] }
 0x8c6   : > { %20392 = vmatprep.subr.bf16.mxu1 %v20391_v19  ;;  %11757 = vst.msk [vmem:[#allocation4 + $0x50] sm:$0xff] %vm11412_vm2, %v11729_v4 }
 0x8c8   : > { %19782 = vmatmul.mubr.f32.gmra.mrb[230].mxu1 %v25742_v48 }
 0x8c9   : > { %19784 = vmatprep.mubr.f32.mxu1 %v25745_v9  ;;  %20394 = vmatpush3.bf16.msra.mxu1 %v20391_v19 }
 0x8ca   : > { %20396 = vmatprep.subr.bf16.mxu1 %v20395_v18  ;;  %v19561_v7 = vpop.f32.mrb[146].mxu1 }
 0x8cb   : > { %v11732_v48 = vadd.f32 %v19561_v7, %v11471_v16  ;;  %v11640_v9 = vpop.f32.mrb[147].mxu1  ;;  %v20411_v16 = vpack.c.bf16 %v13114_v14, %v13113_v34  ;;  %v13116_v7 = vld [vmem:[%s26876_s3 + $0x2c8] sm:$0xff]  ;;  %v12836_v14 = vld [vmem:[#allocation3 + $0xa1] sm:$0xff] }
 0x8cc   : > { %19785 = vmatmul.mubr.f32.gmra.mrb[232].mxu1 %v25749_v1  ;;  %v11731_v15 = vadd.f32 %v11640_v9, %v11470_v0  ;;  %v11473_v1 = vld [vmem:[#allocation4 + $0x78] sm:$0xff]  ;;  %v13115_v0 = vld [vmem:[%s26876_s3 + $0x2c0] sm:$0xff] }
 0x8cd   : > { %19787 = vmatprep.mubr.f32.mxu1 %v25752_v59  ;;  %20398 = vmatpush3.bf16.msra.mxu1 %v20395_v18  ;;  %11760 = vst.msk [vmem:[#allocation4 + $0x68] sm:$0xff] %vm11412_vm2, %v11732_v48  ;;  %v11472_v59 = vld [vmem:[#allocation4 + $0x70] sm:$0xff]  ;;  %v11479_v48 = vld [vmem:[#allocation4 + $0xa8] sm:$0xff]  ;;  %v20415_v9 = vpack.c.bf16 %v13116_v7, %v13115_v0 }
 0x8ce   : > { %20400 = vmatprep.subr.bf16.mxu1 %v20399_v10  ;;  %11759 = vst.msk [vmem:[#allocation4 + $0x60] sm:$0xff] %vm11412_vm2, %v11731_v15  ;;  %v11476_v18 = vld [vmem:[#allocation4 + $0x90] sm:$0xff]  ;;  %v11478_v15 = vld [vmem:[#allocation4 + $0xa0] sm:$0xff] }
 0x8cf   : > { %v12840_v7 = vld [vmem:[#allocation3 + $0xc1] sm:$0xff] }
 0x8d0   : > { %19788 = vmatmul.mubr.f32.gmra.mrb[234].mxu1 %v25760_v49 }
 0x8d1   : > { %19790 = vmatprep.mubr.f32.mxu1 %v25892_v3 }
 0x8d4   : > { %19791 = vmatmul.mubr.f32.gmra.mrb[236].mxu1 %v25894_v21  ;;  %v19564_v49 = vpop.f32.mrb[148].mxu1  ;;  %v12510_v21 = vld [vmem:[#allocation3 + $0xd8] sm:$0xff] }
 0x8d5   : > { %19793 = vmatprep.mubr.f32.mxu1 %v25910_v13  ;;  %v11734_v38 = vadd.f32 %v19564_v49, %v11473_v1  ;;  %v11650_v27 = vpop.f32.mrb[149].mxu1  ;;  %v12511_v13 = vld [vmem:[#allocation3 + $0xe0] sm:$0xff]  ;;  %v13117_v1 = vld [vmem:[%s26876_s3 + $0x2d0] sm:$0xff] }
 0x8d6   : > { %v11733_v3 = vadd.f32 %v11650_v27, %v11472_v59  ;;  %v13118_v59 = vld [vmem:[%s26876_s3 + $0x2d8] sm:$0xff] }
 0x8d7   : > { %11762 = vst.msk [vmem:[#allocation4 + $0x78] sm:$0xff] %vm11412_vm2, %v11734_v38  ;;  %v12826_v38 = vld [vmem:[#allocation3 + $0x51] sm:$0xff] }
 0x8d8   : > { %19794 = vmatmul.mubr.f32.gmra.mrb[238].mxu1 %v25920_v24  ;;  %11761 = vst.msk [vmem:[#allocation4 + $0x70] sm:$0xff] %vm11412_vm2, %v11733_v3  ;;  %v11475_v24 = vld [vmem:[#allocation4 + $0x88] sm:$0xff] }
 0x8d9   : > { %19796 = vmatprep.mubr.f32.mxu1 %v25923_v39  ;;  %v11474_v39 = vld [vmem:[#allocation4 + $0x80] sm:$0xff] }
 0x8dc   : > { %19797 = vmatmul.mubr.f32.gmra.mrb[240].mxu1 %v25927_v45  ;;  %v19567_v20 = vpop.f32.mrb[150].mxu1  ;;  %v13110_v45 = vld [vmem:[%s26876_s3 + $0x298] sm:$0xff] }
 0x8dd   : > { %19799 = vmatprep.mubr.f32.mxu1 %v25930_v5  ;;  %v11736_v5 = vadd.f32 %v19567_v20, %v11475_v24  ;;  %v11660_v41 = vpop.f32.mrb[151].mxu1  ;;  %v20403_v19 = vpack.c.bf16 %v13110_v45, %v13109_v53  ;;  %v13120_v24 = vld [vmem:[%s26876_s3 + $0x2e8] sm:$0xff]  ;;  %v13121_v20 = vld [vmem:[%s26876_s3 + $0x2f0] sm:$0xff] }
 0x8de   : > { %v11735_v6 = vadd.f32 %v11660_v41, %v11474_v39  ;;  %v12830_v53 = vld [vmem:[#allocation3 + $0x71] sm:$0xff] }
 0x8df   : > { %11764 = vst.msk [vmem:[#allocation4 + $0x88] sm:$0xff] %vm11412_vm2, %v11736_v5  ;;  %v11481_v45 = vld [vmem:[#allocation4 + $0xb8] sm:$0xff] }
 0x8e0   : > { %19800 = vmatmul.mubr.f32.gmra.mrb[242].mxu1 %v12510_v21  ;;  %11763 = vst.msk [vmem:[#allocation4 + $0x80] sm:$0xff] %vm11412_vm2, %v11735_v6  ;;  %v20419_v21 = vpack.c.bf16 %v13118_v59, %v13117_v1  ;;  %v13441_v6 = vld [vmem:[%s26876_s3 + $0x308] sm:$0xff] }
 0x8e1   : > { %19802 = vmatprep.mubr.f32.mxu1 %v12511_v13  ;;  %v13119_v13 = vld [vmem:[%s26876_s3 + $0x2e0] sm:$0xff]  ;;  %v12842_v1 = vld [vmem:[#allocation3 + $0xd1] sm:$0xff] }
 0x8e2   : > { %v20423_v39 = vpack.c.bf16 %v13120_v24, %v13119_v13  ;;  %v11796_v24 = vld [vmem:[#allocation4 + $0x28] sm:$0xff] }
 0x8e4   : > { %19803 = vmatmul.mubr.f32.gmra.mrb[244].mxu1 %v12512_v36  ;;  %v13122_v36 = vld [vmem:[%s26876_s3 + $0x2f8] sm:$0xff] }
 0x8e5   : > { %19837 = vmatprep.mubr.f32.mxu1 %v12818_v23  ;;  %v19570_v31 = vpop.f32.mrb[152].mxu1  ;;  %v20427_v5 = vpack.c.bf16 %v13122_v36, %v13121_v20  ;;  %v13440_v23 = vld [vmem:[%s26876_s3 + $0x300] sm:$0xff]  ;;  %v13443_v20 = vld [vmem:[%s26876_s3 + $0x318] sm:$0xff] }
 0x8e6   : > { %v11738_v56 = vadd.f32 %v19570_v31, %v11477_v30  ;;  %v11670_v4 = vpop.f32.mrb[153].mxu1  ;;  %v12834_v30 = vld [vmem:[#allocation3 + $0x91] sm:$0xff] }
 0x8e8   : > { %19838 = vmatmul.mubr.f32.vlgmr.msra.gmra.mrb[246].mxu1 %v25950_v11  ;;  %v12822_v11 = vld [vmem:[#allocation3 + $0x31] sm:$0xff]  ;;  %11766 = vst.msk [vmem:[#allocation4 + $0x98] sm:$0xff] %vm11412_vm2, %v11738_v56 }
 0x8e9   : > { %20402 = vmatpush3.bf16.msra.mxu1 %v20399_v10  ;;  %19840 = vmatprep.mubr.f32.mxu1 %v12820_v42  ;;  %v11737_v10 = vadd.f32 %v11670_v4, %v11476_v18  ;;  %v26279_v42 = vpack.c.bf16 %v13441_v6, %v13440_v23  ;;  %v11483_v18 = vld [vmem:[#allocation4 + $0xc8] sm:$0xff]  ;;  %v11485_v4 = vld [vmem:[#allocation4 + $0xd8] sm:$0x3f] }
 0x8ea   : > { %20404 = vmatprep.subr.bf16.mxu1 %v20403_v19  ;;  %v13444_v6 = vld [vmem:[%s26876_s3 + $0x320] sm:$0xff] }
 0x8eb   : > { %11765 = vst.msk [vmem:[#allocation4 + $0x90] sm:$0xff] %vm11412_vm2, %v11737_v10 }
 0x8ec   : > { %19841 = vmatmul.mubr.f32.gmra.mrb[248].mxu1 %v25961_v8  ;;  %v12824_v8 = vld [vmem:[#allocation3 + $0x41] sm:$0xff] }
 0x8ed   : > { %19843 = vmatprep.mubr.f32.mxu1 %v12822_v11  ;;  %20406 = vmatpush3.bf16.msra.mxu1 %v20403_v19  ;;  %v11484_v11 = vld [vmem:[#allocation4 + $0xd0] sm:$0xff] }
 0x8ee   : > { %20408 = vmatprep.subr.bf16.mxu1 %v20407_v58  ;;  %v19573_v49 = vpop.f32.mrb[154].mxu1 }
 0x8ef   : > { %v11680_v27 = vpop.f32.mrb[155].mxu1 }
 0x8f0   : > { %19844 = vmatmul.mubr.f32.gmra.mrb[250].mxu1 %v25972_v51  ;;  %v11740_v51 = vadd.f32 %v19573_v49, %v11479_v48  ;;  %v11739_v3 = vadd.f32 %v11680_v27, %v11478_v15  ;;  %v11793_v27 = vld [vmem:[#allocation4 + $0x10] sm:$0xff] }
 0x8f1   : > { %19846 = vmatprep.mubr.f32.mxu1 %v12824_v8  ;;  %20410 = vmatpush3.bf16.msra.mxu1 %v20407_v58  ;;  %v11482_v58 = vld [vmem:[#allocation4 + $0xc0] sm:$0xff]  ;;  %v11792_v8 = vld [vmem:[#allocation4 + $0x8] sm:$0xff] }
 0x8f2   : > { %20412 = vmatprep.subr.bf16.mxu1 %v20411_v16  ;;  %11768 = vst.msk [vmem:[#allocation4 + $0xa8] sm:$0xff] %vm11412_vm2, %v11740_v51  ;;  %11767 = vst.msk [vmem:[#allocation4 + $0xa0] sm:$0xff] %vm11412_vm2, %v11739_v3 }
 0x8f4   : > { %19847 = vmatmul.mubr.f32.gmra.mrb[252].mxu1 %v25983_v28  ;;  %v12828_v28 = vld [vmem:[#allocation3 + $0x61] sm:$0xff] }
 0x8f5   : > { %19849 = vmatprep.mubr.f32.mxu1 %v12826_v38  ;;  %20414 = vmatpush3.bf16.msra.mxu1 %v20411_v16  ;;  %v12843_v38 = vld [vmem:[#allocation3 + $0xd9] sm:$0xff] }
 0x8f6   : > { %20416 = vmatprep.subr.bf16.mxu1 %v20415_v9 }
 0x8f8   : > { %19850 = vmatmul.mubr.f32.gmra.mrb[254].mxu1 %v25994_v2  ;;  %v11480_v2 = vld [vmem:[#allocation4 + $0xb0] sm:$0xff] }
 0x8f9   : > { %19852 = vmatprep.mubr.f32.mxu1 %v12828_v28  ;;  %20418 = vmatpush3.bf16.msra.mxu1 %v20415_v9 }
 0x8fa   : > { %20420 = vmatprep.subr.bf16.mxu1 %v20419_v21 }
 0x8fc   : > { %19853 = vmatmul.mubr.f32.gmra.mrb[0].mxu1 %v26005_v63  ;;  %v12832_v63 = vld [vmem:[#allocation3 + $0x81] sm:$0xff] }
 0x8fd   : > { %19855 = vmatprep.mubr.f32.mxu1 %v12830_v53  ;;  %20422 = vmatpush3.bf16.msra.mxu1 %v20419_v21  ;;  %v12844_v21 = vld [vmem:[#allocation3 + $0xe1] sm:$0xff] }
 0x8fe   : > { %20424 = vmatprep.subr.bf16.mxu1 %v20423_v39  ;;  %v11795_v53 = vld [vmem:[#allocation4 + $0x20] sm:$0xff] }
 0x900   : > { %v19576_v41 = vpop.f32.mrb[156].mxu1  ;;  %19856 = vmatmul.mubr.f32.gmra.mrb[18].mxu1 %v26016_v43 }
 0x901   : > { %v11742_v19 = vadd.f32 %v19576_v41, %v11481_v45  ;;  %v11690_v17 = vpop.f32.mrb[157].mxu1  ;;  %19858 = vmatprep.mubr.f32.mxu1 %v12832_v63  ;;  %20426 = vmatpush3.bf16.msra.mxu1 %v20423_v39  ;;  %v13442_v39 = vld [vmem:[%s26876_s3 + $0x310] sm:$0xff]  ;;  %v11797_v63 = vld [vmem:[#allocation4 + $0x30] sm:$0xff] }
 0x902   : > { %v11741_v29 = vadd.f32 %v11690_v17, %v11480_v2  ;;  %20428 = vmatprep.subr.bf16.mxu1 %v20427_v5  ;;  %v11798_v41 = vld [vmem:[#allocation4 + $0x38] sm:$0xff] }
 0x903   : > { %11770 = vst.msk [vmem:[#allocation4 + $0xb8] sm:$0xff] %vm11412_vm2, %v11742_v19  ;;  %v13445_v19 = vld [vmem:[%s26876_s3 + $0x328] sm:$0xff] }
 0x904   : > { %11769 = vst.msk [vmem:[#allocation4 + $0xb0] sm:$0xff] %vm11412_vm2, %v11741_v29  ;;  %19859 = vmatmul.mubr.f32.gmra.mrb[36].mxu1 %v26021_v52  ;;  %v12838_v52 = vld [vmem:[#allocation3 + $0xb1] sm:$0xff] }
 0x905   : > { %19861 = vmatprep.mubr.f32.mxu1 %v12834_v30  ;;  %20430 = vmatpush3.bf16.msra.mxu1 %v20427_v5  ;;  %v20435_v5 = vpack.c.bf16 %v13443_v20, %v13442_v39  ;;  %v20439_v30 = vpack.c.bf16 %v13445_v19, %v13444_v6  ;;  %v13455_v39 = vld [vmem:[%s26876_s3 + $0x378] sm:$0xff]  ;;  %v13773_v19 = vld [vmem:[%s26876_s3 + $0x380] sm:$0xff] }
 0x906   : > { %20432 = vmatprep.subr.bf16.mxu1 %v26279_v42 }
 0x908   : > { %19862 = vmatmul.mubr.f32.gmra.mrb[54].mxu1 %v26026_v32 }
 0x909   : > { %19864 = vmatprep.mubr.f32.mxu1 %v12836_v14 }
 0x90b   : > { %v19579_v43 = vpop.f32.mrb[158].mxu1 }
 0x90c   : > { %v11744_v31 = vadd.f32 %v19579_v43, %v11483_v18  ;;  %v11700_v34 = vpop.f32.mrb[159].mxu1  ;;  %19865 = vmatmul.mubr.f32.gmra.mrb[62].mxu1 %v26031_v46  ;;  %v11791_v46 = vld [vmem:[#allocation4] sm:$0xff]  ;;  %v11800_v18 = vld [vmem:[#allocation4 + $0x48] sm:$0xff]  ;;  %v13446_v43 = vld [vmem:[%s26876_s3 + $0x330] sm:$0xff] }
 0x90d   : > { %v11743_v56 = vadd.f32 %v11700_v34, %v11482_v58  ;;  %19867 = vmatprep.mubr.f32.mxu1 %v12838_v52 }
 0x90e   : > { %11772 = vst.msk [vmem:[#allocation4 + $0xc8] sm:$0xff] %vm11412_vm2, %v11744_v31 }
 0x90f   : > { %11771 = vst.msk [vmem:[#allocation4 + $0xc0] sm:$0xff] %vm11412_vm2, %v11743_v56  ;;  %v19582_v10 = vpop.f32.mrb[160].mxu1  ;;  %v11802_v56 = vld [vmem:[#allocation4 + $0x58] sm:$0xff] }
 0x910   : > { %v11746_v16 = vadd.f32 %v19582_v10, %v11485_v4  ;;  %v11710_v0 = vpop.f32.mrb[161].mxu1  ;;  %19868 = vmatmul.mubr.f32.gmra.mrb[64].mxu1 %v26036_v54  ;;  %v11794_v54 = vld [vmem:[#allocation4 + $0x18] sm:$0xff]  ;;  %v13448_v4 = vld [vmem:[%s26876_s3 + $0x340] sm:$0xff]  ;;  %v11801_v10 = vld [vmem:[#allocation4 + $0x50] sm:$0xff] }
 0x911   : > { %v11745_v32 = vadd.f32 %v11710_v0, %v11484_v11  ;;  %19870 = vmatprep.mubr.f32.mxu1 %v12840_v7  ;;  %v11804_v7 = vld [vmem:[#allocation4 + $0x68] sm:$0xff] }
 0x912   : > { %11774 = vst.msk [vmem:[#allocation4 + $0xd8] sm:$0x3f] %vm11440_vm3, %v11746_v16 }
 0x913   : > { %11773 = vst.msk [vmem:[#allocation4 + $0xd0] sm:$0xff] %vm11412_vm2, %v11745_v32  ;;  %v19617_v48 = vpop.f32.mrb[162].mxu1 }
 0x914   : > { %v12053_v9 = vadd.f32 %v19617_v48, %v11792_v8  ;;  %v11913_v15 = vpop.f32.mrb[163].mxu1  ;;  %19871 = vmatmul.mubr.f32.gmra.mrb[66].mxu1 %v26041_v55  ;;  %v12845_v55 = vld [vmem:[#allocation3 + $0xe9] sm:$0x3f]  ;;  %v13450_v8 = vld [vmem:[%s26876_s3 + $0x350] sm:$0xff] }
 0x915   : > { %v12052_v59 = vadd.f32 %v11913_v15, %v11791_v46  ;;  %19873 = vmatprep.mubr.f32.mxu1 %v12842_v1  ;;  %v13160_v15 = vld [vmem:[#allocation3 + $0x5a] sm:$0xff] }
 0x916   : > { %12081 = vst.msk [vmem:[#allocation4 + $0x8] sm:$0xff] %vm11412_vm2, %v12053_v9  ;;  %v11803_v9 = vld [vmem:[#allocation4 + $0x60] sm:$0xff] }
 0x917   : > { %12080 = vst.msk [vmem:[#allocation4] sm:$0xff] %vm11412_vm2, %v12052_v59  ;;  %v19620_v49 = vpop.f32.mrb[164].mxu1  ;;  %v11806_v59 = vld [vmem:[#allocation4 + $0x78] sm:$0xff] }
 0x918   : > { %v12055_v51 = vadd.f32 %v19620_v49, %v11794_v54  ;;  %v11923_v3 = vpop.f32.mrb[165].mxu1  ;;  %19874 = vmatmul.mubr.f32.gmra.mrb[68].mxu1 %v12843_v38  ;;  %v13452_v49 = vld [vmem:[%s26876_s3 + $0x360] sm:$0xff] }
 0x919   : > { %v12054_v13 = vadd.f32 %v11923_v3, %v11793_v27  ;;  %19876 = vmatprep.mubr.f32.mxu1 %v12844_v21  ;;  %v13161_v27 = vld [vmem:[#allocation3 + $0x62] sm:$0xff]  ;;  %v13162_v21 = vld [vmem:[#allocation3 + $0x6a] sm:$0xff] }
 0x91a   : > { %12083 = vst.msk [vmem:[#allocation4 + $0x18] sm:$0xff] %vm11412_vm2, %v12055_v51 }
 0x91b   : > { %12082 = vst.msk [vmem:[#allocation4 + $0x10] sm:$0xff] %vm11412_vm2, %v12054_v13  ;;  %v19623_v28 = vpop.f32.mrb[166].mxu1 }
 0x91c   : > { %v12057_v36 = vadd.f32 %v19623_v28, %v11796_v24  ;;  %v11933_v45 = vpop.f32.mrb[167].mxu1  ;;  %19877 = vmatmul.mubr.f32.gmra.mrb[70].mxu1 %v12845_v55  ;;  %v11808_v55 = vld [vmem:[#allocation4 + $0x88] sm:$0xff]  ;;  %v13454_v28 = vld [vmem:[%s26876_s3 + $0x370] sm:$0xff] }
 0x91d   : > { %v12056_v2 = vadd.f32 %v11933_v45, %v11795_v53  ;;  %19911 = vmatprep.mubr.f32.mxu1 %v26058_v26  ;;  %v13163_v45 = vld [vmem:[#allocation3 + $0x72] sm:$0xff] }
 0x91e   : > { %12085 = vst.msk [vmem:[#allocation4 + $0x28] sm:$0xff] %vm11412_vm2, %v12057_v36  ;;  %v11807_v36 = vld [vmem:[#allocation4 + $0x80] sm:$0xff] }
 0x91f   : > { %12084 = vst.msk [vmem:[#allocation4 + $0x20] sm:$0xff] %vm11412_vm2, %v12056_v2  ;;  %v19626_v23 = vpop.f32.mrb[168].mxu1 }
 0x920   : > { %v12059_v17 = vadd.f32 %v19626_v23, %v11798_v41  ;;  %v11943_v29 = vpop.f32.mrb[169].mxu1  ;;  %19912 = vmatmul.mubr.f32.vlgmr.msra.gmra.mrb[72].mxu1 %v26061_v25  ;;  %v13447_v25 = vld [vmem:[%s26876_s3 + $0x338] sm:$0xff]  ;;  %v20459_v41 = vpack.c.bf16 %v13455_v39, %v13454_v28  ;;  %v11810_v23 = vld [vmem:[#allocation4 + $0x98] sm:$0xff] }
 0x921   : > { %v12058_v26 = vadd.f32 %v11943_v29, %v11797_v63  ;;  %20434 = vmatpush3.bf16.msra.mxu1 %v26279_v42  ;;  %19914 = vmatprep.mubr.f32.mxu1 %v26070_v12  ;;  %v11799_v42 = vld [vmem:[#allocation4 + $0x40] sm:$0xff]  ;;  %v20443_v14 = vpack.c.bf16 %v13447_v25, %v13446_v43  ;;  %v11809_v29 = vld [vmem:[#allocation4 + $0x90] sm:$0xff]  ;;  %v11812_v43 = vld [vmem:[#allocation4 + $0xa8] sm:$0xff] }
 0x922   : > { %12087 = vst.msk [vmem:[#allocation4 + $0x38] sm:$0xff] %vm11412_vm2, %v12059_v17  ;;  %20436 = vmatprep.subr.bf16.mxu1 %v20435_v5  ;;  %v13774_v17 = vld [vmem:[%s26876_s3 + $0x388] sm:$0xff] }
 0x923   : > { %12086 = vst.msk [vmem:[#allocation4 + $0x30] sm:$0xff] %vm11412_vm2, %v12058_v26  ;;  %v19629_v58 = vpop.f32.mrb[170].mxu1 }
 0x924   : > { %v12061_v31 = vadd.f32 %v19629_v58, %v11800_v18  ;;  %v11953_v34 = vpop.f32.mrb[171].mxu1  ;;  %19915 = vmatmul.mubr.f32.gmra.mrb[74].mxu1 %v26073_v60  ;;  %v13449_v60 = vld [vmem:[%s26876_s3 + $0x348] sm:$0xff]  ;;  %v26369_v58 = vpack.c.bf16 %v13774_v17, %v13773_v19  ;;  %v13777_v17 = vld [vmem:[%s26876_s3 + $0x3a0] sm:$0xff] }
 0x925   : > { %v12060_v12 = vadd.f32 %v11953_v34, %v11799_v42  ;;  %19917 = vmatprep.mubr.f32.mxu1 %v26082_v57  ;;  %20438 = vmatpush3.bf16.msra.mxu1 %v20435_v5  ;;  %v20447_v0 = vpack.c.bf16 %v13449_v60, %v13448_v4  ;;  %v13164_v5 = vld [vmem:[#allocation3 + $0x7a] sm:$0xff] }
 0x926   : > { %12089 = vst.msk [vmem:[#allocation4 + $0x48] sm:$0xff] %vm11412_vm2, %v12061_v31  ;;  %20440 = vmatprep.subr.bf16.mxu1 %v20439_v30  ;;  %v13166_v31 = vld [vmem:[#allocation3 + $0x8a] sm:$0xff]  ;;  %v11811_v34 = vld [vmem:[#allocation4 + $0xa0] sm:$0xff] }
 0x927   : > { %12088 = vst.msk [vmem:[#allocation4 + $0x40] sm:$0xff] %vm11412_vm2, %v12060_v12  ;;  %v19632_v52 = vpop.f32.mrb[172].mxu1  ;;  %v13168_v60 = vld [vmem:[#allocation3 + $0x9a] sm:$0xff] }
 0x928   : > { %v12063_v11 = vadd.f32 %v19632_v52, %v11802_v56  ;;  %v11963_v57 = vpop.f32.mrb[173].mxu1  ;;  %19918 = vmatmul.mubr.f32.gmra.mrb[76].mxu1 %v26085_v44  ;;  %v13451_v44 = vld [vmem:[%s26876_s3 + $0x358] sm:$0xff]  ;;  %v11814_v52 = vld [vmem:[#allocation4 + $0xb8] sm:$0xff] }
 0x929   : > { %v12062_v16 = vadd.f32 %v11963_v57, %v11801_v10  ;;  %19920 = vmatprep.mubr.f32.mxu1 %v26094_v37  ;;  %20442 = vmatpush3.bf16.msra.mxu1 %v20439_v30  ;;  %v20451_v1 = vpack.c.bf16 %v13451_v44, %v13450_v8  ;;  %v13165_v30 = vld [vmem:[#allocation3 + $0x82] sm:$0xff]  ;;  %v11813_v10 = vld [vmem:[#allocation4 + $0xb0] sm:$0xff] }
 0x92a   : > { %12091 = vst.msk [vmem:[#allocation4 + $0x58] sm:$0xff] %vm11412_vm2, %v12063_v11  ;;  %20444 = vmatprep.subr.bf16.mxu1 %v20443_v14  ;;  %v13170_v8 = vld [vmem:[#allocation3 + $0xaa] sm:$0xff] }
 0x92b   : > { %12090 = vst.msk [vmem:[#allocation4 + $0x50] sm:$0xff] %vm11412_vm2, %v12062_v16  ;;  %v19635_v32 = vpop.f32.mrb[174].mxu1  ;;  %v13169_v16 = vld [vmem:[#allocation3 + $0xa2] sm:$0xff] }
 0x92c   : > { %v12065_v48 = vadd.f32 %v19635_v32, %v11804_v7  ;;  %v11973_v37 = vpop.f32.mrb[175].mxu1  ;;  %19921 = vmatmul.mubr.f32.gmra.mrb[78].mxu1 %v26097_v47  ;;  %v13453_v47 = vld [vmem:[%s26876_s3 + $0x368] sm:$0xff]  ;;  %v11816_v7 = vld [vmem:[#allocation4 + $0xc8] sm:$0xff] }
 0x92d   : > { %v12064_v46 = vadd.f32 %v11973_v37, %v11803_v9  ;;  %19923 = vmatprep.mubr.f32.mxu1 %v26106_v22  ;;  %20446 = vmatpush3.bf16.msra.mxu1 %v20443_v14  ;;  %v11805_v22 = vld [vmem:[#allocation4 + $0x70] sm:$0xff]  ;;  %v20455_v13 = vpack.c.bf16 %v13453_v47, %v13452_v49  ;;  %v12125_v47 = vld [vmem:[#allocation4 + $0x8] sm:$0xff] }
 0x92e   : > { %12093 = vst.msk [vmem:[#allocation4 + $0x68] sm:$0xff] %vm11412_vm2, %v12065_v48  ;;  %20448 = vmatprep.subr.bf16.mxu1 %v20447_v0  ;;  %v13167_v14 = vld [vmem:[#allocation3 + $0x92] sm:$0xff]  ;;  %v11815_v48 = vld [vmem:[#allocation4 + $0xc0] sm:$0xff] }
 0x92f   : > { %12092 = vst.msk [vmem:[#allocation4 + $0x60] sm:$0xff] %vm11412_vm2, %v12064_v46  ;;  %v19638_v54 = vpop.f32.mrb[176].mxu1  ;;  %v11818_v46 = vld [vmem:[#allocation4 + $0xd8] sm:$0x3f] }
 0x930   : > { %v12067_v38 = vadd.f32 %v19638_v54, %v11806_v59  ;;  %v11983_v51 = vpop.f32.mrb[177].mxu1  ;;  %19924 = vmatmul.mubr.f32.gmra.mrb[80].mxu1 %v13160_v15  ;;  %v11817_v59 = vld [vmem:[#allocation4 + $0xd0] sm:$0xff] }
 0x931   : > { %v12066_v3 = vadd.f32 %v11983_v51, %v11805_v22  ;;  %19926 = vmatprep.mubr.f32.mxu1 %v13161_v27  ;;  %20450 = vmatpush3.bf16.msra.mxu1 %v20447_v0  ;;  %v12124_v22 = vld [vmem:[#allocation4] sm:$0xff] }
 0x932   : > { %12095 = vst.msk [vmem:[#allocation4 + $0x78] sm:$0xff] %vm11412_vm2, %v12067_v38  ;;  %20452 = vmatprep.subr.bf16.mxu1 %v20451_v1 }
 0x933   : > { %12094 = vst.msk [vmem:[#allocation4 + $0x70] sm:$0xff] %vm11412_vm2, %v12066_v3  ;;  %v19641_v24 = vpop.f32.mrb[178].mxu1  ;;  %v13176_v3 = vld [vmem:[#allocation3 + $0xda] sm:$0xff] }
 0x934   : > { %v12069_v20 = vadd.f32 %v19641_v24, %v11808_v55  ;;  %v11993_v53 = vpop.f32.mrb[179].mxu1  ;;  %19927 = vmatmul.mubr.f32.gmra.mrb[82].mxu1 %v13162_v21  ;;  %v13177_v24 = vld [vmem:[#allocation3 + $0xe2] sm:$0xff] }
 0x935   : > { %v12068_v2 = vadd.f32 %v11993_v53, %v11807_v36  ;;  %19929 = vmatprep.mubr.f32.mxu1 %v13163_v45  ;;  %20454 = vmatpush3.bf16.msra.mxu1 %v20451_v1  ;;  %v13776_v36 = vld [vmem:[%s26876_s3 + $0x398] sm:$0xff] }
 0x936   : > { %12097 = vst.msk [vmem:[#allocation4 + $0x88] sm:$0xff] %vm11412_vm2, %v12069_v20  ;;  %20456 = vmatprep.subr.bf16.mxu1 %v20455_v13  ;;  %v13775_v20 = vld [vmem:[%s26876_s3 + $0x390] sm:$0xff]  ;;  %v12128_v45 = vld [vmem:[#allocation4 + $0x20] sm:$0xff] }
 0x937   : > { %12096 = vst.msk [vmem:[#allocation4 + $0x80] sm:$0xff] %vm11412_vm2, %v12068_v2  ;;  %v19644_v6 = vpop.f32.mrb[180].mxu1 }
 0x938   : > { %v12071_v63 = vadd.f32 %v19644_v6, %v11810_v23  ;;  %v12003_v26 = vpop.f32.mrb[181].mxu1  ;;  %19930 = vmatmul.mubr.f32.gmra.mrb[84].mxu1 %v13164_v5  ;;  %v20467_v23 = vpack.c.bf16 %v13776_v36, %v13775_v20  ;;  %v12131_v6 = vld [vmem:[#allocation4 + $0x38] sm:$0xff] }
 0x939   : > { %v12070_v18 = vadd.f32 %v12003_v26, %v11809_v29  ;;  %19932 = vmatprep.mubr.f32.mxu1 %v13165_v30  ;;  %20458 = vmatpush3.bf16.msra.mxu1 %v20455_v13  ;;  %v12126_v13 = vld [vmem:[#allocation4 + $0x10] sm:$0xff]  ;;  %v13787_v36 = vld [vmem:[%s26876_s3 + $0x3f0] sm:$0xff] }
 0x93a   : > { %12099 = vst.msk [vmem:[#allocation4 + $0x98] sm:$0xff] %vm11412_vm2, %v12071_v63  ;;  %20460 = vmatprep.subr.bf16.mxu1 %v20459_v41  ;;  %v13778_v63 = vld [vmem:[%s26876_s3 + $0x3a8] sm:$0xff] }
 0x93b   : > { %12098 = vst.msk [vmem:[#allocation4 + $0x90] sm:$0xff] %vm11412_vm2, %v12070_v18  ;;  %v19647_v25 = vpop.f32.mrb[182].mxu1  ;;  %v12130_v26 = vld [vmem:[#allocation4 + $0x30] sm:$0xff] }
 0x93c   : > { %v12073_v42 = vadd.f32 %v19647_v25, %v11812_v43  ;;  %v12013_v12 = vpop.f32.mrb[183].mxu1  ;;  %19933 = vmatmul.mubr.f32.gmra.mrb[86].mxu1 %v13166_v31  ;;  %v13487_v43 = vld [vmem:[#allocation3 + $0x38] sm:$0xff]  ;;  %v20471_v25 = vpack.c.bf16 %v13778_v63, %v13777_v17  ;;  %v12133_v31 = vld [vmem:[#allocation4 + $0x48] sm:$0xff] }
 0x93d   : > { %v12072_v56 = vadd.f32 %v12013_v12, %v11811_v34  ;;  %19935 = vmatprep.mubr.f32.mxu1 %v13167_v14  ;;  %20462 = vmatpush3.bf16.msra.mxu1 %v20459_v41  ;;  %v13485_v41 = vld [vmem:[#allocation3 + $0x28] sm:$0xff]  ;;  %v13779_v34 = vld [vmem:[%s26876_s3 + $0x3b0] sm:$0xff]  ;;  %v13780_v12 = vld [vmem:[%s26876_s3 + $0x3b8] sm:$0xff] }
 0x93e   : > { %12101 = vst.msk [vmem:[#allocation4 + $0xa8] sm:$0xff] %vm11412_vm2, %v12073_v42  ;;  %20464 = vmatprep.subr.bf16.mxu1 %v26369_v58 }
 0x93f   : > { %12100 = vst.msk [vmem:[#allocation4 + $0xa0] sm:$0xff] %vm11412_vm2, %v12072_v56  ;;  %v19650_v4 = vpop.f32.mrb[184].mxu1 }
 0x940   : > { %v12075_v11 = vadd.f32 %v19650_v4, %v11814_v52  ;;  %v12023_v57 = vpop.f32.mrb[185].mxu1  ;;  %19936 = vmatmul.mubr.f32.gmra.mrb[88].mxu1 %v13168_v60  ;;  %v13488_v52 = vld [vmem:[#allocation3 + $0x40] sm:$0xff]  ;;  %v13489_v60 = vld [vmem:[#allocation3 + $0x48] sm:$0xff] }
 0x941   : > { %v12074_v0 = vadd.f32 %v12023_v57, %v11813_v10  ;;  %19938 = vmatprep.mubr.f32.mxu1 %v13169_v16  ;;  %v12135_v10 = vld [vmem:[#allocation4 + $0x58] sm:$0xff]  ;;  %v13781_v16 = vld [vmem:[%s26876_s3 + $0x3c0] sm:$0xff] }
 0x942   : > { %12103 = vst.msk [vmem:[#allocation4 + $0xb8] sm:$0xff] %vm11412_vm2, %v12075_v11  ;;  %v20475_v11 = vpack.c.bf16 %v13780_v12, %v13779_v34  ;;  %v12143_v17 = vld [vmem:[#allocation4 + $0x98] sm:$0xff] }
 0x943   : > { %12102 = vst.msk [vmem:[#allocation4 + $0xb0] sm:$0xff] %vm11412_vm2, %v12074_v0  ;;  %v19653_v32 = vpop.f32.mrb[186].mxu1  ;;  %v13782_v0 = vld [vmem:[%s26876_s3 + $0x3c8] sm:$0xff]  ;;  %v13499_v12 = vld [vmem:[#allocation3 + $0x98] sm:$0xff] }
 0x944   : > { %v12077_v44 = vadd.f32 %v19653_v32, %v11816_v7  ;;  %v12033_v9 = vpop.f32.mrb[187].mxu1  ;;  %19939 = vmatmul.mubr.f32.gmra.mrb[90].mxu1 %v13170_v8  ;;  %v12134_v32 = vld [vmem:[#allocation4 + $0x50] sm:$0xff] }
 0x945   : > { %v12076_v37 = vadd.f32 %v12033_v9, %v11815_v48  ;;  %19941 = vmatprep.mubr.f32.mxu1 %v26123_v62  ;;  %v13491_v9 = vld [vmem:[#allocation3 + $0x58] sm:$0xff] }
 0x946   : > { %12105 = vst.msk [vmem:[#allocation4 + $0xc8] sm:$0xff] %vm11412_vm2, %v12077_v44  ;;  %v13490_v44 = vld [vmem:[#allocation3 + $0x50] sm:$0xff] }
 0x947   : > { %12104 = vst.msk [vmem:[#allocation4 + $0xc0] sm:$0xff] %vm11412_vm2, %v12076_v37  ;;  %v19656_v15 = vpop.f32.mrb[188].mxu1  ;;  %v20479_v37 = vpack.c.bf16 %v13782_v0, %v13781_v16 }
 0x948   : > { %v12079_v1 = vadd.f32 %v19656_v15, %v11818_v46  ;;  %v12043_v54 = vpop.f32.mrb[189].mxu1  ;;  %19942 = vmatmul.mubr.f32.gmra.mrb[92].mxu1 %v26126_v50  ;;  %v12127_v50 = vld [vmem:[#allocation4 + $0x18] sm:$0xff]  ;;  %v12137_v46 = vld [vmem:[#allocation4 + $0x68] sm:$0xff] }
 0x949   : > { %v12078_v49 = vadd.f32 %v12043_v54, %v11817_v59  ;;  %19944 = vmatprep.mubr.f32.mxu1 %v26129_v33  ;;  %v13784_v59 = vld [vmem:[%s26876_s3 + $0x3d8] sm:$0xff] }
 0x94a   : > { %12107 = vst.msk [vmem:[#allocation4 + $0xd8] sm:$0x3f] %vm11440_vm3, %v12079_v1  ;;  %v13783_v1 = vld [vmem:[%s26876_s3 + $0x3d0] sm:$0xff]  ;;  %v12146_v16 = vld [vmem:[#allocation4 + $0xb0] sm:$0xff] }
 0x94b   : > { %12106 = vst.msk [vmem:[#allocation4 + $0xd0] sm:$0xff] %vm11412_vm2, %v12078_v49  ;;  %v19691_v62 = vpop.f32.mrb[190].mxu1  ;;  %v12136_v49 = vld [vmem:[#allocation4 + $0x60] sm:$0xff] }
 0x94c   : > { %v12386_v38 = vadd.f32 %v19691_v62, %v12125_v47  ;;  %v12246_v51 = vpop.f32.mrb[191].mxu1  ;;  %19945 = vmatmul.mubr.f32.gmra.mrb[94].mxu1 %v26134_v61  ;;  %v13178_v61 = vld [vmem:[#allocation3 + $0xea] sm:$0x3f]  ;;  %v13492_v62 = vld [vmem:[#allocation3 + $0x60] sm:$0xff] }
 0x94d   : > { %v12385_v27 = vadd.f32 %v12246_v51, %v12124_v22  ;;  %19947 = vmatprep.mubr.f32.mxu1 %v26137_v40  ;;  %v12129_v40 = vld [vmem:[#allocation4 + $0x28] sm:$0xff]  ;;  %v20483_v51 = vpack.c.bf16 %v13784_v59, %v13783_v1 }
 0x94e   : > { %12414 = vst.msk [vmem:[#allocation4 + $0x8] sm:$0xff] %vm11412_vm2, %v12386_v38  ;;  %v13493_v22 = vld [vmem:[#allocation3 + $0x68] sm:$0xff] }
 0x94f   : > { %12413 = vst.msk [vmem:[#allocation4] sm:$0xff] %vm11412_vm2, %v12385_v27  ;;  %v19694_v33 = vpop.f32.mrb[192].mxu1  ;;  %v12139_v27 = vld [vmem:[#allocation4 + $0x78] sm:$0xff] }
 0x950   : > { %v12388_v21 = vadd.f32 %v19694_v33, %v12127_v50  ;;  %v12256_v55 = vpop.f32.mrb[193].mxu1  ;;  %19948 = vmatmul.mubr.f32.gmra.mrb[96].mxu1 %v13176_v3  ;;  %v13785_v33 = vld [vmem:[%s26876_s3 + $0x3e0] sm:$0xff]  ;;  %v13786_v3 = vld [vmem:[%s26876_s3 + $0x3e8] sm:$0xff] }
 0x951   : > { %v12387_v28 = vadd.f32 %v12256_v55, %v12126_v13  ;;  %19950 = vmatprep.mubr.f32.mxu1 %v13177_v24  ;;  %v12138_v13 = vld [vmem:[#allocation4 + $0x70] sm:$0xff]  ;;  %v12151_v59 = vld [vmem:[#allocation4 + $0xd8] sm:$0x3f] }
 0x952   : > { %12416 = vst.msk [vmem:[#allocation4 + $0x18] sm:$0xff] %vm11412_vm2, %v12388_v21  ;;  %v13494_v24 = vld [vmem:[#allocation3 + $0x70] sm:$0xff] }
 0x953   : > { %12415 = vst.msk [vmem:[#allocation4 + $0x10] sm:$0xff] %vm11412_vm2, %v12387_v28  ;;  %v19697_v39 = vpop.f32.mrb[194].mxu1 }
 0x954   : > { %v12390_v53 = vadd.f32 %v19697_v39, %v12129_v40  ;;  %v12266_v2 = vpop.f32.mrb[195].mxu1  ;;  %19951 = vmatmul.mubr.f32.gmra.mrb[98].mxu1 %v13178_v61  ;;  %v13495_v61 = vld [vmem:[#allocation3 + $0x78] sm:$0xff]  ;;  %v20487_v40 = vpack.c.bf16 %v13786_v3, %v13785_v33  ;;  %v12141_v39 = vld [vmem:[#allocation4 + $0x88] sm:$0xff] }
 0x955   : > { %v12389_v5 = vadd.f32 %v12266_v2, %v12128_v45  ;;  %19985 = vmatprep.mubr.f32.mxu1 %v26154_v35  ;;  %v13486_v35 = vld [vmem:[#allocation3 + $0x30] sm:$0xff]  ;;  %v12140_v2 = vld [vmem:[#allocation4 + $0x80] sm:$0xff]  ;;  %v13507_v33 = vld [vmem:[#allocation3 + $0xd8] sm:$0xff] }
 0x956   : > { %12418 = vst.msk [vmem:[#allocation4 + $0x28] sm:$0xff] %vm11412_vm2, %v12390_v53  ;;  %v13788_v53 = vld [vmem:[%s26876_s3 + $0x3f8] sm:$0xff] }
 0x957   : > { %12417 = vst.msk [vmem:[#allocation4 + $0x20] sm:$0xff] %vm11412_vm2, %v12389_v5  ;;  %v19700_v19 = vpop.f32.mrb[196].mxu1 }
 0x958   : > { %v12392_v29 = vadd.f32 %v19700_v19, %v12131_v6  ;;  %v12276_v30 = vpop.f32.mrb[197].mxu1  ;;  %19986 = vmatmul.mubr.f32.vlgmr.msra.gmra.mrb[100].mxu1 %v13485_v41  ;;  %v13496_v41 = vld [vmem:[#allocation3 + $0x80] sm:$0xff]  ;;  %v13497_v6 = vld [vmem:[#allocation3 + $0x88] sm:$0xff]  ;;  %v20491_v19 = vpack.c.bf16 %v13788_v53, %v13787_v36 }
 0x959   : > { %v12391_v18 = vadd.f32 %v12276_v30, %v12130_v26  ;;  %20466 = vmatpush3.bf16.msra.mxu1 %v26369_v58  ;;  %19988 = vmatprep.mubr.f32.mxu1 %v13486_v35  ;;  %v12132_v58 = vld [vmem:[#allocation4 + $0x40] sm:$0xff]  ;;  %v14107_v26 = vld [vmem:[%s26876_s3 + $0x408] sm:$0xff] }
 0x95a   : > { %12420 = vst.msk [vmem:[#allocation4 + $0x38] sm:$0xff] %vm11412_vm2, %v12392_v29  ;;  %20468 = vmatprep.subr.bf16.mxu1 %v20467_v23  ;;  %v14106_v29 = vld [vmem:[%s26876_s3 + $0x400] sm:$0xff]  ;;  %v12142_v35 = vld [vmem:[#allocation4 + $0x90] sm:$0xff] }
 0x95b   : > { %12419 = vst.msk [vmem:[#allocation4 + $0x30] sm:$0xff] %vm11412_vm2, %v12391_v18  ;;  %v19703_v42 = vpop.f32.mrb[198].mxu1 }
 0x95c   : > { %v12394_v14 = vadd.f32 %v19703_v42, %v12133_v31  ;;  %v12286_v56 = vpop.f32.mrb[199].mxu1  ;;  %19989 = vmatmul.mubr.f32.gmra.mrb[102].mxu1 %v13487_v43  ;;  %v13498_v43 = vld [vmem:[#allocation3 + $0x90] sm:$0xff]  ;;  %v26455_v31 = vpack.c.bf16 %v14107_v26, %v14106_v29  ;;  %v12145_v42 = vld [vmem:[#allocation4 + $0xa8] sm:$0xff] }
 0x95d   : > { %v12393_v4 = vadd.f32 %v12286_v56, %v12132_v58  ;;  %19991 = vmatprep.mubr.f32.mxu1 %v13488_v52  ;;  %20470 = vmatpush3.bf16.msra.mxu1 %v20467_v23  ;;  %v12144_v58 = vld [vmem:[#allocation4 + $0xa0] sm:$0xff] }
 0x95e   : > { %12422 = vst.msk [vmem:[#allocation4 + $0x48] sm:$0xff] %vm11412_vm2, %v12394_v14  ;;  %20472 = vmatprep.subr.bf16.mxu1 %v20471_v25  ;;  %v13500_v52 = vld [vmem:[#allocation3 + $0xa0] sm:$0xff] }
 0x95f   : > { %12421 = vst.msk [vmem:[#allocation4 + $0x40] sm:$0xff] %vm11412_vm2, %v12393_v4  ;;  %v19706_v57 = vpop.f32.mrb[200].mxu1  ;;  %v13817_v29 = vld [vmem:[#allocation3 + $0x21] sm:$0xff] }
 0x960   : > { %v12396_v7 = vadd.f32 %v19706_v57, %v12135_v10  ;;  %v12296_v8 = vpop.f32.mrb[201].mxu1  ;;  %19992 = vmatmul.mubr.f32.gmra.mrb[104].mxu1 %v13489_v60  ;;  %v12147_v60 = vld [vmem:[#allocation4 + $0xb8] sm:$0xff]  ;;  %v13501_v10 = vld [vmem:[#allocation3 + $0xa8] sm:$0xff] }
 0x961   : > { %v12395_v48 = vadd.f32 %v12296_v8, %v12134_v32  ;;  %19994 = vmatprep.mubr.f32.mxu1 %v13490_v44  ;;  %20474 = vmatpush3.bf16.msra.mxu1 %v20471_v25  ;;  %v12149_v8 = vld [vmem:[#allocation4 + $0xc8] sm:$0xff] }
 0x962   : > { %12424 = vst.msk [vmem:[#allocation4 + $0x58] sm:$0xff] %vm11412_vm2, %v12396_v7  ;;  %20476 = vmatprep.subr.bf16.mxu1 %v20475_v11  ;;  %v13502_v7 = vld [vmem:[#allocation3 + $0xb0] sm:$0xff] }
 0x963   : > { %12423 = vst.msk [vmem:[#allocation4 + $0x50] sm:$0xff] %vm11412_vm2, %v12395_v48  ;;  %v19709_v15 = vpop.f32.mrb[202].mxu1  ;;  %v13503_v48 = vld [vmem:[#allocation3 + $0xb8] sm:$0xff] }
 0x964   : > { %v12398_v54 = vadd.f32 %v19709_v15, %v12137_v46  ;;  %v12306_v47 = vpop.f32.mrb[203].mxu1  ;;  %19995 = vmatmul.mubr.f32.gmra.mrb[106].mxu1 %v13491_v9  ;;  %v13504_v15 = vld [vmem:[#allocation3 + $0xc0] sm:$0xff] }
 0x965   : > { %v12397_v38 = vadd.f32 %v12306_v47, %v12136_v49  ;;  %19997 = vmatprep.mubr.f32.mxu1 %v13492_v62  ;;  %20478 = vmatpush3.bf16.msra.mxu1 %v20475_v11  ;;  %v13505_v49 = vld [vmem:[#allocation3 + $0xc8] sm:$0xff]  ;;  %v12150_v62 = vld [vmem:[#allocation4 + $0xd0] sm:$0xff] }
 0x966   : > { %12426 = vst.msk [vmem:[#allocation4 + $0x68] sm:$0xff] %vm11412_vm2, %v12398_v54  ;;  %20480 = vmatprep.subr.bf16.mxu1 %v20479_v37 }
 0x967   : > { %12425 = vst.msk [vmem:[#allocation4 + $0x60] sm:$0xff] %vm11412_vm2, %v12397_v38  ;;  %v19712_v50 = vpop.f32.mrb[204].mxu1 }
 0x968   : > { %v12400_v21 = vadd.f32 %v19712_v50, %v12139_v27  ;;  %v12316_v55 = vpop.f32.mrb[205].mxu1  ;;  %19998 = vmatmul.mubr.f32.gmra.mrb[108].mxu1 %v13493_v22  ;;  %v13506_v22 = vld [vmem:[#allocation3 + $0xd0] sm:$0xff]  ;;  %v12458_v27 = vld [vmem:[#allocation4 + $0x8] sm:$0xff] }
 0x969   : > { %v12399_v28 = vadd.f32 %v12316_v55, %v12138_v13  ;;  %20000 = vmatprep.mubr.f32.mxu1 %v13494_v24  ;;  %20482 = vmatpush3.bf16.msra.mxu1 %v20479_v37  ;;  %v12148_v37 = vld [vmem:[#allocation4 + $0xc0] sm:$0xff] }
 0x96a   : > { %12428 = vst.msk [vmem:[#allocation4 + $0x78] sm:$0xff] %vm11412_vm2, %v12400_v21  ;;  %20484 = vmatprep.subr.bf16.mxu1 %v20483_v51  ;;  %v12457_v21 = vld [vmem:[#allocation4] sm:$0xff] }
 0x96b   : > { %12427 = vst.msk [vmem:[#allocation4 + $0x70] sm:$0xff] %vm11412_vm2, %v12399_v28  ;;  %v19715_v20 = vpop.f32.mrb[206].mxu1  ;;  %v13508_v55 = vld [vmem:[#allocation3 + $0xe0] sm:$0xff]  ;;  %v12460_v28 = vld [vmem:[#allocation4 + $0x18] sm:$0xff] }
 0x96c   : > { %v12402_v45 = vadd.f32 %v19715_v20, %v12141_v39  ;;  %v12326_v5 = vpop.f32.mrb[207].mxu1  ;;  %20001 = vmatmul.mubr.f32.gmra.mrb[110].mxu1 %v13495_v61  ;;  %v12459_v20 = vld [vmem:[#allocation4 + $0x10] sm:$0xff] }
 0x96d   : > { %v12401_v23 = vadd.f32 %v12326_v5, %v12140_v2  ;;  %20003 = vmatprep.mubr.f32.mxu1 %v13496_v41  ;;  %20486 = vmatpush3.bf16.msra.mxu1 %v20483_v51  ;;  %v13511_v2 = vld [vmem:[#allocation3 + $0xf8] sm:$0x3f]  ;;  %v12462_v5 = vld [vmem:[#allocation4 + $0x28] sm:$0xff] }
 0x96e   : > { %12430 = vst.msk [vmem:[#allocation4 + $0x88] sm:$0xff] %vm11412_vm2, %v12402_v45  ;;  %20488 = vmatprep.subr.bf16.mxu1 %v20487_v40  ;;  %v21964_v45 = vld [vmem:[#allocation3] sm:$0xff] }
 0x96f   : > { %12429 = vst.msk [vmem:[#allocation4 + $0x80] sm:$0xff] %vm11412_vm2, %v12401_v23  ;;  %v19718_v63 = vpop.f32.mrb[208].mxu1  ;;  %v14108_v23 = vld [vmem:[%s26876_s3 + $0x410] sm:$0xff] }
 0x970   : > { %v12404_v30 = vadd.f32 %v19718_v63, %v12143_v17  ;;  %v12336_v18 = vpop.f32.mrb[209].mxu1  ;;  %20004 = vmatmul.mubr.f32.gmra.mrb[112].mxu1 %v13497_v6  ;;  %v14109_v6 = vld [vmem:[%s26876_s3 + $0x418] sm:$0xff] }
 0x971   : > { %v12403_v25 = vadd.f32 %v12336_v18, %v12142_v35  ;;  %20006 = vmatprep.mubr.f32.mxu1 %v13498_v43  ;;  %20490 = vmatpush3.bf16.msra.mxu1 %v20487_v40  ;;  %v13509_v40 = vld [vmem:[#allocation3 + $0xe8] sm:$0xff]  ;;  %v12461_v17 = vld [vmem:[#allocation4 + $0x20] sm:$0xff]  ;;  %v20499_v35 = vpack.c.bf16 %v14109_v6, %v14108_v23  ;;  %v12464_v18 = vld [vmem:[#allocation4 + $0x38] sm:$0xff] }
 0x972   : > { %12432 = vst.msk [vmem:[#allocation4 + $0x98] sm:$0xff] %vm11412_vm2, %v12404_v30  ;;  %20492 = vmatprep.subr.bf16.mxu1 %v20491_v19  ;;  %v13818_v30 = vld [vmem:[#allocation3 + $0x29] sm:$0xff] }
 0x973   : > { %12431 = vst.msk [vmem:[#allocation4 + $0x90] sm:$0xff] %vm11412_vm2, %v12403_v25  ;;  %v19721_v34 = vpop.f32.mrb[210].mxu1  ;;  %v14110_v25 = vld [vmem:[%s26876_s3 + $0x420] sm:$0xff] }
 0x974   : > { %v12406_v14 = vadd.f32 %v19721_v34, %v12145_v42  ;;  %v12346_v56 = vpop.f32.mrb[211].mxu1  ;;  %20007 = vmatmul.mubr.f32.gmra.mrb[114].mxu1 %v13499_v12  ;;  %v14111_v42 = vld [vmem:[%s26876_s3 + $0x428] sm:$0xff] }
 0x975   : > { %v12405_v4 = vadd.f32 %v12346_v56, %v12144_v58  ;;  %20009 = vmatprep.mubr.f32.mxu1 %v13500_v52  ;;  %20494 = vmatpush3.bf16.msra.mxu1 %v20491_v19  ;;  %v12463_v12 = vld [vmem:[#allocation4 + $0x30] sm:$0xff]  ;;  %v13820_v52 = vld [vmem:[#allocation3 + $0x39] sm:$0xff]  ;;  %v12474_v23 = vld [vmem:[#allocation4 + $0x88] sm:$0xff] }
 0x976   : > { %12434 = vst.msk [vmem:[#allocation4 + $0xa8] sm:$0xff] %vm11412_vm2, %v12406_v14  ;;  %20496 = vmatprep.subr.bf16.mxu1 %v26455_v31  ;;  %v13819_v58 = vld [vmem:[#allocation3 + $0x31] sm:$0xff] }
 0x977   : > { %12433 = vst.msk [vmem:[#allocation4 + $0xa0] sm:$0xff] %vm11412_vm2, %v12405_v4  ;;  %v19724_v11 = vpop.f32.mrb[212].mxu1  ;;  %v20503_v4 = vpack.c.bf16 %v14111_v42, %v14110_v25  ;;  %v13830_v42 = vld [vmem:[#allocation3 + $0x89] sm:$0xff] }
 0x978   : > { %v12408_v57 = vadd.f32 %v19724_v11, %v12147_v60  ;;  %v12356_v0 = vpop.f32.mrb[213].mxu1  ;;  %20010 = vmatmul.mubr.f32.gmra.mrb[116].mxu1 %v13501_v10  ;;  %v12466_v60 = vld [vmem:[#allocation4 + $0x48] sm:$0xff]  ;;  %v14112_v10 = vld [vmem:[%s26876_s3 + $0x430] sm:$0xff] }
 0x979   : > { %v12407_v32 = vadd.f32 %v12356_v0, %v12146_v16  ;;  %20012 = vmatprep.mubr.f32.mxu1 %v13502_v7  ;;  %v13821_v7 = vld [vmem:[#allocation3 + $0x41] sm:$0xff] }
 0x97a   : > { %12436 = vst.msk [vmem:[#allocation4 + $0xb8] sm:$0xff] %vm11412_vm2, %v12408_v57  ;;  %v14113_v57 = vld [vmem:[%s26876_s3 + $0x438] sm:$0xff] }
 0x97b   : > { %12435 = vst.msk [vmem:[#allocation4 + $0xb0] sm:$0xff] %vm11412_vm2, %v12407_v32  ;;  %v19727_v44 = vpop.f32.mrb[214].mxu1 }
 0x97c   : > { %v12410_v9 = vadd.f32 %v19727_v44, %v12149_v8  ;;  %v12366_v46 = vpop.f32.mrb[215].mxu1  ;;  %20013 = vmatmul.mubr.f32.gmra.mrb[118].mxu1 %v13503_v48  ;;  %v13822_v8 = vld [vmem:[#allocation3 + $0x49] sm:$0xff]  ;;  %v20507_v44 = vpack.c.bf16 %v14113_v57, %v14112_v10  ;;  %v12468_v48 = vld [vmem:[#allocation4 + $0x58] sm:$0xff] }
 0x97d   : > { %v12409_v1 = vadd.f32 %v12366_v46, %v12148_v37  ;;  %20015 = vmatprep.mubr.f32.mxu1 %v13504_v15  ;;  %v14114_v37 = vld [vmem:[%s26876_s3 + $0x440] sm:$0xff]  ;;  %v14115_v46 = vld [vmem:[%s26876_s3 + $0x448] sm:$0xff] }
 0x97e   : > { %12438 = vst.msk [vmem:[#allocation4 + $0xc8] sm:$0xff] %vm11412_vm2, %v12410_v9  ;;  %v12477_v10 = vld [vmem:[#allocation4 + $0xa0] sm:$0xff] }
 0x97f   : > { %12437 = vst.msk [vmem:[#allocation4 + $0xc0] sm:$0xff] %vm11412_vm2, %v12409_v1  ;;  %v19730_v54 = vpop.f32.mrb[216].mxu1  ;;  %v12467_v1 = vld [vmem:[#allocation4 + $0x50] sm:$0xff] }
 0x980   : > { %v12412_v47 = vadd.f32 %v19730_v54, %v12151_v59  ;;  %v12376_v38 = vpop.f32.mrb[217].mxu1  ;;  %20016 = vmatmul.mubr.f32.gmra.mrb[120].mxu1 %v13505_v49  ;;  %v13823_v54 = vld [vmem:[#allocation3 + $0x51] sm:$0xff] }
 0x981   : > { %v12411_v51 = vadd.f32 %v12376_v38, %v12150_v62  ;;  %20018 = vmatprep.mubr.f32.mxu1 %v13506_v22  ;;  %v20511_v62 = vpack.c.bf16 %v14115_v46, %v14114_v37  ;;  %v12470_v38 = vld [vmem:[#allocation4 + $0x68] sm:$0xff] }
 0x982   : > { %12440 = vst.msk [vmem:[#allocation4 + $0xd8] sm:$0x3f] %vm11440_vm3, %v12412_v47  ;;  %v13824_v47 = vld [vmem:[#allocation3 + $0x59] sm:$0xff] }
 0x983   : > { %12439 = vst.msk [vmem:[#allocation4 + $0xd0] sm:$0xff] %vm11412_vm2, %v12411_v51  ;;  %v19765_v50 = vpop.f32.mrb[218].mxu1  ;;  %v14116_v51 = vld [vmem:[%s26876_s3 + $0x450] sm:$0xff] }
 0x984   : > { %v12719_v3 = vadd.f32 %v19765_v50, %v12458_v27  ;;  %v12579_v13 = vpop.f32.mrb[219].mxu1  ;;  %20019 = vmatmul.mubr.f32.gmra.mrb[122].mxu1 %v13507_v33  ;;  %v14117_v27 = vld [vmem:[%s26876_s3 + $0x458] sm:$0xff] }
 0x985   : > { %v12718_v24 = vadd.f32 %v12579_v13, %v12457_v21  ;;  %20021 = vmatprep.mubr.f32.mxu1 %v13508_v55  ;;  %v12469_v33 = vld [vmem:[#allocation4 + $0x60] sm:$0xff]  ;;  %v13826_v55 = vld [vmem:[#allocation3 + $0x69] sm:$0xff] }
 0x986   : > { %12747 = vst.msk [vmem:[#allocation4 + $0x8] sm:$0xff] %vm11412_vm2, %v12719_v3  ;;  %v13825_v21 = vld [vmem:[#allocation3 + $0x61] sm:$0xff] }
 0x987   : > { %12746 = vst.msk [vmem:[#allocation4] sm:$0xff] %vm11412_vm2, %v12718_v24  ;;  %v19768_v61 = vpop.f32.mrb[220].mxu1  ;;  %v20515_v24 = vpack.c.bf16 %v14117_v27, %v14116_v51  ;;  %v12482_v46 = vld [vmem:[#allocation4 + $0xc8] sm:$0xff] }
 0x988   : > { %v12721_v39 = vadd.f32 %v19768_v61, %v12460_v28  ;;  %v12589_v36 = vpop.f32.mrb[221].mxu1  ;;  %20022 = vmatmul.mubr.f32.gmra.mrb[124].mxu1 %v13509_v40  ;;  %v12472_v28 = vld [vmem:[#allocation4 + $0x78] sm:$0xff]  ;;  %v14118_v40 = vld [vmem:[%s26876_s3 + $0x460] sm:$0xff] }
 0x989   : > { %v12720_v53 = vadd.f32 %v12589_v36, %v12459_v20  ;;  %20024 = vmatprep.mubr.f32.mxu1 %v21964_v45  ;;  %v12471_v36 = vld [vmem:[#allocation4 + $0x70] sm:$0xff] }
 0x98a   : > { %12749 = vst.msk [vmem:[#allocation4 + $0x18] sm:$0xff] %vm11412_vm2, %v12721_v39  ;;  %v14119_v39 = vld [vmem:[%s26876_s3 + $0x468] sm:$0xff] }
 0x98b   : > { %12748 = vst.msk [vmem:[#allocation4 + $0x10] sm:$0xff] %vm11412_vm2, %v12720_v53  ;;  %v19771_v41 = vpop.f32.mrb[222].mxu1  ;;  %v13827_v45 = vld [vmem:[#allocation3 + $0x71] sm:$0xff]  ;;  %v13838_v51 = vld [vmem:[#allocation3 + $0xc9] sm:$0xff] }
 0x98c   : > { %v12723_v19 = vadd.f32 %v19771_v41, %v12462_v5  ;;  %v12599_v63 = vpop.f32.mrb[223].mxu1  ;;  %20025 = vmatmul.mubr.f32.gmra.mrb[126].mxu1 %v13511_v2  ;;  %v13828_v5 = vld [vmem:[#allocation3 + $0x79] sm:$0xff]  ;;  %v20519_v41 = vpack.c.bf16 %v14119_v39, %v14118_v40  ;;  %v13841_v39 = vld [vmem:[#allocation3 + $0xe1] sm:$0xff] }
 0x98d   : > { %v12722_v26 = vadd.f32 %v12599_v63, %v12461_v17  ;;  %20059 = vmatprep.mubr.f32.mxu1 %v13817_v29  ;;  %v14121_v17 = vld [vmem:[%s26876_s3 + $0x478] sm:$0xff] }
 0x98e   : > { %12751 = vst.msk [vmem:[#allocation4 + $0x28] sm:$0xff] %vm11412_vm2, %v12723_v19  ;;  %v14120_v19 = vld [vmem:[%s26876_s3 + $0x470] sm:$0xff]  ;;  %v12473_v29 = vld [vmem:[#allocation4 + $0x80] sm:$0xff] }
 0x98f   : > { %12750 = vst.msk [vmem:[#allocation4 + $0x20] sm:$0xff] %vm11412_vm2, %v12722_v26  ;;  %v19774_v43 = vpop.f32.mrb[224].mxu1 }
 0x990   : > { %v12725_v34 = vadd.f32 %v19774_v43, %v12464_v18  ;;  %v12609_v14 = vpop.f32.mrb[225].mxu1  ;;  %20060 = vmatmul.mubr.f32.vlgmr.msra.gmra.mrb[128].mxu1 %v13818_v30  ;;  %v13829_v30 = vld [vmem:[#allocation3 + $0x81] sm:$0xff]  ;;  %v20523_v18 = vpack.c.bf16 %v14121_v17, %v14120_v19  ;;  %v12476_v43 = vld [vmem:[#allocation4 + $0x98] sm:$0xff] }
 0x991   : > { %v12724_v56 = vadd.f32 %v12609_v14, %v12463_v12  ;;  %20498 = vmatpush3.bf16.msra.mxu1 %v26455_v31  ;;  %20062 = vmatprep.mubr.f32.mxu1 %v13819_v58  ;;  %v12465_v31 = vld [vmem:[#allocation4 + $0x40] sm:$0xff]  ;;  %v12475_v12 = vld [vmem:[#allocation4 + $0x90] sm:$0xff]  ;;  %v13844_v19 = vld [vmem:[#allocation3 + $0xf9] sm:$0x3f] }
 0x992   : > { %12753 = vst.msk [vmem:[#allocation4 + $0x38] sm:$0xff] %vm11412_vm2, %v12725_v34  ;;  %20500 = vmatprep.subr.bf16.mxu1 %v20499_v35  ;;  %v13831_v58 = vld [vmem:[#allocation3 + $0x91] sm:$0xff] }
 0x993   : > { %12752 = vst.msk [vmem:[#allocation4 + $0x30] sm:$0xff] %vm11412_vm2, %v12724_v56  ;;  %v19777_v11 = vpop.f32.mrb[226].mxu1 }
 0x994   : > { %v12727_v16 = vadd.f32 %v19777_v11, %v12466_v60  ;;  %v12619_v0 = vpop.f32.mrb[227].mxu1  ;;  %20063 = vmatmul.mubr.f32.gmra.mrb[130].mxu1 %v13820_v52  ;;  %v12478_v52 = vld [vmem:[#allocation4 + $0xa8] sm:$0xff]  ;;  %v13832_v60 = vld [vmem:[#allocation3 + $0x99] sm:$0xff] }
 0x995   : > { %v12726_v32 = vadd.f32 %v12619_v0, %v12465_v31  ;;  %20065 = vmatprep.mubr.f32.mxu1 %v13821_v7  ;;  %20502 = vmatpush3.bf16.msra.mxu1 %v20499_v35  ;;  %v12480_v0 = vld [vmem:[#allocation4 + $0xb8] sm:$0xff]  ;;  %v12795_v17 = vld [vmem:[#allocation4 + $0x28] sm:$0xff] }
 0x996   : > { %12755 = vst.msk [vmem:[#allocation4 + $0x48] sm:$0xff] %vm11412_vm2, %v12727_v16  ;;  %20504 = vmatprep.subr.bf16.mxu1 %v20503_v4  ;;  %v13833_v16 = vld [vmem:[#allocation3 + $0xa1] sm:$0xff] }
 0x997   : > { %12754 = vst.msk [vmem:[#allocation4 + $0x40] sm:$0xff] %vm11412_vm2, %v12726_v32  ;;  %v19780_v9 = vpop.f32.mrb[228].mxu1  ;;  %v13834_v32 = vld [vmem:[#allocation3 + $0xa9] sm:$0xff] }
 0x998   : > { %v12729_v15 = vadd.f32 %v19780_v9, %v12468_v48  ;;  %v12629_v59 = vpop.f32.mrb[229].mxu1  ;;  %20066 = vmatmul.mubr.f32.gmra.mrb[132].mxu1 %v13822_v8  ;;  %v13835_v9 = vld [vmem:[#allocation3 + $0xb1] sm:$0xff] }
 0x999   : > { %v12728_v49 = vadd.f32 %v12629_v59, %v12467_v1  ;;  %20068 = vmatprep.mubr.f32.mxu1 %v13823_v54  ;;  %20506 = vmatpush3.bf16.msra.mxu1 %v20503_v4  ;;  %v13836_v1 = vld [vmem:[#allocation3 + $0xb9] sm:$0xff] }
 0x99a   : > { %12757 = vst.msk [vmem:[#allocation4 + $0x58] sm:$0xff] %vm11412_vm2, %v12729_v15  ;;  %20508 = vmatprep.subr.bf16.mxu1 %v20507_v44  ;;  %v12481_v54 = vld [vmem:[#allocation4 + $0xc0] sm:$0xff] }
 0x99b   : > { %12756 = vst.msk [vmem:[#allocation4 + $0x50] sm:$0xff] %vm11412_vm2, %v12728_v49  ;;  %v19783_v22 = vpop.f32.mrb[230].mxu1 }
 0x99c   : > { %v12731_v50 = vadd.f32 %v19783_v22, %v12470_v38  ;;  %v12639_v3 = vpop.f32.mrb[231].mxu1  ;;  %20069 = vmatmul.mubr.f32.gmra.mrb[2].mxu1 %v13824_v47  ;;  %v13837_v47 = vld [vmem:[#allocation3 + $0xc1] sm:$0xff]  ;;  %v12484_v38 = vld [vmem:[#allocation4 + $0xd8] sm:$0x3f] }
 0x99d   : > { %v12730_v13 = vadd.f32 %v12639_v3, %v12469_v33  ;;  %20071 = vmatprep.mubr.f32.mxu1 %v13825_v21  ;;  %20510 = vmatpush3.bf16.msra.mxu1 %v20507_v44  ;;  %v12479_v44 = vld [vmem:[#allocation4 + $0xb0] sm:$0xff] }
 0x99e   : > { %12759 = vst.msk [vmem:[#allocation4 + $0x68] sm:$0xff] %vm11412_vm2, %v12731_v50  ;;  %20512 = vmatprep.subr.bf16.mxu1 %v20511_v62  ;;  %v12483_v50 = vld [vmem:[#allocation4 + $0xd0] sm:$0xff] }
 0x99f   : > { %12758 = vst.msk [vmem:[#allocation4 + $0x60] sm:$0xff] %vm11412_vm2, %v12730_v13  ;;  %v19786_v61 = vpop.f32.mrb[232].mxu1  ;;  %v13839_v3 = vld [vmem:[#allocation3 + $0xd1] sm:$0xff]  ;;  %v12791_v13 = vld [vmem:[#allocation4 + $0x8] sm:$0xff] }
 0x9a0   : > { %v12733_v20 = vadd.f32 %v19786_v61, %v12472_v28  ;;  %v12649_v53 = vpop.f32.mrb[233].mxu1  ;;  %20072 = vmatmul.mubr.f32.gmra.mrb[4].mxu1 %v13826_v55  ;;  %v12790_v61 = vld [vmem:[#allocation4] sm:$0xff] }
 0x9a1   : > { %v12732_v2 = vadd.f32 %v12649_v53, %v12471_v36  ;;  %20074 = vmatprep.mubr.f32.mxu1 %v13827_v45  ;;  %20514 = vmatpush3.bf16.msra.mxu1 %v20511_v62  ;;  %v13843_v36 = vld [vmem:[#allocation3 + $0xf1] sm:$0xff] }
 0x9a2   : > { %12761 = vst.msk [vmem:[#allocation4 + $0x78] sm:$0xff] %vm11412_vm2, %v12733_v20  ;;  %20516 = vmatprep.subr.bf16.mxu1 %v20515_v24  ;;  %v12793_v53 = vld [vmem:[#allocation4 + $0x18] sm:$0xff] }
 0x9a3   : > { %12760 = vst.msk [vmem:[#allocation4 + $0x70] sm:$0xff] %vm11412_vm2, %v12732_v2  ;;  %v19789_v6 = vpop.f32.mrb[234].mxu1  ;;  %v13842_v2 = vld [vmem:[#allocation3 + $0xe9] sm:$0xff] }
 0x9a4   : > { %v12735_v63 = vadd.f32 %v19789_v6, %v12474_v23  ;;  %v12659_v26 = vpop.f32.mrb[235].mxu1  ;;  %20075 = vmatmul.mubr.f32.gmra.mrb[6].mxu1 %v13828_v5 }
 0x9a5   : > { %v12734_v35 = vadd.f32 %v12659_v26, %v12473_v29  ;;  %20077 = vmatprep.mubr.f32.mxu1 %v13829_v30  ;;  %20518 = vmatpush3.bf16.msra.mxu1 %v20515_v24  ;;  %v13840_v24 = vld [vmem:[#allocation3 + $0xd9] sm:$0xff] }
 0x9a6   : > { %12763 = vst.msk [vmem:[#allocation4 + $0x88] sm:$0xff] %vm11412_vm2, %v12735_v63  ;;  %20520 = vmatprep.subr.bf16.mxu1 %v20519_v41  ;;  %v12794_v26 = vld [vmem:[#allocation4 + $0x20] sm:$0xff] }
 0x9a7   : > { %12762 = vst.msk [vmem:[#allocation4 + $0x80] sm:$0xff] %vm11412_vm2, %v12734_v35  ;;  %v19792_v25 = vpop.f32.mrb[236].mxu1  ;;  %v14150_v35 = vld [vmem:[#allocation3 + $0x22] sm:$0xff] }
 0x9a8   : > { %v12737_v34 = vadd.f32 %v19792_v25, %v12476_v43  ;;  %v12669_v14 = vpop.f32.mrb[237].mxu1  ;;  %20078 = vmatmul.mubr.f32.gmra.mrb[8].mxu1 %v13830_v42  ;;  %v12797_v43 = vld [vmem:[#allocation4 + $0x38] sm:$0xff]  ;;  %v14151_v42 = vld [vmem:[#allocation3 + $0x2a] sm:$0xff] }
 0x9a9   : > { %v12736_v56 = vadd.f32 %v12669_v14, %v12475_v12  ;;  %20080 = vmatprep.mubr.f32.mxu1 %v13831_v58  ;;  %20522 = vmatpush3.bf16.msra.mxu1 %v20519_v41  ;;  %v12792_v41 = vld [vmem:[#allocation4 + $0x10] sm:$0xff] }
 0x9aa   : > { %12765 = vst.msk [vmem:[#allocation4 + $0x98] sm:$0xff] %vm11412_vm2, %v12737_v34  ;;  %20524 = vmatprep.subr.bf16.mxu1 %v20523_v18  ;;  %v12796_v12 = vld [vmem:[#allocation4 + $0x30] sm:$0xff] }
 0x9ab   : > { %12764 = vst.msk [vmem:[#allocation4 + $0x90] sm:$0xff] %vm11412_vm2, %v12736_v56  ;;  %v19795_v4 = vpop.f32.mrb[238].mxu1  ;;  %v14152_v58 = vld [vmem:[#allocation3 + $0x32] sm:$0xff] }
 0x9ac   : > { %v12739_v11 = vadd.f32 %v19795_v4, %v12478_v52  ;;  %v12679_v57 = vpop.f32.mrb[239].mxu1  ;;  %20081 = vmatmul.mubr.f32.gmra.mrb[10].mxu1 %v13832_v60  ;;  %v12799_v52 = vld [vmem:[#allocation4 + $0x48] sm:$0xff]  ;;  %v14153_v60 = vld [vmem:[#allocation3 + $0x3a] sm:$0xff] }
 0x9ad   : > { %v12738_v31 = vadd.f32 %v12679_v57, %v12477_v10  ;;  %20083 = vmatprep.mubr.f32.mxu1 %v13833_v16  ;;  %20526 = vmatpush3.bf16.msra.mxu1 %v20523_v18  ;;  %v12798_v10 = vld [vmem:[#allocation4 + $0x40] sm:$0xff] }
 0x9ae   : > { %12767 = vst.msk [vmem:[#allocation4 + $0xa8] sm:$0xff] %vm11412_vm2, %v12739_v11  ;;  %v14154_v16 = vld [vmem:[#allocation3 + $0x42] sm:$0xff] }
 0x9af   : > { %12766 = vst.msk [vmem:[#allocation4 + $0xa0] sm:$0xff] %vm11412_vm2, %v12738_v31  ;;  %v19798_v7 = vpop.f32.mrb[240].mxu1 }
 0x9b0   : > { %v12741_v8 = vadd.f32 %v19798_v7, %v12480_v0  ;;  %v12689_v48 = vpop.f32.mrb[241].mxu1  ;;  %20084 = vmatmul.mubr.f32.gmra.mrb[12].mxu1 %v13834_v32  ;;  %v12801_v0 = vld [vmem:[#allocation4 + $0x58] sm:$0xff]  ;;  %v14155_v32 = vld [vmem:[#allocation3 + $0x4a] sm:$0xff] }
 0x9b1   : > { %v12740_v37 = vadd.f32 %v12689_v48, %v12479_v44  ;;  %20086 = vmatprep.mubr.f32.mxu1 %v13835_v9  ;;  %v12800_v44 = vld [vmem:[#allocation4 + $0x50] sm:$0xff] }
 0x9b2   : > { %12769 = vst.msk [vmem:[#allocation4 + $0xb8] sm:$0xff] %vm11412_vm2, %v12741_v8  ;;  %v14156_v9 = vld [vmem:[#allocation3 + $0x52] sm:$0xff] }
 0x9b3   : > { %12768 = vst.msk [vmem:[#allocation4 + $0xb0] sm:$0xff] %vm11412_vm2, %v12740_v37  ;;  %v19801_v15 = vpop.f32.mrb[242].mxu1 }
 0x9b4   : > { %v12743_v59 = vadd.f32 %v19801_v15, %v12482_v46  ;;  %v12699_v49 = vpop.f32.mrb[243].mxu1  ;;  %20087 = vmatmul.mubr.f32.gmra.mrb[14].mxu1 %v13836_v1  ;;  %v12803_v46 = vld [vmem:[#allocation4 + $0x68] sm:$0xff]  ;;  %v14157_v1 = vld [vmem:[#allocation3 + $0x5a] sm:$0xff] }
 0x9b5   : > { %v12742_v62 = vadd.f32 %v12699_v49, %v12481_v54  ;;  %20089 = vmatprep.mubr.f32.mxu1 %v13837_v47  ;;  %v12802_v54 = vld [vmem:[#allocation4 + $0x60] sm:$0xff] }
 0x9b6   : > { %12771 = vst.msk [vmem:[#allocation4 + $0xc8] sm:$0xff] %vm11412_vm2, %v12743_v59  ;;  %v14158_v47 = vld [vmem:[#allocation3 + $0x62] sm:$0xff] }
 0x9b7   : > { %12770 = vst.msk [vmem:[#allocation4 + $0xc0] sm:$0xff] %vm11412_vm2, %v12742_v62  ;;  %v19804_v22 = vpop.f32.mrb[244].mxu1 }
 0x9b8   : > { %v12745_v27 = vadd.f32 %v19804_v22, %v12484_v38  ;;  %v12709_v33 = vpop.f32.mrb[245].mxu1  ;;  %20090 = vmatmul.mubr.f32.gmra.mrb[16].mxu1 %v13838_v51  ;;  %v12805_v38 = vld [vmem:[#allocation4 + $0x78] sm:$0xff]  ;;  %v14159_v51 = vld [vmem:[#allocation3 + $0x6a] sm:$0xff] }
 0x9b9   : > { %v12744_v21 = vadd.f32 %v12709_v33, %v12483_v50  ;;  %20092 = vmatprep.mubr.f32.mxu1 %v13839_v3  ;;  %v12804_v50 = vld [vmem:[#allocation4 + $0x70] sm:$0xff] }
 0x9ba   : > { %12773 = vst.msk [vmem:[#allocation4 + $0xd8] sm:$0x3f] %vm11440_vm3, %v12745_v27  ;;  %v14160_v3 = vld [vmem:[#allocation3 + $0x72] sm:$0xff] }
 0x9bb   : > { %12772 = vst.msk [vmem:[#allocation4 + $0xd0] sm:$0xff] %vm11412_vm2, %v12744_v21  ;;  %v19839_v55 = vpop.f32.mrb[246].mxu1 }
 0x9bc   : > { %v13052_v28 = vadd.f32 %v19839_v55, %v12791_v13  ;;  %v12912_v40 = vpop.f32.mrb[247].mxu1  ;;  %20093 = vmatmul.mubr.f32.gmra.mrb[20].mxu1 %v13840_v24  ;;  %v12807_v13 = vld [vmem:[#allocation4 + $0x88] sm:$0xff]  ;;  %v14161_v24 = vld [vmem:[#allocation3 + $0x7a] sm:$0xff] }
 0x9bd   : > { %v13051_v20 = vadd.f32 %v12912_v40, %v12790_v61  ;;  %20095 = vmatprep.mubr.f32.mxu1 %v13841_v39  ;;  %v12806_v61 = vld [vmem:[#allocation4 + $0x80] sm:$0xff] }
 0x9be   : > { %13080 = vst.msk [vmem:[#allocation4 + $0x8] sm:$0xff] %vm11412_vm2, %v13052_v28  ;;  %v14162_v39 = vld [vmem:[#allocation3 + $0x82] sm:$0xff] }
 0x9bf   : > { %13079 = vst.msk [vmem:[#allocation4] sm:$0xff] %vm11412_vm2, %v13051_v20  ;;  %v19842_v45 = vpop.f32.mrb[248].mxu1 }
 0x9c0   : > { %v13054_v5 = vadd.f32 %v19842_v45, %v12793_v53  ;;  %v12922_v23 = vpop.f32.mrb[249].mxu1  ;;  %20096 = vmatmul.mubr.f32.gmra.mrb[22].mxu1 %v13842_v2  ;;  %v14163_v45 = vld [vmem:[#allocation3 + $0x8a] sm:$0xff] }
 0x9c1   : > { %v13053_v6 = vadd.f32 %v12922_v23, %v12792_v41  ;;  %20098 = vmatprep.mubr.f32.mxu1 %v13843_v36  ;;  %v12809_v36 = vld [vmem:[#allocation4 + $0x98] sm:$0xff] }
 0x9c2   : > { %13082 = vst.msk [vmem:[#allocation4 + $0x18] sm:$0xff] %vm11412_vm2, %v13054_v5  ;;  %v12808_v5 = vld [vmem:[#allocation4 + $0x90] sm:$0xff] }
 0x9c3   : > { %13081 = vst.msk [vmem:[#allocation4 + $0x10] sm:$0xff] %vm11412_vm2, %v13053_v6  ;;  %v19845_v63 = vpop.f32.mrb[250].mxu1  ;;  %v14164_v23 = vld [vmem:[#allocation3 + $0x92] sm:$0xff] }
 0x9c4   : > { %v13056_v29 = vadd.f32 %v19845_v63, %v12795_v17  ;;  %v12932_v30 = vpop.f32.mrb[251].mxu1  ;;  %20099 = vmatmul.mubr.f32.gmra.mrb[24].mxu1 %v13844_v19  ;;  %v12811_v19 = vld [vmem:[#allocation4 + $0xa8] sm:$0xff]  ;;  %v14165_v63 = vld [vmem:[#allocation3 + $0x9a] sm:$0xff] }
 0x9c5   : > { %v13055_v18 = vadd.f32 %v12932_v30, %v12794_v26  ;;  %20133 = vmatprep.mubr.f32.mxu1 %v14150_v35  ;;  %v12810_v26 = vld [vmem:[#allocation4 + $0xa0] sm:$0xff] }
 0x9c6   : > { %13084 = vst.msk [vmem:[#allocation4 + $0x28] sm:$0xff] %vm11412_vm2, %v13056_v29  ;;  %v14166_v35 = vld [vmem:[#allocation3 + $0xa2] sm:$0xff] }
 0x9c7   : > { %13083 = vst.msk [vmem:[#allocation4 + $0x20] sm:$0xff] %vm11412_vm2, %v13055_v18  ;;  %v19848_v25 = vpop.f32.mrb[252].mxu1 }
 0x9c8   : > { %v13058_v34 = vadd.f32 %v19848_v25, %v12797_v43  ;;  %v12942_v14 = vpop.f32.mrb[253].mxu1  ;;  %20134 = vmatmul.mubr.f32.vlgmr.msra.gmra.mrb[26].mxu1 %v14151_v42  ;;  %v12813_v43 = vld [vmem:[#allocation4 + $0xb8] sm:$0xff]  ;;  %v14167_v42 = vld [vmem:[#allocation3 + $0xaa] sm:$0xff] }
 0x9c9   : > { %v13057_v56 = vadd.f32 %v12942_v14, %v12796_v12  ;;  %20136 = vmatprep.mubr.f32.mxu1 %v14152_v58  ;;  %v12812_v12 = vld [vmem:[#allocation4 + $0xb0] sm:$0xff] }
 0x9ca   : > { %13086 = vst.msk [vmem:[#allocation4 + $0x38] sm:$0xff] %vm11412_vm2, %v13058_v34  ;;  %v14168_v58 = vld [vmem:[#allocation3 + $0xb2] sm:$0xff] }
 0x9cb   : > { %13085 = vst.msk [vmem:[#allocation4 + $0x30] sm:$0xff] %vm11412_vm2, %v13057_v56  ;;  %v19851_v4 = vpop.f32.mrb[254].mxu1 }
 0x9cc   : > { %v13060_v11 = vadd.f32 %v19851_v4, %v12799_v52  ;;  %v12952_v57 = vpop.f32.mrb[255].mxu1  ;;  %20137 = vmatmul.mubr.f32.gmra.mrb[28].mxu1 %v14153_v60  ;;  %v12815_v52 = vld [vmem:[#allocation4 + $0xc8] sm:$0xff]  ;;  %v14169_v60 = vld [vmem:[#allocation3 + $0xba] sm:$0xff] }
 0x9cd   : > { %v13059_v31 = vadd.f32 %v12952_v57, %v12798_v10  ;;  %20139 = vmatprep.mubr.f32.mxu1 %v14154_v16  ;;  %v12814_v10 = vld [vmem:[#allocation4 + $0xc0] sm:$0xff] }
 0x9ce   : > { %13088 = vst.msk [vmem:[#allocation4 + $0x48] sm:$0xff] %vm11412_vm2, %v13060_v11  ;;  %v14170_v16 = vld [vmem:[#allocation3 + $0xc2] sm:$0xff] }
 0x9cf   : > { %13087 = vst.msk [vmem:[#allocation4 + $0x40] sm:$0xff] %vm11412_vm2, %v13059_v31  ;;  %v19854_v7 = vpop.f32.mrb[0].mxu1 }
 0x9d0   : > { %v13062_v8 = vadd.f32 %v19854_v7, %v12801_v0  ;;  %v12962_v48 = vpop.f32.mrb[1].mxu1  ;;  %20140 = vmatmul.mubr.f32.gmra.mrb[30].mxu1 %v14155_v32  ;;  %v12817_v0 = vld [vmem:[#allocation4 + $0xd8] sm:$0x3f]  ;;  %v14171_v32 = vld [vmem:[#allocation3 + $0xca] sm:$0xff] }
 0x9d1   : > { %v13061_v37 = vadd.f32 %v12962_v48, %v12800_v44  ;;  %20142 = vmatprep.mubr.f32.mxu1 %v14156_v9  ;;  %v12816_v44 = vld [vmem:[#allocation4 + $0xd0] sm:$0xff] }
 0x9d2   : > { %13090 = vst.msk [vmem:[#allocation4 + $0x58] sm:$0xff] %vm11412_vm2, %v13062_v8  ;;  %v14172_v9 = vld [vmem:[#allocation3 + $0xd2] sm:$0xff] }
 0x9d3   : > { %13089 = vst.msk [vmem:[#allocation4 + $0x50] sm:$0xff] %vm11412_vm2, %v13061_v37  ;;  %v19857_v15 = vpop.f32.mrb[18].mxu1 }
 0x9d4   : > { %v13064_v59 = vadd.f32 %v19857_v15, %v12803_v46  ;;  %v12972_v49 = vpop.f32.mrb[19].mxu1  ;;  %20143 = vmatmul.mubr.f32.gmra.mrb[32].mxu1 %v14157_v1  ;;  %v13124_v46 = vld [vmem:[#allocation4 + $0x8] sm:$0xff]  ;;  %v14173_v1 = vld [vmem:[#allocation3 + $0xda] sm:$0xff] }
 0x9d5   : > { %v13063_v62 = vadd.f32 %v12972_v49, %v12802_v54  ;;  %20145 = vmatprep.mubr.f32.mxu1 %v14158_v47  ;;  %v13123_v54 = vld [vmem:[#allocation4] sm:$0xff] }
 0x9d6   : > { %13092 = vst.msk [vmem:[#allocation4 + $0x68] sm:$0xff] %vm11412_vm2, %v13064_v59  ;;  %v14174_v47 = vld [vmem:[#allocation3 + $0xe2] sm:$0xff] }
 0x9d7   : > { %13091 = vst.msk [vmem:[#allocation4 + $0x60] sm:$0xff] %vm11412_vm2, %v13063_v62  ;;  %v19860_v22 = vpop.f32.mrb[36].mxu1 }
 0x9d8   : > { %v13066_v27 = vadd.f32 %v19860_v22, %v12805_v38  ;;  %v12982_v33 = vpop.f32.mrb[37].mxu1  ;;  %20146 = vmatmul.mubr.f32.gmra.mrb[34].mxu1 %v14159_v51  ;;  %v14176_v38 = vld [vmem:[#allocation3 + $0xf2] sm:$0xff] }
 0x9d9   : > { %v13065_v21 = vadd.f32 %v12982_v33, %v12804_v50  ;;  %20148 = vmatprep.mubr.f32.mxu1 %v14160_v3  ;;  %v13126_v22 = vld [vmem:[#allocation4 + $0x18] sm:$0xff]  ;;  %v13125_v33 = vld [vmem:[#allocation4 + $0x10] sm:$0xff] }
 0x9da   : > { %13094 = vst.msk [vmem:[#allocation4 + $0x78] sm:$0xff] %vm11412_vm2, %v13066_v27  ;;  %v14175_v27 = vld [vmem:[#allocation3 + $0xea] sm:$0xff] }
 0x9db   : > { %13093 = vst.msk [vmem:[#allocation4 + $0x70] sm:$0xff] %vm11412_vm2, %v13065_v21  ;;  %v19863_v55 = vpop.f32.mrb[54].mxu1 }
 0x9dc   : > { %v13068_v28 = vadd.f32 %v19863_v55, %v12807_v13  ;;  %v12992_v40 = vpop.f32.mrb[55].mxu1  ;;  %20149 = vmatmul.mubr.f32.gmra.mrb[38].mxu1 %v14161_v24  ;;  %v14177_v13 = vld [vmem:[#allocation3 + $0xfa] sm:$0x3f]  ;;  %v14622_v55 = vld [vmem:[%s26878_s5] sm:$0xff]  ;;  %v14623_v24 = vld [vmem:[%s26878_s5 + $0x8] sm:$0xff] }
 0x9dd   : > { %v13067_v20 = vadd.f32 %v12992_v40, %v12806_v61  ;;  %20151 = vmatprep.mubr.f32.mxu1 %v14162_v39  ;;  %v20527_v40 = vpack.c.bf16 %v14623_v24, %v14622_v55 }
 0x9de   : > { %13096 = vst.msk [vmem:[#allocation4 + $0x88] sm:$0xff] %vm11412_vm2, %v13068_v28  ;;  %v13128_v28 = vld [vmem:[#allocation4 + $0x28] sm:$0xff] }
 0x9df   : > { %13095 = vst.msk [vmem:[#allocation4 + $0x80] sm:$0xff] %vm11412_vm2, %v13067_v20  ;;  %v19866_v53 = vpop.f32.mrb[62].mxu1  ;;  %v13127_v20 = vld [vmem:[#allocation4 + $0x20] sm:$0xff]  ;;  %20528 = vmatprep.subr.bf16.mxu1 %v20527_v40 }
 0x9e0   : > { %v13070_v2 = vadd.f32 %v19866_v53, %v12809_v36  ;;  %v13002_v41 = vpop.f32.mrb[63].mxu1  ;;  %20152 = vmatmul.mubr.f32.gmra.mrb[40].mxu1 %v14163_v45  ;;  %v13130_v45 = vld [vmem:[#allocation4 + $0x38] sm:$0xff] }
 0x9e1   : > { %v13069_v6 = vadd.f32 %v13002_v41, %v12808_v5  ;;  %20154 = vmatprep.mubr.f32.mxu1 %v14164_v23  ;;  %20530 = vmatpush3.bf16.msra.mxu1 %v20527_v40  ;;  %v13129_v41 = vld [vmem:[#allocation4 + $0x30] sm:$0xff] }
 0x9e2   : > { %13098 = vst.msk [vmem:[#allocation4 + $0x98] sm:$0xff] %vm11412_vm2, %v13070_v2 }
 0x9e3   : > { %13097 = vst.msk [vmem:[#allocation4 + $0x90] sm:$0xff] %vm11412_vm2, %v13069_v6  ;;  %v19869_v17 = vpop.f32.mrb[64].mxu1 }
 0x9e4   : > { %v13072_v29 = vadd.f32 %v19869_v17, %v12811_v19  ;;  %v13012_v30 = vpop.f32.mrb[65].mxu1  ;;  %20155 = vmatmul.mubr.f32.gmra.mrb[42].mxu1 %v14165_v63  ;;  %v13132_v19 = vld [vmem:[#allocation4 + $0x48] sm:$0xff] }
 0x9e5   : > { %v13071_v18 = vadd.f32 %v13012_v30, %v12810_v26  ;;  %20157 = vmatprep.mubr.f32.mxu1 %v14166_v35  ;;  %v13134_v35 = vld [vmem:[#allocation4 + $0x58] sm:$0xff] }
 0x9e6   : > { %13100 = vst.msk [vmem:[#allocation4 + $0xa8] sm:$0xff] %vm11412_vm2, %v13072_v29  ;;  %v13131_v29 = vld [vmem:[#allocation4 + $0x40] sm:$0xff] }
 0x9e7   : > { %13099 = vst.msk [vmem:[#allocation4 + $0xa0] sm:$0xff] %vm11412_vm2, %v13071_v18  ;;  %v19872_v25 = vpop.f32.mrb[66].mxu1 }
 0x9e8   : > { %v13074_v34 = vadd.f32 %v19872_v25, %v12813_v43  ;;  %v13022_v14 = vpop.f32.mrb[67].mxu1  ;;  %20158 = vmatmul.mubr.f32.gmra.mrb[44].mxu1 %v14167_v42  ;;  %v14624_v43 = vld [vmem:[%s26878_s5 + $0x10] sm:$0xff]  ;;  %v14625_v25 = vld [vmem:[%s26878_s5 + $0x18] sm:$0xff] }
 0x9e9   : > { %v13073_v56 = vadd.f32 %v13022_v14, %v12812_v12  ;;  %20160 = vmatprep.mubr.f32.mxu1 %v14168_v58  ;;  %v20531_v14 = vpack.c.bf16 %v14625_v25, %v14624_v43 }
 0x9ea   : > { %13102 = vst.msk [vmem:[#allocation4 + $0xb8] sm:$0xff] %vm11412_vm2, %v13074_v34  ;;  %v13133_v34 = vld [vmem:[#allocation4 + $0x50] sm:$0xff] }
 0x9eb   : > { %13101 = vst.msk [vmem:[#allocation4 + $0xb0] sm:$0xff] %vm11412_vm2, %v13073_v56  ;;  %v19875_v4 = vpop.f32.mrb[68].mxu1  ;;  %20532 = vmatprep.subr.bf16.mxu1 %v20531_v14  ;;  %v13136_v56 = vld [vmem:[#allocation4 + $0x68] sm:$0xff] }
 0x9ec   : > { %v13076_v11 = vadd.f32 %v19875_v4, %v12815_v52  ;;  %v13032_v57 = vpop.f32.mrb[69].mxu1  ;;  %20161 = vmatmul.mubr.f32.gmra.mrb[46].mxu1 %v14169_v60  ;;  %v13135_v60 = vld [vmem:[#allocation4 + $0x60] sm:$0xff] }
 0x9ed   : > { %v13075_v31 = vadd.f32 %v13032_v57, %v12814_v10  ;;  %20163 = vmatprep.mubr.f32.mxu1 %v14170_v16  ;;  %20534 = vmatpush3.bf16.msra.mxu1 %v20531_v14  ;;  %v13138_v57 = vld [vmem:[#allocation4 + $0x78] sm:$0xff] }
 0x9ee   : > { %13104 = vst.msk [vmem:[#allocation4 + $0xc8] sm:$0xff] %vm11412_vm2, %v13076_v11 }
 0x9ef   : > { %13103 = vst.msk [vmem:[#allocation4 + $0xc0] sm:$0xff] %vm11412_vm2, %v13075_v31  ;;  %v19878_v7 = vpop.f32.mrb[70].mxu1 }
 0x9f0   : > { %v13078_v8 = vadd.f32 %v19878_v7, %v12817_v0  ;;  %v13042_v48 = vpop.f32.mrb[71].mxu1  ;;  %20164 = vmatmul.mubr.f32.gmra.mrb[48].mxu1 %v14171_v32  ;;  %v13137_v0 = vld [vmem:[#allocation4 + $0x70] sm:$0xff] }
 0x9f1   : > { %v13077_v37 = vadd.f32 %v13042_v48, %v12816_v44  ;;  %20166 = vmatprep.mubr.f32.mxu1 %v14172_v9  ;;  %v13139_v9 = vld [vmem:[#allocation4 + $0x80] sm:$0xff] }
 0x9f2   : > { %13106 = vst.msk [vmem:[#allocation4 + $0xd8] sm:$0x3f] %vm11440_vm3, %v13078_v8  ;;  %v13140_v8 = vld [vmem:[#allocation4 + $0x88] sm:$0xff] }
 0x9f3   : > { %13105 = vst.msk [vmem:[#allocation4 + $0xd0] sm:$0xff] %vm11412_vm2, %v13077_v37  ;;  %v19913_v15 = vpop.f32.mrb[72].mxu1 }
 0x9f4   : > { %v13385_v59 = vadd.f32 %v19913_v15, %v13124_v46  ;;  %v13245_v49 = vpop.f32.mrb[73].mxu1  ;;  %20167 = vmatmul.mubr.f32.gmra.mrb[50].mxu1 %v14173_v1  ;;  %v14626_v15 = vld [vmem:[%s26878_s5 + $0x20] sm:$0xff]  ;;  %v14627_v1 = vld [vmem:[%s26878_s5 + $0x28] sm:$0xff] }
 0x9f5   : > { %v13384_v62 = vadd.f32 %v13245_v49, %v13123_v54  ;;  %20169 = vmatprep.mubr.f32.mxu1 %v14174_v47  ;;  %v20535_v49 = vpack.c.bf16 %v14627_v1, %v14626_v15 }
 0x9f6   : > { %13413 = vst.msk [vmem:[#allocation4 + $0x8] sm:$0xff] %vm11412_vm2, %v13385_v59  ;;  %v13142_v59 = vld [vmem:[#allocation4 + $0x98] sm:$0xff] }
 0x9f7   : > { %13412 = vst.msk [vmem:[#allocation4] sm:$0xff] %vm11412_vm2, %v13384_v62  ;;  %v19916_v51 = vpop.f32.mrb[74].mxu1  ;;  %v13141_v62 = vld [vmem:[#allocation4 + $0x90] sm:$0xff]  ;;  %20536 = vmatprep.subr.bf16.mxu1 %v20535_v49 }
 0x9f8   : > { %v13387_v50 = vadd.f32 %v19916_v51, %v13126_v22  ;;  %v13255_v3 = vpop.f32.mrb[75].mxu1  ;;  %20170 = vmatmul.mubr.f32.gmra.mrb[52].mxu1 %v14175_v27  ;;  %v13144_v51 = vld [vmem:[#allocation4 + $0xa8] sm:$0xff] }
 0x9f9   : > { %v13386_v21 = vadd.f32 %v13255_v3, %v13125_v33  ;;  %20172 = vmatprep.mubr.f32.mxu1 %v14176_v38  ;;  %20538 = vmatpush3.bf16.msra.mxu1 %v20535_v49  ;;  %v13143_v33 = vld [vmem:[#allocation4 + $0xa0] sm:$0xff] }
 0x9fa   : > { %13415 = vst.msk [vmem:[#allocation4 + $0x18] sm:$0xff] %vm11412_vm2, %v13387_v50 }
 0x9fb   : > { %13414 = vst.msk [vmem:[#allocation4 + $0x10] sm:$0xff] %vm11412_vm2, %v13386_v21  ;;  %v19919_v61 = vpop.f32.mrb[76].mxu1 }
 0x9fc   : > { %v13389_v39 = vadd.f32 %v19919_v61, %v13128_v28  ;;  %v13265_v36 = vpop.f32.mrb[77].mxu1  ;;  %20173 = vmatmul.mubr.f32.gmra.mrb[56].mxu1 %v14177_v13  ;;  %v13146_v13 = vld [vmem:[#allocation4 + $0xb8] sm:$0xff]  ;;  %v13145_v28 = vld [vmem:[#allocation4 + $0xb0] sm:$0xff] }
 0x9fd   : > { %v13388_v53 = vadd.f32 %v13265_v36, %v13127_v20 }
 0x9fe   : > { %13417 = vst.msk [vmem:[#allocation4 + $0x28] sm:$0xff] %vm11412_vm2, %v13389_v39  ;;  %v13148_v39 = vld [vmem:[#allocation4 + $0xc8] sm:$0xff] }
 0x9ff   : > { %13416 = vst.msk [vmem:[#allocation4 + $0x20] sm:$0xff] %vm11412_vm2, %v13388_v53  ;;  %v19922_v2 = vpop.f32.mrb[78].mxu1  ;;  %v13147_v53 = vld [vmem:[#allocation4 + $0xc0] sm:$0xff] }
 0xa00   : > { %v13391_v5 = vadd.f32 %v19922_v2, %v13130_v45  ;;  %v13275_v23 = vpop.f32.mrb[79].mxu1 }
 0xa01   : > { %v13390_v6 = vadd.f32 %v13275_v23, %v13129_v41  ;;  %v13459_v43 = vld [vmem:[#allocation4 + $0x18] sm:$0xff] }
 0xa02   : > { %13419 = vst.msk [vmem:[#allocation4 + $0x38] sm:$0xff] %vm11412_vm2, %v13391_v5  ;;  %v13150_v5 = vld [vmem:[#allocation4 + $0xd8] sm:$0x3f]  ;;  %v13458_v14 = vld [vmem:[#allocation4 + $0x10] sm:$0xff] }
 0xa03   : > { %13418 = vst.msk [vmem:[#allocation4 + $0x30] sm:$0xff] %vm11412_vm2, %v13390_v6  ;;  %v19925_v17 = vpop.f32.mrb[80].mxu1  ;;  %v13149_v6 = vld [vmem:[#allocation4 + $0xd0] sm:$0xff] }
 0xa04   : > { %v13393_v63 = vadd.f32 %v19925_v17, %v13132_v19  ;;  %v13285_v26 = vpop.f32.mrb[81].mxu1 }
 0xa05   : > { %v13392_v30 = vadd.f32 %v13285_v26, %v13131_v29 }
 0xa06   : > { %13421 = vst.msk [vmem:[#allocation4 + $0x48] sm:$0xff] %vm11412_vm2, %v13393_v63  ;;  %v13457_v63 = vld [vmem:[#allocation4 + $0x8] sm:$0xff] }
 0xa07   : > { %13420 = vst.msk [vmem:[#allocation4 + $0x40] sm:$0xff] %vm11412_vm2, %v13392_v30  ;;  %v19928_v18 = vpop.f32.mrb[82].mxu1  ;;  %v13456_v30 = vld [vmem:[#allocation4] sm:$0xff] }
 0xa08   : > { %v13395_v42 = vadd.f32 %v19928_v18, %v13134_v35  ;;  %v13295_v12 = vpop.f32.mrb[83].mxu1 }
 0xa09   : > { %v13394_v58 = vadd.f32 %v13295_v12, %v13133_v34  ;;  %v14629_v34 = vld [vmem:[%s26878_s5 + $0x38] sm:$0xff] }
 0xa0a   : > { %13423 = vst.msk [vmem:[#allocation4 + $0x58] sm:$0xff] %vm11412_vm2, %v13395_v42  ;;  %v14628_v42 = vld [vmem:[%s26878_s5 + $0x30] sm:$0xff] }
 0xa0b   : > { %13422 = vst.msk [vmem:[#allocation4 + $0x50] sm:$0xff] %vm11412_vm2, %v13394_v58  ;;  %v19931_v52 = vpop.f32.mrb[84].mxu1 }
 0xa0c   : > { %v13397_v4 = vadd.f32 %v19931_v52, %v13136_v56  ;;  %v13305_v11 = vpop.f32.mrb[85].mxu1  ;;  %v20539_v56 = vpack.c.bf16 %v14629_v34, %v14628_v42 }
 0xa0d   : > { %v13396_v10 = vadd.f32 %v13305_v11, %v13135_v60 }
 0xa0e   : > { %13425 = vst.msk [vmem:[#allocation4 + $0x68] sm:$0xff] %vm11412_vm2, %v13397_v4  ;;  %20540 = vmatprep.subr.bf16.mxu1 %v20539_v56  ;;  %v13461_v4 = vld [vmem:[#allocation4 + $0x28] sm:$0xff]  ;;  %v13464_v1 = vld [vmem:[#allocation4 + $0x40] sm:$0xff] }
 0xa0f   : > { %13424 = vst.msk [vmem:[#allocation4 + $0x60] sm:$0xff] %vm11412_vm2, %v13396_v10  ;;  %v19934_v16 = vpop.f32.mrb[86].mxu1  ;;  %20542 = vmatpush3.bf16.msra.mxu1 %v20539_v56  ;;  %v13460_v10 = vld [vmem:[#allocation4 + $0x20] sm:$0xff] }
 0xa10   : > { %v13399_v31 = vadd.f32 %v19934_v16, %v13138_v57  ;;  %v13315_v7 = vpop.f32.mrb[87].mxu1  ;;  %v14590_v16 = vld [vmem:[#allocation5] sm:$0xff] }
 0xa11   : > { %v13398_v32 = vadd.f32 %v13315_v7, %v13137_v0  ;;  %20191 = vmatprep.mubr.msk.f32.mxu1 %vm11412_vm2, %v14590_v16  ;;  %v14591_v0 = vld [vmem:[#allocation5 + $0x8] sm:$0xff]  ;;  %v13463_v7 = vld [vmem:[#allocation4 + $0x38] sm:$0xff] }
 0xa12   : > { %13427 = vst.msk [vmem:[#allocation4 + $0x78] sm:$0xff] %vm11412_vm2, %v13399_v31  ;;  %20192 = vmatmul.mubr.msk.f32.vlgmr.msra.gmra.mrb[58].mxu1 %vm11412_vm2, %v14591_v0  ;;  %v13467_v49 = vld [vmem:[#allocation4 + $0x58] sm:$0xff] }
 0xa13   : > { %13426 = vst.msk [vmem:[#allocation4 + $0x70] sm:$0xff] %vm11412_vm2, %v13398_v32  ;;  %v19937_v44 = vpop.f32.mrb[88].mxu1 }
 0xa14   : > { %v13401_v48 = vadd.f32 %v19937_v44, %v13140_v8  ;;  %v13325_v37 = vpop.f32.mrb[89].mxu1  ;;  %v13462_v44 = vld [vmem:[#allocation4 + $0x30] sm:$0xff] }
 0xa15   : > { %v13400_v46 = vadd.f32 %v13325_v37, %v13139_v9  ;;  %v13465_v37 = vld [vmem:[#allocation4 + $0x48] sm:$0xff] }
 0xa16   : > { %13429 = vst.msk [vmem:[#allocation4 + $0x88] sm:$0xff] %vm11412_vm2, %v13401_v48 }
 0xa17   : > { %13428 = vst.msk [vmem:[#allocation4 + $0x80] sm:$0xff] %vm11412_vm2, %v13400_v46  ;;  %v19940_v54 = vpop.f32.mrb[90].mxu1 }
 0xa18   : > { %v13403_v47 = vadd.f32 %v19940_v54, %v13142_v59  ;;  %v13335_v38 = vpop.f32.mrb[91].mxu1 }
 0xa19   : > { %v13402_v22 = vadd.f32 %v13335_v38, %v13141_v62  ;;  %v13466_v38 = vld [vmem:[#allocation4 + $0x50] sm:$0xff] }
 0xa1a   : > { %13431 = vst.msk [vmem:[#allocation4 + $0x98] sm:$0xff] %vm11412_vm2, %v13403_v47 }
 0xa1b   : > { %13430 = vst.msk [vmem:[#allocation4 + $0x90] sm:$0xff] %vm11412_vm2, %v13402_v22  ;;  %v19943_v27 = vpop.f32.mrb[92].mxu1 }
 0xa1c   : > { %v13405_v50 = vadd.f32 %v19943_v27, %v13144_v51  ;;  %v13345_v3 = vpop.f32.mrb[93].mxu1  ;;  %v13469_v27 = vld [vmem:[#allocation4 + $0x68] sm:$0xff] }
 0xa1d   : > { %v13404_v21 = vadd.f32 %v13345_v3, %v13143_v33  ;;  %v13468_v3 = vld [vmem:[#allocation4 + $0x60] sm:$0xff] }
 0xa1e   : > { %13433 = vst.msk [vmem:[#allocation4 + $0xa8] sm:$0xff] %vm11412_vm2, %v13405_v50 }
 0xa1f   : > { %13432 = vst.msk [vmem:[#allocation4 + $0xa0] sm:$0xff] %vm11412_vm2, %v13404_v21  ;;  %v19946_v55 = vpop.f32.mrb[94].mxu1 }
 0xa20   : > { %v13407_v24 = vadd.f32 %v19946_v55, %v13146_v13  ;;  %v13355_v61 = vpop.f32.mrb[95].mxu1  ;;  %v13471_v55 = vld [vmem:[#allocation4 + $0x78] sm:$0xff] }
 0xa21   : > { %v13406_v40 = vadd.f32 %v13355_v61, %v13145_v28  ;;  %v13470_v61 = vld [vmem:[#allocation4 + $0x70] sm:$0xff] }
 0xa22   : > { %13435 = vst.msk [vmem:[#allocation4 + $0xb8] sm:$0xff] %vm11412_vm2, %v13407_v24 }
 0xa23   : > { %13434 = vst.msk [vmem:[#allocation4 + $0xb0] sm:$0xff] %vm11412_vm2, %v13406_v40  ;;  %v19949_v20 = vpop.f32.mrb[96].mxu1 }
 0xa24   : > { %v13409_v36 = vadd.f32 %v19949_v20, %v13148_v39  ;;  %v13365_v45 = vpop.f32.mrb[97].mxu1  ;;  %v13473_v20 = vld [vmem:[#allocation4 + $0x88] sm:$0xff] }
 0xa25   : > { %v13408_v2 = vadd.f32 %v13365_v45, %v13147_v53  ;;  %v13472_v45 = vld [vmem:[#allocation4 + $0x80] sm:$0xff] }
 0xa26   : > { %13437 = vst.msk [vmem:[#allocation4 + $0xc8] sm:$0xff] %vm11412_vm2, %v13409_v36 }
 0xa27   : > { %13436 = vst.msk [vmem:[#allocation4 + $0xc0] sm:$0xff] %vm11412_vm2, %v13408_v2  ;;  %v19952_v41 = vpop.f32.mrb[98].mxu1 }
 0xa28   : > { %v13411_v23 = vadd.f32 %v19952_v41, %v13150_v5  ;;  %v13375_v19 = vpop.f32.mrb[99].mxu1  ;;  %v13475_v41 = vld [vmem:[#allocation4 + $0x98] sm:$0xff] }
 0xa29   : > { %v13410_v17 = vadd.f32 %v13375_v19, %v13149_v6  ;;  %v13474_v19 = vld [vmem:[#allocation4 + $0x90] sm:$0xff] }
 0xa2a   : > { %13439 = vst.msk [vmem:[#allocation4 + $0xd8] sm:$0x3f] %vm11440_vm3, %v13411_v23 }
 0xa2b   : > { %13438 = vst.msk [vmem:[#allocation4 + $0xd0] sm:$0xff] %vm11412_vm2, %v13410_v17  ;;  %v19987_v29 = vpop.f32.mrb[100].mxu1 }
 0xa2c   : > { %v13718_v26 = vadd.f32 %v19987_v29, %v13457_v63  ;;  %v13578_v35 = vpop.f32.mrb[101].mxu1  ;;  %v13477_v29 = vld [vmem:[#allocation4 + $0xa8] sm:$0xff] }
 0xa2d   : > { %v13717_v18 = vadd.f32 %v13578_v35, %v13456_v30  ;;  %v13476_v35 = vld [vmem:[#allocation4 + $0xa0] sm:$0xff]  ;;  %v13481_v56 = vld [vmem:[#allocation4 + $0xc8] sm:$0xff] }
 0xa2e   : > { %13746 = vst.msk [vmem:[#allocation4 + $0x8] sm:$0xff] %vm11412_vm2, %v13718_v26 }
 0xa2f   : > { %13745 = vst.msk [vmem:[#allocation4] sm:$0xff] %vm11412_vm2, %v13717_v18  ;;  %v19990_v25 = vpop.f32.mrb[102].mxu1 }
 0xa30   : > { %v13720_v12 = vadd.f32 %v19990_v25, %v13459_v43  ;;  %v13588_v58 = vpop.f32.mrb[103].mxu1  ;;  %v13479_v25 = vld [vmem:[#allocation4 + $0xb8] sm:$0xff] }
 0xa31   : > { %v13719_v52 = vadd.f32 %v13588_v58, %v13458_v14 }
 0xa32   : > { %13748 = vst.msk [vmem:[#allocation4 + $0x18] sm:$0xff] %vm11412_vm2, %v13720_v12  ;;  %v13478_v12 = vld [vmem:[#allocation4 + $0xb0] sm:$0xff] }
 0xa33   : > { %13747 = vst.msk [vmem:[#allocation4 + $0x10] sm:$0xff] %vm11412_vm2, %v13719_v52  ;;  %v19993_v60 = vpop.f32.mrb[104].mxu1  ;;  %v13482_v0 = vld [vmem:[#allocation4 + $0xd0] sm:$0xff] }
 0xa34   : > { %v13722_v11 = vadd.f32 %v19993_v60, %v13461_v4  ;;  %v13598_v57 = vpop.f32.mrb[105].mxu1  ;;  %v13480_v60 = vld [vmem:[#allocation4 + $0xc0] sm:$0xff] }
 0xa35   : > { %v13721_v31 = vadd.f32 %v13598_v57, %v13460_v10  ;;  %v13483_v57 = vld [vmem:[#allocation4 + $0xd8] sm:$0x3f] }
 0xa36   : > { %13750 = vst.msk [vmem:[#allocation4 + $0x28] sm:$0xff] %vm11412_vm2, %v13722_v11 }
 0xa37   : > { %13749 = vst.msk [vmem:[#allocation4 + $0x20] sm:$0xff] %vm11412_vm2, %v13721_v31  ;;  %v19996_v32 = vpop.f32.mrb[106].mxu1 }
 0xa38   : > { %v13724_v8 = vadd.f32 %v19996_v32, %v13463_v7  ;;  %v13608_v48 = vpop.f32.mrb[107].mxu1 }
 0xa39   : > { %v13723_v9 = vadd.f32 %v13608_v48, %v13462_v44 }
 0xa3a   : > { %13752 = vst.msk [vmem:[#allocation4 + $0x38] sm:$0xff] %vm11412_vm2, %v13724_v8  ;;  %v13790_v8 = vld [vmem:[#allocation4 + $0x8] sm:$0xff] }
 0xa3b   : > { %13751 = vst.msk [vmem:[#allocation4 + $0x30] sm:$0xff] %vm11412_vm2, %v13723_v9  ;;  %v19999_v46 = vpop.f32.mrb[108].mxu1  ;;  %v13789_v9 = vld [vmem:[#allocation4] sm:$0xff] }
 0xa3c   : > { %v13726_v15 = vadd.f32 %v19999_v46, %v13465_v37  ;;  %v13618_v59 = vpop.f32.mrb[109].mxu1 }
 0xa3d   : > { %v13725_v54 = vadd.f32 %v13618_v59, %v13464_v1 }
 0xa3e   : > { %13754 = vst.msk [vmem:[#allocation4 + $0x48] sm:$0xff] %vm11412_vm2, %v13726_v15  ;;  %v13792_v15 = vld [vmem:[#allocation4 + $0x18] sm:$0xff] }
 0xa3f   : > { %13753 = vst.msk [vmem:[#allocation4 + $0x40] sm:$0xff] %vm11412_vm2, %v13725_v54  ;;  %v20002_v47 = vpop.f32.mrb[110].mxu1  ;;  %v13791_v54 = vld [vmem:[#allocation4 + $0x10] sm:$0xff] }
 0xa40   : > { %v13728_v62 = vadd.f32 %v20002_v47, %v13467_v49  ;;  %v13628_v22 = vpop.f32.mrb[111].mxu1 }
 0xa41   : > { %v13727_v51 = vadd.f32 %v13628_v22, %v13466_v38 }
 0xa42   : > { %13756 = vst.msk [vmem:[#allocation4 + $0x58] sm:$0xff] %vm11412_vm2, %v13728_v62  ;;  %v13794_v62 = vld [vmem:[#allocation4 + $0x28] sm:$0xff] }
 0xa43   : > { %13755 = vst.msk [vmem:[#allocation4 + $0x50] sm:$0xff] %vm11412_vm2, %v13727_v51  ;;  %v20005_v50 = vpop.f32.mrb[112].mxu1  ;;  %v13793_v51 = vld [vmem:[#allocation4 + $0x20] sm:$0xff] }
 0xa44   : > { %v13730_v33 = vadd.f32 %v20005_v50, %v13469_v27  ;;  %v13638_v21 = vpop.f32.mrb[113].mxu1 }
 0xa45   : > { %v13729_v13 = vadd.f32 %v13638_v21, %v13468_v3 }
 0xa46   : > { %13758 = vst.msk [vmem:[#allocation4 + $0x68] sm:$0xff] %vm11412_vm2, %v13730_v33  ;;  %v13796_v33 = vld [vmem:[#allocation4 + $0x38] sm:$0xff] }
 0xa47   : > { %13757 = vst.msk [vmem:[#allocation4 + $0x60] sm:$0xff] %vm11412_vm2, %v13729_v13  ;;  %v20008_v24 = vpop.f32.mrb[114].mxu1  ;;  %v13795_v13 = vld [vmem:[#allocation4 + $0x30] sm:$0xff] }
 0xa48   : > { %v13732_v28 = vadd.f32 %v20008_v24, %v13471_v55  ;;  %v13648_v40 = vpop.f32.mrb[115].mxu1 }
 0xa49   : > { %v13731_v39 = vadd.f32 %v13648_v40, %v13470_v61 }
 0xa4a   : > { %13760 = vst.msk [vmem:[#allocation4 + $0x78] sm:$0xff] %vm11412_vm2, %v13732_v28  ;;  %v13798_v28 = vld [vmem:[#allocation4 + $0x48] sm:$0xff] }
 0xa4b   : > { %13759 = vst.msk [vmem:[#allocation4 + $0x70] sm:$0xff] %vm11412_vm2, %v13731_v39  ;;  %v20011_v36 = vpop.f32.mrb[116].mxu1  ;;  %v13797_v39 = vld [vmem:[#allocation4 + $0x40] sm:$0xff] }
 0xa4c   : > { %v13734_v53 = vadd.f32 %v20011_v36, %v13473_v20  ;;  %v13658_v2 = vpop.f32.mrb[117].mxu1 }
 0xa4d   : > { %v13733_v5 = vadd.f32 %v13658_v2, %v13472_v45 }
 0xa4e   : > { %13762 = vst.msk [vmem:[#allocation4 + $0x88] sm:$0xff] %vm11412_vm2, %v13734_v53  ;;  %v13800_v53 = vld [vmem:[#allocation4 + $0x58] sm:$0xff] }
 0xa4f   : > { %13761 = vst.msk [vmem:[#allocation4 + $0x80] sm:$0xff] %vm11412_vm2, %v13733_v5  ;;  %v20014_v23 = vpop.f32.mrb[118].mxu1  ;;  %v13799_v5 = vld [vmem:[#allocation4 + $0x50] sm:$0xff] }
 0xa50   : > { %v13736_v6 = vadd.f32 %v20014_v23, %v13475_v41  ;;  %v13668_v17 = vpop.f32.mrb[119].mxu1 }
 0xa51   : > { %v13735_v63 = vadd.f32 %v13668_v17, %v13474_v19 }
 0xa52   : > { %13764 = vst.msk [vmem:[#allocation4 + $0x98] sm:$0xff] %vm11412_vm2, %v13736_v6  ;;  %v13802_v6 = vld [vmem:[#allocation4 + $0x68] sm:$0xff] }
 0xa53   : > { %13763 = vst.msk [vmem:[#allocation4 + $0x90] sm:$0xff] %vm11412_vm2, %v13735_v63  ;;  %v20017_v26 = vpop.f32.mrb[120].mxu1  ;;  %v13801_v63 = vld [vmem:[#allocation4 + $0x60] sm:$0xff] }
 0xa54   : > { %v13738_v30 = vadd.f32 %v20017_v26, %v13477_v29  ;;  %v13678_v18 = vpop.f32.mrb[121].mxu1 }
 0xa55   : > { %v13737_v43 = vadd.f32 %v13678_v18, %v13476_v35 }
 0xa56   : > { %13766 = vst.msk [vmem:[#allocation4 + $0xa8] sm:$0xff] %vm11412_vm2, %v13738_v30  ;;  %v13804_v30 = vld [vmem:[#allocation4 + $0x78] sm:$0xff] }
 0xa57   : > { %13765 = vst.msk [vmem:[#allocation4 + $0xa0] sm:$0xff] %vm11412_vm2, %v13737_v43  ;;  %v20020_v42 = vpop.f32.mrb[122].mxu1  ;;  %v13803_v43 = vld [vmem:[#allocation4 + $0x70] sm:$0xff] }
 0xa58   : > { %v13740_v34 = vadd.f32 %v20020_v42, %v13479_v25  ;;  %v13688_v14 = vpop.f32.mrb[123].mxu1 }
 0xa59   : > { %v13739_v58 = vadd.f32 %v13688_v14, %v13478_v12 }
 0xa5a   : > { %13768 = vst.msk [vmem:[#allocation4 + $0xb8] sm:$0xff] %vm11412_vm2, %v13740_v34  ;;  %v13806_v34 = vld [vmem:[#allocation4 + $0x88] sm:$0xff] }
 0xa5b   : > { %13767 = vst.msk [vmem:[#allocation4 + $0xb0] sm:$0xff] %vm11412_vm2, %v13739_v58  ;;  %v20023_v52 = vpop.f32.mrb[124].mxu1  ;;  %v13805_v58 = vld [vmem:[#allocation4 + $0x80] sm:$0xff] }
 0xa5c   : > { %v13742_v4 = vadd.f32 %v20023_v52, %v13481_v56  ;;  %v13698_v11 = vpop.f32.mrb[125].mxu1 }
 0xa5d   : > { %v13741_v10 = vadd.f32 %v13698_v11, %v13480_v60 }
 0xa5e   : > { %13770 = vst.msk [vmem:[#allocation4 + $0xc8] sm:$0xff] %vm11412_vm2, %v13742_v4  ;;  %v13808_v4 = vld [vmem:[#allocation4 + $0x98] sm:$0xff] }
 0xa5f   : > { %13769 = vst.msk [vmem:[#allocation4 + $0xc0] sm:$0xff] %vm11412_vm2, %v13741_v10  ;;  %v20026_v16 = vpop.f32.mrb[126].mxu1  ;;  %v13807_v10 = vld [vmem:[#allocation4 + $0x90] sm:$0xff] }
 0xa60   : > { %v13744_v31 = vadd.f32 %v20026_v16, %v13483_v57  ;;  %v13708_v7 = vpop.f32.mrb[127].mxu1 }
 0xa61   : > { %v13743_v32 = vadd.f32 %v13708_v7, %v13482_v0 }
 0xa62   : > { %13772 = vst.msk [vmem:[#allocation4 + $0xd8] sm:$0x3f] %vm11440_vm3, %v13744_v31  ;;  %v13810_v31 = vld [vmem:[#allocation4 + $0xa8] sm:$0xff] }
 0xa63   : > { %13771 = vst.msk [vmem:[#allocation4 + $0xd0] sm:$0xff] %vm11412_vm2, %v13743_v32  ;;  %v20061_v44 = vpop.f32.mrb[128].mxu1  ;;  %v13809_v32 = vld [vmem:[#allocation4 + $0xa0] sm:$0xff] }
 0xa64   : > { %v14051_v48 = vadd.f32 %v20061_v44, %v13790_v8  ;;  %v13911_v37 = vpop.f32.mrb[129].mxu1 }
 0xa65   : > { %v14050_v46 = vadd.f32 %v13911_v37, %v13789_v9 }
 0xa66   : > { %14079 = vst.msk [vmem:[#allocation4 + $0x8] sm:$0xff] %vm11412_vm2, %v14051_v48  ;;  %v13812_v48 = vld [vmem:[#allocation4 + $0xb8] sm:$0xff] }
 0xa67   : > { %14078 = vst.msk [vmem:[#allocation4] sm:$0xff] %vm11412_vm2, %v14050_v46  ;;  %v20064_v1 = vpop.f32.mrb[130].mxu1  ;;  %v13811_v46 = vld [vmem:[#allocation4 + $0xb0] sm:$0xff] }
 0xa68   : > { %v14053_v59 = vadd.f32 %v20064_v1, %v13792_v15  ;;  %v13921_v49 = vpop.f32.mrb[131].mxu1 }
 0xa69   : > { %v14052_v47 = vadd.f32 %v13921_v49, %v13791_v54 }
 0xa6a   : > { %14081 = vst.msk [vmem:[#allocation4 + $0x18] sm:$0xff] %vm11412_vm2, %v14053_v59  ;;  %v13814_v59 = vld [vmem:[#allocation4 + $0xc8] sm:$0xff] }
 0xa6b   : > { %14080 = vst.msk [vmem:[#allocation4 + $0x10] sm:$0xff] %vm11412_vm2, %v14052_v47  ;;  %v20067_v38 = vpop.f32.mrb[132].mxu1  ;;  %v13813_v47 = vld [vmem:[#allocation4 + $0xc0] sm:$0xff] }
 0xa6c   : > { %v14055_v22 = vadd.f32 %v20067_v38, %v13794_v62  ;;  %v13931_v27 = vpop.f32.mrb[133].mxu1 }
 0xa6d   : > { %v14054_v50 = vadd.f32 %v13931_v27, %v13793_v51 }
 0xa6e   : > { %14083 = vst.msk [vmem:[#allocation4 + $0x28] sm:$0xff] %vm11412_vm2, %v14055_v22  ;;  %v13816_v22 = vld [vmem:[#allocation4 + $0xd8] sm:$0x3f] }
 0xa6f   : > { %14082 = vst.msk [vmem:[#allocation4 + $0x20] sm:$0xff] %vm11412_vm2, %v14054_v50  ;;  %v20070_v3 = vpop.f32.mrb[2].mxu1  ;;  %v13815_v50 = vld [vmem:[#allocation4 + $0xd0] sm:$0xff] }
 0xa70   : > { %v14057_v21 = vadd.f32 %v20070_v3, %v13796_v33  ;;  %v13941_v55 = vpop.f32.mrb[3].mxu1 }
 0xa71   : > { %v14056_v24 = vadd.f32 %v13941_v55, %v13795_v13 }
 0xa72   : > { %14085 = vst.msk [vmem:[#allocation4 + $0x38] sm:$0xff] %vm11412_vm2, %v14057_v21  ;;  %v14123_v21 = vld [vmem:[#allocation4 + $0x8] sm:$0xff] }
 0xa73   : > { %14084 = vst.msk [vmem:[#allocation4 + $0x30] sm:$0xff] %vm11412_vm2, %v14056_v24  ;;  %v20073_v61 = vpop.f32.mrb[4].mxu1  ;;  %v14122_v24 = vld [vmem:[#allocation4] sm:$0xff] }
 0xa74   : > { %v14059_v40 = vadd.f32 %v20073_v61, %v13798_v28  ;;  %v13951_v20 = vpop.f32.mrb[5].mxu1 }
 0xa75   : > { %v14058_v36 = vadd.f32 %v13951_v20, %v13797_v39 }
 0xa76   : > { %14087 = vst.msk [vmem:[#allocation4 + $0x48] sm:$0xff] %vm11412_vm2, %v14059_v40  ;;  %v14125_v40 = vld [vmem:[#allocation4 + $0x18] sm:$0xff] }
 0xa77   : > { %14086 = vst.msk [vmem:[#allocation4 + $0x40] sm:$0xff] %vm11412_vm2, %v14058_v36  ;;  %v20076_v45 = vpop.f32.mrb[6].mxu1  ;;  %v14124_v36 = vld [vmem:[#allocation4 + $0x10] sm:$0xff] }
 0xa78   : > { %v14061_v2 = vadd.f32 %v20076_v45, %v13800_v53  ;;  %v13961_v41 = vpop.f32.mrb[7].mxu1 }
 0xa79   : > { %v14060_v23 = vadd.f32 %v13961_v41, %v13799_v5  ;;  %v14127_v5 = vld [vmem:[#allocation4 + $0x28] sm:$0xff] }
 0xa7a   : > { %14089 = vst.msk [vmem:[#allocation4 + $0x58] sm:$0xff] %vm11412_vm2, %v14061_v2  ;;  %v26682_v2 = vld [vmem:[%s26877_s4] ss:$0 sm:$0xff] }
 0xa7b   : > { %14088 = vst.msk [vmem:[#allocation4 + $0x50] sm:$0xff] %vm11412_vm2, %v14060_v23  ;;  %v20079_v19 = vpop.f32.mrb[8].mxu1 }
 0xa7c   : > { %v14063_v17 = vadd.f32 %v20079_v19, %v13802_v6  ;;  %v13971_v29 = vpop.f32.mrb[9].mxu1  ;;  %v14126_v6 = vld [vmem:[#allocation4 + $0x20] sm:$0xff] }
 0xa7d   : > { %v14062_v26 = vadd.f32 %v13971_v29, %v13801_v63 }
 0xa7e   : > { %14091 = vst.msk [vmem:[#allocation4 + $0x68] sm:$0xff] %vm11412_vm2, %v14063_v17 }
 0xa7f   : > { %14090 = vst.msk [vmem:[#allocation4 + $0x60] sm:$0xff] %vm11412_vm2, %v14062_v26  ;;  %v20082_v35 = vpop.f32.mrb[10].mxu1 }
 0xa80   : > { %v14065_v18 = vadd.f32 %v20082_v35, %v13804_v30  ;;  %v13981_v25 = vpop.f32.mrb[11].mxu1  ;;  %v14129_v35 = vld [vmem:[#allocation4 + $0x38] sm:$0xff] }
 0xa81   : > { %v14064_v42 = vadd.f32 %v13981_v25, %v13803_v43 }
 0xa82   : > { %14093 = vst.msk [vmem:[#allocation4 + $0x78] sm:$0xff] %vm11412_vm2, %v14065_v18 }
 0xa83   : > { %14092 = vst.msk [vmem:[#allocation4 + $0x70] sm:$0xff] %vm11412_vm2, %v14064_v42  ;;  %v20085_v12 = vpop.f32.mrb[12].mxu1  ;;  %v14128_v42 = vld [vmem:[#allocation4 + $0x30] sm:$0xff] }
 0xa84   : > { %v14067_v14 = vadd.f32 %v20085_v12, %v13806_v34  ;;  %v13991_v56 = vpop.f32.mrb[13].mxu1 }
 0xa85   : > { %v14066_v52 = vadd.f32 %v13991_v56, %v13805_v58 }
 0xa86   : > { %14095 = vst.msk [vmem:[#allocation4 + $0x88] sm:$0xff] %vm11412_vm2, %v14067_v14 }
 0xa87   : > { %14094 = vst.msk [vmem:[#allocation4 + $0x80] sm:$0xff] %vm11412_vm2, %v14066_v52  ;;  %v20088_v60 = vpop.f32.mrb[14].mxu1 }
 0xa88   : > { %v14069_v11 = vadd.f32 %v20088_v60, %v13808_v4  ;;  %v14001_v57 = vpop.f32.mrb[15].mxu1  ;;  %v14131_v60 = vld [vmem:[#allocation4 + $0x48] sm:$0xff] }
 0xa89   : > { %v14068_v16 = vadd.f32 %v14001_v57, %v13807_v10 }
 0xa8a   : > { %14097 = vst.msk [vmem:[#allocation4 + $0x98] sm:$0xff] %vm11412_vm2, %v14069_v11 }
 0xa8b   : > { %14096 = vst.msk [vmem:[#allocation4 + $0x90] sm:$0xff] %vm11412_vm2, %v14068_v16  ;;  %v20091_v0 = vpop.f32.mrb[16].mxu1  ;;  %v14130_v16 = vld [vmem:[#allocation4 + $0x40] sm:$0xff] }
 0xa8c   : > { %v14071_v7 = vadd.f32 %v20091_v0, %v13810_v31  ;;  %v14011_v8 = vpop.f32.mrb[17].mxu1 }
 0xa8d   : > { %v14070_v44 = vadd.f32 %v14011_v8, %v13809_v32 }
 0xa8e   : > { %14099 = vst.msk [vmem:[#allocation4 + $0xa8] sm:$0xff] %vm11412_vm2, %v14071_v7 }
 0xa8f   : > { %14098 = vst.msk [vmem:[#allocation4 + $0xa0] sm:$0xff] %vm11412_vm2, %v14070_v44  ;;  %v20094_v9 = vpop.f32.mrb[20].mxu1 }
 0xa90   : > { %v14073_v37 = vadd.f32 %v20094_v9, %v13812_v48  ;;  %v14021_v15 = vpop.f32.mrb[21].mxu1  ;;  %v14133_v9 = vld [vmem:[#allocation4 + $0x58] sm:$0xff] }
 0xa91   : > { %v14072_v1 = vadd.f32 %v14021_v15, %v13811_v46 }
 0xa92   : > { %14101 = vst.msk [vmem:[#allocation4 + $0xb8] sm:$0xff] %vm11412_vm2, %v14073_v37 }
 0xa93   : > { %14100 = vst.msk [vmem:[#allocation4 + $0xb0] sm:$0xff] %vm11412_vm2, %v14072_v1  ;;  %v20097_v54 = vpop.f32.mrb[22].mxu1  ;;  %v14132_v1 = vld [vmem:[#allocation4 + $0x50] sm:$0xff] }
 0xa94   : > { %v14075_v49 = vadd.f32 %v20097_v54, %v13814_v59  ;;  %v14031_v62 = vpop.f32.mrb[23].mxu1 }
 0xa95   : > { %v14074_v38 = vadd.f32 %v14031_v62, %v13813_v47 }
 0xa96   : > { %14103 = vst.msk [vmem:[#allocation4 + $0xc8] sm:$0xff] %vm11412_vm2, %v14075_v49 }
 0xa97   : > { %14102 = vst.msk [vmem:[#allocation4 + $0xc0] sm:$0xff] %vm11412_vm2, %v14074_v38  ;;  %v20100_v51 = vpop.f32.mrb[24].mxu1 }
 0xa98   : > { %v14077_v27 = vadd.f32 %v20100_v51, %v13816_v22  ;;  %v14041_v33 = vpop.f32.mrb[25].mxu1 }
 0xa99   : > { %v14076_v3 = vadd.f32 %v14041_v33, %v13815_v50  ;;  %v14135_v50 = vld [vmem:[#allocation4 + $0x68] sm:$0xff] }
 0xa9a   : > { %14105 = vst.msk [vmem:[#allocation4 + $0xd8] sm:$0x3f] %vm11440_vm3, %v14077_v27 }
 0xa9b   : > { %14104 = vst.msk [vmem:[#allocation4 + $0xd0] sm:$0xff] %vm11412_vm2, %v14076_v3  ;;  %v20135_v13 = vpop.f32.mrb[26].mxu1 }
 0xa9c   : > { %v14384_v55 = vadd.f32 %v20135_v13, %v14123_v21  ;;  %v14244_v28 = vpop.f32.mrb[27].mxu1  ;;  %v14134_v13 = vld [vmem:[#allocation4 + $0x60] sm:$0xff] }
 0xa9d   : > { %v14383_v61 = vadd.f32 %v14244_v28, %v14122_v24 }
 0xa9e   : > { %14412 = vst.msk [vmem:[#allocation4 + $0x8] sm:$0xff] %vm11412_vm2, %v14384_v55 }
 0xa9f   : > { %14411 = vst.msk [vmem:[#allocation4] sm:$0xff] %vm11412_vm2, %v14383_v61  ;;  %v20138_v39 = vpop.f32.mrb[28].mxu1 }
 0xaa0   : > { %v14386_v20 = vadd.f32 %v20138_v39, %v14125_v40  ;;  %v14254_v53 = vpop.f32.mrb[29].mxu1 }
 0xaa1   : > { %v14385_v45 = vadd.f32 %v14254_v53, %v14124_v36 }
 0xaa2   : > { %14414 = vst.msk [vmem:[#allocation4 + $0x18] sm:$0xff] %vm11412_vm2, %v14386_v20 }
 0xaa3   : > { %14413 = vst.msk [vmem:[#allocation4 + $0x10] sm:$0xff] %vm11412_vm2, %v14385_v45  ;;  %v20141_v41 = vpop.f32.mrb[30].mxu1  ;;  %v14137_v45 = vld [vmem:[#allocation4 + $0x78] sm:$0xff] }
 0xaa4   : > { %v14388_v23 = vadd.f32 %v20141_v41, %v14127_v5  ;;  %v14264_v19 = vpop.f32.mrb[31].mxu1 }
 0xaa5   : > { %v14473_v17 = vld [vmem:[#allocation4 + $0x8] sm:$0x3f]  ;;  %v14387_v63 = vadd.f32 %v14264_v19, %v14126_v6  ;;  %v14136_v6 = vld [vmem:[#allocation4 + $0x70] sm:$0xff] }
 0xaa6   : > { %v14481_v29 = vadd.f32 %v26682_v2, %v14473_v17  ;;  %v14472_v26 = vld [vmem:[#allocation4] sm:$0xff]  ;;  %14416 = vst.msk [vmem:[#allocation4 + $0x28] sm:$0xff] %vm11412_vm2, %v14388_v23 }
 0xaa7   : > { %v14480_v30 = vadd.f32 %v26682_v2, %v14472_v26  ;;  %14415 = vst.msk [vmem:[#allocation4 + $0x20] sm:$0xff] %vm11412_vm2, %v14387_v63  ;;  %v20144_v18 = vpop.f32.mrb[32].mxu1 }
 0xaa8   : > { %v14483_v43 = vmax.f32 %v14481_v29, 0.0  ;;  %v14390_v25 = vadd.f32 %v20144_v18, %v14129_v35  ;;  %v14274_v34 = vpop.f32.mrb[33].mxu1 }
 0xaa9   : > { %v14482_v12 = vmax.f32 %v14480_v30, 0.0  ;;  %v14487_v14 = vld [vmem:[#allocation4 + $0x18] sm:$0x3f]  ;;  %v14389_v58 = vadd.f32 %v14274_v34, %v14128_v42 }
 0xaaa   : > { %14485 = vst.msk [vmem:[#allocation5 + $0x19] sm:$0x3f] %vm11440_vm3, %v14483_v43  ;;  %v14489_v56 = vadd.f32 %v26682_v2, %v14487_v14  ;;  %v14486_v52 = vld [vmem:[#allocation4 + $0x10] sm:$0xff]  ;;  %v14138_v14 = vld [vmem:[#allocation4 + $0x80] sm:$0xff] }
 0xaab   : > { %14418 = vst.msk [vmem:[#allocation4 + $0x38] sm:$0xff] %vm11412_vm2, %v14390_v25  ;;  %14484 = vst.msk [vmem:[#allocation5 + $0x11] sm:$0xff] %vm11412_vm2, %v14482_v12  ;;  %v14488_v4 = vadd.f32 %v26682_v2, %v14486_v52  ;;  %v20147_v11 = vpop.f32.mrb[34].mxu1  ;;  %v14139_v25 = vld [vmem:[#allocation4 + $0x88] sm:$0xff] }
 0xaac   : > { %14417 = vst.msk [vmem:[#allocation4 + $0x30] sm:$0xff] %vm11412_vm2, %v14389_v58  ;;  %v14491_v10 = vmax.f32 %v14489_v56, 0.0  ;;  %v14392_v57 = vadd.f32 %v20147_v11, %v14131_v60  ;;  %v14284_v31 = vpop.f32.mrb[35].mxu1 }
 0xaad   : > { %v14490_v0 = vmax.f32 %v14488_v4, 0.0  ;;  %v14495_v7 = vld [vmem:[#allocation4 + $0x28] sm:$0x3f]  ;;  %v14391_v32 = vadd.f32 %v14284_v31, %v14130_v16  ;;  %v14141_v31 = vld [vmem:[#allocation4 + $0x98] sm:$0xff] }
 0xaae   : > { %14493 = vst.msk [vmem:[#allocation5 + $0x29] sm:$0x3f] %vm11440_vm3, %v14491_v10  ;;  %v14497_v8 = vadd.f32 %v26682_v2, %v14495_v7  ;;  %v14494_v44 = vld [vmem:[#allocation4 + $0x20] sm:$0xff] }
 0xaaf   : > { %14420 = vst.msk [vmem:[#allocation4 + $0x48] sm:$0xff] %vm11412_vm2, %v14392_v57  ;;  %14492 = vst.msk [vmem:[#allocation5 + $0x21] sm:$0xff] %vm11412_vm2, %v14490_v0  ;;  %v14496_v48 = vadd.f32 %v26682_v2, %v14494_v44  ;;  %v20150_v37 = vpop.f32.mrb[38].mxu1 }
 0xab0   : > { %14419 = vst.msk [vmem:[#allocation4 + $0x40] sm:$0xff] %vm11412_vm2, %v14391_v32  ;;  %v14499_v46 = vmax.f32 %v14497_v8, 0.0  ;;  %v14394_v15 = vadd.f32 %v20150_v37, %v14133_v9  ;;  %v14294_v59 = vpop.f32.mrb[39].mxu1  ;;  %v14140_v8 = vld [vmem:[#allocation4 + $0x90] sm:$0xff] }
 0xab1   : > { %v14498_v54 = vmax.f32 %v14496_v48, 0.0  ;;  %v14393_v47 = vadd.f32 %v14294_v59, %v14132_v1 }
 0xab2   : > { %v14503_v49 = vld [vmem:[#allocation4 + $0x38] sm:$0x3f]  ;;  %14501 = vst.msk [vmem:[#allocation5 + $0x39] sm:$0x3f] %vm11440_vm3, %v14499_v46  ;;  %v14592_v22 = vld [vmem:[#allocation5 + $0x10] sm:$0xff] }
 0xab3   : > { %v14505_v62 = vadd.f32 %v26682_v2, %v14503_v49  ;;  %v14502_v38 = vld [vmem:[#allocation4 + $0x30] sm:$0xff]  ;;  %14422 = vst.msk [vmem:[#allocation4 + $0x58] sm:$0xff] %vm11412_vm2, %v14394_v15  ;;  %v14593_v51 = vld [vmem:[#allocation5 + $0x18] sm:$0xff]  ;;  %14500 = vst.msk [vmem:[#allocation5 + $0x31] sm:$0xff] %vm11412_vm2, %v14498_v54  ;;  %v20153_v33 = vpop.f32.mrb[40].mxu1  ;;  %20194 = vmatprep.mubr.msk.f32.mxu1 %vm11412_vm2, %v14592_v22 }
 0xab4   : > { %v14504_v27 = vadd.f32 %v26682_v2, %v14502_v38  ;;  %14421 = vst.msk [vmem:[#allocation4 + $0x50] sm:$0xff] %vm11412_vm2, %v14393_v47  ;;  %v14396_v21 = vadd.f32 %v20153_v33, %v14135_v50  ;;  %v14304_v55 = vpop.f32.mrb[41].mxu1  ;;  %20195 = vmatmul.mubr.msk.f32.gmra.mrb[60].mxu1 %vm11412_vm2, %v14593_v51  ;;  %v14143_v49 = vld [vmem:[#allocation4 + $0xa8] sm:$0xff]  ;;  %v14142_v22 = vld [vmem:[#allocation4 + $0xa0] sm:$0xff] }
 0xab5   : > { %v14507_v3 = vmax.f32 %v14505_v62, 0.0  ;;  %v14395_v61 = vadd.f32 %v14304_v55, %v14134_v13 }
 0xab6   : > { %v14506_v24 = vmax.f32 %v14504_v27, 0.0  ;;  %v14511_v28 = vld [vmem:[#allocation4 + $0x48] sm:$0x3f]  ;;  %14424 = vst.msk [vmem:[#allocation4 + $0x68] sm:$0xff] %vm11412_vm2, %v14396_v21  ;;  %v14594_v20 = vld [vmem:[#allocation5 + $0x20] sm:$0xff] }
 0xab7   : > { %14509 = vst.msk [vmem:[#allocation5 + $0x49] sm:$0x3f] %vm11440_vm3, %v14507_v3  ;;  %v14513_v40 = vadd.f32 %v26682_v2, %v14511_v28  ;;  %v14510_v39 = vld [vmem:[#allocation4 + $0x40] sm:$0xff]  ;;  %v14595_v36 = vld [vmem:[#allocation5 + $0x28] sm:$0xff]  ;;  %v20156_v5 = vpop.f32.mrb[42].mxu1  ;;  %20197 = vmatprep.mubr.msk.f32.mxu1 %vm11412_vm2, %v14594_v20  ;;  %v14145_v28 = vld [vmem:[#allocation4 + $0xb8] sm:$0xff] }
 0xab8   : > { %14508 = vst.msk [vmem:[#allocation5 + $0x41] sm:$0xff] %vm11412_vm2, %v14506_v24  ;;  %v14512_v53 = vadd.f32 %v26682_v2, %v14510_v39  ;;  %14423 = vst.msk [vmem:[#allocation4 + $0x60] sm:$0xff] %vm11412_vm2, %v14395_v61  ;;  %v14398_v23 = vadd.f32 %v20156_v5, %v14137_v45  ;;  %v14314_v19 = vpop.f32.mrb[43].mxu1  ;;  %20198 = vmatmul.mubr.msk.f32.gmra.mrb[134].mxu1 %vm11412_vm2, %v14595_v36  ;;  %v14144_v20 = vld [vmem:[#allocation4 + $0xb0] sm:$0xff] }
 0xab9   : > { %v14515_v41 = vmax.f32 %v14513_v40, 0.0  ;;  %v14397_v29 = vadd.f32 %v14314_v19, %v14136_v6 }
 0xaba   : > { %v14514_v17 = vmax.f32 %v14512_v53, 0.0  ;;  %v14519_v63 = vld [vmem:[#allocation4 + $0x58] sm:$0x3f]  ;;  %14426 = vst.msk [vmem:[#allocation4 + $0x78] sm:$0xff] %vm11412_vm2, %v14398_v23  ;;  %v14596_v35 = vld [vmem:[#allocation5 + $0x30] sm:$0xff] }
 0xabb   : > { %14517 = vst.msk [vmem:[#allocation5 + $0x59] sm:$0x3f] %vm11440_vm3, %v14515_v41  ;;  %v14521_v26 = vadd.f32 %v26682_v2, %v14519_v63  ;;  %v14518_v30 = vld [vmem:[#allocation4 + $0x50] sm:$0xff]  ;;  %v14597_v18 = vld [vmem:[#allocation5 + $0x38] sm:$0xff]  ;;  %v20159_v42 = vpop.f32.mrb[44].mxu1  ;;  %20200 = vmatprep.mubr.msk.f32.mxu1 %vm11412_vm2, %v14596_v35  ;;  %v14147_v63 = vld [vmem:[#allocation4 + $0xc8] sm:$0xff] }
 0xabc   : > { %14516 = vst.msk [vmem:[#allocation5 + $0x51] sm:$0xff] %vm11412_vm2, %v14514_v17  ;;  %v14520_v43 = vadd.f32 %v26682_v2, %v14518_v30  ;;  %14425 = vst.msk [vmem:[#allocation4 + $0x70] sm:$0xff] %vm11412_vm2, %v14397_v29  ;;  %v14400_v12 = vadd.f32 %v20159_v42, %v14139_v25  ;;  %v14324_v58 = vpop.f32.mrb[45].mxu1  ;;  %20201 = vmatmul.mubr.msk.f32.gmra.mrb[136].mxu1 %vm11412_vm2, %v14597_v18  ;;  %v14146_v35 = vld [vmem:[#allocation4 + $0xc0] sm:$0xff] }
 0xabd   : > { %v14523_v34 = vmax.f32 %v14521_v26, 0.0  ;;  %v14527_v52 = vld [vmem:[#allocation4 + $0x68] sm:$0x3f]  ;;  %v14399_v4 = vadd.f32 %v14324_v58, %v14138_v14 }
 0xabe   : > { %v14522_v56 = vmax.f32 %v14520_v43, 0.0  ;;  %v14529_v60 = vadd.f32 %v26682_v2, %v14527_v52  ;;  %14428 = vst.msk [vmem:[#allocation4 + $0x88] sm:$0xff] %vm11412_vm2, %v14400_v12  ;;  %v14149_v52 = vld [vmem:[#allocation4 + $0xd8] sm:$0x3f] }
 0xabf   : > { %14525 = vst.msk [vmem:[#allocation5 + $0x69] sm:$0x3f] %vm11440_vm3, %v14523_v34  ;;  %v14526_v11 = vld [vmem:[#allocation4 + $0x60] sm:$0xff]  ;;  %v14599_v57 = vld [vmem:[#allocation5 + $0x48] sm:$0xff]  ;;  %v20162_v0 = vpop.f32.mrb[46].mxu1 }
 0xac0   : > { %v14598_v10 = vld [vmem:[#allocation5 + $0x40] sm:$0xff]  ;;  %14524 = vst.msk [vmem:[#allocation5 + $0x61] sm:$0xff] %vm11412_vm2, %v14522_v56  ;;  %v14528_v16 = vadd.f32 %v26682_v2, %v14526_v11  ;;  %14427 = vst.msk [vmem:[#allocation4 + $0x80] sm:$0xff] %vm11412_vm2, %v14399_v4  ;;  %v14531_v7 = vmax.f32 %v14529_v60, 0.0  ;;  %v14402_v32 = vadd.f32 %v20162_v0, %v14141_v31  ;;  %v14334_v44 = vpop.f32.mrb[47].mxu1 }
 0xac1   : > { %20203 = vmatprep.mubr.msk.f32.mxu1 %vm11412_vm2, %v14598_v10  ;;  %v14535_v9 = vld [vmem:[#allocation4 + $0x78] sm:$0x3f]  ;;  %v14401_v37 = vadd.f32 %v14334_v44, %v14140_v8  ;;  %v14148_v10 = vld [vmem:[#allocation4 + $0xd0] sm:$0xff] }
 0xac2   : > { %20204 = vmatmul.mubr.msk.f32.gmra.mrb[138].mxu1 %vm11412_vm2, %v14599_v57  ;;  %v14530_v48 = vmax.f32 %v14528_v16, 0.0  ;;  %14533 = vst.msk [vmem:[#allocation5 + $0x79] sm:$0x3f] %vm11440_vm3, %v14531_v7  ;;  %v14537_v46 = vadd.f32 %v26682_v2, %v14535_v9 }
 0xac3   : > { %v14534_v15 = vld [vmem:[#allocation4 + $0x70] sm:$0xff]  ;;  %14430 = vst.msk [vmem:[#allocation4 + $0x98] sm:$0xff] %vm11412_vm2, %v14402_v32  ;;  %v14601_v59 = vld [vmem:[#allocation5 + $0x58] sm:$0xff]  ;;  %14429 = vst.msk [vmem:[#allocation4 + $0x90] sm:$0xff] %vm11412_vm2, %v14401_v37  ;;  %v20165_v47 = vpop.f32.mrb[48].mxu1 }
 0xac4   : > { %v14600_v1 = vld [vmem:[#allocation5 + $0x50] sm:$0xff]  ;;  %14532 = vst.msk [vmem:[#allocation5 + $0x71] sm:$0xff] %vm11412_vm2, %v14530_v48  ;;  %v14536_v54 = vadd.f32 %v26682_v2, %v14534_v15  ;;  %v14539_v62 = vmax.f32 %v14537_v46, 0.0  ;;  %v14404_v38 = vadd.f32 %v20165_v47, %v14143_v49  ;;  %v14344_v51 = vpop.f32.mrb[49].mxu1 }
 0xac5   : > { %20206 = vmatprep.mubr.msk.f32.mxu1 %vm11412_vm2, %v14600_v1  ;;  %v14543_v50 = vld [vmem:[#allocation4 + $0x88] sm:$0x3f]  ;;  %v14403_v33 = vadd.f32 %v14344_v51, %v14142_v22 }
 0xac6   : > { %20207 = vmatmul.mubr.msk.f32.gmra.mrb[140].mxu1 %vm11412_vm2, %v14601_v59  ;;  %v14538_v27 = vmax.f32 %v14536_v54, 0.0  ;;  %14541 = vst.msk [vmem:[#allocation5 + $0x89] sm:$0x3f] %vm11440_vm3, %v14539_v62  ;;  %v14545_v3 = vadd.f32 %v26682_v2, %v14543_v50 }
 0xac7   : > { %v14542_v21 = vld [vmem:[#allocation4 + $0x80] sm:$0xff]  ;;  %14432 = vst.msk [vmem:[#allocation4 + $0xa8] sm:$0xff] %vm11412_vm2, %v14404_v38  ;;  %v14603_v55 = vld [vmem:[#allocation5 + $0x68] sm:$0xff]  ;;  %14431 = vst.msk [vmem:[#allocation4 + $0xa0] sm:$0xff] %vm11412_vm2, %v14403_v33  ;;  %v20168_v61 = vpop.f32.mrb[50].mxu1 }
 0xac8   : > { %v14602_v13 = vld [vmem:[#allocation5 + $0x60] sm:$0xff]  ;;  %14540 = vst.msk [vmem:[#allocation5 + $0x81] sm:$0xff] %vm11412_vm2, %v14538_v27  ;;  %v14544_v24 = vadd.f32 %v26682_v2, %v14542_v21  ;;  %v14547_v40 = vmax.f32 %v14545_v3, 0.0  ;;  %v14406_v39 = vadd.f32 %v20168_v61, %v14145_v28  ;;  %v14354_v36 = vpop.f32.mrb[51].mxu1 }
 0xac9   : > { %20209 = vmatprep.mubr.msk.f32.mxu1 %vm11412_vm2, %v14602_v13  ;;  %v14405_v5 = vadd.f32 %v14354_v36, %v14144_v20  ;;  %v26798_v20 = vld [vmem:[%s26879_s6] ss:$0 sm:$0xff] }
 0xaca   : > { %20210 = vmatmul.mubr.msk.f32.gmra.mrb[142].mxu1 %vm11412_vm2, %v14603_v55  ;;  %v14546_v53 = vmax.f32 %v14544_v24, 0.0  ;;  %v14551_v45 = vld [vmem:[#allocation4 + $0x98] sm:$0x3f]  ;;  %14549 = vst.msk [vmem:[#allocation5 + $0x99] sm:$0x3f] %vm11440_vm3, %v14547_v40  ;;  %v14550_v23 = vld [vmem:[#allocation4 + $0x90] sm:$0xff] }
 0xacb   : > { %v14553_v41 = vadd.f32 %v26682_v2, %v14551_v45  ;;  %14434 = vst.msk [vmem:[#allocation4 + $0xb8] sm:$0xff] %vm11412_vm2, %v14406_v39  ;;  %v14604_v6 = vld [vmem:[#allocation5 + $0x70] sm:$0xff]  ;;  %v14605_v19 = vld [vmem:[#allocation5 + $0x78] sm:$0xff]  ;;  %v14552_v17 = vadd.f32 %v26682_v2, %v14550_v23  ;;  %14433 = vst.msk [vmem:[#allocation4 + $0xb0] sm:$0xff] %vm11412_vm2, %v14405_v5  ;;  %v20171_v29 = vpop.f32.mrb[52].mxu1 }
 0xacc   : > { %14548 = vst.msk [vmem:[#allocation5 + $0x91] sm:$0xff] %vm11412_vm2, %v14546_v53  ;;  %20212 = vmatprep.mubr.msk.f32.mxu1 %vm11412_vm2, %v14604_v6  ;;  %v14408_v30 = vadd.f32 %v20171_v29, %v14147_v63  ;;  %v14364_v18 = vpop.f32.mrb[53].mxu1  ;;  %v14620_v40 = vld [vmem:[#allocation5 + $0xf0] sm:$0xff]  ;;  %v14621_v39 = vld [vmem:[#allocation5 + $0xf8] sm:$0xff] }
 0xacd   : > { %v14555_v26 = vmax.f32 %v14553_v41, 0.0  ;;  %v14554_v43 = vmax.f32 %v14552_v17, 0.0  ;;  %v14407_v42 = vadd.f32 %v14364_v18, %v14146_v35 }
 0xace   : > { %20213 = vmatmul.mubr.msk.f32.gmra.mrb[144].mxu1 %vm11412_vm2, %v14605_v19  ;;  %v14559_v25 = vld [vmem:[#allocation4 + $0xa8] sm:$0x3f]  ;;  %v14558_v12 = vld [vmem:[#allocation4 + $0xa0] sm:$0xff]  ;;  %14436 = vst.msk [vmem:[#allocation4 + $0xc8] sm:$0xff] %vm11412_vm2, %v14408_v30 }
 0xacf   : > { %14557 = vst.msk [vmem:[#allocation5 + $0xa9] sm:$0x3f] %vm11440_vm3, %v14555_v26  ;;  %v14561_v34 = vadd.f32 %v26682_v2, %v14559_v25  ;;  %v14606_v14 = vld [vmem:[#allocation5 + $0x80] sm:$0xff]  ;;  %v14607_v58 = vld [vmem:[#allocation5 + $0x88] sm:$0xff]  ;;  %v14560_v56 = vadd.f32 %v26682_v2, %v14558_v12  ;;  %v20174_v4 = vpop.f32.mrb[56].mxu1 }
 0xad0   : > { %14556 = vst.msk [vmem:[#allocation5 + $0xa1] sm:$0xff] %vm11412_vm2, %v14554_v43  ;;  %14435 = vst.msk [vmem:[#allocation4 + $0xc0] sm:$0xff] %vm11412_vm2, %v14407_v42  ;;  %20215 = vmatprep.mubr.msk.f32.mxu1 %vm11412_vm2, %v14606_v14  ;;  %v14410_v11 = vadd.f32 %v20174_v4, %v14149_v52  ;;  %v14374_v57 = vpop.f32.mrb[57].mxu1 }
 0xad1   : > { %v14563_v60 = vmax.f32 %v14561_v34, 0.0  ;;  %v14562_v16 = vmax.f32 %v14560_v56, 0.0  ;;  %v14409_v0 = vadd.f32 %v14374_v57, %v14148_v10 }
 0xad2   : > { %20216 = vmatmul.mubr.msk.f32.gmra.mrb[146].mxu1 %vm11412_vm2, %v14607_v58  ;;  %v14567_v31 = vld [vmem:[#allocation4 + $0xb8] sm:$0x3f]  ;;  %v14566_v32 = vld [vmem:[#allocation4 + $0xb0] sm:$0xff]  ;;  %14438 = vst.msk [vmem:[#allocation4 + $0xd8] sm:$0x3f] %vm11440_vm3, %v14410_v11 }
 0xad3   : > { %14565 = vst.msk [vmem:[#allocation5 + $0xb9] sm:$0x3f] %vm11440_vm3, %v14563_v60  ;;  %v14569_v7 = vadd.f32 %v26682_v2, %v14567_v31  ;;  %v14608_v8 = vld [vmem:[#allocation5 + $0x90] sm:$0xff]  ;;  %v14609_v44 = vld [vmem:[#allocation5 + $0x98] sm:$0xff]  ;;  %v14568_v48 = vadd.f32 %v26682_v2, %v14566_v32 }
 0xad4   : > { %14564 = vst.msk [vmem:[#allocation5 + $0xb1] sm:$0xff] %vm11412_vm2, %v14562_v16  ;;  %14437 = vst.msk [vmem:[#allocation4 + $0xd0] sm:$0xff] %vm11412_vm2, %v14409_v0  ;;  %20218 = vmatprep.mubr.msk.f32.mxu1 %vm11412_vm2, %v14608_v8 }
 0xad5   : > { %v14571_v9 = vmax.f32 %v14569_v7, 0.0  ;;  %v14570_v37 = vmax.f32 %v14568_v48, 0.0  ;;  %v14575_v46 = vld [vmem:[#allocation4 + $0xc8] sm:$0x3f] }
 0xad6   : > { %20219 = vmatmul.mubr.msk.f32.gmra.mrb[148].mxu1 %vm11412_vm2, %v14609_v44  ;;  %v14577_v15 = vadd.f32 %v26682_v2, %v14575_v46 }
 0xad7   : > { %14573 = vst.msk [vmem:[#allocation5 + $0xc9] sm:$0x3f] %vm11440_vm3, %v14571_v9  ;;  %v14574_v1 = vld [vmem:[#allocation4 + $0xc0] sm:$0xff]  ;;  %v14611_v54 = vld [vmem:[#allocation5 + $0xa8] sm:$0xff] }
 0xad8   : > { %v14610_v59 = vld [vmem:[#allocation5 + $0xa0] sm:$0xff]  ;;  %14572 = vst.msk [vmem:[#allocation5 + $0xc1] sm:$0xff] %vm11412_vm2, %v14570_v37  ;;  %v14576_v49 = vadd.f32 %v26682_v2, %v14574_v1  ;;  %v14579_v47 = vmax.f32 %v14577_v15, 0.0 }
 0xad9   : > { %20221 = vmatprep.mubr.msk.f32.mxu1 %vm11412_vm2, %v14610_v59  ;;  %v14583_v38 = vld [vmem:[#allocation4 + $0xd8] sm:$0x3f] }
 0xada   : > { %20222 = vmatmul.mubr.msk.f32.gmra.mrb[150].mxu1 %vm11412_vm2, %v14611_v54  ;;  %v14578_v62 = vmax.f32 %v14576_v49, 0.0  ;;  %14581 = vst.msk [vmem:[#allocation5 + $0xd9] sm:$0x3f] %vm11440_vm3, %v14579_v47  ;;  %v14585_v50 = vadd.f32 %v26682_v2, %v14583_v38 }
 0xadb   : > { %v14582_v22 = vld [vmem:[#allocation4 + $0xd0] sm:$0xff]  ;;  %v14613_v27 = vld [vmem:[#allocation5 + $0xb8] sm:$0xff] }
 0xadc   : > { %v14612_v51 = vld [vmem:[#allocation5 + $0xb0] sm:$0xff]  ;;  %14580 = vst.msk [vmem:[#allocation5 + $0xd1] sm:$0xff] %vm11412_vm2, %v14578_v62  ;;  %v14584_v33 = vadd.f32 %v26682_v2, %v14582_v22  ;;  %v14587_v3 = vmax.f32 %v14585_v50, 0.0 }
 0xadd   : > { %20224 = vmatprep.mubr.msk.f32.mxu1 %vm11412_vm2, %v14612_v51 }
 0xade   : > { %20225 = vmatmul.mubr.msk.f32.gmra.mrb[152].mxu1 %vm11412_vm2, %v14613_v27  ;;  %v14586_v21 = vmax.f32 %v14584_v33, 0.0  ;;  %14589 = vst.msk [vmem:[#allocation5 + $0xe9] sm:$0x3f] %vm11440_vm3, %v14587_v3 }
 0xadf   : > { %v14614_v13 = vld [vmem:[#allocation5 + $0xc0] sm:$0xff]  ;;  %v14615_v55 = vld [vmem:[#allocation5 + $0xc8] sm:$0xff] }
 0xae0   : > { %14588 = vst.msk [vmem:[#allocation5 + $0xe1] sm:$0xff] %vm11412_vm2, %v14586_v21  ;;  %20227 = vmatprep.mubr.msk.f32.mxu1 %vm11412_vm2, %v14614_v13 }
 0xae2   : > { %20228 = vmatmul.mubr.msk.f32.gmra.mrb[154].mxu1 %vm11412_vm2, %v14615_v55 }
 0xae3   : > { %v14616_v24 = vld [vmem:[#allocation5 + $0xd0] sm:$0xff]  ;;  %v14617_v28 = vld [vmem:[#allocation5 + $0xd8] sm:$0xff] }
 0xae4   : > { %20230 = vmatprep.mubr.msk.f32.mxu1 %vm11412_vm2, %v14616_v24 }
 0xae5   : > { %v20193_v36 = vpop.f32.mrb[58].mxu1 }
 0xae6   : > { %20231 = vmatmul.mubr.msk.f32.gmra.mrb[156].mxu1 %vm11412_vm2, %v14617_v28  ;;  %v14805_v53 = vadd.f32 %v20193_v36, %v26798_v20  ;;  %v14799_v45 = vpop.f32.mrb[59].mxu1 }
 0xae7   : > { %v14618_v2 = vld [vmem:[#allocation5 + $0xe0] sm:$0xff]  ;;  %v14619_v61 = vld [vmem:[#allocation5 + $0xe8] sm:$0xff]  ;;  %v14800_v5 = vadd.f32 %v26798_v20, %v14799_v45 }
 0xae8   : > { %20233 = vmatprep.mubr.msk.f32.mxu1 %vm11412_vm2, %v14618_v2  ;;  %v14959_v41 = vmax.f32 %v14805_v53, 0.0 }
 0xae9   : > { %v14958_v23 = vmax.f32 %v14800_v5, 0.0 }
 0xaea   : > { %20234 = vmatmul.mubr.msk.f32.gmra.mrb[158].mxu1 %vm11412_vm2, %v14619_v61  ;;  %14991 = vst [vmem:[%s26805_s17 + $0x8] sm:$0xff] %v14959_v41 }
 0xaeb   : > { %20236 = vmatprep.mubr.msk.f32.mxu1 %vm11412_vm2, %v14620_v40  ;;  %14990 = vst [vmem:[%s26805_s17] sm:$0xff] %v14958_v23 }
 0xaee   : > { %20237 = vmatmul.mubr.msk.f32.gmra.mrb[160].mxu1 %vm11412_vm2, %v14621_v39 }
 0xb87   : > { %v20196_v6 = vpop.f32.mrb[60].mxu1 }
 0xb88   : > { %v14815_v19 = vadd.f32 %v20196_v6, %v26798_v20  ;;  %v14809_v17 = vpop.f32.mrb[61].mxu1 }
 0xb89   : > { %v14810_v63 = vadd.f32 %v26798_v20, %v14809_v17 }
 0xb8a   : > { %v14961_v29 = vmax.f32 %v14815_v19, 0.0 }
 0xb8b   : > { %v14960_v26 = vmax.f32 %v14810_v63, 0.0  ;;  %v20199_v30 = vpop.f32.mrb[134].mxu1 }
 0xb8c   : > { %14993 = vst [vmem:[%s26805_s17 + $0x18] sm:$0xff] %v14961_v29  ;;  %v14825_v35 = vadd.f32 %v20199_v30, %v26798_v20  ;;  %v14819_v18 = vpop.f32.mrb[135].mxu1 }
 0xb8d   : > { %14992 = vst [vmem:[%s26805_s17 + $0x10] sm:$0xff] %v14960_v26  ;;  %v14820_v43 = vadd.f32 %v26798_v20, %v14819_v18 }
 0xb8e   : > { %v14963_v25 = vmax.f32 %v14825_v35, 0.0 }
 0xb8f   : > { %v14962_v42 = vmax.f32 %v14820_v43, 0.0  ;;  %v20202_v34 = vpop.f32.mrb[136].mxu1 }
 0xb90   : > { %14995 = vst [vmem:[%s26805_s17 + $0x28] sm:$0xff] %v14963_v25  ;;  %v14835_v12 = vadd.f32 %v20202_v34, %v26798_v20  ;;  %v14829_v14 = vpop.f32.mrb[137].mxu1 }
 0xb91   : > { %14994 = vst [vmem:[%s26805_s17 + $0x20] sm:$0xff] %v14962_v42  ;;  %v14830_v58 = vadd.f32 %v26798_v20, %v14829_v14 }
 0xb92   : > { %v14965_v56 = vmax.f32 %v14835_v12, 0.0 }
 0xb93   : > { %v14964_v52 = vmax.f32 %v14830_v58, 0.0 }
 0xb94   : > { %14997 = vst [vmem:[%s26805_s17 + $0x38] sm:$0xff] %v14965_v56 }
 0xb95   : > { %v20205_v4 = vpop.f32.mrb[138].mxu1  ;;  %14996 = vst [vmem:[%s26805_s17 + $0x30] sm:$0xff] %v14964_v52 }
 0xb96   : > { %v14845_v60 = vadd.f32 %v20205_v4, %v26798_v20  ;;  %v14839_v11 = vpop.f32.mrb[139].mxu1 }
 0xb97   : > { %v14840_v10 = vadd.f32 %v26798_v20, %v14839_v11 }
 0xb98   : > { %v14967_v57 = vmax.f32 %v14845_v60, 0.0 }
 0xb99   : > { %v14966_v16 = vmax.f32 %v14840_v10, 0.0  ;;  %v20208_v31 = vpop.f32.mrb[140].mxu1 }
 0xb9a   : > { %14999 = vst [vmem:[%s26805_s17 + $0x48] sm:$0xff] %v14967_v57  ;;  %v14855_v0 = vadd.f32 %v20208_v31, %v26798_v20  ;;  %v14849_v7 = vpop.f32.mrb[141].mxu1 }
 0xb9b   : > { %14998 = vst [vmem:[%s26805_s17 + $0x40] sm:$0xff] %v14966_v16  ;;  %v14850_v32 = vadd.f32 %v26798_v20, %v14849_v7 }
 0xb9c   : > { %v14969_v8 = vmax.f32 %v14855_v0, 0.0 }
 0xb9d   : > { %v14968_v44 = vmax.f32 %v14850_v32, 0.0  ;;  %v20211_v48 = vpop.f32.mrb[142].mxu1 }
 0xb9e   : > { %15001 = vst [vmem:[%s26805_s17 + $0x58] sm:$0xff] %v14969_v8  ;;  %v14865_v9 = vadd.f32 %v20211_v48, %v26798_v20  ;;  %v14859_v37 = vpop.f32.mrb[143].mxu1 }
 0xb9f   : > { %15000 = vst [vmem:[%s26805_s17 + $0x50] sm:$0xff] %v14968_v44  ;;  %v14860_v46 = vadd.f32 %v26798_v20, %v14859_v37 }
 0xba0   : > { %v14971_v15 = vmax.f32 %v14865_v9, 0.0 }
 0xba1   : > { %v14970_v1 = vmax.f32 %v14860_v46, 0.0  ;;  %v20214_v59 = vpop.f32.mrb[144].mxu1 }
 0xba2   : > { %15003 = vst [vmem:[%s26805_s17 + $0x68] sm:$0xff] %v14971_v15  ;;  %v14875_v54 = vadd.f32 %v20214_v59, %v26798_v20  ;;  %v14869_v49 = vpop.f32.mrb[145].mxu1 }
 0xba3   : > { %15002 = vst [vmem:[%s26805_s17 + $0x60] sm:$0xff] %v14970_v1  ;;  %v14870_v47 = vadd.f32 %v26798_v20, %v14869_v49 }
 0xba4   : > { %v14973_v62 = vmax.f32 %v14875_v54, 0.0 }
 0xba5   : > { %v14972_v38 = vmax.f32 %v14870_v47, 0.0  ;;  %v20217_v22 = vpop.f32.mrb[146].mxu1 }
 0xba6   : > { %15005 = vst [vmem:[%s26805_s17 + $0x78] sm:$0xff] %v14973_v62  ;;  %v14885_v51 = vadd.f32 %v20217_v22, %v26798_v20  ;;  %v14879_v27 = vpop.f32.mrb[147].mxu1 }
 0xba7   : > { %15004 = vst [vmem:[%s26805_s17 + $0x70] sm:$0xff] %v14972_v38  ;;  %v14880_v50 = vadd.f32 %v26798_v20, %v14879_v27 }
 0xba8   : > { %v14975_v33 = vmax.f32 %v14885_v51, 0.0 }
 0xba9   : > { %v14974_v3 = vmax.f32 %v14880_v50, 0.0  ;;  %v20220_v21 = vpop.f32.mrb[148].mxu1 }
 0xbaa   : > { %15007 = vst [vmem:[%s26805_s17 + $0x88] sm:$0xff] %v14975_v33  ;;  %v14895_v13 = vadd.f32 %v20220_v21, %v26798_v20  ;;  %v14889_v55 = vpop.f32.mrb[149].mxu1 }
 0xbab   : > { %15006 = vst [vmem:[%s26805_s17 + $0x80] sm:$0xff] %v14974_v3  ;;  %v14890_v24 = vadd.f32 %v26798_v20, %v14889_v55 }
 0xbac   : > { %v14977_v28 = vmax.f32 %v14895_v13, 0.0 }
 0xbad   : > { %v14976_v2 = vmax.f32 %v14890_v24, 0.0  ;;  %v20223_v61 = vpop.f32.mrb[150].mxu1 }
 0xbae   : > { %15009 = vst [vmem:[%s26805_s17 + $0x98] sm:$0xff] %v14977_v28  ;;  %v14905_v40 = vadd.f32 %v20223_v61, %v26798_v20  ;;  %v14899_v39 = vpop.f32.mrb[151].mxu1 }
 0xbaf   : > { %15008 = vst [vmem:[%s26805_s17 + $0x90] sm:$0xff] %v14976_v2  ;;  %v14900_v36 = vadd.f32 %v26798_v20, %v14899_v39 }
 0xbb0   : > { %v14979_v53 = vmax.f32 %v14905_v40, 0.0 }
 0xbb1   : > { %v14978_v45 = vmax.f32 %v14900_v36, 0.0  ;;  %v20226_v5 = vpop.f32.mrb[152].mxu1 }
 0xbb2   : > { %15011 = vst [vmem:[%s26805_s17 + $0xa8] sm:$0xff] %v14979_v53  ;;  %v14915_v41 = vadd.f32 %v20226_v5, %v26798_v20  ;;  %v14909_v23 = vpop.f32.mrb[153].mxu1 }
 0xbb3   : > { %15010 = vst [vmem:[%s26805_s17 + $0xa0] sm:$0xff] %v14978_v45  ;;  %v14910_v6 = vadd.f32 %v26798_v20, %v14909_v23 }
 0xbb4   : > { %v14981_v19 = vmax.f32 %v14915_v41, 0.0 }
 0xbb5   : > { %v14980_v17 = vmax.f32 %v14910_v6, 0.0  ;;  %v20229_v63 = vpop.f32.mrb[154].mxu1 }
 0xbb6   : > { %15013 = vst [vmem:[%s26805_s17 + $0xb8] sm:$0xff] %v14981_v19  ;;  %v14925_v29 = vadd.f32 %v20229_v63, %v26798_v20  ;;  %v14919_v26 = vpop.f32.mrb[155].mxu1 }
 0xbb7   : > { %15012 = vst [vmem:[%s26805_s17 + $0xb0] sm:$0xff] %v14980_v17  ;;  %v14920_v30 = vadd.f32 %v26798_v20, %v14919_v26 }
 0xbb8   : > { %v14983_v35 = vmax.f32 %v14925_v29, 0.0 }
 0xbb9   : > { %v14982_v18 = vmax.f32 %v14920_v30, 0.0  ;;  %v20232_v43 = vpop.f32.mrb[156].mxu1 }
 0xbba   : > { %15015 = vst [vmem:[%s26805_s17 + $0xc8] sm:$0xff] %v14983_v35  ;;  %v14935_v25 = vadd.f32 %v20232_v43, %v26798_v20  ;;  %v14929_v42 = vpop.f32.mrb[157].mxu1 }
 0xbbb   : > { %15014 = vst [vmem:[%s26805_s17 + $0xc0] sm:$0xff] %v14982_v18  ;;  %v14930_v34 = vadd.f32 %v26798_v20, %v14929_v42 }
 0xbbc   : > { %v14985_v12 = vmax.f32 %v14935_v25, 0.0 }
 0xbbd   : > { %v14984_v14 = vmax.f32 %v14930_v34, 0.0  ;;  %v20235_v58 = vpop.f32.mrb[158].mxu1 }
 0xbbe   : > { %15017 = vst [vmem:[%s26805_s17 + $0xd8] sm:$0xff] %v14985_v12  ;;  %v14945_v56 = vadd.f32 %v20235_v58, %v26798_v20  ;;  %v14939_v52 = vpop.f32.mrb[159].mxu1 }
 0xbbf   : > { %15016 = vst [vmem:[%s26805_s17 + $0xd0] sm:$0xff] %v14984_v14  ;;  %v14940_v4 = vadd.f32 %v26798_v20, %v14939_v52 }
 0xbc0   : > { %v14987_v60 = vmax.f32 %v14945_v56, 0.0 }
 0xbc1   : > { %v14986_v11 = vmax.f32 %v14940_v4, 0.0  ;;  %v20238_v10 = vpop.f32.mrb[160].mxu1 }
 0xbc2   : > { %15019 = vst [vmem:[%s26805_s17 + $0xe8] sm:$0xff] %v14987_v60  ;;  %v14955_v57 = vadd.f32 %v20238_v10, %v26798_v20  ;;  %v14949_v16 = vpop.f32.mrb[161].mxu1 }
 0xbc3   : > { %15018 = vst [vmem:[%s26805_s17 + $0xe0] sm:$0xff] %v14986_v11  ;;  %v14950_v31 = vadd.f32 %v26798_v20, %v14949_v16 }
 0xbc4   : > { %v14989_v0 = vmax.f32 %v14955_v57, 0.0 }
 0xbc5   : > { %v14988_v7 = vmax.f32 %v14950_v31, 0.0 }
 0xbc6   : > { %15021 = vst [vmem:[%s26805_s17 + $0xf8] sm:$0xff] %v14989_v0 }
 0xbc7   : > { %15020 = vst [vmem:[%s26805_s17 + $0xf0] sm:$0xff] %v14988_v7 }
 0xbc8 PF: > { %s17_s24 = sadd.s32 1, %s21971_s24  }
 0xbc9   : > { %p14_p4 = scmp.ge.s32.totalorder %s17_s24, 4  }
 0xbcb   :  { %16 = sbr.rel (!%p14_p4) target bundleno = 1 (0x1), region = 78 }

</bundles_post_ra>
